<compile_context>
chip_gen: v7x
topology: tpu7x:2x2x1
jax: 0.10.0
libtpu: 0.0.40
codegen_flags: <defaults>
</compile_context>

<pallas_src>
import numpy as np

import jax
import jax.numpy as jnp
from jax.experimental import pallas as pl
from jax.experimental.pallas import tpu as pltpu


def _rup8(v):
    """Round up to a multiple of 8 (minimum 8)."""
    return max(8, ((int(v) + 7) // 8) * 8)


class _Packer:
    """Collects same-shaped f32 matrices into stacked 3-D Pallas operands."""

    def __init__(self):
        self._groups = {}
        self._order = []
        self.pos = None

    def add(self, arr):
        arr = np.ascontiguousarray(np.asarray(arr, np.float32))
        key = arr.shape
        if key not in self._groups:
            self._groups[key] = []
            self._order.append(key)
        idx = len(self._groups[key])
        self._groups[key].append(arr)
        return (key, idx)

    def finalize(self):
        self.pos = {k: i for i, k in enumerate(self._order)}
        return [jnp.asarray(np.stack(self._groups[k], axis=0))
                for k in self._order]


def _conv_sel(n_in, n_out, stride, pad, dil, tap):
    """S[i_in, i_out] = 1 iff i_in == i_out*stride + tap*dil - pad."""
    m = np.zeros((n_in, n_out), np.float32)
    for o in range(n_out):
        i = o * stride + tap * dil - pad
        if 0 <= i < n_in:
            m[i, o] = 1.0
    return m


def _deconv_sel(n_in, n_out, stride, pad, tap):
    """S[i_in, i_out] = 1 iff i_out == i_in*stride - pad + tap."""
    m = np.zeros((n_in, n_out), np.float32)
    for i in range(n_in):
        o = i * stride - pad + tap
        if 0 <= o < n_out:
            m[i, o] = 1.0
    return m


def _make_conv(pk, rng, batch, cin, cout, k, hin, win, *, stride=1, padding=0,
               dilation=1, output_padding=0, deconv=False, prelu=True,
               bias=True):
    """Pre-pack one Conv_BN_ReLU (Conv2d/ConvTranspose2d + BN(eval) + PReLU)."""
    if deconv:  # PyTorch ConvTranspose2d weight layout: (Cin, Cout, kh, kw)
        wgt = 0.1 * rng.standard_normal((cin, cout, k, k)).astype(np.float32)
        hout = (hin - 1) * stride - 2 * padding + k + output_padding
        wout = (win - 1) * stride - 2 * padding + k + output_padding
    else:       # Conv2d weight layout: (Cout, Cin, kh, kw)
        wgt = 0.1 * rng.standard_normal((cout, cin, k, k)).astype(np.float32)
        hout = (hin + 2 * padding - dilation * (k - 1) - 1) // stride + 1
        wout = (win + 2 * padding - dilation * (k - 1) - 1) // stride + 1
    conv_b = (0.1 * rng.standard_normal(cout).astype(np.float32)
              if bias else np.zeros(cout, np.float32))
    gamma = 1.0 + 0.1 * rng.standard_normal(cout).astype(np.float32)
    beta = 0.1 * rng.standard_normal(cout).astype(np.float32)
    mean = 0.1 * rng.standard_normal(cout).astype(np.float32)
    var = 1.0 + np.abs(0.1 * rng.standard_normal(cout)).astype(np.float32)
    scale = gamma / np.sqrt(var + 1e-5)
    bias_f = (conv_b - mean) * scale + beta
    wf = wgt * (scale[None, :, None, None] if deconv
                else scale[:, None, None, None])

    lanes_in, lanes_out = _rup8(cin * hin), _rup8(cout * hout)
    rows_in, rows_out = _rup8(batch * win), _rup8(batch * wout)

    taps = []
    for j in range(k):
        cj = (_deconv_sel(win, wout, stride, padding, j) if deconv
              else _conv_sel(win, wout, stride, padding, dilation, j))
        if not cj.any():
            continue
        a_blk = np.zeros((cin * hin, cout * hout), np.float32)
        for i in range(k):
            ri = (_deconv_sel(hin, hout, stride, padding, i) if deconv
                  else _conv_sel(hin, hout, stride, padding, dilation, i))
            if not ri.any():
                continue
            wt = wf[:, :, i, j] if deconv else wf[:, :, i, j].T  # (cin, cout)
            a_blk += np.kron(wt, ri)
        if not a_blk.any():
            continue
        a_pad = np.zeros((lanes_in, lanes_out), np.float32)
        a_pad[:cin * hin, :cout * hout] = a_blk
        a_h = pk.add(a_pad)

        b_blk = np.kron(np.eye(batch, dtype=np.float32), cj.T)
        if (win == wout
                and np.array_equal(b_blk,
                                   np.eye(batch * win, dtype=np.float32))):
            b_h = None  # horizontal tap is the identity -> skip the matmul
        else:
            b_pad = np.zeros((rows_out, rows_in), np.float32)
            b_pad[:batch * wout, :batch * win] = b_blk
            b_h = pk.add(b_pad)
        taps.append((a_h, b_h))

    bias_row = np.zeros((1, lanes_out), np.float32)
    bias_row[0, :cout * hout] = np.repeat(bias_f, hout)
    return dict(taps=taps, bias=pk.add(bias_row),
                alpha=(0.25 if prelu else None), hout=hout, wout=wout)


def _make_bottleneck(pk, rng, batch, in_c, out_c, h, w, flag=None,
                     output_padding=0, dilation=1):
    temp = in_c // 2
    p = {'prelu': 0.25}
    p['conv1'] = _make_conv(pk, rng, batch, in_c, temp, 1, h, w,
                            prelu=True, bias=False)
    if flag is None:
        p['conv2'] = _make_conv(pk, rng, batch, temp, temp, 3, h, w,
                                stride=1, padding=dilation, dilation=dilation,
                                prelu=True, bias=True)
        p['residual'] = _make_conv(pk, rng, batch, in_c, out_c, 1, h, w,
                                   prelu=False, bias=False)
    elif flag == 'down':
        p['conv2'] = _make_conv(pk, rng, batch, temp, temp, 3, h, w,
                                stride=2, padding=1, prelu=True, bias=True)
        p['residual'] = _make_conv(pk, rng, batch, in_c, out_c, 3, h, w,
                                   stride=2, padding=1, prelu=True, bias=True)
    elif flag == 'up':
        p['conv2'] = _make_conv(pk, rng, batch, temp, temp, 3, h, w,
                                stride=2, padding=1,
                                output_padding=output_padding, deconv=True,
                                prelu=True, bias=True)
        p['residual'] = _make_conv(pk, rng, batch, in_c, out_c, 3, h, w,
                                   stride=2, padding=1,
                                   output_padding=output_padding, deconv=True,
                                   prelu=True, bias=True)
    else:
        raise AssertionError("flag should be 'up', 'down' or None")
    hm, wm = p['conv2']['hout'], p['conv2']['wout']
    p['conv3'] = _make_conv(pk, rng, batch, temp, out_c, 1, hm, wm,
                            prelu=False, bias=True)
    p['hout'], p['wout'] = hm, wm
    return p


def _make_hourglass(pk, rng, batch, in_c, h, w, output_padding=(1, 1, 1, 1)):
    out_c = in_c
    hp = {}
    hp['down1'] = _make_bottleneck(pk, rng, batch, in_c, out_c, h, w, 'down')
    h1, w1 = hp['down1']['hout'], hp['down1']['wout']
    hp['down2'] = _make_bottleneck(pk, rng, batch, out_c, out_c, h1, w1, 'down')
    h2, w2 = hp['down2']['hout'], hp['down2']['wout']
    hp['down3'] = _make_bottleneck(pk, rng, batch, out_c, out_c, h2, w2, 'down')
    h3, w3 = hp['down3']['hout'], hp['down3']['wout']
    hp['down4'] = _make_bottleneck(pk, rng, batch, out_c, out_c, h3, w3, 'down')
    h4, w4 = hp['down4']['hout'], hp['down4']['wout']
    hp['same'] = [_make_bottleneck(pk, rng, batch, out_c, out_c, h4, w4, None)
                  for _ in range(3)]
    hp['up4'] = _make_bottleneck(pk, rng, batch, out_c, out_c, h4, w4, 'up',
                                 output_padding[3])
    hu4, wu4 = hp['up4']['hout'], hp['up4']['wout']
    hp['up3'] = _make_bottleneck(pk, rng, batch, out_c, out_c, hu4, wu4, 'up',
                                 output_padding[2])
    hu3, wu3 = hp['up3']['hout'], hp['up3']['wout']
    hp['up2'] = _make_bottleneck(pk, rng, batch, out_c, out_c, hu3, wu3, 'up',
                                 output_padding[1])
    hu2, wu2 = hp['up2']['hout'], hp['up2']['wout']
    hp['up1'] = _make_bottleneck(pk, rng, batch, out_c, out_c, hu2, wu2, 'up',
                                 output_padding[0])
    hp['residual1'] = _make_bottleneck(pk, rng, batch, in_c, out_c, h, w, None)
    hp['residual2'] = _make_bottleneck(pk, rng, batch, out_c, out_c, h1, w1, None)
    hp['residual3'] = _make_bottleneck(pk, rng, batch, out_c, out_c, h2, w2, None)
    hp['residual4'] = _make_bottleneck(pk, rng, batch, out_c, out_c, h3, w3, None)
    return hp


def build_hourglass(batch=2, in_c=8, height=16, width=16, seed=0):
    """Returns (forward_fn, packed_param_stacks).

    forward_fn(x_nchw, param_stacks) -> y_nchw with the whole Hourglass
    forward fused into a single Pallas TPU kernel.
    """
    rng = np.random.default_rng(seed)
    pk = _Packer()
    net = _make_hourglass(pk, rng, batch, in_c, height, width)
    stacks = pk.finalize()
    pos = pk.pos
    n_groups = len(stacks)
    out_rows = batch * width        # final activation rows  = (n, w)
    out_lanes = in_c * height       # final activation lanes = (c, h) = 128

    def kernel(*refs):
        x_ref = refs[0]
        p_refs = refs[1:1 + n_groups]
        o_ref = refs[1 + n_groups]

        def fetch(handle):
            key, idx = handle
            val = p_refs[pos[key]][idx]
            return val.reshape(val.shape[-2], val.shape[-1])

        def conv(x, layer):
            acc = None
            for a_h, b_h in layer['taps']:
                t = x if b_h is None else jnp.dot(
                    fetch(b_h), x, preferred_element_type=jnp.float32)
                y = jnp.dot(t, fetch(a_h), preferred_element_type=jnp.float32)
                acc = y if acc is None else acc + y
            acc = acc + fetch(layer['bias'])
            if layer['alpha'] is not None:                      # PReLU
                acc = jnp.where(acc >= 0.0, acc, layer['alpha'] * acc)
            return acc

        def bottleneck(x, p):
            r = conv(x, p['residual'])          # residual branch
            y = conv(x, p['conv1'])
            y = conv(y, p['conv2'])
            y = conv(y, p['conv3'])             # Dropout2d(p=0) == identity
            y = y + r
            return jnp.where(y >= 0.0, y, p['prelu'] * y)

        x = x_ref[...]
        out1 = bottleneck(x, net['down1'])
        out2 = bottleneck(out1, net['down2'])
        out3 = bottleneck(out2, net['down3'])
        out4 = bottleneck(out3, net['down4'])
        out = out4
        for p in net['same']:
            out = bottleneck(out, p)
        out = bottleneck(out, net['up4']) + bottleneck(out3, net['residual4'])
        out = bottleneck(out, net['up3']) + bottleneck(out2, net['residual3'])
        out = bottleneck(out, net['up2']) + bottleneck(out1, net['residual2'])
        out = bottleneck(out, net['up1']) + bottleneck(x, net['residual1'])
        o_ref[...] = out

    def forward(x_nchw, param_stacks):
        # NCHW -> rows=(n, w), lanes=(c, h); lanes are 128-wide at full res.
        x2d = jnp.transpose(x_nchw.astype(jnp.float32), (0, 3, 1, 2)).reshape(
            batch * width, in_c * height)
        args = [x2d] + list(param_stacks)
        in_specs = [pl.BlockSpec(a.shape, (lambda i, nd=a.ndim: (0,) * nd))
                    for a in args]
        y2d = pl.pallas_call(
            kernel,
            out_shape=jax.ShapeDtypeStruct((out_rows, out_lanes), jnp.float32),
            grid=(1,),
            in_specs=in_specs,
            out_specs=pl.BlockSpec((out_rows, out_lanes), lambda i: (0, 0)),
            compiler_params=pltpu.CompilerParams(
                dimension_semantics=("arbitrary",),
                vmem_limit_bytes=32 * 1024 * 1024),
        )(*args)
        # rows=(n, w), lanes=(c, h) -> NCHW
        return jnp.transpose(y2d.reshape(batch, width, in_c, height),
                             (0, 2, 3, 1))

    return forward, stacks


if __name__ == "__main__":
    BATCH, C, H, W = 2, 8, 16, 16      # in_chs must be even; 16->8->4->2->1
    forward, param_stacks = build_hourglass(BATCH, C, H, W)

    x = jax.random.normal(jax.random.PRNGKey(0), (BATCH, C, H, W), jnp.float32)

    fwd = jax.jit(forward)
    out = jax.block_until_ready(fwd(x, param_stacks))

    assert out.shape == (BATCH, C, H, W), out.shape
    assert bool(jnp.all(jnp.isfinite(out)))
    print("KERNEL_OK")
</pallas_src>

<mosaic_0001>
module attributes {stable_mosaic.version = 11 : i64} {
  func.func @kernel(%arg0: i32, %arg1: memref<32x128xf32, #tpu.memory_space<vmem>>, %arg2: memref<5x128x64xf32, #tpu.memory_space<vmem>>, %arg3: memref<10x1x64xf32, #tpu.memory_space<vmem>>, %arg4: memref<9x64x32xf32, #tpu.memory_space<vmem>>, %arg5: memref<15x16x32xf32, #tpu.memory_space<vmem>>, %arg6: memref<12x1x32xf32, #tpu.memory_space<vmem>>, %arg7: memref<9x32x64xf32, #tpu.memory_space<vmem>>, %arg8: memref<15x32x16xf32, #tpu.memory_space<vmem>>, %arg9: memref<14x8x16xf32, #tpu.memory_space<vmem>>, %arg10: memref<12x1x16xf32, #tpu.memory_space<vmem>>, %arg11: memref<14x16x8xf32, #tpu.memory_space<vmem>>, %arg12: memref<45x8x8xf32, #tpu.memory_space<vmem>>, %arg13: memref<22x1x8xf32, #tpu.memory_space<vmem>>, %arg14: memref<5x64x128xf32, #tpu.memory_space<vmem>>, %arg15: memref<4x1x128xf32, #tpu.memory_space<vmem>>, %arg16: memref<4x64x64xf32, #tpu.memory_space<vmem>>, %arg17: memref<6x32x32xf32, #tpu.memory_space<vmem>>, %arg18: memref<1x128x128xf32, #tpu.memory_space<vmem>>, %arg19: memref<6x16x16xf32, #tpu.memory_space<vmem>>, %arg20: memref<32x128xf32, #tpu.memory_space<vmem>>) attributes {dimension_semantics = [#tpu.dimension_semantics<arbitrary>], iteration_bounds = array<i64: 1>, scalar_prefetch = 0 : i64, scratch_operands = 0 : i64, tpu.core_type = #tpu.core_type<tc>, window_params = [{pipeline_mode = #tpu.pipeline_mode<synchronous>, transform_indices = @transform_0, window_bounds = array<i64: 32, 128>}, {pipeline_mode = #tpu.pipeline_mode<synchronous>, transform_indices = @transform_1, window_bounds = array<i64: 5, 128, 64>}, {pipeline_mode = #tpu.pipeline_mode<synchronous>, transform_indices = @transform_2, window_bounds = array<i64: 10, 1, 64>}, {pipeline_mode = #tpu.pipeline_mode<synchronous>, transform_indices = @transform_3, window_bounds = array<i64: 9, 64, 32>}, {pipeline_mode = #tpu.pipeline_mode<synchronous>, transform_indices = @transform_4, window_bounds = array<i64: 15, 16, 32>}, {pipeline_mode = #tpu.pipeline_mode<synchronous>, transform_indices = @transform_5, window_bounds = array<i64: 12, 1, 32>}, {pipeline_mode = #tpu.pipeline_mode<synchronous>, transform_indices = @transform_6, window_bounds = array<i64: 9, 32, 64>}, {pipeline_mode = #tpu.pipeline_mode<synchronous>, transform_indices = @transform_7, window_bounds = array<i64: 15, 32, 16>}, {pipeline_mode = #tpu.pipeline_mode<synchronous>, transform_indices = @transform_8, window_bounds = array<i64: 14, 8, 16>}, {pipeline_mode = #tpu.pipeline_mode<synchronous>, transform_indices = @transform_9, window_bounds = array<i64: 12, 1, 16>}, {pipeline_mode = #tpu.pipeline_mode<synchronous>, transform_indices = @transform_10, window_bounds = array<i64: 14, 16, 8>}, {pipeline_mode = #tpu.pipeline_mode<synchronous>, transform_indices = @transform_11, window_bounds = array<i64: 45, 8, 8>}, {pipeline_mode = #tpu.pipeline_mode<synchronous>, transform_indices = @transform_12, window_bounds = array<i64: 22, 1, 8>}, {pipeline_mode = #tpu.pipeline_mode<synchronous>, transform_indices = @transform_13, window_bounds = array<i64: 5, 64, 128>}, {pipeline_mode = #tpu.pipeline_mode<synchronous>, transform_indices = @transform_14, window_bounds = array<i64: 4, 1, 128>}, {pipeline_mode = #tpu.pipeline_mode<synchronous>, transform_indices = @transform_15, window_bounds = array<i64: 4, 64, 64>}, {pipeline_mode = #tpu.pipeline_mode<synchronous>, transform_indices = @transform_16, window_bounds = array<i64: 6, 32, 32>}, {pipeline_mode = #tpu.pipeline_mode<synchronous>, transform_indices = @transform_17, window_bounds = array<i64: 1, 128, 128>}, {pipeline_mode = #tpu.pipeline_mode<synchronous>, transform_indices = @transform_18, window_bounds = array<i64: 6, 16, 16>}, {pipeline_mode = #tpu.pipeline_mode<synchronous>, transform_indices = @transform_19, window_bounds = array<i64: 32, 128>}]} {
    %c0 = arith.constant 0 : index
    %c0_0 = arith.constant 0 : index
    %0 = vector.load %arg1[%c0, %c0_0] : memref<32x128xf32, #tpu.memory_space<vmem>>, vector<32x128xf32>
    %c3 = arith.constant 3 : index
    %c0_1 = arith.constant 0 : index
    %c0_2 = arith.constant 0 : index
    %1 = vector.load %arg5[%c3, %c0_1, %c0_2] : memref<15x16x32xf32, #tpu.memory_space<vmem>>, vector<1x16x32xf32>
    %2 = vector.shape_cast %1 : vector<1x16x32xf32> to vector<16x32xf32>
    %cst = arith.constant dense<0.000000e+00> : vector<16x128xf32>
    %3 = tpu.matmul %2, %0, %cst {dimension_numbers = #tpu.dot_dimension_numbers<[1], [0], [0], [1], [0, 0, 1, 1], [], []>} : vector<16x32xf32>, vector<32x128xf32>, vector<16x128xf32> -> vector<16x128xf32>
    %c1 = arith.constant 1 : index
    %c0_3 = arith.constant 0 : index
    %c0_4 = arith.constant 0 : index
    %4 = vector.load %arg2[%c1, %c0_3, %c0_4] : memref<5x128x64xf32, #tpu.memory_space<vmem>>, vector<1x128x64xf32>
    %5 = vector.shape_cast %4 : vector<1x128x64xf32> to vector<128x64xf32>
    %cst_5 = arith.constant dense<0.000000e+00> : vector<16x64xf32>
    %6 = tpu.matmul %3, %5, %cst_5 {dimension_numbers = #tpu.dot_dimension_numbers<[1], [0], [0], [1], [0, 0, 1, 1], [], []>} : vector<16x128xf32>, vector<128x64xf32>, vector<16x64xf32> -> vector<16x64xf32>
    %c4 = arith.constant 4 : index
    %c0_6 = arith.constant 0 : index
    %c0_7 = arith.constant 0 : index
    %7 = vector.load %arg5[%c4, %c0_6, %c0_7] : memref<15x16x32xf32, #tpu.memory_space<vmem>>, vector<1x16x32xf32>
    %8 = vector.shape_cast %7 : vector<1x16x32xf32> to vector<16x32xf32>
    %cst_8 = arith.constant dense<0.000000e+00> : vector<16x128xf32>
    %9 = tpu.matmul %8, %0, %cst_8 {dimension_numbers = #tpu.dot_dimension_numbers<[1], [0], [0], [1], [0, 0, 1, 1], [], []>} : vector<16x32xf32>, vector<32x128xf32>, vector<16x128xf32> -> vector<16x128xf32>
    %c2 = arith.constant 2 : index
    %c0_9 = arith.constant 0 : index
    %c0_10 = arith.constant 0 : index
    %10 = vector.load %arg2[%c2, %c0_9, %c0_10] : memref<5x128x64xf32, #tpu.memory_space<vmem>>, vector<1x128x64xf32>
    %11 = vector.shape_cast %10 : vector<1x128x64xf32> to vector<128x64xf32>
    %cst_11 = arith.constant dense<0.000000e+00> : vector<16x64xf32>
    %12 = tpu.matmul %9, %11, %cst_11 {dimension_numbers = #tpu.dot_dimension_numbers<[1], [0], [0], [1], [0, 0, 1, 1], [], []>} : vector<16x128xf32>, vector<128x64xf32>, vector<16x64xf32> -> vector<16x64xf32>
    %13 = arith.addf %6, %12 : vector<16x64xf32>
    %c5 = arith.constant 5 : index
    %c0_12 = arith.constant 0 : index
    %c0_13 = arith.constant 0 : index
    %14 = vector.load %arg5[%c5, %c0_12, %c0_13] : memref<15x16x32xf32, #tpu.memory_space<vmem>>, vector<1x16x32xf32>
    %15 = vector.shape_cast %14 : vector<1x16x32xf32> to vector<16x32xf32>
    %cst_14 = arith.constant dense<0.000000e+00> : vector<16x128xf32>
    %16 = tpu.matmul %15, %0, %cst_14 {dimension_numbers = #tpu.dot_dimension_numbers<[1], [0], [0], [1], [0, 0, 1, 1], [], []>} : vector<16x32xf32>, vector<32x128xf32>, vector<16x128xf32> -> vector<16x128xf32>
    %c3_15 = arith.constant 3 : index
    %c0_16 = arith.constant 0 : index
    %c0_17 = arith.constant 0 : index
    %17 = vector.load %arg2[%c3_15, %c0_16, %c0_17] : memref<5x128x64xf32, #tpu.memory_space<vmem>>, vector<1x128x64xf32>
    %18 = vector.shape_cast %17 : vector<1x128x64xf32> to vector<128x64xf32>
    %cst_18 = arith.constant dense<0.000000e+00> : vector<16x64xf32>
    %19 = tpu.matmul %16, %18, %cst_18 {dimension_numbers = #tpu.dot_dimension_numbers<[1], [0], [0], [1], [0, 0, 1, 1], [], []>} : vector<16x128xf32>, vector<128x64xf32>, vector<16x64xf32> -> vector<16x64xf32>
    %20 = arith.addf %13, %19 : vector<16x64xf32>
    %c1_19 = arith.constant 1 : index
    %c0_20 = arith.constant 0 : index
    %c0_21 = arith.constant 0 : index
    %21 = vector.load %arg3[%c1_19, %c0_20, %c0_21] : memref<10x1x64xf32, #tpu.memory_space<vmem>>, vector<1x1x64xf32>
    %22 = vector.shape_cast %21 : vector<1x1x64xf32> to vector<1x64xf32>
    %23 = vector.broadcast %22 : vector<1x64xf32> to vector<16x64xf32>
    %24 = arith.addf %20, %23 : vector<16x64xf32>
    %cst_22 = arith.constant 0.000000e+00 : f32
    %25 = vector.broadcast %cst_22 : f32 to vector<16x64xf32>
    %26 = arith.cmpf oge, %24, %25 : vector<16x64xf32>
    %cst_23 = arith.constant 2.500000e-01 : f32
    %27 = vector.broadcast %cst_23 : f32 to vector<16x64xf32>
    %28 = arith.mulf %27, %24 : vector<16x64xf32>
    %29 = arith.select %26, %24, %28 : vector<16x64xi1>, vector<16x64xf32>
    %c0_24 = arith.constant 0 : index
    %c0_25 = arith.constant 0 : index
    %c0_26 = arith.constant 0 : index
    %30 = vector.load %arg2[%c0_24, %c0_25, %c0_26] : memref<5x128x64xf32, #tpu.memory_space<vmem>>, vector<1x128x64xf32>
    %31 = vector.shape_cast %30 : vector<1x128x64xf32> to vector<128x64xf32>
    %cst_27 = arith.constant dense<0.000000e+00> : vector<32x64xf32>
    %32 = tpu.matmul %0, %31, %cst_27 {dimension_numbers = #tpu.dot_dimension_numbers<[1], [0], [0], [1], [0, 0, 1, 1], [], []>} : vector<32x128xf32>, vector<128x64xf32>, vector<32x64xf32> -> vector<32x64xf32>
    %c0_28 = arith.constant 0 : index
    %c0_29 = arith.constant 0 : index
    %c0_30 = arith.constant 0 : index
    %33 = vector.load %arg3[%c0_28, %c0_29, %c0_30] : memref<10x1x64xf32, #tpu.memory_space<vmem>>, vector<1x1x64xf32>
    %34 = vector.shape_cast %33 : vector<1x1x64xf32> to vector<1x64xf32>
    %35 = vector.broadcast %34 : vector<1x64xf32> to vector<32x64xf32>
    %36 = arith.addf %32, %35 : vector<32x64xf32>
    %cst_31 = arith.constant 0.000000e+00 : f32
    %37 = vector.broadcast %cst_31 : f32 to vector<32x64xf32>
    %38 = arith.cmpf oge, %36, %37 : vector<32x64xf32>
    %cst_32 = arith.constant 2.500000e-01 : f32
    %39 = vector.broadcast %cst_32 : f32 to vector<32x64xf32>
    %40 = arith.mulf %39, %36 : vector<32x64xf32>
    %41 = arith.select %38, %36, %40 : vector<32x64xi1>, vector<32x64xf32>
    %c0_33 = arith.constant 0 : index
    %c0_34 = arith.constant 0 : index
    %c0_35 = arith.constant 0 : index
    %42 = vector.load %arg5[%c0_33, %c0_34, %c0_35] : memref<15x16x32xf32, #tpu.memory_space<vmem>>, vector<1x16x32xf32>
    %43 = vector.shape_cast %42 : vector<1x16x32xf32> to vector<16x32xf32>
    %cst_36 = arith.constant dense<0.000000e+00> : vector<16x64xf32>
    %44 = tpu.matmul %43, %41, %cst_36 {dimension_numbers = #tpu.dot_dimension_numbers<[1], [0], [0], [1], [0, 0, 1, 1], [], []>} : vector<16x32xf32>, vector<32x64xf32>, vector<16x64xf32> -> vector<16x64xf32>
    %c0_37 = arith.constant 0 : index
    %c0_38 = arith.constant 0 : index
    %c0_39 = arith.constant 0 : index
    %45 = vector.load %arg4[%c0_37, %c0_38, %c0_39] : memref<9x64x32xf32, #tpu.memory_space<vmem>>, vector<1x64x32xf32>
    %46 = vector.shape_cast %45 : vector<1x64x32xf32> to vector<64x32xf32>
    %cst_40 = arith.constant dense<0.000000e+00> : vector<16x32xf32>
    %47 = tpu.matmul %44, %46, %cst_40 {dimension_numbers = #tpu.dot_dimension_numbers<[1], [0], [0], [1], [0, 0, 1, 1], [], []>} : vector<16x64xf32>, vector<64x32xf32>, vector<16x32xf32> -> vector<16x32xf32>
    %c1_41 = arith.constant 1 : index
    %c0_42 = arith.constant 0 : index
    %c0_43 = arith.constant 0 : index
    %48 = vector.load %arg5[%c1_41, %c0_42, %c0_43] : memref<15x16x32xf32, #tpu.memory_space<vmem>>, vector<1x16x32xf32>
    %49 = vector.shape_cast %48 : vector<1x16x32xf32> to vector<16x32xf32>
    %cst_44 = arith.constant dense<0.000000e+00> : vector<16x64xf32>
    %50 = tpu.matmul %49, %41, %cst_44 {dimension_numbers = #tpu.dot_dimension_numbers<[1], [0], [0], [1], [0, 0, 1, 1], [], []>} : vector<16x32xf32>, vector<32x64xf32>, vector<16x64xf32> -> vector<16x64xf32>
    %c1_45 = arith.constant 1 : index
    %c0_46 = arith.constant 0 : index
    %c0_47 = arith.constant 0 : index
    %51 = vector.load %arg4[%c1_45, %c0_46, %c0_47] : memref<9x64x32xf32, #tpu.memory_space<vmem>>, vector<1x64x32xf32>
    %52 = vector.shape_cast %51 : vector<1x64x32xf32> to vector<64x32xf32>
    %cst_48 = arith.constant dense<0.000000e+00> : vector<16x32xf32>
    %53 = tpu.matmul %50, %52, %cst_48 {dimension_numbers = #tpu.dot_dimension_numbers<[1], [0], [0], [1], [0, 0, 1, 1], [], []>} : vector<16x64xf32>, vector<64x32xf32>, vector<16x32xf32> -> vector<16x32xf32>
    %54 = arith.addf %47, %53 : vector<16x32xf32>
    %c2_49 = arith.constant 2 : index
    %c0_50 = arith.constant 0 : index
    %c0_51 = arith.constant 0 : index
    %55 = vector.load %arg5[%c2_49, %c0_50, %c0_51] : memref<15x16x32xf32, #tpu.memory_space<vmem>>, vector<1x16x32xf32>
    %56 = vector.shape_cast %55 : vector<1x16x32xf32> to vector<16x32xf32>
    %cst_52 = arith.constant dense<0.000000e+00> : vector<16x64xf32>
    %57 = tpu.matmul %56, %41, %cst_52 {dimension_numbers = #tpu.dot_dimension_numbers<[1], [0], [0], [1], [0, 0, 1, 1], [], []>} : vector<16x32xf32>, vector<32x64xf32>, vector<16x64xf32> -> vector<16x64xf32>
    %c2_53 = arith.constant 2 : index
    %c0_54 = arith.constant 0 : index
    %c0_55 = arith.constant 0 : index
    %58 = vector.load %arg4[%c2_53, %c0_54, %c0_55] : memref<9x64x32xf32, #tpu.memory_space<vmem>>, vector<1x64x32xf32>
    %59 = vector.shape_cast %58 : vector<1x64x32xf32> to vector<64x32xf32>
    %cst_56 = arith.constant dense<0.000000e+00> : vector<16x32xf32>
    %60 = tpu.matmul %57, %59, %cst_56 {dimension_numbers = #tpu.dot_dimension_numbers<[1], [0], [0], [1], [0, 0, 1, 1], [], []>} : vector<16x64xf32>, vector<64x32xf32>, vector<16x32xf32> -> vector<16x32xf32>
    %61 = arith.addf %54, %60 : vector<16x32xf32>
    %c0_57 = arith.constant 0 : index
    %c0_58 = arith.constant 0 : index
    %c0_59 = arith.constant 0 : index
    %62 = vector.load %arg6[%c0_57, %c0_58, %c0_59] : memref<12x1x32xf32, #tpu.memory_space<vmem>>, vector<1x1x32xf32>
    %63 = vector.shape_cast %62 : vector<1x1x32xf32> to vector<1x32xf32>
    %64 = vector.broadcast %63 : vector<1x32xf32> to vector<16x32xf32>
    %65 = arith.addf %61, %64 : vector<16x32xf32>
    %cst_60 = arith.constant 0.000000e+00 : f32
    %66 = vector.broadcast %cst_60 : f32 to vector<16x32xf32>
    %67 = arith.cmpf oge, %65, %66 : vector<16x32xf32>
    %cst_61 = arith.constant 2.500000e-01 : f32
    %68 = vector.broadcast %cst_61 : f32 to vector<16x32xf32>
    %69 = arith.mulf %68, %65 : vector<16x32xf32>
    %70 = arith.select %67, %65, %69 : vector<16x32xi1>, vector<16x32xf32>
    %c0_62 = arith.constant 0 : index
    %c0_63 = arith.constant 0 : index
    %c0_64 = arith.constant 0 : index
    %71 = vector.load %arg7[%c0_62, %c0_63, %c0_64] : memref<9x32x64xf32, #tpu.memory_space<vmem>>, vector<1x32x64xf32>
    %72 = vector.shape_cast %71 : vector<1x32x64xf32> to vector<32x64xf32>
    %cst_65 = arith.constant dense<0.000000e+00> : vector<16x64xf32>
    %73 = tpu.matmul %70, %72, %cst_65 {dimension_numbers = #tpu.dot_dimension_numbers<[1], [0], [0], [1], [0, 0, 1, 1], [], []>} : vector<16x32xf32>, vector<32x64xf32>, vector<16x64xf32> -> vector<16x64xf32>
    %c2_66 = arith.constant 2 : index
    %c0_67 = arith.constant 0 : index
    %c0_68 = arith.constant 0 : index
    %74 = vector.load %arg3[%c2_66, %c0_67, %c0_68] : memref<10x1x64xf32, #tpu.memory_space<vmem>>, vector<1x1x64xf32>
    %75 = vector.shape_cast %74 : vector<1x1x64xf32> to vector<1x64xf32>
    %76 = vector.broadcast %75 : vector<1x64xf32> to vector<16x64xf32>
    %77 = arith.addf %73, %76 : vector<16x64xf32>
    %78 = arith.addf %77, %29 : vector<16x64xf32>
    %cst_69 = arith.constant 0.000000e+00 : f32
    %79 = vector.broadcast %cst_69 : f32 to vector<16x64xf32>
    %80 = arith.cmpf oge, %78, %79 : vector<16x64xf32>
    %cst_70 = arith.constant 2.500000e-01 : f32
    %81 = vector.broadcast %cst_70 : f32 to vector<16x64xf32>
    %82 = arith.mulf %81, %78 : vector<16x64xf32>
    %83 = arith.select %80, %78, %82 : vector<16x64xi1>, vector<16x64xf32>
    %c3_71 = arith.constant 3 : index
    %c0_72 = arith.constant 0 : index
    %c0_73 = arith.constant 0 : index
    %84 = vector.load %arg9[%c3_71, %c0_72, %c0_73] : memref<14x8x16xf32, #tpu.memory_space<vmem>>, vector<1x8x16xf32>
    %85 = vector.shape_cast %84 : vector<1x8x16xf32> to vector<8x16xf32>
    %cst_74 = arith.constant dense<0.000000e+00> : vector<8x64xf32>
    %86 = tpu.matmul %85, %83, %cst_74 {dimension_numbers = #tpu.dot_dimension_numbers<[1], [0], [0], [1], [0, 0, 1, 1], [], []>} : vector<8x16xf32>, vector<16x64xf32>, vector<8x64xf32> -> vector<8x64xf32>
    %c4_75 = arith.constant 4 : index
    %c0_76 = arith.constant 0 : index
    %c0_77 = arith.constant 0 : index
    %87 = vector.load %arg4[%c4_75, %c0_76, %c0_77] : memref<9x64x32xf32, #tpu.memory_space<vmem>>, vector<1x64x32xf32>
    %88 = vector.shape_cast %87 : vector<1x64x32xf32> to vector<64x32xf32>
    %cst_78 = arith.constant dense<0.000000e+00> : vector<8x32xf32>
    %89 = tpu.matmul %86, %88, %cst_78 {dimension_numbers = #tpu.dot_dimension_numbers<[1], [0], [0], [1], [0, 0, 1, 1], [], []>} : vector<8x64xf32>, vector<64x32xf32>, vector<8x32xf32> -> vector<8x32xf32>
    %c4_79 = arith.constant 4 : index
    %c0_80 = arith.constant 0 : index
    %c0_81 = arith.constant 0 : index
    %90 = vector.load %arg9[%c4_79, %c0_80, %c0_81] : memref<14x8x16xf32, #tpu.memory_space<vmem>>, vector<1x8x16xf32>
    %91 = vector.shape_cast %90 : vector<1x8x16xf32> to vector<8x16xf32>
    %cst_82 = arith.constant dense<0.000000e+00> : vector<8x64xf32>
    %92 = tpu.matmul %91, %83, %cst_82 {dimension_numbers = #tpu.dot_dimension_numbers<[1], [0], [0], [1], [0, 0, 1, 1], [], []>} : vector<8x16xf32>, vector<16x64xf32>, vector<8x64xf32> -> vector<8x64xf32>
    %c5_83 = arith.constant 5 : index
    %c0_84 = arith.constant 0 : index
    %c0_85 = arith.constant 0 : index
    %93 = vector.load %arg4[%c5_83, %c0_84, %c0_85] : memref<9x64x32xf32, #tpu.memory_space<vmem>>, vector<1x64x32xf32>
    %94 = vector.shape_cast %93 : vector<1x64x32xf32> to vector<64x32xf32>
    %cst_86 = arith.constant dense<0.000000e+00> : vector<8x32xf32>
    %95 = tpu.matmul %92, %94, %cst_86 {dimension_numbers = #tpu.dot_dimension_numbers<[1], [0], [0], [1], [0, 0, 1, 1], [], []>} : vector<8x64xf32>, vector<64x32xf32>, vector<8x32xf32> -> vector<8x32xf32>
    %96 = arith.addf %89, %95 : vector<8x32xf32>
    %c5_87 = arith.constant 5 : index
    %c0_88 = arith.constant 0 : index
    %c0_89 = arith.constant 0 : index
    %97 = vector.load %arg9[%c5_87, %c0_88, %c0_89] : memref<14x8x16xf32, #tpu.memory_space<vmem>>, vector<1x8x16xf32>
    %98 = vector.shape_cast %97 : vector<1x8x16xf32> to vector<8x16xf32>
    %cst_90 = arith.constant dense<0.000000e+00> : vector<8x64xf32>
    %99 = tpu.matmul %98, %83, %cst_90 {dimension_numbers = #tpu.dot_dimension_numbers<[1], [0], [0], [1], [0, 0, 1, 1], [], []>} : vector<8x16xf32>, vector<16x64xf32>, vector<8x64xf32> -> vector<8x64xf32>
    %c6 = arith.constant 6 : index
    %c0_91 = arith.constant 0 : index
    %c0_92 = arith.constant 0 : index
    %100 = vector.load %arg4[%c6, %c0_91, %c0_92] : memref<9x64x32xf32, #tpu.memory_space<vmem>>, vector<1x64x32xf32>
    %101 = vector.shape_cast %100 : vector<1x64x32xf32> to vector<64x32xf32>
    %cst_93 = arith.constant dense<0.000000e+00> : vector<8x32xf32>
    %102 = tpu.matmul %99, %101, %cst_93 {dimension_numbers = #tpu.dot_dimension_numbers<[1], [0], [0], [1], [0, 0, 1, 1], [], []>} : vector<8x64xf32>, vector<64x32xf32>, vector<8x32xf32> -> vector<8x32xf32>
    %103 = arith.addf %96, %102 : vector<8x32xf32>
    %c2_94 = arith.constant 2 : index
    %c0_95 = arith.constant 0 : index
    %c0_96 = arith.constant 0 : index
    %104 = vector.load %arg6[%c2_94, %c0_95, %c0_96] : memref<12x1x32xf32, #tpu.memory_space<vmem>>, vector<1x1x32xf32>
    %105 = vector.shape_cast %104 : vector<1x1x32xf32> to vector<1x32xf32>
    %106 = vector.broadcast %105 : vector<1x32xf32> to vector<8x32xf32>
    %107 = arith.addf %103, %106 : vector<8x32xf32>
    %cst_97 = arith.constant 0.000000e+00 : f32
    %108 = vector.broadcast %cst_97 : f32 to vector<8x32xf32>
    %109 = arith.cmpf oge, %107, %108 : vector<8x32xf32>
    %cst_98 = arith.constant 2.500000e-01 : f32
    %110 = vector.broadcast %cst_98 : f32 to vector<8x32xf32>
    %111 = arith.mulf %110, %107 : vector<8x32xf32>
    %112 = arith.select %109, %107, %111 : vector<8x32xi1>, vector<8x32xf32>
    %c3_99 = arith.constant 3 : index
    %c0_100 = arith.constant 0 : index
    %c0_101 = arith.constant 0 : index
    %113 = vector.load %arg4[%c3_99, %c0_100, %c0_101] : memref<9x64x32xf32, #tpu.memory_space<vmem>>, vector<1x64x32xf32>
    %114 = vector.shape_cast %113 : vector<1x64x32xf32> to vector<64x32xf32>
    %cst_102 = arith.constant dense<0.000000e+00> : vector<16x32xf32>
    %115 = tpu.matmul %83, %114, %cst_102 {dimension_numbers = #tpu.dot_dimension_numbers<[1], [0], [0], [1], [0, 0, 1, 1], [], []>} : vector<16x64xf32>, vector<64x32xf32>, vector<16x32xf32> -> vector<16x32xf32>
    %c1_103 = arith.constant 1 : index
    %c0_104 = arith.constant 0 : index
    %c0_105 = arith.constant 0 : index
    %116 = vector.load %arg6[%c1_103, %c0_104, %c0_105] : memref<12x1x32xf32, #tpu.memory_space<vmem>>, vector<1x1x32xf32>
    %117 = vector.shape_cast %116 : vector<1x1x32xf32> to vector<1x32xf32>
    %118 = vector.broadcast %117 : vector<1x32xf32> to vector<16x32xf32>
    %119 = arith.addf %115, %118 : vector<16x32xf32>
    %cst_106 = arith.constant 0.000000e+00 : f32
    %120 = vector.broadcast %cst_106 : f32 to vector<16x32xf32>
    %121 = arith.cmpf oge, %119, %120 : vector<16x32xf32>
    %cst_107 = arith.constant 2.500000e-01 : f32
    %122 = vector.broadcast %cst_107 : f32 to vector<16x32xf32>
    %123 = arith.mulf %122, %119 : vector<16x32xf32>
    %124 = arith.select %121, %119, %123 : vector<16x32xi1>, vector<16x32xf32>
    %c0_108 = arith.constant 0 : index
    %c0_109 = arith.constant 0 : index
    %c0_110 = arith.constant 0 : index
    %125 = vector.load %arg9[%c0_108, %c0_109, %c0_110] : memref<14x8x16xf32, #tpu.memory_space<vmem>>, vector<1x8x16xf32>
    %126 = vector.shape_cast %125 : vector<1x8x16xf32> to vector<8x16xf32>
    %cst_111 = arith.constant dense<0.000000e+00> : vector<8x32xf32>
    %127 = tpu.matmul %126, %124, %cst_111 {dimension_numbers = #tpu.dot_dimension_numbers<[1], [0], [0], [1], [0, 0, 1, 1], [], []>} : vector<8x16xf32>, vector<16x32xf32>, vector<8x32xf32> -> vector<8x32xf32>
    %c0_112 = arith.constant 0 : index
    %c0_113 = arith.constant 0 : index
    %c0_114 = arith.constant 0 : index
    %128 = vector.load %arg8[%c0_112, %c0_113, %c0_114] : memref<15x32x16xf32, #tpu.memory_space<vmem>>, vector<1x32x16xf32>
    %129 = vector.shape_cast %128 : vector<1x32x16xf32> to vector<32x16xf32>
    %cst_115 = arith.constant dense<0.000000e+00> : vector<8x16xf32>
    %130 = tpu.matmul %127, %129, %cst_115 {dimension_numbers = #tpu.dot_dimension_numbers<[1], [0], [0], [1], [0, 0, 1, 1], [], []>} : vector<8x32xf32>, vector<32x16xf32>, vector<8x16xf32> -> vector<8x16xf32>
    %c1_116 = arith.constant 1 : index
    %c0_117 = arith.constant 0 : index
    %c0_118 = arith.constant 0 : index
    %131 = vector.load %arg9[%c1_116, %c0_117, %c0_118] : memref<14x8x16xf32, #tpu.memory_space<vmem>>, vector<1x8x16xf32>
    %132 = vector.shape_cast %131 : vector<1x8x16xf32> to vector<8x16xf32>
    %cst_119 = arith.constant dense<0.000000e+00> : vector<8x32xf32>
    %133 = tpu.matmul %132, %124, %cst_119 {dimension_numbers = #tpu.dot_dimension_numbers<[1], [0], [0], [1], [0, 0, 1, 1], [], []>} : vector<8x16xf32>, vector<16x32xf32>, vector<8x32xf32> -> vector<8x32xf32>
    %c1_120 = arith.constant 1 : index
    %c0_121 = arith.constant 0 : index
    %c0_122 = arith.constant 0 : index
    %134 = vector.load %arg8[%c1_120, %c0_121, %c0_122] : memref<15x32x16xf32, #tpu.memory_space<vmem>>, vector<1x32x16xf32>
    %135 = vector.shape_cast %134 : vector<1x32x16xf32> to vector<32x16xf32>
    %cst_123 = arith.constant dense<0.000000e+00> : vector<8x16xf32>
    %136 = tpu.matmul %133, %135, %cst_123 {dimension_numbers = #tpu.dot_dimension_numbers<[1], [0], [0], [1], [0, 0, 1, 1], [], []>} : vector<8x32xf32>, vector<32x16xf32>, vector<8x16xf32> -> vector<8x16xf32>
    %137 = arith.addf %130, %136 : vector<8x16xf32>
    %c2_124 = arith.constant 2 : index
    %c0_125 = arith.constant 0 : index
    %c0_126 = arith.constant 0 : index
    %138 = vector.load %arg9[%c2_124, %c0_125, %c0_126] : memref<14x8x16xf32, #tpu.memory_space<vmem>>, vector<1x8x16xf32>
    %139 = vector.shape_cast %138 : vector<1x8x16xf32> to vector<8x16xf32>
    %cst_127 = arith.constant dense<0.000000e+00> : vector<8x32xf32>
    %140 = tpu.matmul %139, %124, %cst_127 {dimension_numbers = #tpu.dot_dimension_numbers<[1], [0], [0], [1], [0, 0, 1, 1], [], []>} : vector<8x16xf32>, vector<16x32xf32>, vector<8x32xf32> -> vector<8x32xf32>
    %c2_128 = arith.constant 2 : index
    %c0_129 = arith.constant 0 : index
    %c0_130 = arith.constant 0 : index
    %141 = vector.load %arg8[%c2_128, %c0_129, %c0_130] : memref<15x32x16xf32, #tpu.memory_space<vmem>>, vector<1x32x16xf32>
    %142 = vector.shape_cast %141 : vector<1x32x16xf32> to vector<32x16xf32>
    %cst_131 = arith.constant dense<0.000000e+00> : vector<8x16xf32>
    %143 = tpu.matmul %140, %142, %cst_131 {dimension_numbers = #tpu.dot_dimension_numbers<[1], [0], [0], [1], [0, 0, 1, 1], [], []>} : vector<8x32xf32>, vector<32x16xf32>, vector<8x16xf32> -> vector<8x16xf32>
    %144 = arith.addf %137, %143 : vector<8x16xf32>
    %c0_132 = arith.constant 0 : index
    %c0_133 = arith.constant 0 : index
    %c0_134 = arith.constant 0 : index
    %145 = vector.load %arg10[%c0_132, %c0_133, %c0_134] : memref<12x1x16xf32, #tpu.memory_space<vmem>>, vector<1x1x16xf32>
    %146 = vector.shape_cast %145 : vector<1x1x16xf32> to vector<1x16xf32>
    %147 = vector.broadcast %146 : vector<1x16xf32> to vector<8x16xf32>
    %148 = arith.addf %144, %147 : vector<8x16xf32>
    %cst_135 = arith.constant 0.000000e+00 : f32
    %149 = vector.broadcast %cst_135 : f32 to vector<8x16xf32>
    %150 = arith.cmpf oge, %148, %149 : vector<8x16xf32>
    %cst_136 = arith.constant 2.500000e-01 : f32
    %151 = vector.broadcast %cst_136 : f32 to vector<8x16xf32>
    %152 = arith.mulf %151, %148 : vector<8x16xf32>
    %153 = arith.select %150, %148, %152 : vector<8x16xi1>, vector<8x16xf32>
    %c6_137 = arith.constant 6 : index
    %c0_138 = arith.constant 0 : index
    %c0_139 = arith.constant 0 : index
    %154 = vector.load %arg5[%c6_137, %c0_138, %c0_139] : memref<15x16x32xf32, #tpu.memory_space<vmem>>, vector<1x16x32xf32>
    %155 = vector.shape_cast %154 : vector<1x16x32xf32> to vector<16x32xf32>
    %cst_140 = arith.constant dense<0.000000e+00> : vector<8x32xf32>
    %156 = tpu.matmul %153, %155, %cst_140 {dimension_numbers = #tpu.dot_dimension_numbers<[1], [0], [0], [1], [0, 0, 1, 1], [], []>} : vector<8x16xf32>, vector<16x32xf32>, vector<8x32xf32> -> vector<8x32xf32>
    %c3_141 = arith.constant 3 : index
    %c0_142 = arith.constant 0 : index
    %c0_143 = arith.constant 0 : index
    %157 = vector.load %arg6[%c3_141, %c0_142, %c0_143] : memref<12x1x32xf32, #tpu.memory_space<vmem>>, vector<1x1x32xf32>
    %158 = vector.shape_cast %157 : vector<1x1x32xf32> to vector<1x32xf32>
    %159 = vector.broadcast %158 : vector<1x32xf32> to vector<8x32xf32>
    %160 = arith.addf %156, %159 : vector<8x32xf32>
    %161 = arith.addf %160, %112 : vector<8x32xf32>
    %cst_144 = arith.constant 0.000000e+00 : f32
    %162 = vector.broadcast %cst_144 : f32 to vector<8x32xf32>
    %163 = arith.cmpf oge, %161, %162 : vector<8x32xf32>
    %cst_145 = arith.constant 2.500000e-01 : f32
    %164 = vector.broadcast %cst_145 : f32 to vector<8x32xf32>
    %165 = arith.mulf %164, %161 : vector<8x32xf32>
    %166 = arith.select %163, %161, %165 : vector<8x32xi1>, vector<8x32xf32>
    %c3_146 = arith.constant 3 : index
    %c0_147 = arith.constant 0 : index
    %c0_148 = arith.constant 0 : index
    %167 = vector.load %arg12[%c3_146, %c0_147, %c0_148] : memref<45x8x8xf32, #tpu.memory_space<vmem>>, vector<1x8x8xf32>
    %168 = vector.shape_cast %167 : vector<1x8x8xf32> to vector<8x8xf32>
    %cst_149 = arith.constant dense<0.000000e+00> : vector<8x32xf32>
    %169 = tpu.matmul %168, %166, %cst_149 {dimension_numbers = #tpu.dot_dimension_numbers<[1], [0], [0], [1], [0, 0, 1, 1], [], []>} : vector<8x8xf32>, vector<8x32xf32>, vector<8x32xf32> -> vector<8x32xf32>
    %c4_150 = arith.constant 4 : index
    %c0_151 = arith.constant 0 : index
    %c0_152 = arith.constant 0 : index
    %170 = vector.load %arg8[%c4_150, %c0_151, %c0_152] : memref<15x32x16xf32, #tpu.memory_space<vmem>>, vector<1x32x16xf32>
    %171 = vector.shape_cast %170 : vector<1x32x16xf32> to vector<32x16xf32>
    %cst_153 = arith.constant dense<0.000000e+00> : vector<8x16xf32>
    %172 = tpu.matmul %169, %171, %cst_153 {dimension_numbers = #tpu.dot_dimension_numbers<[1], [0], [0], [1], [0, 0, 1, 1], [], []>} : vector<8x32xf32>, vector<32x16xf32>, vector<8x16xf32> -> vector<8x16xf32>
    %c4_154 = arith.constant 4 : index
    %c0_155 = arith.constant 0 : index
    %c0_156 = arith.constant 0 : index
    %173 = vector.load %arg12[%c4_154, %c0_155, %c0_156] : memref<45x8x8xf32, #tpu.memory_space<vmem>>, vector<1x8x8xf32>
    %174 = vector.shape_cast %173 : vector<1x8x8xf32> to vector<8x8xf32>
    %cst_157 = arith.constant dense<0.000000e+00> : vector<8x32xf32>
    %175 = tpu.matmul %174, %166, %cst_157 {dimension_numbers = #tpu.dot_dimension_numbers<[1], [0], [0], [1], [0, 0, 1, 1], [], []>} : vector<8x8xf32>, vector<8x32xf32>, vector<8x32xf32> -> vector<8x32xf32>
    %c5_158 = arith.constant 5 : index
    %c0_159 = arith.constant 0 : index
    %c0_160 = arith.constant 0 : index
    %176 = vector.load %arg8[%c5_158, %c0_159, %c0_160] : memref<15x32x16xf32, #tpu.memory_space<vmem>>, vector<1x32x16xf32>
    %177 = vector.shape_cast %176 : vector<1x32x16xf32> to vector<32x16xf32>
    %cst_161 = arith.constant dense<0.000000e+00> : vector<8x16xf32>
    %178 = tpu.matmul %175, %177, %cst_161 {dimension_numbers = #tpu.dot_dimension_numbers<[1], [0], [0], [1], [0, 0, 1, 1], [], []>} : vector<8x32xf32>, vector<32x16xf32>, vector<8x16xf32> -> vector<8x16xf32>
    %179 = arith.addf %172, %178 : vector<8x16xf32>
    %c5_162 = arith.constant 5 : index
    %c0_163 = arith.constant 0 : index
    %c0_164 = arith.constant 0 : index
    %180 = vector.load %arg12[%c5_162, %c0_163, %c0_164] : memref<45x8x8xf32, #tpu.memory_space<vmem>>, vector<1x8x8xf32>
    %181 = vector.shape_cast %180 : vector<1x8x8xf32> to vector<8x8xf32>
    %cst_165 = arith.constant dense<0.000000e+00> : vector<8x32xf32>
    %182 = tpu.matmul %181, %166, %cst_165 {dimension_numbers = #tpu.dot_dimension_numbers<[1], [0], [0], [1], [0, 0, 1, 1], [], []>} : vector<8x8xf32>, vector<8x32xf32>, vector<8x32xf32> -> vector<8x32xf32>
    %c6_166 = arith.constant 6 : index
    %c0_167 = arith.constant 0 : index
    %c0_168 = arith.constant 0 : index
    %183 = vector.load %arg8[%c6_166, %c0_167, %c0_168] : memref<15x32x16xf32, #tpu.memory_space<vmem>>, vector<1x32x16xf32>
    %184 = vector.shape_cast %183 : vector<1x32x16xf32> to vector<32x16xf32>
    %cst_169 = arith.constant dense<0.000000e+00> : vector<8x16xf32>
    %185 = tpu.matmul %182, %184, %cst_169 {dimension_numbers = #tpu.dot_dimension_numbers<[1], [0], [0], [1], [0, 0, 1, 1], [], []>} : vector<8x32xf32>, vector<32x16xf32>, vector<8x16xf32> -> vector<8x16xf32>
    %186 = arith.addf %179, %185 : vector<8x16xf32>
    %c2_170 = arith.constant 2 : index
    %c0_171 = arith.constant 0 : index
    %c0_172 = arith.constant 0 : index
    %187 = vector.load %arg10[%c2_170, %c0_171, %c0_172] : memref<12x1x16xf32, #tpu.memory_space<vmem>>, vector<1x1x16xf32>
    %188 = vector.shape_cast %187 : vector<1x1x16xf32> to vector<1x16xf32>
    %189 = vector.broadcast %188 : vector<1x16xf32> to vector<8x16xf32>
    %190 = arith.addf %186, %189 : vector<8x16xf32>
    %cst_173 = arith.constant 0.000000e+00 : f32
    %191 = vector.broadcast %cst_173 : f32 to vector<8x16xf32>
    %192 = arith.cmpf oge, %190, %191 : vector<8x16xf32>
    %cst_174 = arith.constant 2.500000e-01 : f32
    %193 = vector.broadcast %cst_174 : f32 to vector<8x16xf32>
    %194 = arith.mulf %193, %190 : vector<8x16xf32>
    %195 = arith.select %192, %190, %194 : vector<8x16xi1>, vector<8x16xf32>
    %c3_175 = arith.constant 3 : index
    %c0_176 = arith.constant 0 : index
    %c0_177 = arith.constant 0 : index
    %196 = vector.load %arg8[%c3_175, %c0_176, %c0_177] : memref<15x32x16xf32, #tpu.memory_space<vmem>>, vector<1x32x16xf32>
    %197 = vector.shape_cast %196 : vector<1x32x16xf32> to vector<32x16xf32>
    %cst_178 = arith.constant dense<0.000000e+00> : vector<8x16xf32>
    %198 = tpu.matmul %166, %197, %cst_178 {dimension_numbers = #tpu.dot_dimension_numbers<[1], [0], [0], [1], [0, 0, 1, 1], [], []>} : vector<8x32xf32>, vector<32x16xf32>, vector<8x16xf32> -> vector<8x16xf32>
    %c1_179 = arith.constant 1 : index
    %c0_180 = arith.constant 0 : index
    %c0_181 = arith.constant 0 : index
    %199 = vector.load %arg10[%c1_179, %c0_180, %c0_181] : memref<12x1x16xf32, #tpu.memory_space<vmem>>, vector<1x1x16xf32>
    %200 = vector.shape_cast %199 : vector<1x1x16xf32> to vector<1x16xf32>
    %201 = vector.broadcast %200 : vector<1x16xf32> to vector<8x16xf32>
    %202 = arith.addf %198, %201 : vector<8x16xf32>
    %cst_182 = arith.constant 0.000000e+00 : f32
    %203 = vector.broadcast %cst_182 : f32 to vector<8x16xf32>
    %204 = arith.cmpf oge, %202, %203 : vector<8x16xf32>
    %cst_183 = arith.constant 2.500000e-01 : f32
    %205 = vector.broadcast %cst_183 : f32 to vector<8x16xf32>
    %206 = arith.mulf %205, %202 : vector<8x16xf32>
    %207 = arith.select %204, %202, %206 : vector<8x16xi1>, vector<8x16xf32>
    %c0_184 = arith.constant 0 : index
    %c0_185 = arith.constant 0 : index
    %c0_186 = arith.constant 0 : index
    %208 = vector.load %arg12[%c0_184, %c0_185, %c0_186] : memref<45x8x8xf32, #tpu.memory_space<vmem>>, vector<1x8x8xf32>
    %209 = vector.shape_cast %208 : vector<1x8x8xf32> to vector<8x8xf32>
    %cst_187 = arith.constant dense<0.000000e+00> : vector<8x16xf32>
    %210 = tpu.matmul %209, %207, %cst_187 {dimension_numbers = #tpu.dot_dimension_numbers<[1], [0], [0], [1], [0, 0, 1, 1], [], []>} : vector<8x8xf32>, vector<8x16xf32>, vector<8x16xf32> -> vector<8x16xf32>
    %c0_188 = arith.constant 0 : index
    %c0_189 = arith.constant 0 : index
    %c0_190 = arith.constant 0 : index
    %211 = vector.load %arg11[%c0_188, %c0_189, %c0_190] : memref<14x16x8xf32, #tpu.memory_space<vmem>>, vector<1x16x8xf32>
    %212 = vector.shape_cast %211 : vector<1x16x8xf32> to vector<16x8xf32>
    %cst_191 = arith.constant dense<0.000000e+00> : vector<8x8xf32>
    %213 = tpu.matmul %210, %212, %cst_191 {dimension_numbers = #tpu.dot_dimension_numbers<[1], [0], [0], [1], [0, 0, 1, 1], [], []>} : vector<8x16xf32>, vector<16x8xf32>, vector<8x8xf32> -> vector<8x8xf32>
    %c1_192 = arith.constant 1 : index
    %c0_193 = arith.constant 0 : index
    %c0_194 = arith.constant 0 : index
    %214 = vector.load %arg12[%c1_192, %c0_193, %c0_194] : memref<45x8x8xf32, #tpu.memory_space<vmem>>, vector<1x8x8xf32>
    %215 = vector.shape_cast %214 : vector<1x8x8xf32> to vector<8x8xf32>
    %cst_195 = arith.constant dense<0.000000e+00> : vector<8x16xf32>
    %216 = tpu.matmul %215, %207, %cst_195 {dimension_numbers = #tpu.dot_dimension_numbers<[1], [0], [0], [1], [0, 0, 1, 1], [], []>} : vector<8x8xf32>, vector<8x16xf32>, vector<8x16xf32> -> vector<8x16xf32>
    %c1_196 = arith.constant 1 : index
    %c0_197 = arith.constant 0 : index
    %c0_198 = arith.constant 0 : index
    %217 = vector.load %arg11[%c1_196, %c0_197, %c0_198] : memref<14x16x8xf32, #tpu.memory_space<vmem>>, vector<1x16x8xf32>
    %218 = vector.shape_cast %217 : vector<1x16x8xf32> to vector<16x8xf32>
    %cst_199 = arith.constant dense<0.000000e+00> : vector<8x8xf32>
    %219 = tpu.matmul %216, %218, %cst_199 {dimension_numbers = #tpu.dot_dimension_numbers<[1], [0], [0], [1], [0, 0, 1, 1], [], []>} : vector<8x16xf32>, vector<16x8xf32>, vector<8x8xf32> -> vector<8x8xf32>
    %220 = arith.addf %213, %219 : vector<8x8xf32>
    %c2_200 = arith.constant 2 : index
    %c0_201 = arith.constant 0 : index
    %c0_202 = arith.constant 0 : index
    %221 = vector.load %arg12[%c2_200, %c0_201, %c0_202] : memref<45x8x8xf32, #tpu.memory_space<vmem>>, vector<1x8x8xf32>
    %222 = vector.shape_cast %221 : vector<1x8x8xf32> to vector<8x8xf32>
    %cst_203 = arith.constant dense<0.000000e+00> : vector<8x16xf32>
    %223 = tpu.matmul %222, %207, %cst_203 {dimension_numbers = #tpu.dot_dimension_numbers<[1], [0], [0], [1], [0, 0, 1, 1], [], []>} : vector<8x8xf32>, vector<8x16xf32>, vector<8x16xf32> -> vector<8x16xf32>
    %c2_204 = arith.constant 2 : index
    %c0_205 = arith.constant 0 : index
    %c0_206 = arith.constant 0 : index
    %224 = vector.load %arg11[%c2_204, %c0_205, %c0_206] : memref<14x16x8xf32, #tpu.memory_space<vmem>>, vector<1x16x8xf32>
    %225 = vector.shape_cast %224 : vector<1x16x8xf32> to vector<16x8xf32>
    %cst_207 = arith.constant dense<0.000000e+00> : vector<8x8xf32>
    %226 = tpu.matmul %223, %225, %cst_207 {dimension_numbers = #tpu.dot_dimension_numbers<[1], [0], [0], [1], [0, 0, 1, 1], [], []>} : vector<8x16xf32>, vector<16x8xf32>, vector<8x8xf32> -> vector<8x8xf32>
    %227 = arith.addf %220, %226 : vector<8x8xf32>
    %c0_208 = arith.constant 0 : index
    %c0_209 = arith.constant 0 : index
    %c0_210 = arith.constant 0 : index
    %228 = vector.load %arg13[%c0_208, %c0_209, %c0_210] : memref<22x1x8xf32, #tpu.memory_space<vmem>>, vector<1x1x8xf32>
    %229 = vector.shape_cast %228 : vector<1x1x8xf32> to vector<1x8xf32>
    %230 = vector.broadcast %229 : vector<1x8xf32> to vector<8x8xf32>
    %231 = arith.addf %227, %230 : vector<8x8xf32>
    %cst_211 = arith.constant 0.000000e+00 : f32
    %232 = vector.broadcast %cst_211 : f32 to vector<8x8xf32>
    %233 = arith.cmpf oge, %231, %232 : vector<8x8xf32>
    %cst_212 = arith.constant 2.500000e-01 : f32
    %234 = vector.broadcast %cst_212 : f32 to vector<8x8xf32>
    %235 = arith.mulf %234, %231 : vector<8x8xf32>
    %236 = arith.select %233, %231, %235 : vector<8x8xi1>, vector<8x8xf32>
    %c6_213 = arith.constant 6 : index
    %c0_214 = arith.constant 0 : index
    %c0_215 = arith.constant 0 : index
    %237 = vector.load %arg9[%c6_213, %c0_214, %c0_215] : memref<14x8x16xf32, #tpu.memory_space<vmem>>, vector<1x8x16xf32>
    %238 = vector.shape_cast %237 : vector<1x8x16xf32> to vector<8x16xf32>
    %cst_216 = arith.constant dense<0.000000e+00> : vector<8x16xf32>
    %239 = tpu.matmul %236, %238, %cst_216 {dimension_numbers = #tpu.dot_dimension_numbers<[1], [0], [0], [1], [0, 0, 1, 1], [], []>} : vector<8x8xf32>, vector<8x16xf32>, vector<8x16xf32> -> vector<8x16xf32>
    %c3_217 = arith.constant 3 : index
    %c0_218 = arith.constant 0 : index
    %c0_219 = arith.constant 0 : index
    %240 = vector.load %arg10[%c3_217, %c0_218, %c0_219] : memref<12x1x16xf32, #tpu.memory_space<vmem>>, vector<1x1x16xf32>
    %241 = vector.shape_cast %240 : vector<1x1x16xf32> to vector<1x16xf32>
    %242 = vector.broadcast %241 : vector<1x16xf32> to vector<8x16xf32>
    %243 = arith.addf %239, %242 : vector<8x16xf32>
    %244 = arith.addf %243, %195 : vector<8x16xf32>
    %cst_220 = arith.constant 0.000000e+00 : f32
    %245 = vector.broadcast %cst_220 : f32 to vector<8x16xf32>
    %246 = arith.cmpf oge, %244, %245 : vector<8x16xf32>
    %cst_221 = arith.constant 2.500000e-01 : f32
    %247 = vector.broadcast %cst_221 : f32 to vector<8x16xf32>
    %248 = arith.mulf %247, %244 : vector<8x16xf32>
    %249 = arith.select %246, %244, %248 : vector<8x16xi1>, vector<8x16xf32>
    %c10 = arith.constant 10 : index
    %c0_222 = arith.constant 0 : index
    %c0_223 = arith.constant 0 : index
    %250 = vector.load %arg12[%c10, %c0_222, %c0_223] : memref<45x8x8xf32, #tpu.memory_space<vmem>>, vector<1x8x8xf32>
    %251 = vector.shape_cast %250 : vector<1x8x8xf32> to vector<8x8xf32>
    %cst_224 = arith.constant dense<0.000000e+00> : vector<8x16xf32>
    %252 = tpu.matmul %251, %249, %cst_224 {dimension_numbers = #tpu.dot_dimension_numbers<[1], [0], [0], [1], [0, 0, 1, 1], [], []>} : vector<8x8xf32>, vector<8x16xf32>, vector<8x16xf32> -> vector<8x16xf32>
    %c4_225 = arith.constant 4 : index
    %c0_226 = arith.constant 0 : index
    %c0_227 = arith.constant 0 : index
    %253 = vector.load %arg11[%c4_225, %c0_226, %c0_227] : memref<14x16x8xf32, #tpu.memory_space<vmem>>, vector<1x16x8xf32>
    %254 = vector.shape_cast %253 : vector<1x16x8xf32> to vector<16x8xf32>
    %cst_228 = arith.constant dense<0.000000e+00> : vector<8x8xf32>
    %255 = tpu.matmul %252, %254, %cst_228 {dimension_numbers = #tpu.dot_dimension_numbers<[1], [0], [0], [1], [0, 0, 1, 1], [], []>} : vector<8x16xf32>, vector<16x8xf32>, vector<8x8xf32> -> vector<8x8xf32>
    %c11 = arith.constant 11 : index
    %c0_229 = arith.constant 0 : index
    %c0_230 = arith.constant 0 : index
    %256 = vector.load %arg12[%c11, %c0_229, %c0_230] : memref<45x8x8xf32, #tpu.memory_space<vmem>>, vector<1x8x8xf32>
    %257 = vector.shape_cast %256 : vector<1x8x8xf32> to vector<8x8xf32>
    %cst_231 = arith.constant dense<0.000000e+00> : vector<8x16xf32>
    %258 = tpu.matmul %257, %249, %cst_231 {dimension_numbers = #tpu.dot_dimension_numbers<[1], [0], [0], [1], [0, 0, 1, 1], [], []>} : vector<8x8xf32>, vector<8x16xf32>, vector<8x16xf32> -> vector<8x16xf32>
    %c5_232 = arith.constant 5 : index
    %c0_233 = arith.constant 0 : index
    %c0_234 = arith.constant 0 : index
    %259 = vector.load %arg11[%c5_232, %c0_233, %c0_234] : memref<14x16x8xf32, #tpu.memory_space<vmem>>, vector<1x16x8xf32>
    %260 = vector.shape_cast %259 : vector<1x16x8xf32> to vector<16x8xf32>
    %cst_235 = arith.constant dense<0.000000e+00> : vector<8x8xf32>
    %261 = tpu.matmul %258, %260, %cst_235 {dimension_numbers = #tpu.dot_dimension_numbers<[1], [0], [0], [1], [0, 0, 1, 1], [], []>} : vector<8x16xf32>, vector<16x8xf32>, vector<8x8xf32> -> vector<8x8xf32>
    %262 = arith.addf %255, %261 : vector<8x8xf32>
    %c3_236 = arith.constant 3 : index
    %c0_237 = arith.constant 0 : index
    %c0_238 = arith.constant 0 : index
    %263 = vector.load %arg13[%c3_236, %c0_237, %c0_238] : memref<22x1x8xf32, #tpu.memory_space<vmem>>, vector<1x1x8xf32>
    %264 = vector.shape_cast %263 : vector<1x1x8xf32> to vector<1x8xf32>
    %265 = vector.broadcast %264 : vector<1x8xf32> to vector<8x8xf32>
    %266 = arith.addf %262, %265 : vector<8x8xf32>
    %cst_239 = arith.constant 0.000000e+00 : f32
    %267 = vector.broadcast %cst_239 : f32 to vector<8x8xf32>
    %268 = arith.cmpf oge, %266, %267 : vector<8x8xf32>
    %cst_240 = arith.constant 2.500000e-01 : f32
    %269 = vector.broadcast %cst_240 : f32 to vector<8x8xf32>
    %270 = arith.mulf %269, %266 : vector<8x8xf32>
    %271 = arith.select %268, %266, %270 : vector<8x8xi1>, vector<8x8xf32>
    %c3_241 = arith.constant 3 : index
    %c0_242 = arith.constant 0 : index
    %c0_243 = arith.constant 0 : index
    %272 = vector.load %arg11[%c3_241, %c0_242, %c0_243] : memref<14x16x8xf32, #tpu.memory_space<vmem>>, vector<1x16x8xf32>
    %273 = vector.shape_cast %272 : vector<1x16x8xf32> to vector<16x8xf32>
    %cst_244 = arith.constant dense<0.000000e+00> : vector<8x8xf32>
    %274 = tpu.matmul %249, %273, %cst_244 {dimension_numbers = #tpu.dot_dimension_numbers<[1], [0], [0], [1], [0, 0, 1, 1], [], []>} : vector<8x16xf32>, vector<16x8xf32>, vector<8x8xf32> -> vector<8x8xf32>
    %c1_245 = arith.constant 1 : index
    %c0_246 = arith.constant 0 : index
    %c0_247 = arith.constant 0 : index
    %275 = vector.load %arg13[%c1_245, %c0_246, %c0_247] : memref<22x1x8xf32, #tpu.memory_space<vmem>>, vector<1x1x8xf32>
    %276 = vector.shape_cast %275 : vector<1x1x8xf32> to vector<1x8xf32>
    %277 = vector.broadcast %276 : vector<1x8xf32> to vector<8x8xf32>
    %278 = arith.addf %274, %277 : vector<8x8xf32>
    %cst_248 = arith.constant 0.000000e+00 : f32
    %279 = vector.broadcast %cst_248 : f32 to vector<8x8xf32>
    %280 = arith.cmpf oge, %278, %279 : vector<8x8xf32>
    %cst_249 = arith.constant 2.500000e-01 : f32
    %281 = vector.broadcast %cst_249 : f32 to vector<8x8xf32>
    %282 = arith.mulf %281, %278 : vector<8x8xf32>
    %283 = arith.select %280, %278, %282 : vector<8x8xi1>, vector<8x8xf32>
    %c7 = arith.constant 7 : index
    %c0_250 = arith.constant 0 : index
    %c0_251 = arith.constant 0 : index
    %284 = vector.load %arg12[%c7, %c0_250, %c0_251] : memref<45x8x8xf32, #tpu.memory_space<vmem>>, vector<1x8x8xf32>
    %285 = vector.shape_cast %284 : vector<1x8x8xf32> to vector<8x8xf32>
    %cst_252 = arith.constant dense<0.000000e+00> : vector<8x8xf32>
    %286 = tpu.matmul %285, %283, %cst_252 {dimension_numbers = #tpu.dot_dimension_numbers<[1], [0], [0], [1], [0, 0, 1, 1], [], []>} : vector<8x8xf32>, vector<8x8xf32>, vector<8x8xf32> -> vector<8x8xf32>
    %c6_253 = arith.constant 6 : index
    %c0_254 = arith.constant 0 : index
    %c0_255 = arith.constant 0 : index
    %287 = vector.load %arg12[%c6_253, %c0_254, %c0_255] : memref<45x8x8xf32, #tpu.memory_space<vmem>>, vector<1x8x8xf32>
    %288 = vector.shape_cast %287 : vector<1x8x8xf32> to vector<8x8xf32>
    %cst_256 = arith.constant dense<0.000000e+00> : vector<8x8xf32>
    %289 = tpu.matmul %286, %288, %cst_256 {dimension_numbers = #tpu.dot_dimension_numbers<[1], [0], [0], [1], [0, 0, 1, 1], [], []>} : vector<8x8xf32>, vector<8x8xf32>, vector<8x8xf32> -> vector<8x8xf32>
    %c9 = arith.constant 9 : index
    %c0_257 = arith.constant 0 : index
    %c0_258 = arith.constant 0 : index
    %290 = vector.load %arg12[%c9, %c0_257, %c0_258] : memref<45x8x8xf32, #tpu.memory_space<vmem>>, vector<1x8x8xf32>
    %291 = vector.shape_cast %290 : vector<1x8x8xf32> to vector<8x8xf32>
    %cst_259 = arith.constant dense<0.000000e+00> : vector<8x8xf32>
    %292 = tpu.matmul %291, %283, %cst_259 {dimension_numbers = #tpu.dot_dimension_numbers<[1], [0], [0], [1], [0, 0, 1, 1], [], []>} : vector<8x8xf32>, vector<8x8xf32>, vector<8x8xf32> -> vector<8x8xf32>
    %c8 = arith.constant 8 : index
    %c0_260 = arith.constant 0 : index
    %c0_261 = arith.constant 0 : index
    %293 = vector.load %arg12[%c8, %c0_260, %c0_261] : memref<45x8x8xf32, #tpu.memory_space<vmem>>, vector<1x8x8xf32>
    %294 = vector.shape_cast %293 : vector<1x8x8xf32> to vector<8x8xf32>
    %cst_262 = arith.constant dense<0.000000e+00> : vector<8x8xf32>
    %295 = tpu.matmul %292, %294, %cst_262 {dimension_numbers = #tpu.dot_dimension_numbers<[1], [0], [0], [1], [0, 0, 1, 1], [], []>} : vector<8x8xf32>, vector<8x8xf32>, vector<8x8xf32> -> vector<8x8xf32>
    %296 = arith.addf %289, %295 : vector<8x8xf32>
    %c2_263 = arith.constant 2 : index
    %c0_264 = arith.constant 0 : index
    %c0_265 = arith.constant 0 : index
    %297 = vector.load %arg13[%c2_263, %c0_264, %c0_265] : memref<22x1x8xf32, #tpu.memory_space<vmem>>, vector<1x1x8xf32>
    %298 = vector.shape_cast %297 : vector<1x1x8xf32> to vector<1x8xf32>
    %299 = vector.broadcast %298 : vector<1x8xf32> to vector<8x8xf32>
    %300 = arith.addf %296, %299 : vector<8x8xf32>
    %cst_266 = arith.constant 0.000000e+00 : f32
    %301 = vector.broadcast %cst_266 : f32 to vector<8x8xf32>
    %302 = arith.cmpf oge, %300, %301 : vector<8x8xf32>
    %cst_267 = arith.constant 2.500000e-01 : f32
    %303 = vector.broadcast %cst_267 : f32 to vector<8x8xf32>
    %304 = arith.mulf %303, %300 : vector<8x8xf32>
    %305 = arith.select %302, %300, %304 : vector<8x8xi1>, vector<8x8xf32>
    %c12 = arith.constant 12 : index
    %c0_268 = arith.constant 0 : index
    %c0_269 = arith.constant 0 : index
    %306 = vector.load %arg12[%c12, %c0_268, %c0_269] : memref<45x8x8xf32, #tpu.memory_space<vmem>>, vector<1x8x8xf32>
    %307 = vector.shape_cast %306 : vector<1x8x8xf32> to vector<8x8xf32>
    %cst_270 = arith.constant dense<0.000000e+00> : vector<8x8xf32>
    %308 = tpu.matmul %305, %307, %cst_270 {dimension_numbers = #tpu.dot_dimension_numbers<[1], [0], [0], [1], [0, 0, 1, 1], [], []>} : vector<8x8xf32>, vector<8x8xf32>, vector<8x8xf32> -> vector<8x8xf32>
    %c4_271 = arith.constant 4 : index
    %c0_272 = arith.constant 0 : index
    %c0_273 = arith.constant 0 : index
    %309 = vector.load %arg13[%c4_271, %c0_272, %c0_273] : memref<22x1x8xf32, #tpu.memory_space<vmem>>, vector<1x1x8xf32>
    %310 = vector.shape_cast %309 : vector<1x1x8xf32> to vector<1x8xf32>
    %311 = vector.broadcast %310 : vector<1x8xf32> to vector<8x8xf32>
    %312 = arith.addf %308, %311 : vector<8x8xf32>
    %313 = arith.addf %312, %271 : vector<8x8xf32>
    %cst_274 = arith.constant 0.000000e+00 : f32
    %314 = vector.broadcast %cst_274 : f32 to vector<8x8xf32>
    %315 = arith.cmpf oge, %313, %314 : vector<8x8xf32>
    %cst_275 = arith.constant 2.500000e-01 : f32
    %316 = vector.broadcast %cst_275 : f32 to vector<8x8xf32>
    %317 = arith.mulf %316, %313 : vector<8x8xf32>
    %318 = arith.select %315, %313, %317 : vector<8x8xi1>, vector<8x8xf32>
    %c15 = arith.constant 15 : index
    %c0_276 = arith.constant 0 : index
    %c0_277 = arith.constant 0 : index
    %319 = vector.load %arg12[%c15, %c0_276, %c0_277] : memref<45x8x8xf32, #tpu.memory_space<vmem>>, vector<1x8x8xf32>
    %320 = vector.shape_cast %319 : vector<1x8x8xf32> to vector<8x8xf32>
    %cst_278 = arith.constant dense<0.000000e+00> : vector<8x8xf32>
    %321 = tpu.matmul %318, %320, %cst_278 {dimension_numbers = #tpu.dot_dimension_numbers<[1], [0], [0], [1], [0, 0, 1, 1], [], []>} : vector<8x8xf32>, vector<8x8xf32>, vector<8x8xf32> -> vector<8x8xf32>
    %c7_279 = arith.constant 7 : index
    %c0_280 = arith.constant 0 : index
    %c0_281 = arith.constant 0 : index
    %322 = vector.load %arg13[%c7_279, %c0_280, %c0_281] : memref<22x1x8xf32, #tpu.memory_space<vmem>>, vector<1x1x8xf32>
    %323 = vector.shape_cast %322 : vector<1x1x8xf32> to vector<1x8xf32>
    %324 = vector.broadcast %323 : vector<1x8xf32> to vector<8x8xf32>
    %325 = arith.addf %321, %324 : vector<8x8xf32>
    %c13 = arith.constant 13 : index
    %c0_282 = arith.constant 0 : index
    %c0_283 = arith.constant 0 : index
    %326 = vector.load %arg12[%c13, %c0_282, %c0_283] : memref<45x8x8xf32, #tpu.memory_space<vmem>>, vector<1x8x8xf32>
    %327 = vector.shape_cast %326 : vector<1x8x8xf32> to vector<8x8xf32>
    %cst_284 = arith.constant dense<0.000000e+00> : vector<8x8xf32>
    %328 = tpu.matmul %318, %327, %cst_284 {dimension_numbers = #tpu.dot_dimension_numbers<[1], [0], [0], [1], [0, 0, 1, 1], [], []>} : vector<8x8xf32>, vector<8x8xf32>, vector<8x8xf32> -> vector<8x8xf32>
    %c5_285 = arith.constant 5 : index
    %c0_286 = arith.constant 0 : index
    %c0_287 = arith.constant 0 : index
    %329 = vector.load %arg13[%c5_285, %c0_286, %c0_287] : memref<22x1x8xf32, #tpu.memory_space<vmem>>, vector<1x1x8xf32>
    %330 = vector.shape_cast %329 : vector<1x1x8xf32> to vector<1x8xf32>
    %331 = vector.broadcast %330 : vector<1x8xf32> to vector<8x8xf32>
    %332 = arith.addf %328, %331 : vector<8x8xf32>
    %cst_288 = arith.constant 0.000000e+00 : f32
    %333 = vector.broadcast %cst_288 : f32 to vector<8x8xf32>
    %334 = arith.cmpf oge, %332, %333 : vector<8x8xf32>
    %cst_289 = arith.constant 2.500000e-01 : f32
    %335 = vector.broadcast %cst_289 : f32 to vector<8x8xf32>
    %336 = arith.mulf %335, %332 : vector<8x8xf32>
    %337 = arith.select %334, %332, %336 : vector<8x8xi1>, vector<8x8xf32>
    %c14 = arith.constant 14 : index
    %c0_290 = arith.constant 0 : index
    %c0_291 = arith.constant 0 : index
    %338 = vector.load %arg12[%c14, %c0_290, %c0_291] : memref<45x8x8xf32, #tpu.memory_space<vmem>>, vector<1x8x8xf32>
    %339 = vector.shape_cast %338 : vector<1x8x8xf32> to vector<8x8xf32>
    %cst_292 = arith.constant dense<0.000000e+00> : vector<8x8xf32>
    %340 = tpu.matmul %337, %339, %cst_292 {dimension_numbers = #tpu.dot_dimension_numbers<[1], [0], [0], [1], [0, 0, 1, 1], [], []>} : vector<8x8xf32>, vector<8x8xf32>, vector<8x8xf32> -> vector<8x8xf32>
    %c6_293 = arith.constant 6 : index
    %c0_294 = arith.constant 0 : index
    %c0_295 = arith.constant 0 : index
    %341 = vector.load %arg13[%c6_293, %c0_294, %c0_295] : memref<22x1x8xf32, #tpu.memory_space<vmem>>, vector<1x1x8xf32>
    %342 = vector.shape_cast %341 : vector<1x1x8xf32> to vector<1x8xf32>
    %343 = vector.broadcast %342 : vector<1x8xf32> to vector<8x8xf32>
    %344 = arith.addf %340, %343 : vector<8x8xf32>
    %cst_296 = arith.constant 0.000000e+00 : f32
    %345 = vector.broadcast %cst_296 : f32 to vector<8x8xf32>
    %346 = arith.cmpf oge, %344, %345 : vector<8x8xf32>
    %cst_297 = arith.constant 2.500000e-01 : f32
    %347 = vector.broadcast %cst_297 : f32 to vector<8x8xf32>
    %348 = arith.mulf %347, %344 : vector<8x8xf32>
    %349 = arith.select %346, %344, %348 : vector<8x8xi1>, vector<8x8xf32>
    %c16 = arith.constant 16 : index
    %c0_298 = arith.constant 0 : index
    %c0_299 = arith.constant 0 : index
    %350 = vector.load %arg12[%c16, %c0_298, %c0_299] : memref<45x8x8xf32, #tpu.memory_space<vmem>>, vector<1x8x8xf32>
    %351 = vector.shape_cast %350 : vector<1x8x8xf32> to vector<8x8xf32>
    %cst_300 = arith.constant dense<0.000000e+00> : vector<8x8xf32>
    %352 = tpu.matmul %349, %351, %cst_300 {dimension_numbers = #tpu.dot_dimension_numbers<[1], [0], [0], [1], [0, 0, 1, 1], [], []>} : vector<8x8xf32>, vector<8x8xf32>, vector<8x8xf32> -> vector<8x8xf32>
    %c8_301 = arith.constant 8 : index
    %c0_302 = arith.constant 0 : index
    %c0_303 = arith.constant 0 : index
    %353 = vector.load %arg13[%c8_301, %c0_302, %c0_303] : memref<22x1x8xf32, #tpu.memory_space<vmem>>, vector<1x1x8xf32>
    %354 = vector.shape_cast %353 : vector<1x1x8xf32> to vector<1x8xf32>
    %355 = vector.broadcast %354 : vector<1x8xf32> to vector<8x8xf32>
    %356 = arith.addf %352, %355 : vector<8x8xf32>
    %357 = arith.addf %356, %325 : vector<8x8xf32>
    %cst_304 = arith.constant 0.000000e+00 : f32
    %358 = vector.broadcast %cst_304 : f32 to vector<8x8xf32>
    %359 = arith.cmpf oge, %357, %358 : vector<8x8xf32>
    %cst_305 = arith.constant 2.500000e-01 : f32
    %360 = vector.broadcast %cst_305 : f32 to vector<8x8xf32>
    %361 = arith.mulf %360, %357 : vector<8x8xf32>
    %362 = arith.select %359, %357, %361 : vector<8x8xi1>, vector<8x8xf32>
    %c19 = arith.constant 19 : index
    %c0_306 = arith.constant 0 : index
    %c0_307 = arith.constant 0 : index
    %363 = vector.load %arg12[%c19, %c0_306, %c0_307] : memref<45x8x8xf32, #tpu.memory_space<vmem>>, vector<1x8x8xf32>
    %364 = vector.shape_cast %363 : vector<1x8x8xf32> to vector<8x8xf32>
    %cst_308 = arith.constant dense<0.000000e+00> : vector<8x8xf32>
    %365 = tpu.matmul %362, %364, %cst_308 {dimension_numbers = #tpu.dot_dimension_numbers<[1], [0], [0], [1], [0, 0, 1, 1], [], []>} : vector<8x8xf32>, vector<8x8xf32>, vector<8x8xf32> -> vector<8x8xf32>
    %c11_309 = arith.constant 11 : index
    %c0_310 = arith.constant 0 : index
    %c0_311 = arith.constant 0 : index
    %366 = vector.load %arg13[%c11_309, %c0_310, %c0_311] : memref<22x1x8xf32, #tpu.memory_space<vmem>>, vector<1x1x8xf32>
    %367 = vector.shape_cast %366 : vector<1x1x8xf32> to vector<1x8xf32>
    %368 = vector.broadcast %367 : vector<1x8xf32> to vector<8x8xf32>
    %369 = arith.addf %365, %368 : vector<8x8xf32>
    %c17 = arith.constant 17 : index
    %c0_312 = arith.constant 0 : index
    %c0_313 = arith.constant 0 : index
    %370 = vector.load %arg12[%c17, %c0_312, %c0_313] : memref<45x8x8xf32, #tpu.memory_space<vmem>>, vector<1x8x8xf32>
    %371 = vector.shape_cast %370 : vector<1x8x8xf32> to vector<8x8xf32>
    %cst_314 = arith.constant dense<0.000000e+00> : vector<8x8xf32>
    %372 = tpu.matmul %362, %371, %cst_314 {dimension_numbers = #tpu.dot_dimension_numbers<[1], [0], [0], [1], [0, 0, 1, 1], [], []>} : vector<8x8xf32>, vector<8x8xf32>, vector<8x8xf32> -> vector<8x8xf32>
    %c9_315 = arith.constant 9 : index
    %c0_316 = arith.constant 0 : index
    %c0_317 = arith.constant 0 : index
    %373 = vector.load %arg13[%c9_315, %c0_316, %c0_317] : memref<22x1x8xf32, #tpu.memory_space<vmem>>, vector<1x1x8xf32>
    %374 = vector.shape_cast %373 : vector<1x1x8xf32> to vector<1x8xf32>
    %375 = vector.broadcast %374 : vector<1x8xf32> to vector<8x8xf32>
    %376 = arith.addf %372, %375 : vector<8x8xf32>
    %cst_318 = arith.constant 0.000000e+00 : f32
    %377 = vector.broadcast %cst_318 : f32 to vector<8x8xf32>
    %378 = arith.cmpf oge, %376, %377 : vector<8x8xf32>
    %cst_319 = arith.constant 2.500000e-01 : f32
    %379 = vector.broadcast %cst_319 : f32 to vector<8x8xf32>
    %380 = arith.mulf %379, %376 : vector<8x8xf32>
    %381 = arith.select %378, %376, %380 : vector<8x8xi1>, vector<8x8xf32>
    %c18 = arith.constant 18 : index
    %c0_320 = arith.constant 0 : index
    %c0_321 = arith.constant 0 : index
    %382 = vector.load %arg12[%c18, %c0_320, %c0_321] : memref<45x8x8xf32, #tpu.memory_space<vmem>>, vector<1x8x8xf32>
    %383 = vector.shape_cast %382 : vector<1x8x8xf32> to vector<8x8xf32>
    %cst_322 = arith.constant dense<0.000000e+00> : vector<8x8xf32>
    %384 = tpu.matmul %381, %383, %cst_322 {dimension_numbers = #tpu.dot_dimension_numbers<[1], [0], [0], [1], [0, 0, 1, 1], [], []>} : vector<8x8xf32>, vector<8x8xf32>, vector<8x8xf32> -> vector<8x8xf32>
    %c10_323 = arith.constant 10 : index
    %c0_324 = arith.constant 0 : index
    %c0_325 = arith.constant 0 : index
    %385 = vector.load %arg13[%c10_323, %c0_324, %c0_325] : memref<22x1x8xf32, #tpu.memory_space<vmem>>, vector<1x1x8xf32>
    %386 = vector.shape_cast %385 : vector<1x1x8xf32> to vector<1x8xf32>
    %387 = vector.broadcast %386 : vector<1x8xf32> to vector<8x8xf32>
    %388 = arith.addf %384, %387 : vector<8x8xf32>
    %cst_326 = arith.constant 0.000000e+00 : f32
    %389 = vector.broadcast %cst_326 : f32 to vector<8x8xf32>
    %390 = arith.cmpf oge, %388, %389 : vector<8x8xf32>
    %cst_327 = arith.constant 2.500000e-01 : f32
    %391 = vector.broadcast %cst_327 : f32 to vector<8x8xf32>
    %392 = arith.mulf %391, %388 : vector<8x8xf32>
    %393 = arith.select %390, %388, %392 : vector<8x8xi1>, vector<8x8xf32>
    %c20 = arith.constant 20 : index
    %c0_328 = arith.constant 0 : index
    %c0_329 = arith.constant 0 : index
    %394 = vector.load %arg12[%c20, %c0_328, %c0_329] : memref<45x8x8xf32, #tpu.memory_space<vmem>>, vector<1x8x8xf32>
    %395 = vector.shape_cast %394 : vector<1x8x8xf32> to vector<8x8xf32>
    %cst_330 = arith.constant dense<0.000000e+00> : vector<8x8xf32>
    %396 = tpu.matmul %393, %395, %cst_330 {dimension_numbers = #tpu.dot_dimension_numbers<[1], [0], [0], [1], [0, 0, 1, 1], [], []>} : vector<8x8xf32>, vector<8x8xf32>, vector<8x8xf32> -> vector<8x8xf32>
    %c12_331 = arith.constant 12 : index
    %c0_332 = arith.constant 0 : index
    %c0_333 = arith.constant 0 : index
    %397 = vector.load %arg13[%c12_331, %c0_332, %c0_333] : memref<22x1x8xf32, #tpu.memory_space<vmem>>, vector<1x1x8xf32>
    %398 = vector.shape_cast %397 : vector<1x1x8xf32> to vector<1x8xf32>
    %399 = vector.broadcast %398 : vector<1x8xf32> to vector<8x8xf32>
    %400 = arith.addf %396, %399 : vector<8x8xf32>
    %401 = arith.addf %400, %369 : vector<8x8xf32>
    %cst_334 = arith.constant 0.000000e+00 : f32
    %402 = vector.broadcast %cst_334 : f32 to vector<8x8xf32>
    %403 = arith.cmpf oge, %401, %402 : vector<8x8xf32>
    %cst_335 = arith.constant 2.500000e-01 : f32
    %404 = vector.broadcast %cst_335 : f32 to vector<8x8xf32>
    %405 = arith.mulf %404, %401 : vector<8x8xf32>
    %406 = arith.select %403, %401, %405 : vector<8x8xi1>, vector<8x8xf32>
    %c23 = arith.constant 23 : index
    %c0_336 = arith.constant 0 : index
    %c0_337 = arith.constant 0 : index
    %407 = vector.load %arg12[%c23, %c0_336, %c0_337] : memref<45x8x8xf32, #tpu.memory_space<vmem>>, vector<1x8x8xf32>
    %408 = vector.shape_cast %407 : vector<1x8x8xf32> to vector<8x8xf32>
    %cst_338 = arith.constant dense<0.000000e+00> : vector<8x8xf32>
    %409 = tpu.matmul %406, %408, %cst_338 {dimension_numbers = #tpu.dot_dimension_numbers<[1], [0], [0], [1], [0, 0, 1, 1], [], []>} : vector<8x8xf32>, vector<8x8xf32>, vector<8x8xf32> -> vector<8x8xf32>
    %c15_339 = arith.constant 15 : index
    %c0_340 = arith.constant 0 : index
    %c0_341 = arith.constant 0 : index
    %410 = vector.load %arg13[%c15_339, %c0_340, %c0_341] : memref<22x1x8xf32, #tpu.memory_space<vmem>>, vector<1x1x8xf32>
    %411 = vector.shape_cast %410 : vector<1x1x8xf32> to vector<1x8xf32>
    %412 = vector.broadcast %411 : vector<1x8xf32> to vector<8x8xf32>
    %413 = arith.addf %409, %412 : vector<8x8xf32>
    %c21 = arith.constant 21 : index
    %c0_342 = arith.constant 0 : index
    %c0_343 = arith.constant 0 : index
    %414 = vector.load %arg12[%c21, %c0_342, %c0_343] : memref<45x8x8xf32, #tpu.memory_space<vmem>>, vector<1x8x8xf32>
    %415 = vector.shape_cast %414 : vector<1x8x8xf32> to vector<8x8xf32>
    %cst_344 = arith.constant dense<0.000000e+00> : vector<8x8xf32>
    %416 = tpu.matmul %406, %415, %cst_344 {dimension_numbers = #tpu.dot_dimension_numbers<[1], [0], [0], [1], [0, 0, 1, 1], [], []>} : vector<8x8xf32>, vector<8x8xf32>, vector<8x8xf32> -> vector<8x8xf32>
    %c13_345 = arith.constant 13 : index
    %c0_346 = arith.constant 0 : index
    %c0_347 = arith.constant 0 : index
    %417 = vector.load %arg13[%c13_345, %c0_346, %c0_347] : memref<22x1x8xf32, #tpu.memory_space<vmem>>, vector<1x1x8xf32>
    %418 = vector.shape_cast %417 : vector<1x1x8xf32> to vector<1x8xf32>
    %419 = vector.broadcast %418 : vector<1x8xf32> to vector<8x8xf32>
    %420 = arith.addf %416, %419 : vector<8x8xf32>
    %cst_348 = arith.constant 0.000000e+00 : f32
    %421 = vector.broadcast %cst_348 : f32 to vector<8x8xf32>
    %422 = arith.cmpf oge, %420, %421 : vector<8x8xf32>
    %cst_349 = arith.constant 2.500000e-01 : f32
    %423 = vector.broadcast %cst_349 : f32 to vector<8x8xf32>
    %424 = arith.mulf %423, %420 : vector<8x8xf32>
    %425 = arith.select %422, %420, %424 : vector<8x8xi1>, vector<8x8xf32>
    %c22 = arith.constant 22 : index
    %c0_350 = arith.constant 0 : index
    %c0_351 = arith.constant 0 : index
    %426 = vector.load %arg12[%c22, %c0_350, %c0_351] : memref<45x8x8xf32, #tpu.memory_space<vmem>>, vector<1x8x8xf32>
    %427 = vector.shape_cast %426 : vector<1x8x8xf32> to vector<8x8xf32>
    %cst_352 = arith.constant dense<0.000000e+00> : vector<8x8xf32>
    %428 = tpu.matmul %425, %427, %cst_352 {dimension_numbers = #tpu.dot_dimension_numbers<[1], [0], [0], [1], [0, 0, 1, 1], [], []>} : vector<8x8xf32>, vector<8x8xf32>, vector<8x8xf32> -> vector<8x8xf32>
    %c14_353 = arith.constant 14 : index
    %c0_354 = arith.constant 0 : index
    %c0_355 = arith.constant 0 : index
    %429 = vector.load %arg13[%c14_353, %c0_354, %c0_355] : memref<22x1x8xf32, #tpu.memory_space<vmem>>, vector<1x1x8xf32>
    %430 = vector.shape_cast %429 : vector<1x1x8xf32> to vector<1x8xf32>
    %431 = vector.broadcast %430 : vector<1x8xf32> to vector<8x8xf32>
    %432 = arith.addf %428, %431 : vector<8x8xf32>
    %cst_356 = arith.constant 0.000000e+00 : f32
    %433 = vector.broadcast %cst_356 : f32 to vector<8x8xf32>
    %434 = arith.cmpf oge, %432, %433 : vector<8x8xf32>
    %cst_357 = arith.constant 2.500000e-01 : f32
    %435 = vector.broadcast %cst_357 : f32 to vector<8x8xf32>
    %436 = arith.mulf %435, %432 : vector<8x8xf32>
    %437 = arith.select %434, %432, %436 : vector<8x8xi1>, vector<8x8xf32>
    %c24 = arith.constant 24 : index
    %c0_358 = arith.constant 0 : index
    %c0_359 = arith.constant 0 : index
    %438 = vector.load %arg12[%c24, %c0_358, %c0_359] : memref<45x8x8xf32, #tpu.memory_space<vmem>>, vector<1x8x8xf32>
    %439 = vector.shape_cast %438 : vector<1x8x8xf32> to vector<8x8xf32>
    %cst_360 = arith.constant dense<0.000000e+00> : vector<8x8xf32>
    %440 = tpu.matmul %437, %439, %cst_360 {dimension_numbers = #tpu.dot_dimension_numbers<[1], [0], [0], [1], [0, 0, 1, 1], [], []>} : vector<8x8xf32>, vector<8x8xf32>, vector<8x8xf32> -> vector<8x8xf32>
    %c16_361 = arith.constant 16 : index
    %c0_362 = arith.constant 0 : index
    %c0_363 = arith.constant 0 : index
    %441 = vector.load %arg13[%c16_361, %c0_362, %c0_363] : memref<22x1x8xf32, #tpu.memory_space<vmem>>, vector<1x1x8xf32>
    %442 = vector.shape_cast %441 : vector<1x1x8xf32> to vector<1x8xf32>
    %443 = vector.broadcast %442 : vector<1x8xf32> to vector<8x8xf32>
    %444 = arith.addf %440, %443 : vector<8x8xf32>
    %445 = arith.addf %444, %413 : vector<8x8xf32>
    %cst_364 = arith.constant 0.000000e+00 : f32
    %446 = vector.broadcast %cst_364 : f32 to vector<8x8xf32>
    %447 = arith.cmpf oge, %445, %446 : vector<8x8xf32>
    %cst_365 = arith.constant 2.500000e-01 : f32
    %448 = vector.broadcast %cst_365 : f32 to vector<8x8xf32>
    %449 = arith.mulf %448, %445 : vector<8x8xf32>
    %450 = arith.select %447, %445, %449 : vector<8x8xi1>, vector<8x8xf32>
    %c30 = arith.constant 30 : index
    %c0_366 = arith.constant 0 : index
    %c0_367 = arith.constant 0 : index
    %451 = vector.load %arg12[%c30, %c0_366, %c0_367] : memref<45x8x8xf32, #tpu.memory_space<vmem>>, vector<1x8x8xf32>
    %452 = vector.shape_cast %451 : vector<1x8x8xf32> to vector<8x8xf32>
    %cst_368 = arith.constant dense<0.000000e+00> : vector<8x8xf32>
    %453 = tpu.matmul %452, %450, %cst_368 {dimension_numbers = #tpu.dot_dimension_numbers<[1], [0], [0], [1], [0, 0, 1, 1], [], []>} : vector<8x8xf32>, vector<8x8xf32>, vector<8x8xf32> -> vector<8x8xf32>
    %c7_369 = arith.constant 7 : index
    %c0_370 = arith.constant 0 : index
    %c0_371 = arith.constant 0 : index
    %454 = vector.load %arg9[%c7_369, %c0_370, %c0_371] : memref<14x8x16xf32, #tpu.memory_space<vmem>>, vector<1x8x16xf32>
    %455 = vector.shape_cast %454 : vector<1x8x16xf32> to vector<8x16xf32>
    %cst_372 = arith.constant dense<0.000000e+00> : vector<8x16xf32>
    %456 = tpu.matmul %453, %455, %cst_372 {dimension_numbers = #tpu.dot_dimension_numbers<[1], [0], [0], [1], [0, 0, 1, 1], [], []>} : vector<8x8xf32>, vector<8x16xf32>, vector<8x16xf32> -> vector<8x16xf32>
    %c31 = arith.constant 31 : index
    %c0_373 = arith.constant 0 : index
    %c0_374 = arith.constant 0 : index
    %457 = vector.load %arg12[%c31, %c0_373, %c0_374] : memref<45x8x8xf32, #tpu.memory_space<vmem>>, vector<1x8x8xf32>
    %458 = vector.shape_cast %457 : vector<1x8x8xf32> to vector<8x8xf32>
    %cst_375 = arith.constant dense<0.000000e+00> : vector<8x8xf32>
    %459 = tpu.matmul %458, %450, %cst_375 {dimension_numbers = #tpu.dot_dimension_numbers<[1], [0], [0], [1], [0, 0, 1, 1], [], []>} : vector<8x8xf32>, vector<8x8xf32>, vector<8x8xf32> -> vector<8x8xf32>
    %c8_376 = arith.constant 8 : index
    %c0_377 = arith.constant 0 : index
    %c0_378 = arith.constant 0 : index
    %460 = vector.load %arg9[%c8_376, %c0_377, %c0_378] : memref<14x8x16xf32, #tpu.memory_space<vmem>>, vector<1x8x16xf32>
    %461 = vector.shape_cast %460 : vector<1x8x16xf32> to vector<8x16xf32>
    %cst_379 = arith.constant dense<0.000000e+00> : vector<8x16xf32>
    %462 = tpu.matmul %459, %461, %cst_379 {dimension_numbers = #tpu.dot_dimension_numbers<[1], [0], [0], [1], [0, 0, 1, 1], [], []>} : vector<8x8xf32>, vector<8x16xf32>, vector<8x16xf32> -> vector<8x16xf32>
    %463 = arith.addf %456, %462 : vector<8x16xf32>
    %c4_380 = arith.constant 4 : index
    %c0_381 = arith.constant 0 : index
    %c0_382 = arith.constant 0 : index
    %464 = vector.load %arg10[%c4_380, %c0_381, %c0_382] : memref<12x1x16xf32, #tpu.memory_space<vmem>>, vector<1x1x16xf32>
    %465 = vector.shape_cast %464 : vector<1x1x16xf32> to vector<1x16xf32>
    %466 = vector.broadcast %465 : vector<1x16xf32> to vector<8x16xf32>
    %467 = arith.addf %463, %466 : vector<8x16xf32>
    %cst_383 = arith.constant 0.000000e+00 : f32
    %468 = vector.broadcast %cst_383 : f32 to vector<8x16xf32>
    %469 = arith.cmpf oge, %467, %468 : vector<8x16xf32>
    %cst_384 = arith.constant 2.500000e-01 : f32
    %470 = vector.broadcast %cst_384 : f32 to vector<8x16xf32>
    %471 = arith.mulf %470, %467 : vector<8x16xf32>
    %472 = arith.select %469, %467, %471 : vector<8x16xi1>, vector<8x16xf32>
    %c25 = arith.constant 25 : index
    %c0_385 = arith.constant 0 : index
    %c0_386 = arith.constant 0 : index
    %473 = vector.load %arg12[%c25, %c0_385, %c0_386] : memref<45x8x8xf32, #tpu.memory_space<vmem>>, vector<1x8x8xf32>
    %474 = vector.shape_cast %473 : vector<1x8x8xf32> to vector<8x8xf32>
    %cst_387 = arith.constant dense<0.000000e+00> : vector<8x8xf32>
    %475 = tpu.matmul %450, %474, %cst_387 {dimension_numbers = #tpu.dot_dimension_numbers<[1], [0], [0], [1], [0, 0, 1, 1], [], []>} : vector<8x8xf32>, vector<8x8xf32>, vector<8x8xf32> -> vector<8x8xf32>
    %c17_388 = arith.constant 17 : index
    %c0_389 = arith.constant 0 : index
    %c0_390 = arith.constant 0 : index
    %476 = vector.load %arg13[%c17_388, %c0_389, %c0_390] : memref<22x1x8xf32, #tpu.memory_space<vmem>>, vector<1x1x8xf32>
    %477 = vector.shape_cast %476 : vector<1x1x8xf32> to vector<1x8xf32>
    %478 = vector.broadcast %477 : vector<1x8xf32> to vector<8x8xf32>
    %479 = arith.addf %475, %478 : vector<8x8xf32>
    %cst_391 = arith.constant 0.000000e+00 : f32
    %480 = vector.broadcast %cst_391 : f32 to vector<8x8xf32>
    %481 = arith.cmpf oge, %479, %480 : vector<8x8xf32>
    %cst_392 = arith.constant 2.500000e-01 : f32
    %482 = vector.broadcast %cst_392 : f32 to vector<8x8xf32>
    %483 = arith.mulf %482, %479 : vector<8x8xf32>
    %484 = arith.select %481, %479, %483 : vector<8x8xi1>, vector<8x8xf32>
    %c27 = arith.constant 27 : index
    %c0_393 = arith.constant 0 : index
    %c0_394 = arith.constant 0 : index
    %485 = vector.load %arg12[%c27, %c0_393, %c0_394] : memref<45x8x8xf32, #tpu.memory_space<vmem>>, vector<1x8x8xf32>
    %486 = vector.shape_cast %485 : vector<1x8x8xf32> to vector<8x8xf32>
    %cst_395 = arith.constant dense<0.000000e+00> : vector<8x8xf32>
    %487 = tpu.matmul %486, %484, %cst_395 {dimension_numbers = #tpu.dot_dimension_numbers<[1], [0], [0], [1], [0, 0, 1, 1], [], []>} : vector<8x8xf32>, vector<8x8xf32>, vector<8x8xf32> -> vector<8x8xf32>
    %c26 = arith.constant 26 : index
    %c0_396 = arith.constant 0 : index
    %c0_397 = arith.constant 0 : index
    %488 = vector.load %arg12[%c26, %c0_396, %c0_397] : memref<45x8x8xf32, #tpu.memory_space<vmem>>, vector<1x8x8xf32>
    %489 = vector.shape_cast %488 : vector<1x8x8xf32> to vector<8x8xf32>
    %cst_398 = arith.constant dense<0.000000e+00> : vector<8x8xf32>
    %490 = tpu.matmul %487, %489, %cst_398 {dimension_numbers = #tpu.dot_dimension_numbers<[1], [0], [0], [1], [0, 0, 1, 1], [], []>} : vector<8x8xf32>, vector<8x8xf32>, vector<8x8xf32> -> vector<8x8xf32>
    %c29 = arith.constant 29 : index
    %c0_399 = arith.constant 0 : index
    %c0_400 = arith.constant 0 : index
    %491 = vector.load %arg12[%c29, %c0_399, %c0_400] : memref<45x8x8xf32, #tpu.memory_space<vmem>>, vector<1x8x8xf32>
    %492 = vector.shape_cast %491 : vector<1x8x8xf32> to vector<8x8xf32>
    %cst_401 = arith.constant dense<0.000000e+00> : vector<8x8xf32>
    %493 = tpu.matmul %492, %484, %cst_401 {dimension_numbers = #tpu.dot_dimension_numbers<[1], [0], [0], [1], [0, 0, 1, 1], [], []>} : vector<8x8xf32>, vector<8x8xf32>, vector<8x8xf32> -> vector<8x8xf32>
    %c28 = arith.constant 28 : index
    %c0_402 = arith.constant 0 : index
    %c0_403 = arith.constant 0 : index
    %494 = vector.load %arg12[%c28, %c0_402, %c0_403] : memref<45x8x8xf32, #tpu.memory_space<vmem>>, vector<1x8x8xf32>
    %495 = vector.shape_cast %494 : vector<1x8x8xf32> to vector<8x8xf32>
    %cst_404 = arith.constant dense<0.000000e+00> : vector<8x8xf32>
    %496 = tpu.matmul %493, %495, %cst_404 {dimension_numbers = #tpu.dot_dimension_numbers<[1], [0], [0], [1], [0, 0, 1, 1], [], []>} : vector<8x8xf32>, vector<8x8xf32>, vector<8x8xf32> -> vector<8x8xf32>
    %497 = arith.addf %490, %496 : vector<8x8xf32>
    %c18_405 = arith.constant 18 : index
    %c0_406 = arith.constant 0 : index
    %c0_407 = arith.constant 0 : index
    %498 = vector.load %arg13[%c18_405, %c0_406, %c0_407] : memref<22x1x8xf32, #tpu.memory_space<vmem>>, vector<1x1x8xf32>
    %499 = vector.shape_cast %498 : vector<1x1x8xf32> to vector<1x8xf32>
    %500 = vector.broadcast %499 : vector<1x8xf32> to vector<8x8xf32>
    %501 = arith.addf %497, %500 : vector<8x8xf32>
    %cst_408 = arith.constant 0.000000e+00 : f32
    %502 = vector.broadcast %cst_408 : f32 to vector<8x8xf32>
    %503 = arith.cmpf oge, %501, %502 : vector<8x8xf32>
    %cst_409 = arith.constant 2.500000e-01 : f32
    %504 = vector.broadcast %cst_409 : f32 to vector<8x8xf32>
    %505 = arith.mulf %504, %501 : vector<8x8xf32>
    %506 = arith.select %503, %501, %505 : vector<8x8xi1>, vector<8x8xf32>
    %c9_410 = arith.constant 9 : index
    %c0_411 = arith.constant 0 : index
    %c0_412 = arith.constant 0 : index
    %507 = vector.load %arg9[%c9_410, %c0_411, %c0_412] : memref<14x8x16xf32, #tpu.memory_space<vmem>>, vector<1x8x16xf32>
    %508 = vector.shape_cast %507 : vector<1x8x16xf32> to vector<8x16xf32>
    %cst_413 = arith.constant dense<0.000000e+00> : vector<8x16xf32>
    %509 = tpu.matmul %506, %508, %cst_413 {dimension_numbers = #tpu.dot_dimension_numbers<[1], [0], [0], [1], [0, 0, 1, 1], [], []>} : vector<8x8xf32>, vector<8x16xf32>, vector<8x16xf32> -> vector<8x16xf32>
    %c5_414 = arith.constant 5 : index
    %c0_415 = arith.constant 0 : index
    %c0_416 = arith.constant 0 : index
    %510 = vector.load %arg10[%c5_414, %c0_415, %c0_416] : memref<12x1x16xf32, #tpu.memory_space<vmem>>, vector<1x1x16xf32>
    %511 = vector.shape_cast %510 : vector<1x1x16xf32> to vector<1x16xf32>
    %512 = vector.broadcast %511 : vector<1x16xf32> to vector<8x16xf32>
    %513 = arith.addf %509, %512 : vector<8x16xf32>
    %514 = arith.addf %513, %472 : vector<8x16xf32>
    %cst_417 = arith.constant 0.000000e+00 : f32
    %515 = vector.broadcast %cst_417 : f32 to vector<8x16xf32>
    %516 = arith.cmpf oge, %514, %515 : vector<8x16xf32>
    %cst_418 = arith.constant 2.500000e-01 : f32
    %517 = vector.broadcast %cst_418 : f32 to vector<8x16xf32>
    %518 = arith.mulf %517, %514 : vector<8x16xf32>
    %519 = arith.select %516, %514, %518 : vector<8x16xi1>, vector<8x16xf32>
    %c5_419 = arith.constant 5 : index
    %c0_420 = arith.constant 0 : index
    %c0_421 = arith.constant 0 : index
    %520 = vector.load %arg19[%c5_419, %c0_420, %c0_421] : memref<6x16x16xf32, #tpu.memory_space<vmem>>, vector<1x16x16xf32>
    %521 = vector.shape_cast %520 : vector<1x16x16xf32> to vector<16x16xf32>
    %cst_422 = arith.constant dense<0.000000e+00> : vector<8x16xf32>
    %522 = tpu.matmul %249, %521, %cst_422 {dimension_numbers = #tpu.dot_dimension_numbers<[1], [0], [0], [1], [0, 0, 1, 1], [], []>} : vector<8x16xf32>, vector<16x16xf32>, vector<8x16xf32> -> vector<8x16xf32>
    %c10_423 = arith.constant 10 : index
    %c0_424 = arith.constant 0 : index
    %c0_425 = arith.constant 0 : index
    %523 = vector.load %arg10[%c10_423, %c0_424, %c0_425] : memref<12x1x16xf32, #tpu.memory_space<vmem>>, vector<1x1x16xf32>
    %524 = vector.shape_cast %523 : vector<1x1x16xf32> to vector<1x16xf32>
    %525 = vector.broadcast %524 : vector<1x16xf32> to vector<8x16xf32>
    %526 = arith.addf %522, %525 : vector<8x16xf32>
    %c13_426 = arith.constant 13 : index
    %c0_427 = arith.constant 0 : index
    %c0_428 = arith.constant 0 : index
    %527 = vector.load %arg11[%c13_426, %c0_427, %c0_428] : memref<14x16x8xf32, #tpu.memory_space<vmem>>, vector<1x16x8xf32>
    %528 = vector.shape_cast %527 : vector<1x16x8xf32> to vector<16x8xf32>
    %cst_429 = arith.constant dense<0.000000e+00> : vector<8x8xf32>
    %529 = tpu.matmul %249, %528, %cst_429 {dimension_numbers = #tpu.dot_dimension_numbers<[1], [0], [0], [1], [0, 0, 1, 1], [], []>} : vector<8x16xf32>, vector<16x8xf32>, vector<8x8xf32> -> vector<8x8xf32>
    %c20_430 = arith.constant 20 : index
    %c0_431 = arith.constant 0 : index
    %c0_432 = arith.constant 0 : index
    %530 = vector.load %arg13[%c20_430, %c0_431, %c0_432] : memref<22x1x8xf32, #tpu.memory_space<vmem>>, vector<1x1x8xf32>
    %531 = vector.shape_cast %530 : vector<1x1x8xf32> to vector<1x8xf32>
    %532 = vector.broadcast %531 : vector<1x8xf32> to vector<8x8xf32>
    %533 = arith.addf %529, %532 : vector<8x8xf32>
    %cst_433 = arith.constant 0.000000e+00 : f32
    %534 = vector.broadcast %cst_433 : f32 to vector<8x8xf32>
    %535 = arith.cmpf oge, %533, %534 : vector<8x8xf32>
    %cst_434 = arith.constant 2.500000e-01 : f32
    %536 = vector.broadcast %cst_434 : f32 to vector<8x8xf32>
    %537 = arith.mulf %536, %533 : vector<8x8xf32>
    %538 = arith.select %535, %533, %537 : vector<8x8xi1>, vector<8x8xf32>
    %c41 = arith.constant 41 : index
    %c0_435 = arith.constant 0 : index
    %c0_436 = arith.constant 0 : index
    %539 = vector.load %arg12[%c41, %c0_435, %c0_436] : memref<45x8x8xf32, #tpu.memory_space<vmem>>, vector<1x8x8xf32>
    %540 = vector.shape_cast %539 : vector<1x8x8xf32> to vector<8x8xf32>
    %cst_437 = arith.constant dense<0.000000e+00> : vector<8x8xf32>
    %541 = tpu.matmul %540, %538, %cst_437 {dimension_numbers = #tpu.dot_dimension_numbers<[1], [0], [0], [1], [0, 0, 1, 1], [], []>} : vector<8x8xf32>, vector<8x8xf32>, vector<8x8xf32> -> vector<8x8xf32>
    %c40 = arith.constant 40 : index
    %c0_438 = arith.constant 0 : index
    %c0_439 = arith.constant 0 : index
    %542 = vector.load %arg12[%c40, %c0_438, %c0_439] : memref<45x8x8xf32, #tpu.memory_space<vmem>>, vector<1x8x8xf32>
    %543 = vector.shape_cast %542 : vector<1x8x8xf32> to vector<8x8xf32>
    %cst_440 = arith.constant dense<0.000000e+00> : vector<8x8xf32>
    %544 = tpu.matmul %541, %543, %cst_440 {dimension_numbers = #tpu.dot_dimension_numbers<[1], [0], [0], [1], [0, 0, 1, 1], [], []>} : vector<8x8xf32>, vector<8x8xf32>, vector<8x8xf32> -> vector<8x8xf32>
    %c42 = arith.constant 42 : index
    %c0_441 = arith.constant 0 : index
    %c0_442 = arith.constant 0 : index
    %545 = vector.load %arg12[%c42, %c0_441, %c0_442] : memref<45x8x8xf32, #tpu.memory_space<vmem>>, vector<1x8x8xf32>
    %546 = vector.shape_cast %545 : vector<1x8x8xf32> to vector<8x8xf32>
    %cst_443 = arith.constant dense<0.000000e+00> : vector<8x8xf32>
    %547 = tpu.matmul %538, %546, %cst_443 {dimension_numbers = #tpu.dot_dimension_numbers<[1], [0], [0], [1], [0, 0, 1, 1], [], []>} : vector<8x8xf32>, vector<8x8xf32>, vector<8x8xf32> -> vector<8x8xf32>
    %548 = arith.addf %544, %547 : vector<8x8xf32>
    %c44 = arith.constant 44 : index
    %c0_444 = arith.constant 0 : index
    %c0_445 = arith.constant 0 : index
    %549 = vector.load %arg12[%c44, %c0_444, %c0_445] : memref<45x8x8xf32, #tpu.memory_space<vmem>>, vector<1x8x8xf32>
    %550 = vector.shape_cast %549 : vector<1x8x8xf32> to vector<8x8xf32>
    %cst_446 = arith.constant dense<0.000000e+00> : vector<8x8xf32>
    %551 = tpu.matmul %550, %538, %cst_446 {dimension_numbers = #tpu.dot_dimension_numbers<[1], [0], [0], [1], [0, 0, 1, 1], [], []>} : vector<8x8xf32>, vector<8x8xf32>, vector<8x8xf32> -> vector<8x8xf32>
    %c43 = arith.constant 43 : index
    %c0_447 = arith.constant 0 : index
    %c0_448 = arith.constant 0 : index
    %552 = vector.load %arg12[%c43, %c0_447, %c0_448] : memref<45x8x8xf32, #tpu.memory_space<vmem>>, vector<1x8x8xf32>
    %553 = vector.shape_cast %552 : vector<1x8x8xf32> to vector<8x8xf32>
    %cst_449 = arith.constant dense<0.000000e+00> : vector<8x8xf32>
    %554 = tpu.matmul %551, %553, %cst_449 {dimension_numbers = #tpu.dot_dimension_numbers<[1], [0], [0], [1], [0, 0, 1, 1], [], []>} : vector<8x8xf32>, vector<8x8xf32>, vector<8x8xf32> -> vector<8x8xf32>
    %555 = arith.addf %548, %554 : vector<8x8xf32>
    %c21_450 = arith.constant 21 : index
    %c0_451 = arith.constant 0 : index
    %c0_452 = arith.constant 0 : index
    %556 = vector.load %arg13[%c21_450, %c0_451, %c0_452] : memref<22x1x8xf32, #tpu.memory_space<vmem>>, vector<1x1x8xf32>
    %557 = vector.shape_cast %556 : vector<1x1x8xf32> to vector<1x8xf32>
    %558 = vector.broadcast %557 : vector<1x8xf32> to vector<8x8xf32>
    %559 = arith.addf %555, %558 : vector<8x8xf32>
    %cst_453 = arith.constant 0.000000e+00 : f32
    %560 = vector.broadcast %cst_453 : f32 to vector<8x8xf32>
    %561 = arith.cmpf oge, %559, %560 : vector<8x8xf32>
    %cst_454 = arith.constant 2.500000e-01 : f32
    %562 = vector.broadcast %cst_454 : f32 to vector<8x8xf32>
    %563 = arith.mulf %562, %559 : vector<8x8xf32>
    %564 = arith.select %561, %559, %563 : vector<8x8xi1>, vector<8x8xf32>
    %c13_455 = arith.constant 13 : index
    %c0_456 = arith.constant 0 : index
    %c0_457 = arith.constant 0 : index
    %565 = vector.load %arg9[%c13_455, %c0_456, %c0_457] : memref<14x8x16xf32, #tpu.memory_space<vmem>>, vector<1x8x16xf32>
    %566 = vector.shape_cast %565 : vector<1x8x16xf32> to vector<8x16xf32>
    %cst_458 = arith.constant dense<0.000000e+00> : vector<8x16xf32>
    %567 = tpu.matmul %564, %566, %cst_458 {dimension_numbers = #tpu.dot_dimension_numbers<[1], [0], [0], [1], [0, 0, 1, 1], [], []>} : vector<8x8xf32>, vector<8x16xf32>, vector<8x16xf32> -> vector<8x16xf32>
    %c11_459 = arith.constant 11 : index
    %c0_460 = arith.constant 0 : index
    %c0_461 = arith.constant 0 : index
    %568 = vector.load %arg10[%c11_459, %c0_460, %c0_461] : memref<12x1x16xf32, #tpu.memory_space<vmem>>, vector<1x1x16xf32>
    %569 = vector.shape_cast %568 : vector<1x1x16xf32> to vector<1x16xf32>
    %570 = vector.broadcast %569 : vector<1x16xf32> to vector<8x16xf32>
    %571 = arith.addf %567, %570 : vector<8x16xf32>
    %572 = arith.addf %571, %526 : vector<8x16xf32>
    %cst_462 = arith.constant 0.000000e+00 : f32
    %573 = vector.broadcast %cst_462 : f32 to vector<8x16xf32>
    %574 = arith.cmpf oge, %572, %573 : vector<8x16xf32>
    %cst_463 = arith.constant 2.500000e-01 : f32
    %575 = vector.broadcast %cst_463 : f32 to vector<8x16xf32>
    %576 = arith.mulf %575, %572 : vector<8x16xf32>
    %577 = arith.select %574, %572, %576 : vector<8x16xi1>, vector<8x16xf32>
    %578 = arith.addf %519, %577 : vector<8x16xf32>
    %c35 = arith.constant 35 : index
    %c0_464 = arith.constant 0 : index
    %c0_465 = arith.constant 0 : index
    %579 = vector.load %arg12[%c35, %c0_464, %c0_465] : memref<45x8x8xf32, #tpu.memory_space<vmem>>, vector<1x8x8xf32>
    %580 = vector.shape_cast %579 : vector<1x8x8xf32> to vector<8x8xf32>
    %cst_466 = arith.constant dense<0.000000e+00> : vector<8x16xf32>
    %581 = tpu.matmul %580, %578, %cst_466 {dimension_numbers = #tpu.dot_dimension_numbers<[1], [0], [0], [1], [0, 0, 1, 1], [], []>} : vector<8x8xf32>, vector<8x16xf32>, vector<8x16xf32> -> vector<8x16xf32>
    %c7_467 = arith.constant 7 : index
    %c0_468 = arith.constant 0 : index
    %c0_469 = arith.constant 0 : index
    %582 = vector.load %arg5[%c7_467, %c0_468, %c0_469] : memref<15x16x32xf32, #tpu.memory_space<vmem>>, vector<1x16x32xf32>
    %583 = vector.shape_cast %582 : vector<1x16x32xf32> to vector<16x32xf32>
    %cst_470 = arith.constant dense<0.000000e+00> : vector<8x32xf32>
    %584 = tpu.matmul %581, %583, %cst_470 {dimension_numbers = #tpu.dot_dimension_numbers<[1], [0], [0], [1], [0, 0, 1, 1], [], []>} : vector<8x16xf32>, vector<16x32xf32>, vector<8x32xf32> -> vector<8x32xf32>
    %c36 = arith.constant 36 : index
    %c0_471 = arith.constant 0 : index
    %c0_472 = arith.constant 0 : index
    %585 = vector.load %arg12[%c36, %c0_471, %c0_472] : memref<45x8x8xf32, #tpu.memory_space<vmem>>, vector<1x8x8xf32>
    %586 = vector.shape_cast %585 : vector<1x8x8xf32> to vector<8x8xf32>
    %cst_473 = arith.constant dense<0.000000e+00> : vector<8x16xf32>
    %587 = tpu.matmul %586, %578, %cst_473 {dimension_numbers = #tpu.dot_dimension_numbers<[1], [0], [0], [1], [0, 0, 1, 1], [], []>} : vector<8x8xf32>, vector<8x16xf32>, vector<8x16xf32> -> vector<8x16xf32>
    %c8_474 = arith.constant 8 : index
    %c0_475 = arith.constant 0 : index
    %c0_476 = arith.constant 0 : index
    %588 = vector.load %arg5[%c8_474, %c0_475, %c0_476] : memref<15x16x32xf32, #tpu.memory_space<vmem>>, vector<1x16x32xf32>
    %589 = vector.shape_cast %588 : vector<1x16x32xf32> to vector<16x32xf32>
    %cst_477 = arith.constant dense<0.000000e+00> : vector<8x32xf32>
    %590 = tpu.matmul %587, %589, %cst_477 {dimension_numbers = #tpu.dot_dimension_numbers<[1], [0], [0], [1], [0, 0, 1, 1], [], []>} : vector<8x16xf32>, vector<16x32xf32>, vector<8x32xf32> -> vector<8x32xf32>
    %591 = arith.addf %584, %590 : vector<8x32xf32>
    %c37 = arith.constant 37 : index
    %c0_478 = arith.constant 0 : index
    %c0_479 = arith.constant 0 : index
    %592 = vector.load %arg12[%c37, %c0_478, %c0_479] : memref<45x8x8xf32, #tpu.memory_space<vmem>>, vector<1x8x8xf32>
    %593 = vector.shape_cast %592 : vector<1x8x8xf32> to vector<8x8xf32>
    %cst_480 = arith.constant dense<0.000000e+00> : vector<8x16xf32>
    %594 = tpu.matmul %593, %578, %cst_480 {dimension_numbers = #tpu.dot_dimension_numbers<[1], [0], [0], [1], [0, 0, 1, 1], [], []>} : vector<8x8xf32>, vector<8x16xf32>, vector<8x16xf32> -> vector<8x16xf32>
    %c9_481 = arith.constant 9 : index
    %c0_482 = arith.constant 0 : index
    %c0_483 = arith.constant 0 : index
    %595 = vector.load %arg5[%c9_481, %c0_482, %c0_483] : memref<15x16x32xf32, #tpu.memory_space<vmem>>, vector<1x16x32xf32>
    %596 = vector.shape_cast %595 : vector<1x16x32xf32> to vector<16x32xf32>
    %cst_484 = arith.constant dense<0.000000e+00> : vector<8x32xf32>
    %597 = tpu.matmul %594, %596, %cst_484 {dimension_numbers = #tpu.dot_dimension_numbers<[1], [0], [0], [1], [0, 0, 1, 1], [], []>} : vector<8x16xf32>, vector<16x32xf32>, vector<8x32xf32> -> vector<8x32xf32>
    %598 = arith.addf %591, %597 : vector<8x32xf32>
    %c4_485 = arith.constant 4 : index
    %c0_486 = arith.constant 0 : index
    %c0_487 = arith.constant 0 : index
    %599 = vector.load %arg6[%c4_485, %c0_486, %c0_487] : memref<12x1x32xf32, #tpu.memory_space<vmem>>, vector<1x1x32xf32>
    %600 = vector.shape_cast %599 : vector<1x1x32xf32> to vector<1x32xf32>
    %601 = vector.broadcast %600 : vector<1x32xf32> to vector<8x32xf32>
    %602 = arith.addf %598, %601 : vector<8x32xf32>
    %cst_488 = arith.constant 0.000000e+00 : f32
    %603 = vector.broadcast %cst_488 : f32 to vector<8x32xf32>
    %604 = arith.cmpf oge, %602, %603 : vector<8x32xf32>
    %cst_489 = arith.constant 2.500000e-01 : f32
    %605 = vector.broadcast %cst_489 : f32 to vector<8x32xf32>
    %606 = arith.mulf %605, %602 : vector<8x32xf32>
    %607 = arith.select %604, %602, %606 : vector<8x32xi1>, vector<8x32xf32>
    %c6_490 = arith.constant 6 : index
    %c0_491 = arith.constant 0 : index
    %c0_492 = arith.constant 0 : index
    %608 = vector.load %arg11[%c6_490, %c0_491, %c0_492] : memref<14x16x8xf32, #tpu.memory_space<vmem>>, vector<1x16x8xf32>
    %609 = vector.shape_cast %608 : vector<1x16x8xf32> to vector<16x8xf32>
    %cst_493 = arith.constant dense<0.000000e+00> : vector<8x8xf32>
    %610 = tpu.matmul %578, %609, %cst_493 {dimension_numbers = #tpu.dot_dimension_numbers<[1], [0], [0], [1], [0, 0, 1, 1], [], []>} : vector<8x16xf32>, vector<16x8xf32>, vector<8x8xf32> -> vector<8x8xf32>
    %c19_494 = arith.constant 19 : index
    %c0_495 = arith.constant 0 : index
    %c0_496 = arith.constant 0 : index
    %611 = vector.load %arg13[%c19_494, %c0_495, %c0_496] : memref<22x1x8xf32, #tpu.memory_space<vmem>>, vector<1x1x8xf32>
    %612 = vector.shape_cast %611 : vector<1x1x8xf32> to vector<1x8xf32>
    %613 = vector.broadcast %612 : vector<1x8xf32> to vector<8x8xf32>
    %614 = arith.addf %610, %613 : vector<8x8xf32>
    %cst_497 = arith.constant 0.000000e+00 : f32
    %615 = vector.broadcast %cst_497 : f32 to vector<8x8xf32>
    %616 = arith.cmpf oge, %614, %615 : vector<8x8xf32>
    %cst_498 = arith.constant 2.500000e-01 : f32
    %617 = vector.broadcast %cst_498 : f32 to vector<8x8xf32>
    %618 = arith.mulf %617, %614 : vector<8x8xf32>
    %619 = arith.select %616, %614, %618 : vector<8x8xi1>, vector<8x8xf32>
    %c32 = arith.constant 32 : index
    %c0_499 = arith.constant 0 : index
    %c0_500 = arith.constant 0 : index
    %620 = vector.load %arg12[%c32, %c0_499, %c0_500] : memref<45x8x8xf32, #tpu.memory_space<vmem>>, vector<1x8x8xf32>
    %621 = vector.shape_cast %620 : vector<1x8x8xf32> to vector<8x8xf32>
    %cst_501 = arith.constant dense<0.000000e+00> : vector<8x8xf32>
    %622 = tpu.matmul %621, %619, %cst_501 {dimension_numbers = #tpu.dot_dimension_numbers<[1], [0], [0], [1], [0, 0, 1, 1], [], []>} : vector<8x8xf32>, vector<8x8xf32>, vector<8x8xf32> -> vector<8x8xf32>
    %c10_502 = arith.constant 10 : index
    %c0_503 = arith.constant 0 : index
    %c0_504 = arith.constant 0 : index
    %623 = vector.load %arg9[%c10_502, %c0_503, %c0_504] : memref<14x8x16xf32, #tpu.memory_space<vmem>>, vector<1x8x16xf32>
    %624 = vector.shape_cast %623 : vector<1x8x16xf32> to vector<8x16xf32>
    %cst_505 = arith.constant dense<0.000000e+00> : vector<8x16xf32>
    %625 = tpu.matmul %622, %624, %cst_505 {dimension_numbers = #tpu.dot_dimension_numbers<[1], [0], [0], [1], [0, 0, 1, 1], [], []>} : vector<8x8xf32>, vector<8x16xf32>, vector<8x16xf32> -> vector<8x16xf32>
    %c33 = arith.constant 33 : index
    %c0_506 = arith.constant 0 : index
    %c0_507 = arith.constant 0 : index
    %626 = vector.load %arg12[%c33, %c0_506, %c0_507] : memref<45x8x8xf32, #tpu.memory_space<vmem>>, vector<1x8x8xf32>
    %627 = vector.shape_cast %626 : vector<1x8x8xf32> to vector<8x8xf32>
    %cst_508 = arith.constant dense<0.000000e+00> : vector<8x8xf32>
    %628 = tpu.matmul %627, %619, %cst_508 {dimension_numbers = #tpu.dot_dimension_numbers<[1], [0], [0], [1], [0, 0, 1, 1], [], []>} : vector<8x8xf32>, vector<8x8xf32>, vector<8x8xf32> -> vector<8x8xf32>
    %c11_509 = arith.constant 11 : index
    %c0_510 = arith.constant 0 : index
    %c0_511 = arith.constant 0 : index
    %629 = vector.load %arg9[%c11_509, %c0_510, %c0_511] : memref<14x8x16xf32, #tpu.memory_space<vmem>>, vector<1x8x16xf32>
    %630 = vector.shape_cast %629 : vector<1x8x16xf32> to vector<8x16xf32>
    %cst_512 = arith.constant dense<0.000000e+00> : vector<8x16xf32>
    %631 = tpu.matmul %628, %630, %cst_512 {dimension_numbers = #tpu.dot_dimension_numbers<[1], [0], [0], [1], [0, 0, 1, 1], [], []>} : vector<8x8xf32>, vector<8x16xf32>, vector<8x16xf32> -> vector<8x16xf32>
    %632 = arith.addf %625, %631 : vector<8x16xf32>
    %c34 = arith.constant 34 : index
    %c0_513 = arith.constant 0 : index
    %c0_514 = arith.constant 0 : index
    %633 = vector.load %arg12[%c34, %c0_513, %c0_514] : memref<45x8x8xf32, #tpu.memory_space<vmem>>, vector<1x8x8xf32>
    %634 = vector.shape_cast %633 : vector<1x8x8xf32> to vector<8x8xf32>
    %cst_515 = arith.constant dense<0.000000e+00> : vector<8x8xf32>
    %635 = tpu.matmul %634, %619, %cst_515 {dimension_numbers = #tpu.dot_dimension_numbers<[1], [0], [0], [1], [0, 0, 1, 1], [], []>} : vector<8x8xf32>, vector<8x8xf32>, vector<8x8xf32> -> vector<8x8xf32>
    %c12_516 = arith.constant 12 : index
    %c0_517 = arith.constant 0 : index
    %c0_518 = arith.constant 0 : index
    %636 = vector.load %arg9[%c12_516, %c0_517, %c0_518] : memref<14x8x16xf32, #tpu.memory_space<vmem>>, vector<1x8x16xf32>
    %637 = vector.shape_cast %636 : vector<1x8x16xf32> to vector<8x16xf32>
    %cst_519 = arith.constant dense<0.000000e+00> : vector<8x16xf32>
    %638 = tpu.matmul %635, %637, %cst_519 {dimension_numbers = #tpu.dot_dimension_numbers<[1], [0], [0], [1], [0, 0, 1, 1], [], []>} : vector<8x8xf32>, vector<8x16xf32>, vector<8x16xf32> -> vector<8x16xf32>
    %639 = arith.addf %632, %638 : vector<8x16xf32>
    %c6_520 = arith.constant 6 : index
    %c0_521 = arith.constant 0 : index
    %c0_522 = arith.constant 0 : index
    %640 = vector.load %arg10[%c6_520, %c0_521, %c0_522] : memref<12x1x16xf32, #tpu.memory_space<vmem>>, vector<1x1x16xf32>
    %641 = vector.shape_cast %640 : vector<1x1x16xf32> to vector<1x16xf32>
    %642 = vector.broadcast %641 : vector<1x16xf32> to vector<8x16xf32>
    %643 = arith.addf %639, %642 : vector<8x16xf32>
    %cst_523 = arith.constant 0.000000e+00 : f32
    %644 = vector.broadcast %cst_523 : f32 to vector<8x16xf32>
    %645 = arith.cmpf oge, %643, %644 : vector<8x16xf32>
    %cst_524 = arith.constant 2.500000e-01 : f32
    %646 = vector.broadcast %cst_524 : f32 to vector<8x16xf32>
    %647 = arith.mulf %646, %643 : vector<8x16xf32>
    %648 = arith.select %645, %643, %647 : vector<8x16xi1>, vector<8x16xf32>
    %c10_525 = arith.constant 10 : index
    %c0_526 = arith.constant 0 : index
    %c0_527 = arith.constant 0 : index
    %649 = vector.load %arg5[%c10_525, %c0_526, %c0_527] : memref<15x16x32xf32, #tpu.memory_space<vmem>>, vector<1x16x32xf32>
    %650 = vector.shape_cast %649 : vector<1x16x32xf32> to vector<16x32xf32>
    %cst_528 = arith.constant dense<0.000000e+00> : vector<8x32xf32>
    %651 = tpu.matmul %648, %650, %cst_528 {dimension_numbers = #tpu.dot_dimension_numbers<[1], [0], [0], [1], [0, 0, 1, 1], [], []>} : vector<8x16xf32>, vector<16x32xf32>, vector<8x32xf32> -> vector<8x32xf32>
    %c5_529 = arith.constant 5 : index
    %c0_530 = arith.constant 0 : index
    %c0_531 = arith.constant 0 : index
    %652 = vector.load %arg6[%c5_529, %c0_530, %c0_531] : memref<12x1x32xf32, #tpu.memory_space<vmem>>, vector<1x1x32xf32>
    %653 = vector.shape_cast %652 : vector<1x1x32xf32> to vector<1x32xf32>
    %654 = vector.broadcast %653 : vector<1x32xf32> to vector<8x32xf32>
    %655 = arith.addf %651, %654 : vector<8x32xf32>
    %656 = arith.addf %655, %607 : vector<8x32xf32>
    %cst_532 = arith.constant 0.000000e+00 : f32
    %657 = vector.broadcast %cst_532 : f32 to vector<8x32xf32>
    %658 = arith.cmpf oge, %656, %657 : vector<8x32xf32>
    %cst_533 = arith.constant 2.500000e-01 : f32
    %659 = vector.broadcast %cst_533 : f32 to vector<8x32xf32>
    %660 = arith.mulf %659, %656 : vector<8x32xf32>
    %661 = arith.select %658, %656, %660 : vector<8x32xi1>, vector<8x32xf32>
    %c5_534 = arith.constant 5 : index
    %c0_535 = arith.constant 0 : index
    %c0_536 = arith.constant 0 : index
    %662 = vector.load %arg17[%c5_534, %c0_535, %c0_536] : memref<6x32x32xf32, #tpu.memory_space<vmem>>, vector<1x32x32xf32>
    %663 = vector.shape_cast %662 : vector<1x32x32xf32> to vector<32x32xf32>
    %cst_537 = arith.constant dense<0.000000e+00> : vector<8x32xf32>
    %664 = tpu.matmul %166, %663, %cst_537 {dimension_numbers = #tpu.dot_dimension_numbers<[1], [0], [0], [1], [0, 0, 1, 1], [], []>} : vector<8x32xf32>, vector<32x32xf32>, vector<8x32xf32> -> vector<8x32xf32>
    %c10_538 = arith.constant 10 : index
    %c0_539 = arith.constant 0 : index
    %c0_540 = arith.constant 0 : index
    %665 = vector.load %arg6[%c10_538, %c0_539, %c0_540] : memref<12x1x32xf32, #tpu.memory_space<vmem>>, vector<1x1x32xf32>
    %666 = vector.shape_cast %665 : vector<1x1x32xf32> to vector<1x32xf32>
    %667 = vector.broadcast %666 : vector<1x32xf32> to vector<8x32xf32>
    %668 = arith.addf %664, %667 : vector<8x32xf32>
    %c14_541 = arith.constant 14 : index
    %c0_542 = arith.constant 0 : index
    %c0_543 = arith.constant 0 : index
    %669 = vector.load %arg8[%c14_541, %c0_542, %c0_543] : memref<15x32x16xf32, #tpu.memory_space<vmem>>, vector<1x32x16xf32>
    %670 = vector.shape_cast %669 : vector<1x32x16xf32> to vector<32x16xf32>
    %cst_544 = arith.constant dense<0.000000e+00> : vector<8x16xf32>
    %671 = tpu.matmul %166, %670, %cst_544 {dimension_numbers = #tpu.dot_dimension_numbers<[1], [0], [0], [1], [0, 0, 1, 1], [], []>} : vector<8x32xf32>, vector<32x16xf32>, vector<8x16xf32> -> vector<8x16xf32>
    %c8_545 = arith.constant 8 : index
    %c0_546 = arith.constant 0 : index
    %c0_547 = arith.constant 0 : index
    %672 = vector.load %arg10[%c8_545, %c0_546, %c0_547] : memref<12x1x16xf32, #tpu.memory_space<vmem>>, vector<1x1x16xf32>
    %673 = vector.shape_cast %672 : vector<1x1x16xf32> to vector<1x16xf32>
    %674 = vector.broadcast %673 : vector<1x16xf32> to vector<8x16xf32>
    %675 = arith.addf %671, %674 : vector<8x16xf32>
    %cst_548 = arith.constant 0.000000e+00 : f32
    %676 = vector.broadcast %cst_548 : f32 to vector<8x16xf32>
    %677 = arith.cmpf oge, %675, %676 : vector<8x16xf32>
    %cst_549 = arith.constant 2.500000e-01 : f32
    %678 = vector.broadcast %cst_549 : f32 to vector<8x16xf32>
    %679 = arith.mulf %678, %675 : vector<8x16xf32>
    %680 = arith.select %677, %675, %679 : vector<8x16xi1>, vector<8x16xf32>
    %c38 = arith.constant 38 : index
    %c0_550 = arith.constant 0 : index
    %c0_551 = arith.constant 0 : index
    %681 = vector.load %arg12[%c38, %c0_550, %c0_551] : memref<45x8x8xf32, #tpu.memory_space<vmem>>, vector<1x8x8xf32>
    %682 = vector.shape_cast %681 : vector<1x8x8xf32> to vector<8x8xf32>
    %cst_552 = arith.constant dense<0.000000e+00> : vector<8x16xf32>
    %683 = tpu.matmul %682, %680, %cst_552 {dimension_numbers = #tpu.dot_dimension_numbers<[1], [0], [0], [1], [0, 0, 1, 1], [], []>} : vector<8x8xf32>, vector<8x16xf32>, vector<8x16xf32> -> vector<8x16xf32>
    %c2_553 = arith.constant 2 : index
    %c0_554 = arith.constant 0 : index
    %c0_555 = arith.constant 0 : index
    %684 = vector.load %arg19[%c2_553, %c0_554, %c0_555] : memref<6x16x16xf32, #tpu.memory_space<vmem>>, vector<1x16x16xf32>
    %685 = vector.shape_cast %684 : vector<1x16x16xf32> to vector<16x16xf32>
    %cst_556 = arith.constant dense<0.000000e+00> : vector<8x16xf32>
    %686 = tpu.matmul %683, %685, %cst_556 {dimension_numbers = #tpu.dot_dimension_numbers<[1], [0], [0], [1], [0, 0, 1, 1], [], []>} : vector<8x16xf32>, vector<16x16xf32>, vector<8x16xf32> -> vector<8x16xf32>
    %c3_557 = arith.constant 3 : index
    %c0_558 = arith.constant 0 : index
    %c0_559 = arith.constant 0 : index
    %687 = vector.load %arg19[%c3_557, %c0_558, %c0_559] : memref<6x16x16xf32, #tpu.memory_space<vmem>>, vector<1x16x16xf32>
    %688 = vector.shape_cast %687 : vector<1x16x16xf32> to vector<16x16xf32>
    %cst_560 = arith.constant dense<0.000000e+00> : vector<8x16xf32>
    %689 = tpu.matmul %680, %688, %cst_560 {dimension_numbers = #tpu.dot_dimension_numbers<[1], [0], [0], [1], [0, 0, 1, 1], [], []>} : vector<8x16xf32>, vector<16x16xf32>, vector<8x16xf32> -> vector<8x16xf32>
    %690 = arith.addf %686, %689 : vector<8x16xf32>
    %c39 = arith.constant 39 : index
    %c0_561 = arith.constant 0 : index
    %c0_562 = arith.constant 0 : index
    %691 = vector.load %arg12[%c39, %c0_561, %c0_562] : memref<45x8x8xf32, #tpu.memory_space<vmem>>, vector<1x8x8xf32>
    %692 = vector.shape_cast %691 : vector<1x8x8xf32> to vector<8x8xf32>
    %cst_563 = arith.constant dense<0.000000e+00> : vector<8x16xf32>
    %693 = tpu.matmul %692, %680, %cst_563 {dimension_numbers = #tpu.dot_dimension_numbers<[1], [0], [0], [1], [0, 0, 1, 1], [], []>} : vector<8x8xf32>, vector<8x16xf32>, vector<8x16xf32> -> vector<8x16xf32>
    %c4_564 = arith.constant 4 : index
    %c0_565 = arith.constant 0 : index
    %c0_566 = arith.constant 0 : index
    %694 = vector.load %arg19[%c4_564, %c0_565, %c0_566] : memref<6x16x16xf32, #tpu.memory_space<vmem>>, vector<1x16x16xf32>
    %695 = vector.shape_cast %694 : vector<1x16x16xf32> to vector<16x16xf32>
    %cst_567 = arith.constant dense<0.000000e+00> : vector<8x16xf32>
    %696 = tpu.matmul %693, %695, %cst_567 {dimension_numbers = #tpu.dot_dimension_numbers<[1], [0], [0], [1], [0, 0, 1, 1], [], []>} : vector<8x16xf32>, vector<16x16xf32>, vector<8x16xf32> -> vector<8x16xf32>
    %697 = arith.addf %690, %696 : vector<8x16xf32>
    %c9_568 = arith.constant 9 : index
    %c0_569 = arith.constant 0 : index
    %c0_570 = arith.constant 0 : index
    %698 = vector.load %arg10[%c9_568, %c0_569, %c0_570] : memref<12x1x16xf32, #tpu.memory_space<vmem>>, vector<1x1x16xf32>
    %699 = vector.shape_cast %698 : vector<1x1x16xf32> to vector<1x16xf32>
    %700 = vector.broadcast %699 : vector<1x16xf32> to vector<8x16xf32>
    %701 = arith.addf %697, %700 : vector<8x16xf32>
    %cst_571 = arith.constant 0.000000e+00 : f32
    %702 = vector.broadcast %cst_571 : f32 to vector<8x16xf32>
    %703 = arith.cmpf oge, %701, %702 : vector<8x16xf32>
    %cst_572 = arith.constant 2.500000e-01 : f32
    %704 = vector.broadcast %cst_572 : f32 to vector<8x16xf32>
    %705 = arith.mulf %704, %701 : vector<8x16xf32>
    %706 = arith.select %703, %701, %705 : vector<8x16xi1>, vector<8x16xf32>
    %c14_573 = arith.constant 14 : index
    %c0_574 = arith.constant 0 : index
    %c0_575 = arith.constant 0 : index
    %707 = vector.load %arg5[%c14_573, %c0_574, %c0_575] : memref<15x16x32xf32, #tpu.memory_space<vmem>>, vector<1x16x32xf32>
    %708 = vector.shape_cast %707 : vector<1x16x32xf32> to vector<16x32xf32>
    %cst_576 = arith.constant dense<0.000000e+00> : vector<8x32xf32>
    %709 = tpu.matmul %706, %708, %cst_576 {dimension_numbers = #tpu.dot_dimension_numbers<[1], [0], [0], [1], [0, 0, 1, 1], [], []>} : vector<8x16xf32>, vector<16x32xf32>, vector<8x32xf32> -> vector<8x32xf32>
    %c11_577 = arith.constant 11 : index
    %c0_578 = arith.constant 0 : index
    %c0_579 = arith.constant 0 : index
    %710 = vector.load %arg6[%c11_577, %c0_578, %c0_579] : memref<12x1x32xf32, #tpu.memory_space<vmem>>, vector<1x1x32xf32>
    %711 = vector.shape_cast %710 : vector<1x1x32xf32> to vector<1x32xf32>
    %712 = vector.broadcast %711 : vector<1x32xf32> to vector<8x32xf32>
    %713 = arith.addf %709, %712 : vector<8x32xf32>
    %714 = arith.addf %713, %668 : vector<8x32xf32>
    %cst_580 = arith.constant 0.000000e+00 : f32
    %715 = vector.broadcast %cst_580 : f32 to vector<8x32xf32>
    %716 = arith.cmpf oge, %714, %715 : vector<8x32xf32>
    %cst_581 = arith.constant 2.500000e-01 : f32
    %717 = vector.broadcast %cst_581 : f32 to vector<8x32xf32>
    %718 = arith.mulf %717, %714 : vector<8x32xf32>
    %719 = arith.select %716, %714, %718 : vector<8x32xi1>, vector<8x32xf32>
    %720 = arith.addf %661, %719 : vector<8x32xf32>
    %c10_582 = arith.constant 10 : index
    %c0_583 = arith.constant 0 : index
    %c0_584 = arith.constant 0 : index
    %721 = vector.load %arg11[%c10_582, %c0_583, %c0_584] : memref<14x16x8xf32, #tpu.memory_space<vmem>>, vector<1x16x8xf32>
    %722 = vector.shape_cast %721 : vector<1x16x8xf32> to vector<16x8xf32>
    %cst_585 = arith.constant dense<0.000000e+00> : vector<16x32xf32>
    %723 = tpu.matmul %722, %720, %cst_585 {dimension_numbers = #tpu.dot_dimension_numbers<[1], [0], [0], [1], [0, 0, 1, 1], [], []>} : vector<16x8xf32>, vector<8x32xf32>, vector<16x32xf32> -> vector<16x32xf32>
    %c1_586 = arith.constant 1 : index
    %c0_587 = arith.constant 0 : index
    %c0_588 = arith.constant 0 : index
    %724 = vector.load %arg7[%c1_586, %c0_587, %c0_588] : memref<9x32x64xf32, #tpu.memory_space<vmem>>, vector<1x32x64xf32>
    %725 = vector.shape_cast %724 : vector<1x32x64xf32> to vector<32x64xf32>
    %cst_589 = arith.constant dense<0.000000e+00> : vector<16x64xf32>
    %726 = tpu.matmul %723, %725, %cst_589 {dimension_numbers = #tpu.dot_dimension_numbers<[1], [0], [0], [1], [0, 0, 1, 1], [], []>} : vector<16x32xf32>, vector<32x64xf32>, vector<16x64xf32> -> vector<16x64xf32>
    %c11_590 = arith.constant 11 : index
    %c0_591 = arith.constant 0 : index
    %c0_592 = arith.constant 0 : index
    %727 = vector.load %arg11[%c11_590, %c0_591, %c0_592] : memref<14x16x8xf32, #tpu.memory_space<vmem>>, vector<1x16x8xf32>
    %728 = vector.shape_cast %727 : vector<1x16x8xf32> to vector<16x8xf32>
    %cst_593 = arith.constant dense<0.000000e+00> : vector<16x32xf32>
    %729 = tpu.matmul %728, %720, %cst_593 {dimension_numbers = #tpu.dot_dimension_numbers<[1], [0], [0], [1], [0, 0, 1, 1], [], []>} : vector<16x8xf32>, vector<8x32xf32>, vector<16x32xf32> -> vector<16x32xf32>
    %c2_594 = arith.constant 2 : index
    %c0_595 = arith.constant 0 : index
    %c0_596 = arith.constant 0 : index
    %730 = vector.load %arg7[%c2_594, %c0_595, %c0_596] : memref<9x32x64xf32, #tpu.memory_space<vmem>>, vector<1x32x64xf32>
    %731 = vector.shape_cast %730 : vector<1x32x64xf32> to vector<32x64xf32>
    %cst_597 = arith.constant dense<0.000000e+00> : vector<16x64xf32>
    %732 = tpu.matmul %729, %731, %cst_597 {dimension_numbers = #tpu.dot_dimension_numbers<[1], [0], [0], [1], [0, 0, 1, 1], [], []>} : vector<16x32xf32>, vector<32x64xf32>, vector<16x64xf32> -> vector<16x64xf32>
    %733 = arith.addf %726, %732 : vector<16x64xf32>
    %c12_598 = arith.constant 12 : index
    %c0_599 = arith.constant 0 : index
    %c0_600 = arith.constant 0 : index
    %734 = vector.load %arg11[%c12_598, %c0_599, %c0_600] : memref<14x16x8xf32, #tpu.memory_space<vmem>>, vector<1x16x8xf32>
    %735 = vector.shape_cast %734 : vector<1x16x8xf32> to vector<16x8xf32>
    %cst_601 = arith.constant dense<0.000000e+00> : vector<16x32xf32>
    %736 = tpu.matmul %735, %720, %cst_601 {dimension_numbers = #tpu.dot_dimension_numbers<[1], [0], [0], [1], [0, 0, 1, 1], [], []>} : vector<16x8xf32>, vector<8x32xf32>, vector<16x32xf32> -> vector<16x32xf32>
    %c3_602 = arith.constant 3 : index
    %c0_603 = arith.constant 0 : index
    %c0_604 = arith.constant 0 : index
    %737 = vector.load %arg7[%c3_602, %c0_603, %c0_604] : memref<9x32x64xf32, #tpu.memory_space<vmem>>, vector<1x32x64xf32>
    %738 = vector.shape_cast %737 : vector<1x32x64xf32> to vector<32x64xf32>
    %cst_605 = arith.constant dense<0.000000e+00> : vector<16x64xf32>
    %739 = tpu.matmul %736, %738, %cst_605 {dimension_numbers = #tpu.dot_dimension_numbers<[1], [0], [0], [1], [0, 0, 1, 1], [], []>} : vector<16x32xf32>, vector<32x64xf32>, vector<16x64xf32> -> vector<16x64xf32>
    %740 = arith.addf %733, %739 : vector<16x64xf32>
    %c3_606 = arith.constant 3 : index
    %c0_607 = arith.constant 0 : index
    %c0_608 = arith.constant 0 : index
    %741 = vector.load %arg3[%c3_606, %c0_607, %c0_608] : memref<10x1x64xf32, #tpu.memory_space<vmem>>, vector<1x1x64xf32>
    %742 = vector.shape_cast %741 : vector<1x1x64xf32> to vector<1x64xf32>
    %743 = vector.broadcast %742 : vector<1x64xf32> to vector<16x64xf32>
    %744 = arith.addf %740, %743 : vector<16x64xf32>
    %cst_609 = arith.constant 0.000000e+00 : f32
    %745 = vector.broadcast %cst_609 : f32 to vector<16x64xf32>
    %746 = arith.cmpf oge, %744, %745 : vector<16x64xf32>
    %cst_610 = arith.constant 2.500000e-01 : f32
    %747 = vector.broadcast %cst_610 : f32 to vector<16x64xf32>
    %748 = arith.mulf %747, %744 : vector<16x64xf32>
    %749 = arith.select %746, %744, %748 : vector<16x64xi1>, vector<16x64xf32>
    %c7_611 = arith.constant 7 : index
    %c0_612 = arith.constant 0 : index
    %c0_613 = arith.constant 0 : index
    %750 = vector.load %arg8[%c7_611, %c0_612, %c0_613] : memref<15x32x16xf32, #tpu.memory_space<vmem>>, vector<1x32x16xf32>
    %751 = vector.shape_cast %750 : vector<1x32x16xf32> to vector<32x16xf32>
    %cst_614 = arith.constant dense<0.000000e+00> : vector<8x16xf32>
    %752 = tpu.matmul %720, %751, %cst_614 {dimension_numbers = #tpu.dot_dimension_numbers<[1], [0], [0], [1], [0, 0, 1, 1], [], []>} : vector<8x32xf32>, vector<32x16xf32>, vector<8x16xf32> -> vector<8x16xf32>
    %c7_615 = arith.constant 7 : index
    %c0_616 = arith.constant 0 : index
    %c0_617 = arith.constant 0 : index
    %753 = vector.load %arg10[%c7_615, %c0_616, %c0_617] : memref<12x1x16xf32, #tpu.memory_space<vmem>>, vector<1x1x16xf32>
    %754 = vector.shape_cast %753 : vector<1x1x16xf32> to vector<1x16xf32>
    %755 = vector.broadcast %754 : vector<1x16xf32> to vector<8x16xf32>
    %756 = arith.addf %752, %755 : vector<8x16xf32>
    %cst_618 = arith.constant 0.000000e+00 : f32
    %757 = vector.broadcast %cst_618 : f32 to vector<8x16xf32>
    %758 = arith.cmpf oge, %756, %757 : vector<8x16xf32>
    %cst_619 = arith.constant 2.500000e-01 : f32
    %759 = vector.broadcast %cst_619 : f32 to vector<8x16xf32>
    %760 = arith.mulf %759, %756 : vector<8x16xf32>
    %761 = arith.select %758, %756, %760 : vector<8x16xi1>, vector<8x16xf32>
    %c7_620 = arith.constant 7 : index
    %c0_621 = arith.constant 0 : index
    %c0_622 = arith.constant 0 : index
    %762 = vector.load %arg11[%c7_620, %c0_621, %c0_622] : memref<14x16x8xf32, #tpu.memory_space<vmem>>, vector<1x16x8xf32>
    %763 = vector.shape_cast %762 : vector<1x16x8xf32> to vector<16x8xf32>
    %cst_623 = arith.constant dense<0.000000e+00> : vector<16x16xf32>
    %764 = tpu.matmul %763, %761, %cst_623 {dimension_numbers = #tpu.dot_dimension_numbers<[1], [0], [0], [1], [0, 0, 1, 1], [], []>} : vector<16x8xf32>, vector<8x16xf32>, vector<16x16xf32> -> vector<16x16xf32>
    %c11_624 = arith.constant 11 : index
    %c0_625 = arith.constant 0 : index
    %c0_626 = arith.constant 0 : index
    %765 = vector.load %arg5[%c11_624, %c0_625, %c0_626] : memref<15x16x32xf32, #tpu.memory_space<vmem>>, vector<1x16x32xf32>
    %766 = vector.shape_cast %765 : vector<1x16x32xf32> to vector<16x32xf32>
    %cst_627 = arith.constant dense<0.000000e+00> : vector<16x32xf32>
    %767 = tpu.matmul %764, %766, %cst_627 {dimension_numbers = #tpu.dot_dimension_numbers<[1], [0], [0], [1], [0, 0, 1, 1], [], []>} : vector<16x16xf32>, vector<16x32xf32>, vector<16x32xf32> -> vector<16x32xf32>
    %c8_628 = arith.constant 8 : index
    %c0_629 = arith.constant 0 : index
    %c0_630 = arith.constant 0 : index
    %768 = vector.load %arg11[%c8_628, %c0_629, %c0_630] : memref<14x16x8xf32, #tpu.memory_space<vmem>>, vector<1x16x8xf32>
    %769 = vector.shape_cast %768 : vector<1x16x8xf32> to vector<16x8xf32>
    %cst_631 = arith.constant dense<0.000000e+00> : vector<16x16xf32>
    %770 = tpu.matmul %769, %761, %cst_631 {dimension_numbers = #tpu.dot_dimension_numbers<[1], [0], [0], [1], [0, 0, 1, 1], [], []>} : vector<16x8xf32>, vector<8x16xf32>, vector<16x16xf32> -> vector<16x16xf32>
    %c12_632 = arith.constant 12 : index
    %c0_633 = arith.constant 0 : index
    %c0_634 = arith.constant 0 : index
    %771 = vector.load %arg5[%c12_632, %c0_633, %c0_634] : memref<15x16x32xf32, #tpu.memory_space<vmem>>, vector<1x16x32xf32>
    %772 = vector.shape_cast %771 : vector<1x16x32xf32> to vector<16x32xf32>
    %cst_635 = arith.constant dense<0.000000e+00> : vector<16x32xf32>
    %773 = tpu.matmul %770, %772, %cst_635 {dimension_numbers = #tpu.dot_dimension_numbers<[1], [0], [0], [1], [0, 0, 1, 1], [], []>} : vector<16x16xf32>, vector<16x32xf32>, vector<16x32xf32> -> vector<16x32xf32>
    %774 = arith.addf %767, %773 : vector<16x32xf32>
    %c9_636 = arith.constant 9 : index
    %c0_637 = arith.constant 0 : index
    %c0_638 = arith.constant 0 : index
    %775 = vector.load %arg11[%c9_636, %c0_637, %c0_638] : memref<14x16x8xf32, #tpu.memory_space<vmem>>, vector<1x16x8xf32>
    %776 = vector.shape_cast %775 : vector<1x16x8xf32> to vector<16x8xf32>
    %cst_639 = arith.constant dense<0.000000e+00> : vector<16x16xf32>
    %777 = tpu.matmul %776, %761, %cst_639 {dimension_numbers = #tpu.dot_dimension_numbers<[1], [0], [0], [1], [0, 0, 1, 1], [], []>} : vector<16x8xf32>, vector<8x16xf32>, vector<16x16xf32> -> vector<16x16xf32>
    %c13_640 = arith.constant 13 : index
    %c0_641 = arith.constant 0 : index
    %c0_642 = arith.constant 0 : index
    %778 = vector.load %arg5[%c13_640, %c0_641, %c0_642] : memref<15x16x32xf32, #tpu.memory_space<vmem>>, vector<1x16x32xf32>
    %779 = vector.shape_cast %778 : vector<1x16x32xf32> to vector<16x32xf32>
    %cst_643 = arith.constant dense<0.000000e+00> : vector<16x32xf32>
    %780 = tpu.matmul %777, %779, %cst_643 {dimension_numbers = #tpu.dot_dimension_numbers<[1], [0], [0], [1], [0, 0, 1, 1], [], []>} : vector<16x16xf32>, vector<16x32xf32>, vector<16x32xf32> -> vector<16x32xf32>
    %781 = arith.addf %774, %780 : vector<16x32xf32>
    %c6_644 = arith.constant 6 : index
    %c0_645 = arith.constant 0 : index
    %c0_646 = arith.constant 0 : index
    %782 = vector.load %arg6[%c6_644, %c0_645, %c0_646] : memref<12x1x32xf32, #tpu.memory_space<vmem>>, vector<1x1x32xf32>
    %783 = vector.shape_cast %782 : vector<1x1x32xf32> to vector<1x32xf32>
    %784 = vector.broadcast %783 : vector<1x32xf32> to vector<16x32xf32>
    %785 = arith.addf %781, %784 : vector<16x32xf32>
    %cst_647 = arith.constant 0.000000e+00 : f32
    %786 = vector.broadcast %cst_647 : f32 to vector<16x32xf32>
    %787 = arith.cmpf oge, %785, %786 : vector<16x32xf32>
    %cst_648 = arith.constant 2.500000e-01 : f32
    %788 = vector.broadcast %cst_648 : f32 to vector<16x32xf32>
    %789 = arith.mulf %788, %785 : vector<16x32xf32>
    %790 = arith.select %787, %785, %789 : vector<16x32xi1>, vector<16x32xf32>
    %c4_649 = arith.constant 4 : index
    %c0_650 = arith.constant 0 : index
    %c0_651 = arith.constant 0 : index
    %791 = vector.load %arg7[%c4_649, %c0_650, %c0_651] : memref<9x32x64xf32, #tpu.memory_space<vmem>>, vector<1x32x64xf32>
    %792 = vector.shape_cast %791 : vector<1x32x64xf32> to vector<32x64xf32>
    %cst_652 = arith.constant dense<0.000000e+00> : vector<16x64xf32>
    %793 = tpu.matmul %790, %792, %cst_652 {dimension_numbers = #tpu.dot_dimension_numbers<[1], [0], [0], [1], [0, 0, 1, 1], [], []>} : vector<16x32xf32>, vector<32x64xf32>, vector<16x64xf32> -> vector<16x64xf32>
    %c4_653 = arith.constant 4 : index
    %c0_654 = arith.constant 0 : index
    %c0_655 = arith.constant 0 : index
    %794 = vector.load %arg3[%c4_653, %c0_654, %c0_655] : memref<10x1x64xf32, #tpu.memory_space<vmem>>, vector<1x1x64xf32>
    %795 = vector.shape_cast %794 : vector<1x1x64xf32> to vector<1x64xf32>
    %796 = vector.broadcast %795 : vector<1x64xf32> to vector<16x64xf32>
    %797 = arith.addf %793, %796 : vector<16x64xf32>
    %798 = arith.addf %797, %749 : vector<16x64xf32>
    %cst_656 = arith.constant 0.000000e+00 : f32
    %799 = vector.broadcast %cst_656 : f32 to vector<16x64xf32>
    %800 = arith.cmpf oge, %798, %799 : vector<16x64xf32>
    %cst_657 = arith.constant 2.500000e-01 : f32
    %801 = vector.broadcast %cst_657 : f32 to vector<16x64xf32>
    %802 = arith.mulf %801, %798 : vector<16x64xf32>
    %803 = arith.select %800, %798, %802 : vector<16x64xi1>, vector<16x64xf32>
    %c3_658 = arith.constant 3 : index
    %c0_659 = arith.constant 0 : index
    %c0_660 = arith.constant 0 : index
    %804 = vector.load %arg16[%c3_658, %c0_659, %c0_660] : memref<4x64x64xf32, #tpu.memory_space<vmem>>, vector<1x64x64xf32>
    %805 = vector.shape_cast %804 : vector<1x64x64xf32> to vector<64x64xf32>
    %cst_661 = arith.constant dense<0.000000e+00> : vector<16x64xf32>
    %806 = tpu.matmul %83, %805, %cst_661 {dimension_numbers = #tpu.dot_dimension_numbers<[1], [0], [0], [1], [0, 0, 1, 1], [], []>} : vector<16x64xf32>, vector<64x64xf32>, vector<16x64xf32> -> vector<16x64xf32>
    %c8_662 = arith.constant 8 : index
    %c0_663 = arith.constant 0 : index
    %c0_664 = arith.constant 0 : index
    %807 = vector.load %arg3[%c8_662, %c0_663, %c0_664] : memref<10x1x64xf32, #tpu.memory_space<vmem>>, vector<1x1x64xf32>
    %808 = vector.shape_cast %807 : vector<1x1x64xf32> to vector<1x64xf32>
    %809 = vector.broadcast %808 : vector<1x64xf32> to vector<16x64xf32>
    %810 = arith.addf %806, %809 : vector<16x64xf32>
    %c8_665 = arith.constant 8 : index
    %c0_666 = arith.constant 0 : index
    %c0_667 = arith.constant 0 : index
    %811 = vector.load %arg4[%c8_665, %c0_666, %c0_667] : memref<9x64x32xf32, #tpu.memory_space<vmem>>, vector<1x64x32xf32>
    %812 = vector.shape_cast %811 : vector<1x64x32xf32> to vector<64x32xf32>
    %cst_668 = arith.constant dense<0.000000e+00> : vector<16x32xf32>
    %813 = tpu.matmul %83, %812, %cst_668 {dimension_numbers = #tpu.dot_dimension_numbers<[1], [0], [0], [1], [0, 0, 1, 1], [], []>} : vector<16x64xf32>, vector<64x32xf32>, vector<16x32xf32> -> vector<16x32xf32>
    %c8_669 = arith.constant 8 : index
    %c0_670 = arith.constant 0 : index
    %c0_671 = arith.constant 0 : index
    %814 = vector.load %arg6[%c8_669, %c0_670, %c0_671] : memref<12x1x32xf32, #tpu.memory_space<vmem>>, vector<1x1x32xf32>
    %815 = vector.shape_cast %814 : vector<1x1x32xf32> to vector<1x32xf32>
    %816 = vector.broadcast %815 : vector<1x32xf32> to vector<16x32xf32>
    %817 = arith.addf %813, %816 : vector<16x32xf32>
    %cst_672 = arith.constant 0.000000e+00 : f32
    %818 = vector.broadcast %cst_672 : f32 to vector<16x32xf32>
    %819 = arith.cmpf oge, %817, %818 : vector<16x32xf32>
    %cst_673 = arith.constant 2.500000e-01 : f32
    %820 = vector.broadcast %cst_673 : f32 to vector<16x32xf32>
    %821 = arith.mulf %820, %817 : vector<16x32xf32>
    %822 = arith.select %819, %817, %821 : vector<16x32xi1>, vector<16x32xf32>
    %c0_674 = arith.constant 0 : index
    %c0_675 = arith.constant 0 : index
    %c0_676 = arith.constant 0 : index
    %823 = vector.load %arg19[%c0_674, %c0_675, %c0_676] : memref<6x16x16xf32, #tpu.memory_space<vmem>>, vector<1x16x16xf32>
    %824 = vector.shape_cast %823 : vector<1x16x16xf32> to vector<16x16xf32>
    %cst_677 = arith.constant dense<0.000000e+00> : vector<16x32xf32>
    %825 = tpu.matmul %824, %822, %cst_677 {dimension_numbers = #tpu.dot_dimension_numbers<[1], [0], [0], [1], [0, 0, 1, 1], [], []>} : vector<16x16xf32>, vector<16x32xf32>, vector<16x32xf32> -> vector<16x32xf32>
    %c2_678 = arith.constant 2 : index
    %c0_679 = arith.constant 0 : index
    %c0_680 = arith.constant 0 : index
    %826 = vector.load %arg17[%c2_678, %c0_679, %c0_680] : memref<6x32x32xf32, #tpu.memory_space<vmem>>, vector<1x32x32xf32>
    %827 = vector.shape_cast %826 : vector<1x32x32xf32> to vector<32x32xf32>
    %cst_681 = arith.constant dense<0.000000e+00> : vector<16x32xf32>
    %828 = tpu.matmul %825, %827, %cst_681 {dimension_numbers = #tpu.dot_dimension_numbers<[1], [0], [0], [1], [0, 0, 1, 1], [], []>} : vector<16x32xf32>, vector<32x32xf32>, vector<16x32xf32> -> vector<16x32xf32>
    %c3_682 = arith.constant 3 : index
    %c0_683 = arith.constant 0 : index
    %c0_684 = arith.constant 0 : index
    %829 = vector.load %arg17[%c3_682, %c0_683, %c0_684] : memref<6x32x32xf32, #tpu.memory_space<vmem>>, vector<1x32x32xf32>
    %830 = vector.shape_cast %829 : vector<1x32x32xf32> to vector<32x32xf32>
    %cst_685 = arith.constant dense<0.000000e+00> : vector<16x32xf32>
    %831 = tpu.matmul %822, %830, %cst_685 {dimension_numbers = #tpu.dot_dimension_numbers<[1], [0], [0], [1], [0, 0, 1, 1], [], []>} : vector<16x32xf32>, vector<32x32xf32>, vector<16x32xf32> -> vector<16x32xf32>
    %832 = arith.addf %828, %831 : vector<16x32xf32>
    %c1_686 = arith.constant 1 : index
    %c0_687 = arith.constant 0 : index
    %c0_688 = arith.constant 0 : index
    %833 = vector.load %arg19[%c1_686, %c0_687, %c0_688] : memref<6x16x16xf32, #tpu.memory_space<vmem>>, vector<1x16x16xf32>
    %834 = vector.shape_cast %833 : vector<1x16x16xf32> to vector<16x16xf32>
    %cst_689 = arith.constant dense<0.000000e+00> : vector<16x32xf32>
    %835 = tpu.matmul %834, %822, %cst_689 {dimension_numbers = #tpu.dot_dimension_numbers<[1], [0], [0], [1], [0, 0, 1, 1], [], []>} : vector<16x16xf32>, vector<16x32xf32>, vector<16x32xf32> -> vector<16x32xf32>
    %c4_690 = arith.constant 4 : index
    %c0_691 = arith.constant 0 : index
    %c0_692 = arith.constant 0 : index
    %836 = vector.load %arg17[%c4_690, %c0_691, %c0_692] : memref<6x32x32xf32, #tpu.memory_space<vmem>>, vector<1x32x32xf32>
    %837 = vector.shape_cast %836 : vector<1x32x32xf32> to vector<32x32xf32>
    %cst_693 = arith.constant dense<0.000000e+00> : vector<16x32xf32>
    %838 = tpu.matmul %835, %837, %cst_693 {dimension_numbers = #tpu.dot_dimension_numbers<[1], [0], [0], [1], [0, 0, 1, 1], [], []>} : vector<16x32xf32>, vector<32x32xf32>, vector<16x32xf32> -> vector<16x32xf32>
    %839 = arith.addf %832, %838 : vector<16x32xf32>
    %c9_694 = arith.constant 9 : index
    %c0_695 = arith.constant 0 : index
    %c0_696 = arith.constant 0 : index
    %840 = vector.load %arg6[%c9_694, %c0_695, %c0_696] : memref<12x1x32xf32, #tpu.memory_space<vmem>>, vector<1x1x32xf32>
    %841 = vector.shape_cast %840 : vector<1x1x32xf32> to vector<1x32xf32>
    %842 = vector.broadcast %841 : vector<1x32xf32> to vector<16x32xf32>
    %843 = arith.addf %839, %842 : vector<16x32xf32>
    %cst_697 = arith.constant 0.000000e+00 : f32
    %844 = vector.broadcast %cst_697 : f32 to vector<16x32xf32>
    %845 = arith.cmpf oge, %843, %844 : vector<16x32xf32>
    %cst_698 = arith.constant 2.500000e-01 : f32
    %846 = vector.broadcast %cst_698 : f32 to vector<16x32xf32>
    %847 = arith.mulf %846, %843 : vector<16x32xf32>
    %848 = arith.select %845, %843, %847 : vector<16x32xi1>, vector<16x32xf32>
    %c8_699 = arith.constant 8 : index
    %c0_700 = arith.constant 0 : index
    %c0_701 = arith.constant 0 : index
    %849 = vector.load %arg7[%c8_699, %c0_700, %c0_701] : memref<9x32x64xf32, #tpu.memory_space<vmem>>, vector<1x32x64xf32>
    %850 = vector.shape_cast %849 : vector<1x32x64xf32> to vector<32x64xf32>
    %cst_702 = arith.constant dense<0.000000e+00> : vector<16x64xf32>
    %851 = tpu.matmul %848, %850, %cst_702 {dimension_numbers = #tpu.dot_dimension_numbers<[1], [0], [0], [1], [0, 0, 1, 1], [], []>} : vector<16x32xf32>, vector<32x64xf32>, vector<16x64xf32> -> vector<16x64xf32>
    %c9_703 = arith.constant 9 : index
    %c0_704 = arith.constant 0 : index
    %c0_705 = arith.constant 0 : index
    %852 = vector.load %arg3[%c9_703, %c0_704, %c0_705] : memref<10x1x64xf32, #tpu.memory_space<vmem>>, vector<1x1x64xf32>
    %853 = vector.shape_cast %852 : vector<1x1x64xf32> to vector<1x64xf32>
    %854 = vector.broadcast %853 : vector<1x64xf32> to vector<16x64xf32>
    %855 = arith.addf %851, %854 : vector<16x64xf32>
    %856 = arith.addf %855, %810 : vector<16x64xf32>
    %cst_706 = arith.constant 0.000000e+00 : f32
    %857 = vector.broadcast %cst_706 : f32 to vector<16x64xf32>
    %858 = arith.cmpf oge, %856, %857 : vector<16x64xf32>
    %cst_707 = arith.constant 2.500000e-01 : f32
    %859 = vector.broadcast %cst_707 : f32 to vector<16x64xf32>
    %860 = arith.mulf %859, %856 : vector<16x64xf32>
    %861 = arith.select %858, %856, %860 : vector<16x64xi1>, vector<16x64xf32>
    %862 = arith.addf %803, %861 : vector<16x64xf32>
    %c11_708 = arith.constant 11 : index
    %c0_709 = arith.constant 0 : index
    %c0_710 = arith.constant 0 : index
    %863 = vector.load %arg8[%c11_708, %c0_709, %c0_710] : memref<15x32x16xf32, #tpu.memory_space<vmem>>, vector<1x32x16xf32>
    %864 = vector.shape_cast %863 : vector<1x32x16xf32> to vector<32x16xf32>
    %cst_711 = arith.constant dense<0.000000e+00> : vector<32x64xf32>
    %865 = tpu.matmul %864, %862, %cst_711 {dimension_numbers = #tpu.dot_dimension_numbers<[1], [0], [0], [1], [0, 0, 1, 1], [], []>} : vector<32x16xf32>, vector<16x64xf32>, vector<32x64xf32> -> vector<32x64xf32>
    %c0_712 = arith.constant 0 : index
    %c0_713 = arith.constant 0 : index
    %c0_714 = arith.constant 0 : index
    %866 = vector.load %arg14[%c0_712, %c0_713, %c0_714] : memref<5x64x128xf32, #tpu.memory_space<vmem>>, vector<1x64x128xf32>
    %867 = vector.shape_cast %866 : vector<1x64x128xf32> to vector<64x128xf32>
    %cst_715 = arith.constant dense<0.000000e+00> : vector<32x128xf32>
    %868 = tpu.matmul %865, %867, %cst_715 {dimension_numbers = #tpu.dot_dimension_numbers<[1], [0], [0], [1], [0, 0, 1, 1], [], []>} : vector<32x64xf32>, vector<64x128xf32>, vector<32x128xf32> -> vector<32x128xf32>
    %c12_716 = arith.constant 12 : index
    %c0_717 = arith.constant 0 : index
    %c0_718 = arith.constant 0 : index
    %869 = vector.load %arg8[%c12_716, %c0_717, %c0_718] : memref<15x32x16xf32, #tpu.memory_space<vmem>>, vector<1x32x16xf32>
    %870 = vector.shape_cast %869 : vector<1x32x16xf32> to vector<32x16xf32>
    %cst_719 = arith.constant dense<0.000000e+00> : vector<32x64xf32>
    %871 = tpu.matmul %870, %862, %cst_719 {dimension_numbers = #tpu.dot_dimension_numbers<[1], [0], [0], [1], [0, 0, 1, 1], [], []>} : vector<32x16xf32>, vector<16x64xf32>, vector<32x64xf32> -> vector<32x64xf32>
    %c1_720 = arith.constant 1 : index
    %c0_721 = arith.constant 0 : index
    %c0_722 = arith.constant 0 : index
    %872 = vector.load %arg14[%c1_720, %c0_721, %c0_722] : memref<5x64x128xf32, #tpu.memory_space<vmem>>, vector<1x64x128xf32>
    %873 = vector.shape_cast %872 : vector<1x64x128xf32> to vector<64x128xf32>
    %cst_723 = arith.constant dense<0.000000e+00> : vector<32x128xf32>
    %874 = tpu.matmul %871, %873, %cst_723 {dimension_numbers = #tpu.dot_dimension_numbers<[1], [0], [0], [1], [0, 0, 1, 1], [], []>} : vector<32x64xf32>, vector<64x128xf32>, vector<32x128xf32> -> vector<32x128xf32>
    %875 = arith.addf %868, %874 : vector<32x128xf32>
    %c13_724 = arith.constant 13 : index
    %c0_725 = arith.constant 0 : index
    %c0_726 = arith.constant 0 : index
    %876 = vector.load %arg8[%c13_724, %c0_725, %c0_726] : memref<15x32x16xf32, #tpu.memory_space<vmem>>, vector<1x32x16xf32>
    %877 = vector.shape_cast %876 : vector<1x32x16xf32> to vector<32x16xf32>
    %cst_727 = arith.constant dense<0.000000e+00> : vector<32x64xf32>
    %878 = tpu.matmul %877, %862, %cst_727 {dimension_numbers = #tpu.dot_dimension_numbers<[1], [0], [0], [1], [0, 0, 1, 1], [], []>} : vector<32x16xf32>, vector<16x64xf32>, vector<32x64xf32> -> vector<32x64xf32>
    %c2_728 = arith.constant 2 : index
    %c0_729 = arith.constant 0 : index
    %c0_730 = arith.constant 0 : index
    %879 = vector.load %arg14[%c2_728, %c0_729, %c0_730] : memref<5x64x128xf32, #tpu.memory_space<vmem>>, vector<1x64x128xf32>
    %880 = vector.shape_cast %879 : vector<1x64x128xf32> to vector<64x128xf32>
    %cst_731 = arith.constant dense<0.000000e+00> : vector<32x128xf32>
    %881 = tpu.matmul %878, %880, %cst_731 {dimension_numbers = #tpu.dot_dimension_numbers<[1], [0], [0], [1], [0, 0, 1, 1], [], []>} : vector<32x64xf32>, vector<64x128xf32>, vector<32x128xf32> -> vector<32x128xf32>
    %882 = arith.addf %875, %881 : vector<32x128xf32>
    %c0_732 = arith.constant 0 : index
    %c0_733 = arith.constant 0 : index
    %c0_734 = arith.constant 0 : index
    %883 = vector.load %arg15[%c0_732, %c0_733, %c0_734] : memref<4x1x128xf32, #tpu.memory_space<vmem>>, vector<1x1x128xf32>
    %884 = vector.shape_cast %883 : vector<1x1x128xf32> to vector<1x128xf32>
    %885 = vector.broadcast %884 : vector<1x128xf32> to vector<32x128xf32>
    %886 = arith.addf %882, %885 : vector<32x128xf32>
    %cst_735 = arith.constant 0.000000e+00 : f32
    %887 = vector.broadcast %cst_735 : f32 to vector<32x128xf32>
    %888 = arith.cmpf oge, %886, %887 : vector<32x128xf32>
    %cst_736 = arith.constant 2.500000e-01 : f32
    %889 = vector.broadcast %cst_736 : f32 to vector<32x128xf32>
    %890 = arith.mulf %889, %886 : vector<32x128xf32>
    %891 = arith.select %888, %886, %890 : vector<32x128xi1>, vector<32x128xf32>
    %c7_737 = arith.constant 7 : index
    %c0_738 = arith.constant 0 : index
    %c0_739 = arith.constant 0 : index
    %892 = vector.load %arg4[%c7_737, %c0_738, %c0_739] : memref<9x64x32xf32, #tpu.memory_space<vmem>>, vector<1x64x32xf32>
    %893 = vector.shape_cast %892 : vector<1x64x32xf32> to vector<64x32xf32>
    %cst_740 = arith.constant dense<0.000000e+00> : vector<16x32xf32>
    %894 = tpu.matmul %862, %893, %cst_740 {dimension_numbers = #tpu.dot_dimension_numbers<[1], [0], [0], [1], [0, 0, 1, 1], [], []>} : vector<16x64xf32>, vector<64x32xf32>, vector<16x32xf32> -> vector<16x32xf32>
    %c7_741 = arith.constant 7 : index
    %c0_742 = arith.constant 0 : index
    %c0_743 = arith.constant 0 : index
    %895 = vector.load %arg6[%c7_741, %c0_742, %c0_743] : memref<12x1x32xf32, #tpu.memory_space<vmem>>, vector<1x1x32xf32>
    %896 = vector.shape_cast %895 : vector<1x1x32xf32> to vector<1x32xf32>
    %897 = vector.broadcast %896 : vector<1x32xf32> to vector<16x32xf32>
    %898 = arith.addf %894, %897 : vector<16x32xf32>
    %cst_744 = arith.constant 0.000000e+00 : f32
    %899 = vector.broadcast %cst_744 : f32 to vector<16x32xf32>
    %900 = arith.cmpf oge, %898, %899 : vector<16x32xf32>
    %cst_745 = arith.constant 2.500000e-01 : f32
    %901 = vector.broadcast %cst_745 : f32 to vector<16x32xf32>
    %902 = arith.mulf %901, %898 : vector<16x32xf32>
    %903 = arith.select %900, %898, %902 : vector<16x32xi1>, vector<16x32xf32>
    %c8_746 = arith.constant 8 : index
    %c0_747 = arith.constant 0 : index
    %c0_748 = arith.constant 0 : index
    %904 = vector.load %arg8[%c8_746, %c0_747, %c0_748] : memref<15x32x16xf32, #tpu.memory_space<vmem>>, vector<1x32x16xf32>
    %905 = vector.shape_cast %904 : vector<1x32x16xf32> to vector<32x16xf32>
    %cst_749 = arith.constant dense<0.000000e+00> : vector<32x32xf32>
    %906 = tpu.matmul %905, %903, %cst_749 {dimension_numbers = #tpu.dot_dimension_numbers<[1], [0], [0], [1], [0, 0, 1, 1], [], []>} : vector<32x16xf32>, vector<16x32xf32>, vector<32x32xf32> -> vector<32x32xf32>
    %c5_750 = arith.constant 5 : index
    %c0_751 = arith.constant 0 : index
    %c0_752 = arith.constant 0 : index
    %907 = vector.load %arg7[%c5_750, %c0_751, %c0_752] : memref<9x32x64xf32, #tpu.memory_space<vmem>>, vector<1x32x64xf32>
    %908 = vector.shape_cast %907 : vector<1x32x64xf32> to vector<32x64xf32>
    %cst_753 = arith.constant dense<0.000000e+00> : vector<32x64xf32>
    %909 = tpu.matmul %906, %908, %cst_753 {dimension_numbers = #tpu.dot_dimension_numbers<[1], [0], [0], [1], [0, 0, 1, 1], [], []>} : vector<32x32xf32>, vector<32x64xf32>, vector<32x64xf32> -> vector<32x64xf32>
    %c9_754 = arith.constant 9 : index
    %c0_755 = arith.constant 0 : index
    %c0_756 = arith.constant 0 : index
    %910 = vector.load %arg8[%c9_754, %c0_755, %c0_756] : memref<15x32x16xf32, #tpu.memory_space<vmem>>, vector<1x32x16xf32>
    %911 = vector.shape_cast %910 : vector<1x32x16xf32> to vector<32x16xf32>
    %cst_757 = arith.constant dense<0.000000e+00> : vector<32x32xf32>
    %912 = tpu.matmul %911, %903, %cst_757 {dimension_numbers = #tpu.dot_dimension_numbers<[1], [0], [0], [1], [0, 0, 1, 1], [], []>} : vector<32x16xf32>, vector<16x32xf32>, vector<32x32xf32> -> vector<32x32xf32>
    %c6_758 = arith.constant 6 : index
    %c0_759 = arith.constant 0 : index
    %c0_760 = arith.constant 0 : index
    %913 = vector.load %arg7[%c6_758, %c0_759, %c0_760] : memref<9x32x64xf32, #tpu.memory_space<vmem>>, vector<1x32x64xf32>
    %914 = vector.shape_cast %913 : vector<1x32x64xf32> to vector<32x64xf32>
    %cst_761 = arith.constant dense<0.000000e+00> : vector<32x64xf32>
    %915 = tpu.matmul %912, %914, %cst_761 {dimension_numbers = #tpu.dot_dimension_numbers<[1], [0], [0], [1], [0, 0, 1, 1], [], []>} : vector<32x32xf32>, vector<32x64xf32>, vector<32x64xf32> -> vector<32x64xf32>
    %916 = arith.addf %909, %915 : vector<32x64xf32>
    %c10_762 = arith.constant 10 : index
    %c0_763 = arith.constant 0 : index
    %c0_764 = arith.constant 0 : index
    %917 = vector.load %arg8[%c10_762, %c0_763, %c0_764] : memref<15x32x16xf32, #tpu.memory_space<vmem>>, vector<1x32x16xf32>
    %918 = vector.shape_cast %917 : vector<1x32x16xf32> to vector<32x16xf32>
    %cst_765 = arith.constant dense<0.000000e+00> : vector<32x32xf32>
    %919 = tpu.matmul %918, %903, %cst_765 {dimension_numbers = #tpu.dot_dimension_numbers<[1], [0], [0], [1], [0, 0, 1, 1], [], []>} : vector<32x16xf32>, vector<16x32xf32>, vector<32x32xf32> -> vector<32x32xf32>
    %c7_766 = arith.constant 7 : index
    %c0_767 = arith.constant 0 : index
    %c0_768 = arith.constant 0 : index
    %920 = vector.load %arg7[%c7_766, %c0_767, %c0_768] : memref<9x32x64xf32, #tpu.memory_space<vmem>>, vector<1x32x64xf32>
    %921 = vector.shape_cast %920 : vector<1x32x64xf32> to vector<32x64xf32>
    %cst_769 = arith.constant dense<0.000000e+00> : vector<32x64xf32>
    %922 = tpu.matmul %919, %921, %cst_769 {dimension_numbers = #tpu.dot_dimension_numbers<[1], [0], [0], [1], [0, 0, 1, 1], [], []>} : vector<32x32xf32>, vector<32x64xf32>, vector<32x64xf32> -> vector<32x64xf32>
    %923 = arith.addf %916, %922 : vector<32x64xf32>
    %c5_770 = arith.constant 5 : index
    %c0_771 = arith.constant 0 : index
    %c0_772 = arith.constant 0 : index
    %924 = vector.load %arg3[%c5_770, %c0_771, %c0_772] : memref<10x1x64xf32, #tpu.memory_space<vmem>>, vector<1x1x64xf32>
    %925 = vector.shape_cast %924 : vector<1x1x64xf32> to vector<1x64xf32>
    %926 = vector.broadcast %925 : vector<1x64xf32> to vector<32x64xf32>
    %927 = arith.addf %923, %926 : vector<32x64xf32>
    %cst_773 = arith.constant 0.000000e+00 : f32
    %928 = vector.broadcast %cst_773 : f32 to vector<32x64xf32>
    %929 = arith.cmpf oge, %927, %928 : vector<32x64xf32>
    %cst_774 = arith.constant 2.500000e-01 : f32
    %930 = vector.broadcast %cst_774 : f32 to vector<32x64xf32>
    %931 = arith.mulf %930, %927 : vector<32x64xf32>
    %932 = arith.select %929, %927, %931 : vector<32x64xi1>, vector<32x64xf32>
    %c3_775 = arith.constant 3 : index
    %c0_776 = arith.constant 0 : index
    %c0_777 = arith.constant 0 : index
    %933 = vector.load %arg14[%c3_775, %c0_776, %c0_777] : memref<5x64x128xf32, #tpu.memory_space<vmem>>, vector<1x64x128xf32>
    %934 = vector.shape_cast %933 : vector<1x64x128xf32> to vector<64x128xf32>
    %cst_778 = arith.constant dense<0.000000e+00> : vector<32x128xf32>
    %935 = tpu.matmul %932, %934, %cst_778 {dimension_numbers = #tpu.dot_dimension_numbers<[1], [0], [0], [1], [0, 0, 1, 1], [], []>} : vector<32x64xf32>, vector<64x128xf32>, vector<32x128xf32> -> vector<32x128xf32>
    %c1_779 = arith.constant 1 : index
    %c0_780 = arith.constant 0 : index
    %c0_781 = arith.constant 0 : index
    %936 = vector.load %arg15[%c1_779, %c0_780, %c0_781] : memref<4x1x128xf32, #tpu.memory_space<vmem>>, vector<1x1x128xf32>
    %937 = vector.shape_cast %936 : vector<1x1x128xf32> to vector<1x128xf32>
    %938 = vector.broadcast %937 : vector<1x128xf32> to vector<32x128xf32>
    %939 = arith.addf %935, %938 : vector<32x128xf32>
    %940 = arith.addf %939, %891 : vector<32x128xf32>
    %cst_782 = arith.constant 0.000000e+00 : f32
    %941 = vector.broadcast %cst_782 : f32 to vector<32x128xf32>
    %942 = arith.cmpf oge, %940, %941 : vector<32x128xf32>
    %cst_783 = arith.constant 2.500000e-01 : f32
    %943 = vector.broadcast %cst_783 : f32 to vector<32x128xf32>
    %944 = arith.mulf %943, %940 : vector<32x128xf32>
    %945 = arith.select %942, %940, %944 : vector<32x128xi1>, vector<32x128xf32>
    %c0_784 = arith.constant 0 : index
    %c0_785 = arith.constant 0 : index
    %c0_786 = arith.constant 0 : index
    %946 = vector.load %arg18[%c0_784, %c0_785, %c0_786] : memref<1x128x128xf32, #tpu.memory_space<vmem>>, vector<1x128x128xf32>
    %947 = vector.shape_cast %946 : vector<1x128x128xf32> to vector<128x128xf32>
    %cst_787 = arith.constant dense<0.000000e+00> : vector<32x128xf32>
    %948 = tpu.matmul %0, %947, %cst_787 {dimension_numbers = #tpu.dot_dimension_numbers<[1], [0], [0], [1], [0, 0, 1, 1], [], []>} : vector<32x128xf32>, vector<128x128xf32>, vector<32x128xf32> -> vector<32x128xf32>
    %c2_788 = arith.constant 2 : index
    %c0_789 = arith.constant 0 : index
    %c0_790 = arith.constant 0 : index
    %949 = vector.load %arg15[%c2_788, %c0_789, %c0_790] : memref<4x1x128xf32, #tpu.memory_space<vmem>>, vector<1x1x128xf32>
    %950 = vector.shape_cast %949 : vector<1x1x128xf32> to vector<1x128xf32>
    %951 = vector.broadcast %950 : vector<1x128xf32> to vector<32x128xf32>
    %952 = arith.addf %948, %951 : vector<32x128xf32>
    %c4_791 = arith.constant 4 : index
    %c0_792 = arith.constant 0 : index
    %c0_793 = arith.constant 0 : index
    %953 = vector.load %arg2[%c4_791, %c0_792, %c0_793] : memref<5x128x64xf32, #tpu.memory_space<vmem>>, vector<1x128x64xf32>
    %954 = vector.shape_cast %953 : vector<1x128x64xf32> to vector<128x64xf32>
    %cst_794 = arith.constant dense<0.000000e+00> : vector<32x64xf32>
    %955 = tpu.matmul %0, %954, %cst_794 {dimension_numbers = #tpu.dot_dimension_numbers<[1], [0], [0], [1], [0, 0, 1, 1], [], []>} : vector<32x128xf32>, vector<128x64xf32>, vector<32x64xf32> -> vector<32x64xf32>
    %c6_795 = arith.constant 6 : index
    %c0_796 = arith.constant 0 : index
    %c0_797 = arith.constant 0 : index
    %956 = vector.load %arg3[%c6_795, %c0_796, %c0_797] : memref<10x1x64xf32, #tpu.memory_space<vmem>>, vector<1x1x64xf32>
    %957 = vector.shape_cast %956 : vector<1x1x64xf32> to vector<1x64xf32>
    %958 = vector.broadcast %957 : vector<1x64xf32> to vector<32x64xf32>
    %959 = arith.addf %955, %958 : vector<32x64xf32>
    %cst_798 = arith.constant 0.000000e+00 : f32
    %960 = vector.broadcast %cst_798 : f32 to vector<32x64xf32>
    %961 = arith.cmpf oge, %959, %960 : vector<32x64xf32>
    %cst_799 = arith.constant 2.500000e-01 : f32
    %962 = vector.broadcast %cst_799 : f32 to vector<32x64xf32>
    %963 = arith.mulf %962, %959 : vector<32x64xf32>
    %964 = arith.select %961, %959, %963 : vector<32x64xi1>, vector<32x64xf32>
    %c0_800 = arith.constant 0 : index
    %c0_801 = arith.constant 0 : index
    %c0_802 = arith.constant 0 : index
    %965 = vector.load %arg17[%c0_800, %c0_801, %c0_802] : memref<6x32x32xf32, #tpu.memory_space<vmem>>, vector<1x32x32xf32>
    %966 = vector.shape_cast %965 : vector<1x32x32xf32> to vector<32x32xf32>
    %cst_803 = arith.constant dense<0.000000e+00> : vector<32x64xf32>
    %967 = tpu.matmul %966, %964, %cst_803 {dimension_numbers = #tpu.dot_dimension_numbers<[1], [0], [0], [1], [0, 0, 1, 1], [], []>} : vector<32x32xf32>, vector<32x64xf32>, vector<32x64xf32> -> vector<32x64xf32>
    %c0_804 = arith.constant 0 : index
    %c0_805 = arith.constant 0 : index
    %c0_806 = arith.constant 0 : index
    %968 = vector.load %arg16[%c0_804, %c0_805, %c0_806] : memref<4x64x64xf32, #tpu.memory_space<vmem>>, vector<1x64x64xf32>
    %969 = vector.shape_cast %968 : vector<1x64x64xf32> to vector<64x64xf32>
    %cst_807 = arith.constant dense<0.000000e+00> : vector<32x64xf32>
    %970 = tpu.matmul %967, %969, %cst_807 {dimension_numbers = #tpu.dot_dimension_numbers<[1], [0], [0], [1], [0, 0, 1, 1], [], []>} : vector<32x64xf32>, vector<64x64xf32>, vector<32x64xf32> -> vector<32x64xf32>
    %c1_808 = arith.constant 1 : index
    %c0_809 = arith.constant 0 : index
    %c0_810 = arith.constant 0 : index
    %971 = vector.load %arg16[%c1_808, %c0_809, %c0_810] : memref<4x64x64xf32, #tpu.memory_space<vmem>>, vector<1x64x64xf32>
    %972 = vector.shape_cast %971 : vector<1x64x64xf32> to vector<64x64xf32>
    %cst_811 = arith.constant dense<0.000000e+00> : vector<32x64xf32>
    %973 = tpu.matmul %964, %972, %cst_811 {dimension_numbers = #tpu.dot_dimension_numbers<[1], [0], [0], [1], [0, 0, 1, 1], [], []>} : vector<32x64xf32>, vector<64x64xf32>, vector<32x64xf32> -> vector<32x64xf32>
    %974 = arith.addf %970, %973 : vector<32x64xf32>
    %c1_812 = arith.constant 1 : index
    %c0_813 = arith.constant 0 : index
    %c0_814 = arith.constant 0 : index
    %975 = vector.load %arg17[%c1_812, %c0_813, %c0_814] : memref<6x32x32xf32, #tpu.memory_space<vmem>>, vector<1x32x32xf32>
    %976 = vector.shape_cast %975 : vector<1x32x32xf32> to vector<32x32xf32>
    %cst_815 = arith.constant dense<0.000000e+00> : vector<32x64xf32>
    %977 = tpu.matmul %976, %964, %cst_815 {dimension_numbers = #tpu.dot_dimension_numbers<[1], [0], [0], [1], [0, 0, 1, 1], [], []>} : vector<32x32xf32>, vector<32x64xf32>, vector<32x64xf32> -> vector<32x64xf32>
    %c2_816 = arith.constant 2 : index
    %c0_817 = arith.constant 0 : index
    %c0_818 = arith.constant 0 : index
    %978 = vector.load %arg16[%c2_816, %c0_817, %c0_818] : memref<4x64x64xf32, #tpu.memory_space<vmem>>, vector<1x64x64xf32>
    %979 = vector.shape_cast %978 : vector<1x64x64xf32> to vector<64x64xf32>
    %cst_819 = arith.constant dense<0.000000e+00> : vector<32x64xf32>
    %980 = tpu.matmul %977, %979, %cst_819 {dimension_numbers = #tpu.dot_dimension_numbers<[1], [0], [0], [1], [0, 0, 1, 1], [], []>} : vector<32x64xf32>, vector<64x64xf32>, vector<32x64xf32> -> vector<32x64xf32>
    %981 = arith.addf %974, %980 : vector<32x64xf32>
    %c7_820 = arith.constant 7 : index
    %c0_821 = arith.constant 0 : index
    %c0_822 = arith.constant 0 : index
    %982 = vector.load %arg3[%c7_820, %c0_821, %c0_822] : memref<10x1x64xf32, #tpu.memory_space<vmem>>, vector<1x1x64xf32>
    %983 = vector.shape_cast %982 : vector<1x1x64xf32> to vector<1x64xf32>
    %984 = vector.broadcast %983 : vector<1x64xf32> to vector<32x64xf32>
    %985 = arith.addf %981, %984 : vector<32x64xf32>
    %cst_823 = arith.constant 0.000000e+00 : f32
    %986 = vector.broadcast %cst_823 : f32 to vector<32x64xf32>
    %987 = arith.cmpf oge, %985, %986 : vector<32x64xf32>
    %cst_824 = arith.constant 2.500000e-01 : f32
    %988 = vector.broadcast %cst_824 : f32 to vector<32x64xf32>
    %989 = arith.mulf %988, %985 : vector<32x64xf32>
    %990 = arith.select %987, %985, %989 : vector<32x64xi1>, vector<32x64xf32>
    %c4_825 = arith.constant 4 : index
    %c0_826 = arith.constant 0 : index
    %c0_827 = arith.constant 0 : index
    %991 = vector.load %arg14[%c4_825, %c0_826, %c0_827] : memref<5x64x128xf32, #tpu.memory_space<vmem>>, vector<1x64x128xf32>
    %992 = vector.shape_cast %991 : vector<1x64x128xf32> to vector<64x128xf32>
    %cst_828 = arith.constant dense<0.000000e+00> : vector<32x128xf32>
    %993 = tpu.matmul %990, %992, %cst_828 {dimension_numbers = #tpu.dot_dimension_numbers<[1], [0], [0], [1], [0, 0, 1, 1], [], []>} : vector<32x64xf32>, vector<64x128xf32>, vector<32x128xf32> -> vector<32x128xf32>
    %c3_829 = arith.constant 3 : index
    %c0_830 = arith.constant 0 : index
    %c0_831 = arith.constant 0 : index
    %994 = vector.load %arg15[%c3_829, %c0_830, %c0_831] : memref<4x1x128xf32, #tpu.memory_space<vmem>>, vector<1x1x128xf32>
    %995 = vector.shape_cast %994 : vector<1x1x128xf32> to vector<1x128xf32>
    %996 = vector.broadcast %995 : vector<1x128xf32> to vector<32x128xf32>
    %997 = arith.addf %993, %996 : vector<32x128xf32>
    %998 = arith.addf %997, %952 : vector<32x128xf32>
    %cst_832 = arith.constant 0.000000e+00 : f32
    %999 = vector.broadcast %cst_832 : f32 to vector<32x128xf32>
    %1000 = arith.cmpf oge, %998, %999 : vector<32x128xf32>
    %cst_833 = arith.constant 2.500000e-01 : f32
    %1001 = vector.broadcast %cst_833 : f32 to vector<32x128xf32>
    %1002 = arith.mulf %1001, %998 : vector<32x128xf32>
    %1003 = arith.select %1000, %998, %1002 : vector<32x128xi1>, vector<32x128xf32>
    %1004 = arith.addf %945, %1003 : vector<32x128xf32>
    %c0_834 = arith.constant 0 : index
    %c0_835 = arith.constant 0 : index
    %1005 = vector.load %arg20[%c0_834, %c0_835] : memref<32x128xf32, #tpu.memory_space<vmem>>, vector<32x128xf32>
    tpu.vector_store %arg20[%c0_834, %c0_835], %1004 {strides = array<i32>} : memref<32x128xf32, #tpu.memory_space<vmem>>, vector<32x128xf32>,
    return
  }
  func.func @transform_0(%arg0: i32) -> (i32, i32) {
    %c0_i32 = arith.constant 0 : i32
    %c0_i32_0 = arith.constant 0 : i32
    %c0_i32_1 = arith.constant 0 : i32
    return %c0_i32, %c0_i32_0 : i32, i32
  }
  func.func @transform_1(%arg0: i32) -> (i32, i32, i32) {
    %c0_i32 = arith.constant 0 : i32
    %c0_i32_0 = arith.constant 0 : i32
    %c0_i32_1 = arith.constant 0 : i32
    %c0_i32_2 = arith.constant 0 : i32
    return %c0_i32, %c0_i32_0, %c0_i32_1 : i32, i32, i32
  }
  func.func @transform_2(%arg0: i32) -> (i32, i32, i32) {
    %c0_i32 = arith.constant 0 : i32
    %c0_i32_0 = arith.constant 0 : i32
    %c0_i32_1 = arith.constant 0 : i32
    %c0_i32_2 = arith.constant 0 : i32
    return %c0_i32, %c0_i32_0, %c0_i32_1 : i32, i32, i32
  }
  func.func @transform_3(%arg0: i32) -> (i32, i32, i32) {
    %c0_i32 = arith.constant 0 : i32
    %c0_i32_0 = arith.constant 0 : i32
    %c0_i32_1 = arith.constant 0 : i32
    %c0_i32_2 = arith.constant 0 : i32
    return %c0_i32, %c0_i32_0, %c0_i32_1 : i32, i32, i32
  }
  func.func @transform_4(%arg0: i32) -> (i32, i32, i32) {
    %c0_i32 = arith.constant 0 : i32
    %c0_i32_0 = arith.constant 0 : i32
    %c0_i32_1 = arith.constant 0 : i32
    %c0_i32_2 = arith.constant 0 : i32
    return %c0_i32, %c0_i32_0, %c0_i32_1 : i32, i32, i32
  }
  func.func @transform_5(%arg0: i32) -> (i32, i32, i32) {
    %c0_i32 = arith.constant 0 : i32
    %c0_i32_0 = arith.constant 0 : i32
    %c0_i32_1 = arith.constant 0 : i32
    %c0_i32_2 = arith.constant 0 : i32
    return %c0_i32, %c0_i32_0, %c0_i32_1 : i32, i32, i32
  }
  func.func @transform_6(%arg0: i32) -> (i32, i32, i32) {
    %c0_i32 = arith.constant 0 : i32
    %c0_i32_0 = arith.constant 0 : i32
    %c0_i32_1 = arith.constant 0 : i32
    %c0_i32_2 = arith.constant 0 : i32
    return %c0_i32, %c0_i32_0, %c0_i32_1 : i32, i32, i32
  }
  func.func @transform_7(%arg0: i32) -> (i32, i32, i32) {
    %c0_i32 = arith.constant 0 : i32
    %c0_i32_0 = arith.constant 0 : i32
    %c0_i32_1 = arith.constant 0 : i32
    %c0_i32_2 = arith.constant 0 : i32
    return %c0_i32, %c0_i32_0, %c0_i32_1 : i32, i32, i32
  }
  func.func @transform_8(%arg0: i32) -> (i32, i32, i32) {
    %c0_i32 = arith.constant 0 : i32
    %c0_i32_0 = arith.constant 0 : i32
    %c0_i32_1 = arith.constant 0 : i32
    %c0_i32_2 = arith.constant 0 : i32
    return %c0_i32, %c0_i32_0, %c0_i32_1 : i32, i32, i32
  }
  func.func @transform_9(%arg0: i32) -> (i32, i32, i32) {
    %c0_i32 = arith.constant 0 : i32
    %c0_i32_0 = arith.constant 0 : i32
    %c0_i32_1 = arith.constant 0 : i32
    %c0_i32_2 = arith.constant 0 : i32
    return %c0_i32, %c0_i32_0, %c0_i32_1 : i32, i32, i32
  }
  func.func @transform_10(%arg0: i32) -> (i32, i32, i32) {
    %c0_i32 = arith.constant 0 : i32
    %c0_i32_0 = arith.constant 0 : i32
    %c0_i32_1 = arith.constant 0 : i32
    %c0_i32_2 = arith.constant 0 : i32
    return %c0_i32, %c0_i32_0, %c0_i32_1 : i32, i32, i32
  }
  func.func @transform_11(%arg0: i32) -> (i32, i32, i32) {
    %c0_i32 = arith.constant 0 : i32
    %c0_i32_0 = arith.constant 0 : i32
    %c0_i32_1 = arith.constant 0 : i32
    %c0_i32_2 = arith.constant 0 : i32
    return %c0_i32, %c0_i32_0, %c0_i32_1 : i32, i32, i32
  }
  func.func @transform_12(%arg0: i32) -> (i32, i32, i32) {
    %c0_i32 = arith.constant 0 : i32
    %c0_i32_0 = arith.constant 0 : i32
    %c0_i32_1 = arith.constant 0 : i32
    %c0_i32_2 = arith.constant 0 : i32
    return %c0_i32, %c0_i32_0, %c0_i32_1 : i32, i32, i32
  }
  func.func @transform_13(%arg0: i32) -> (i32, i32, i32) {
    %c0_i32 = arith.constant 0 : i32
    %c0_i32_0 = arith.constant 0 : i32
    %c0_i32_1 = arith.constant 0 : i32
    %c0_i32_2 = arith.constant 0 : i32
    return %c0_i32, %c0_i32_0, %c0_i32_1 : i32, i32, i32
  }
  func.func @transform_14(%arg0: i32) -> (i32, i32, i32) {
    %c0_i32 = arith.constant 0 : i32
    %c0_i32_0 = arith.constant 0 : i32
    %c0_i32_1 = arith.constant 0 : i32
    %c0_i32_2 = arith.constant 0 : i32
    return %c0_i32, %c0_i32_0, %c0_i32_1 : i32, i32, i32
  }
  func.func @transform_15(%arg0: i32) -> (i32, i32, i32) {
    %c0_i32 = arith.constant 0 : i32
    %c0_i32_0 = arith.constant 0 : i32
    %c0_i32_1 = arith.constant 0 : i32
    %c0_i32_2 = arith.constant 0 : i32
    return %c0_i32, %c0_i32_0, %c0_i32_1 : i32, i32, i32
  }
  func.func @transform_16(%arg0: i32) -> (i32, i32, i32) {
    %c0_i32 = arith.constant 0 : i32
    %c0_i32_0 = arith.constant 0 : i32
    %c0_i32_1 = arith.constant 0 : i32
    %c0_i32_2 = arith.constant 0 : i32
    return %c0_i32, %c0_i32_0, %c0_i32_1 : i32, i32, i32
  }
  func.func @transform_17(%arg0: i32) -> (i32, i32, i32) {
    %c0_i32 = arith.constant 0 : i32
    %c0_i32_0 = arith.constant 0 : i32
    %c0_i32_1 = arith.constant 0 : i32
    %c0_i32_2 = arith.constant 0 : i32
    return %c0_i32, %c0_i32_0, %c0_i32_1 : i32, i32, i32
  }
  func.func @transform_18(%arg0: i32) -> (i32, i32, i32) {
    %c0_i32 = arith.constant 0 : i32
    %c0_i32_0 = arith.constant 0 : i32
    %c0_i32_1 = arith.constant 0 : i32
    %c0_i32_2 = arith.constant 0 : i32
    return %c0_i32, %c0_i32_0, %c0_i32_1 : i32, i32, i32
  }
  func.func @transform_19(%arg0: i32) -> (i32, i32) {
    %c0_i32 = arith.constant 0 : i32
    %c0_i32_0 = arith.constant 0 : i32
    %c0_i32_1 = arith.constant 0 : i32
    return %c0_i32, %c0_i32_0 : i32, i32
  }
}

</mosaic_0001>

<bundles_post_ra>
// kernel: forward.1
= control target key start
LH: loop header
LB: loop body
LE: loop exit
PB: predicated region body
PF: predicated region fallthrough
CT: control target
= control target key end

     0   :  { %vm69_vm0 = vcmask 261120   ;;  %vm917_vm5 = vcmask 523264   ;;  %vm16942_vm8 = vmmov 0   ;;  %vm1374_vm13 = vcmask 130048   ;;  %s19400_s0 = inlined_call_operand.vmem [shape: f32[32,128], index: 0, kind: input, shape index: {}]   ;;  %s19401_s4 = inlined_call_operand.vmem [shape: f32[15,16,32], index: 4, kind: input, shape index: {}]   ;;  %s19402_s1 = inlined_call_operand.vmem [shape: f32[5,128,64], index: 1, kind: input, shape index: {}]   ;;  %s19403_s2 = inlined_call_operand.vmem [shape: f32[10,1,64], index: 2, kind: input, shape index: {}]   ;;  %s19404_s3 = inlined_call_operand.vmem [shape: f32[9,64,32], index: 3, kind: input, shape index: {}]   ;;  %s19405_s6 = inlined_call_operand.vmem [shape: f32[9,32,64], index: 6, kind: input, shape index: {}]   ;;  %s19406_s5 = inlined_call_operand.vmem [shape: f32[12,1,32], index: 5, kind: input, shape index: {}]   ;;  %s19407_s8 = inlined_call_operand.vmem [shape: f32[14,8,16], index: 8, kind: input, shape index: {}]   ;;  %s19408_s7 = inlined_call_operand.vmem [shape: f32[15,32,16], index: 7, kind: input, shape index: {}]   ;;  %s19409_s9 = inlined_call_operand.vmem [shape: f32[12,1,16], index: 9, kind: input, shape index: {}]   ;;  %s19410_s11 = inlined_call_operand.vmem [shape: f32[45,8,8], index: 11, kind: input, shape index: {}]   ;;  %s19411_s10 = inlined_call_operand.vmem [shape: f32[14,16,8], index: 10, kind: input, shape index: {}]   ;;  %s19412_s12 = inlined_call_operand.vmem [shape: f32[22,1,8], index: 12, kind: input, shape index: {}]   ;;  %s19413_s18 = inlined_call_operand.vmem [shape: f32[6,16,16], index: 18, kind: input, shape index: {}]   ;;  %s19414_s16 = inlined_call_operand.vmem [shape: f32[6,32,32], index: 16, kind: input, shape index: {}]   ;;  %s19415_s15 = inlined_call_operand.vmem [shape: f32[4,64,64], index: 15, kind: input, shape index: {}]   ;;  %s19416_s13 = inlined_call_operand.vmem [shape: f32[5,64,128], index: 13, kind: input, shape index: {}]   ;;  %s19417_s17 = inlined_call_operand.vmem [shape: f32[1,128,128], index: 17, kind: input, shape index: {}]   ;;  %s19418_s14 = inlined_call_operand.vmem [shape: f32[4,1,128], index: 14, kind: input, shape index: {}]   ;;  %s19419_s19 = inlined_call_operand.vmem [shape: f32[32,128], index: 19, kind: output, shape index: {}]  }
   0x1   :  { %19424 = sst [smem:[#allocation2_spill]] %s19400_s0 }
   0x2   :  { %19425 = sst [smem:[#allocation3_spill]] %s19401_s4  ;;  %s19428_s20 = sld [smem:[#allocation2_spill]] }
   0x3   :  { %19426 = sst [smem:[#allocation4_spill]] %s19402_s1  ;;  %s19429_s26 = sld [smem:[#allocation3_spill]] }
   0x4   :  { %19427 = sst [smem:[#allocation5_spill]] %s19403_s2  ;;  %s19430_s29 = sld [smem:[#allocation4_spill]] }
   0x5   :  { %s19431_s25 = sld [smem:[#allocation5_spill]] }
   0x8   :  { %v17047_v0 = vld [vmem:[%s19428_s20] sm:$0xff]  ;;  %v17052_v1 = vld [vmem:[%s19428_s20 + $0x8] sm:$0xff]  ;;  %v17057_v2 = vld [vmem:[%s19428_s20 + $0x10] sm:$0xff] }
   0x9   :  { %v17061_v3 = vpack.c.bf16 %v17052_v1, %v17047_v0  ;;  %v17066_v4 = vld [vmem:[%s19428_s20 + $0x18] sm:$0xff]  ;;  %v13081_v5 = vld [vmem:[%s19429_s26 + $0x40] sm:$0xff]  ;;  %v13061_v9 = vld [vmem:[%s19429_s26 + $0x30] sm:$0xff] }
   0xa   :  { %v17073_v6 = vpack.c.bf16 %v17066_v4, %v17057_v2  ;;  %14579 = vmatprep.mubr.msk.f32.mxu1 %vm69_vm0, %v13081_v5  ;;  %v13085_v7 = vld [vmem:[%s19430_s29 + $0x100] sm:$0xff]  ;;  %v13086_v8 = vld [vmem:[%s19430_s29 + $0x108] sm:$0xff]  ;;  %v13087_v11 = vld [vmem:[%s19430_s29 + $0x110] sm:$0xff]  ;;  %14568 = vmatprep.mubr.msk.f32.mxu0 %vm69_vm0, %v13061_v9 }
   0xb   :  { %16057 = vmatprep.subr.bf16.mxu1 %v17061_v3  ;;  %16049 = vmatprep.subr.bf16.mxu0 %v17061_v3  ;;  %v16064_v10 = vpack.c.bf16 %v13086_v8, %v13085_v7  ;;  %v13088_v12 = vld [vmem:[%s19430_s29 + $0x118] sm:$0xff]  ;;  %v13082_v13 = vld [vmem:[%s19429_s26 + $0x48] sm:$0xff]  ;;  %v13089_v16 = vld [vmem:[%s19430_s29 + $0x120] sm:$0xff] }
   0xc   :  { %16059 = vmatpush3.bf16.msra.mxu1 %v17061_v3  ;;  %16051 = vmatpush3.bf16.msra.mxu0 %v17061_v3  ;;  %v13062_v14 = vld [vmem:[%s19429_s26 + $0x38] sm:$0xff]  ;;  %v16068_v15 = vpack.c.bf16 %v13088_v12, %v13087_v11  ;;  %v13090_v17 = vld [vmem:[%s19430_s29 + $0x128] sm:$0xff]  ;;  %v13091_v19 = vld [vmem:[%s19430_s29 + $0x130] sm:$0xff] }
   0xd   :  { %16061 = vmatprep.subr.bf16.mxu1 %v17073_v6  ;;  %16053 = vmatprep.subr.bf16.mxu0 %v17073_v6  ;;  %v16072_v18 = vpack.c.bf16 %v13090_v17, %v13089_v16  ;;  %v13092_v20 = vld [vmem:[%s19430_s29 + $0x138] sm:$0xff]  ;;  %v13093_v22 = vld [vmem:[%s19430_s29 + $0x140] sm:$0xff]  ;;  %v13094_v23 = vld [vmem:[%s19430_s29 + $0x148] sm:$0xff] }
   0xe   :  { %v16076_v21 = vpack.c.bf16 %v13092_v20, %v13091_v19  ;;  %v16080_v24 = vpack.c.bf16 %v13094_v23, %v13093_v22  ;;  %v13095_v25 = vld [vmem:[%s19430_s29 + $0x150] sm:$0xff]  ;;  %v13096_v26 = vld [vmem:[%s19430_s29 + $0x158] sm:$0xff]  ;;  %v13097_v28 = vld [vmem:[%s19430_s29 + $0x160] sm:$0xff] }
   0xf   :  { %v16084_v27 = vpack.c.bf16 %v13096_v26, %v13095_v25  ;;  %v13098_v29 = vld [vmem:[%s19430_s29 + $0x168] sm:$0xff]  ;;  %v13099_v31 = vld [vmem:[%s19430_s29 + $0x170] sm:$0xff]  ;;  %v13100_v32 = vld [vmem:[%s19430_s29 + $0x178] sm:$0xff] }
  0x10   :  { %16063 = vmatpush3.bf16.msra.mxu1 %v17073_v6  ;;  %16055 = vmatpush3.bf16.msra.mxu0 %v17073_v6  ;;  %v16088_v30 = vpack.c.bf16 %v13098_v29, %v13097_v28  ;;  %v16092_v33 = vpack.c.bf16 %v13100_v32, %v13099_v31  ;;  %v13065_v34 = vld [vmem:[%s19430_s29 + $0x80] sm:$0xff]  ;;  %v13066_v35 = vld [vmem:[%s19430_s29 + $0x88] sm:$0xff]  ;;  %v13067_v36 = vld [vmem:[%s19430_s29 + $0x90] sm:$0xff] }
  0x11   :  { %16065 = vmatprep.subr.bf16.mxu1 %v16064_v10  ;;  %v16096_v37 = vpack.c.bf16 %v13066_v35, %v13065_v34  ;;  %v13068_v38 = vld [vmem:[%s19430_s29 + $0x98] sm:$0xff]  ;;  %v13069_v40 = vld [vmem:[%s19430_s29 + $0xa0] sm:$0xff]  ;;  %v13070_v41 = vld [vmem:[%s19430_s29 + $0xa8] sm:$0xff] }
  0x12   :  { %v16100_v39 = vpack.c.bf16 %v13068_v38, %v13067_v36  ;;  %v16104_v42 = vpack.c.bf16 %v13070_v41, %v13069_v40  ;;  %v13071_v43 = vld [vmem:[%s19430_s29 + $0xb0] sm:$0xff]  ;;  %v13072_v44 = vld [vmem:[%s19430_s29 + $0xb8] sm:$0xff]  ;;  %v13073_v46 = vld [vmem:[%s19430_s29 + $0xc0] sm:$0xff] }
  0x13   :  { %14580 = vmatmul.mubr.msk.f32.vlgmr.msra.gmra.mrb[0].mxu1 %vm69_vm0, %v13082_v13  ;;  %14569 = vmatmul.mubr.msk.f32.vlgmr.msra.gmra.mrb[0].mxu0 %vm69_vm0, %v13062_v14  ;;  %v16108_v45 = vpack.c.bf16 %v13072_v44, %v13071_v43  ;;  %v13074_v47 = vld [vmem:[%s19430_s29 + $0xc8] sm:$0xff]  ;;  %v13075_v49 = vld [vmem:[%s19430_s29 + $0xd0] sm:$0xff]  ;;  %v13076_v50 = vld [vmem:[%s19430_s29 + $0xd8] sm:$0xff] }
  0x14   :  { %16067 = vmatpush3.bf16.msra.mxu1 %v16064_v10  ;;  %16097 = vmatprep.subr.bf16.mxu0 %v16096_v37  ;;  %v16112_v48 = vpack.c.bf16 %v13074_v47, %v13073_v46  ;;  %v16116_v51 = vpack.c.bf16 %v13076_v50, %v13075_v49  ;;  %v13077_v52 = vld [vmem:[%s19430_s29 + $0xe0] sm:$0xff]  ;;  %v13078_v53 = vld [vmem:[%s19430_s29 + $0xe8] sm:$0xff]  ;;  %v13079_v55 = vld [vmem:[%s19430_s29 + $0xf0] sm:$0xff] }
  0x15   :  { %16069 = vmatprep.subr.bf16.mxu1 %v16068_v15  ;;  %16099 = vmatpush3.bf16.msra.mxu0 %v16096_v37  ;;  %v16120_v54 = vpack.c.bf16 %v13078_v53, %v13077_v52  ;;  %v13080_v56 = vld [vmem:[%s19430_s29 + $0xf8] sm:$0xff]  ;;  %v13105_v58 = vld [vmem:[%s19430_s29 + $0x180] sm:$0xff]  ;;  %v13106_v59 = vld [vmem:[%s19430_s29 + $0x188] sm:$0xff] }
  0x16   :  { %16101 = vmatprep.subr.bf16.mxu0 %v16100_v39  ;;  %v16124_v57 = vpack.c.bf16 %v13080_v56, %v13079_v55  ;;  %v16136_v60 = vpack.c.bf16 %v13106_v59, %v13105_v58  ;;  %v13107_v61 = vld [vmem:[%s19430_s29 + $0x190] sm:$0xff]  ;;  %v13108_v62 = vld [vmem:[%s19430_s29 + $0x198] sm:$0xff]  ;;  %v613_v10 = vld [vmem:[%s19430_s29] sm:$0xff] }
  0x17   :  { %v13101_v8 = vld [vmem:[%s19429_s26 + $0x50] sm:$0xff]  ;;  %v614_v11 = vld [vmem:[%s19430_s29 + $0x8] sm:$0xff]  ;;  %v16140_v12 = vpack.c.bf16 %v13108_v62, %v13107_v61  ;;  %v13109_v13 = vld [vmem:[%s19430_s29 + $0x1a0] sm:$0xff] }
  0x18   :  { %16071 = vmatpush3.bf16.msra.mxu1 %v16068_v15  ;;  %v13110_v14 = vld [vmem:[%s19430_s29 + $0x1a8] sm:$0xff]  ;;  %v16168_v15 = vpack.c.bf16 %v614_v11, %v613_v10  ;;  %v615_v16 = vld [vmem:[%s19430_s29 + $0x10] sm:$0xff]  ;;  %v616_v17 = vld [vmem:[%s19430_s29 + $0x18] sm:$0xff] }
  0x19   :  { %16073 = vmatprep.subr.bf16.mxu1 %v16072_v18  ;;  %16103 = vmatpush3.bf16.msra.mxu0 %v16100_v39  ;;  %v13112_v19 = vld [vmem:[%s19430_s29 + $0x1b8] sm:$0xff]  ;;  %v617_v22 = vld [vmem:[%s19430_s29 + $0x20] sm:$0xff]  ;;  %v618_v23 = vld [vmem:[%s19430_s29 + $0x28] sm:$0xff] }
  0x1a   :  { %16105 = vmatprep.subr.bf16.mxu0 %v16104_v42  ;;  %v13102_v20 = vld [vmem:[%s19429_s26 + $0x58] sm:$0xff]  ;;  %v13114_v25 = vld [vmem:[%s19430_s29 + $0x1c8] sm:$0xff]  ;;  %v16176_v26 = vpack.c.bf16 %v618_v23, %v617_v22  ;;  %v621_v32 = vld [vmem:[%s19430_s29 + $0x40] sm:$0xff] }
  0x1b   :  { %v620_v28 = vld [vmem:[%s19430_s29 + $0x38] sm:$0xff]  ;;  %v623_v36 = vld [vmem:[%s19430_s29 + $0x50] sm:$0xff]  ;;  %v625_v39 = vld [vmem:[%s19430_s29 + $0x60] sm:$0xff] }
  0x1c   :  { %16075 = vmatpush3.bf16.msra.mxu1 %v16072_v18  ;;  %v16144_v18 = vpack.c.bf16 %v13110_v14, %v13109_v13  ;;  %v624_v37 = vld [vmem:[%s19430_s29 + $0x58] sm:$0xff]  ;;  %v626_v40 = vld [vmem:[%s19430_s29 + $0x68] sm:$0xff]  ;;  %v13123_v53 = vld [vmem:[%s19431_s25] ss:$0 sm:$0xff] }
  0x1d   :  { %16077 = vmatprep.subr.bf16.mxu1 %v16076_v21  ;;  %16107 = vmatpush3.bf16.msra.mxu0 %v16104_v42  ;;  %v16188_v38 = vpack.c.bf16 %v624_v37, %v623_v36  ;;  %v16192_v41 = vpack.c.bf16 %v626_v40, %v625_v39  ;;  %v627_v42 = vld [vmem:[%s19430_s29 + $0x70] sm:$0xff]  ;;  %v628_v43 = vld [vmem:[%s19430_s29 + $0x78] sm:$0xff]  ;;  %v13118_v46 = vld [vmem:[%s19430_s29 + $0x1e8] sm:$0xff] }
  0x1e   :  { %16109 = vmatprep.subr.bf16.mxu0 %v16108_v45  ;;  %v16196_v44 = vpack.c.bf16 %v628_v43, %v627_v42  ;;  %v734_v14 = vld [vmem:[%s19429_s26 + $0x8] sm:$0xff]  ;;  %v13134_v22 = vld [vmem:[%s19404_s3 + $0x60] sm:$0xff]  ;;  %v819_v36 = vld [vmem:[%s19404_s3 + $0x18] sm:$0xff] }
  0x1f   :  { %v13135_v23 = vld [vmem:[%s19404_s3 + $0x68] sm:$0xff]  ;;  %v820_v40 = vld [vmem:[%s19404_s3 + $0x20] sm:$0xff]  ;;  %v822_v43 = vld [vmem:[%s19404_s3 + $0x30] sm:$0xff] }
  0x20   :  { %16079 = vmatpush3.bf16.msra.mxu1 %v16076_v21  ;;  %v16172_v21 = vpack.c.bf16 %v616_v17, %v615_v16  ;;  %v13127_v16 = vld [vmem:[%s19429_s26 + $0x18] sm:$0xff]  ;;  %v13130_v17 = vld [vmem:[%s19404_s3 + $0x40] sm:$0xff] }
  0x21   :  { %16081 = vmatprep.subr.bf16.mxu1 %v16080_v24  ;;  %16111 = vmatpush3.bf16.msra.mxu0 %v16108_v45  ;;  %v13117_v45 = vld [vmem:[%s19430_s29 + $0x1e0] sm:$0xff] }
  0x22   :  { %16113 = vmatprep.subr.bf16.mxu0 %v16112_v48  ;;  %v16160_v47 = vpack.c.bf16 %v13118_v46, %v13117_v45  ;;  %v13142_v46 = vld [vmem:[%s19429_s26 + $0x20] sm:$0xff] }
  0x24   :  { %16083 = vmatpush3.bf16.msra.mxu1 %v16080_v24 }
  0x25   :  { %16085 = vmatprep.subr.bf16.mxu1 %v16084_v27  ;;  %16115 = vmatpush3.bf16.msra.mxu0 %v16112_v48  ;;  %v13119_v48 = vld [vmem:[%s19430_s29 + $0x1f0] sm:$0xff] }
  0x26   :  { %16117 = vmatprep.subr.bf16.mxu0 %v16116_v51 }
  0x28   :  { %16087 = vmatpush3.bf16.msra.mxu1 %v16084_v27  ;;  %v619_v27 = vld [vmem:[%s19430_s29 + $0x30] sm:$0xff] }
  0x29   :  { %16089 = vmatprep.subr.bf16.mxu1 %v16088_v30  ;;  %16119 = vmatpush3.bf16.msra.mxu0 %v16116_v51  ;;  %v16180_v31 = vpack.c.bf16 %v620_v28, %v619_v27  ;;  %v816_v27 = vld [vmem:[%s19404_s3] sm:$0xff]  ;;  %v817_v28 = vld [vmem:[%s19404_s3 + $0x8] sm:$0xff] }
  0x2a   :  { %16121 = vmatprep.subr.bf16.mxu0 %v16120_v54 }
  0x2c   :  { %16091 = vmatpush3.bf16.msra.mxu1 %v16088_v30  ;;  %v13115_v30 = vld [vmem:[%s19430_s29 + $0x1d0] sm:$0xff] }
  0x2d   :  { %16093 = vmatprep.subr.bf16.mxu1 %v16092_v33  ;;  %16123 = vmatpush3.bf16.msra.mxu0 %v16120_v54 }
  0x2e   :  { %16125 = vmatprep.subr.bf16.mxu0 %v16124_v57 }
  0x30   :  { %16095 = vmatpush3.bf16.msra.mxu1 %v16092_v33  ;;  %v622_v33 = vld [vmem:[%s19430_s29 + $0x48] sm:$0xff] }
  0x31   :  { %16129 = vmatprep.subr.bf16.mxu1 %v17061_v3  ;;  %16127 = vmatpush3.bf16.msra.mxu0 %v16124_v57  ;;  %v16184_v35 = vpack.c.bf16 %v622_v33, %v621_v32 }
  0x32   :  { %16137 = vmatprep.subr.bf16.mxu0 %v16136_v60 }
  0xe6   :  { %v14581_v63 = vpop.f32.mrb[0].mxu1  ;;  %v14570_v5 = vpop.f32.mrb[0].mxu0 }
  0xe7   :  { %v243_v7 = vpop.f32.mrb[1].mxu1  ;;  %v142_v9 = vpop.f32.mrb[1].mxu0 }
  0xe8   :  { %14614 = vmatprep.mubr.f32.mxu1 %v243_v7  ;;  %14649 = vmatprep.mubr.f32.mxu0 %v142_v9 }
  0xe9   :  { %14615 = vmatmul.mubr.f32.vlgmr.msra.gmra.mrb[2].mxu1 %v14581_v63  ;;  %14650 = vmatmul.mubr.f32.vlgmr.msra.gmra.mrb[2].mxu0 %v14570_v5 }
  0xea   :  { %16131 = vmatpush3.bf16.msra.mxu1 %v17061_v3  ;;  %14660 = vmatprep.mubr.msk.f32.mxu1 %vm69_vm0, %v13101_v8  ;;  %v13111_v3 = vld [vmem:[%s19430_s29 + $0x1b0] sm:$0xff] }
  0xeb   :  { %16133 = vmatprep.subr.bf16.mxu1 %v17073_v6  ;;  %16139 = vmatpush3.bf16.msra.mxu0 %v16136_v60  ;;  %v16148_v24 = vpack.c.bf16 %v13112_v19, %v13111_v3  ;;  %v13132_v3 = vld [vmem:[%s19404_s3 + $0x50] sm:$0xff] }
  0xec   :  { %16141 = vmatprep.subr.bf16.mxu0 %v16140_v12 }
  0xee   :  { %16135 = vmatpush3.bf16.msra.mxu1 %v17073_v6  ;;  %v13113_v6 = vld [vmem:[%s19430_s29 + $0x1c0] sm:$0xff] }
  0xef   :  { %16169 = vmatprep.subr.bf16.mxu1 %v16168_v15  ;;  %16143 = vmatpush3.bf16.msra.mxu0 %v16140_v12  ;;  %v16152_v29 = vpack.c.bf16 %v13114_v25, %v13113_v6  ;;  %v13136_v6 = vld [vmem:[%s19404_s3 + $0x70] sm:$0xff]  ;;  %v13137_v25 = vld [vmem:[%s19404_s3 + $0x78] sm:$0xff] }
  0xf0   :  { %16145 = vmatprep.subr.bf16.mxu0 %v16144_v18 }
  0xf1   :  { %14661 = vmatmul.mubr.msk.f32.vlgmr.msra.gmra.mrb[4].mxu1 %vm69_vm0, %v13102_v20  ;;  %v13133_v20 = vld [vmem:[%s19404_s3 + $0x58] sm:$0xff] }
  0xf2   :  { %16171 = vmatpush3.bf16.msra.mxu1 %v16168_v15  ;;  %14730 = vmatprep.mubr.f32.mxu1 %v17047_v0  ;;  %v13116_v0 = vld [vmem:[%s19430_s29 + $0x1d8] sm:$0xff]  ;;  %v13126_v15 = vld [vmem:[%s19429_s26 + $0x10] sm:$0xff] }
  0xf3   :  { %16173 = vmatprep.subr.bf16.mxu1 %v16172_v21  ;;  %16147 = vmatpush3.bf16.msra.mxu0 %v16144_v18  ;;  %v16156_v34 = vpack.c.bf16 %v13116_v0, %v13115_v30  ;;  %v13131_v18 = vld [vmem:[%s19404_s3 + $0x48] sm:$0xff] }
  0xf4   :  { %16149 = vmatprep.subr.bf16.mxu0 %v16148_v24  ;;  %v16216_v19 = vpack.c.bf16 %v13131_v18, %v13130_v17  ;;  %v16943_v17 = vmov 0.0   ;;  %v13163_v18 = vld [vmem:[%s19404_s3 + $0x100] sm:$0xff] }
  0xf6   :  { %16175 = vmatpush3.bf16.msra.mxu1 %v16172_v21  ;;  %v16220_v21 = vpack.c.bf16 %v13133_v20, %v13132_v3  ;;  %v13164_v3 = vld [vmem:[%s19404_s3 + $0x108] sm:$0xff]  ;;  %v13165_v20 = vld [vmem:[%s19404_s3 + $0x110] sm:$0xff] }
  0xf7   :  { %16177 = vmatprep.subr.bf16.mxu1 %v16176_v26  ;;  %16151 = vmatpush3.bf16.msra.mxu0 %v16148_v24  ;;  %v16224_v24 = vpack.c.bf16 %v13135_v23, %v13134_v22  ;;  %v13167_v23 = vld [vmem:[%s19404_s3 + $0x120] sm:$0xff] }
  0xf8   :  { %16153 = vmatprep.subr.bf16.mxu0 %v16152_v29 }
  0xfa   :  { %16179 = vmatpush3.bf16.msra.mxu1 %v16176_v26  ;;  %v16228_v26 = vpack.c.bf16 %v13137_v25, %v13136_v6  ;;  %v13169_v25 = vld [vmem:[%s19404_s3 + $0x130] sm:$0xff] }
  0xfb   :  { %16181 = vmatprep.subr.bf16.mxu1 %v16180_v31  ;;  %16155 = vmatpush3.bf16.msra.mxu0 %v16152_v29  ;;  %v16232_v29 = vpack.c.bf16 %v817_v28, %v816_v27  ;;  %v13122_v28 = vld [vmem:[%s19431_s25 + $0x1] ss:$0 sm:$0xff] }
  0xfc   :  { %16157 = vmatprep.subr.bf16.mxu0 %v16156_v34 }
  0xfe   :  { %16183 = vmatpush3.bf16.msra.mxu1 %v16180_v31 }
  0xff   :  { %16185 = vmatprep.subr.bf16.mxu1 %v16184_v35  ;;  %16159 = vmatpush3.bf16.msra.mxu0 %v16156_v34 }
 0x100   :  { %16161 = vmatprep.subr.bf16.mxu0 %v16160_v47 }
 0x102   :  { %16187 = vmatpush3.bf16.msra.mxu1 %v16184_v35  ;;  %v818_v35 = vld [vmem:[%s19404_s3 + $0x10] sm:$0xff] }
 0x103   :  { %16189 = vmatprep.subr.bf16.mxu1 %v16188_v38  ;;  %16163 = vmatpush3.bf16.msra.mxu0 %v16160_v47  ;;  %v16236_v39 = vpack.c.bf16 %v819_v36, %v818_v35  ;;  %v13146_v47 = vld [vmem:[%s19404_s3 + $0x80] sm:$0xff] }
 0x106   :  { %16191 = vmatpush3.bf16.msra.mxu1 %v16188_v38 }
 0x107   :  { %16193 = vmatprep.subr.bf16.mxu1 %v16192_v41 }
 0x10a   :  { %16195 = vmatpush3.bf16.msra.mxu1 %v16192_v41  ;;  %v821_v41 = vld [vmem:[%s19404_s3 + $0x28] sm:$0xff] }
 0x10b   :  { %16197 = vmatprep.subr.bf16.mxu1 %v16196_v44  ;;  %v16240_v42 = vpack.c.bf16 %v821_v41, %v820_v40 }
 0x10e   :  { %16199 = vmatpush3.bf16.msra.mxu1 %v16196_v44  ;;  %v823_v44 = vld [vmem:[%s19404_s3 + $0x38] sm:$0xff] }
 0x10f   :  { %v16244_v45 = vpack.c.bf16 %v823_v44, %v822_v43 }
 0x111   :  { %14731 = vmatmul.mubr.f32.vlgmr.msra.gmra.mrb[6].mxu1 %v17052_v1  ;;  %v13120_v1 = vld [vmem:[%s19430_s29 + $0x1f8] sm:$0xff] }
 0x112   :  { %14733 = vmatprep.mubr.f32.mxu1 %v17057_v2  ;;  %v16164_v2 = vpack.c.bf16 %v13120_v1, %v13119_v48  ;;  %v13147_v48 = vld [vmem:[%s19404_s3 + $0x88] sm:$0xff] }
 0x113   :  { %v16256_v1 = vpack.c.bf16 %v13147_v48, %v13146_v47  ;;  %v13173_v47 = vld [vmem:[%s19404_s3 + $0x140] sm:$0xff]  ;;  %v13174_v48 = vld [vmem:[%s19404_s3 + $0x148] sm:$0xff] }
 0x114   :  { %16165 = vmatprep.subr.bf16.mxu0 %v16164_v2 }
 0x115   :  { %14734 = vmatmul.mubr.f32.gmra.mrb[8].mxu1 %v17066_v4  ;;  %16167 = vmatpush3.bf16.msra.mxu0 %v16164_v2  ;;  %v733_v4 = vld [vmem:[%s19429_s26] sm:$0xff]  ;;  %v13148_v2 = vld [vmem:[%s19404_s3 + $0x90] sm:$0xff] }
 0x116   :  { %14744 = vmatprep.mubr.msk.f32.mxu1 %vm69_vm0, %v733_v4  ;;  %v13149_v4 = vld [vmem:[%s19404_s3 + $0x98] sm:$0xff] }
 0x1bc   :  { %v17308_v49 = vpop.f32.mrb[2].mxu1 }
 0x1bd   :  { %v17310_v50 = vpop.f32.mrb[3].mxu1 }
 0x1c4   :  { %v14662_v51 = vpop.f32.mrb[4].mxu1 }
 0x1c5   :  { %v494_v52 = vpop.f32.mrb[5].mxu1 }
 0x1c6   :  { %14695 = vmatprep.mubr.f32.mxu0 %v494_v52  ;;  %v13151_v52 = vld [vmem:[%s19404_s3 + $0xa8] sm:$0xff] }
 0x1c7   :  { %14696 = vmatmul.mubr.f32.vlgmr.msra.gmra.mrb[2].mxu0 %v14662_v51  ;;  %v13150_v51 = vld [vmem:[%s19404_s3 + $0xa0] sm:$0xff] }
 0x1e4   :  { %v14732_v54 = vpop.f32.mrb[6].mxu1 }
 0x1e5   :  { %v708_v55 = vadd.f32 %v14732_v54, %v13123_v53  ;;  %v702_v56 = vpop.f32.mrb[7].mxu1  ;;  %v13152_v54 = vld [vmem:[%s19404_s3 + $0xb0] sm:$0xff] }
 0x1e6   :  { %v703_v57 = vadd.f32 %v13123_v53, %v702_v56 }
 0x1e7   :  { %vm722_vm1 = vcmp.ge.f32.partialorder %v708_v55, 0.0  ;;  %v726_v58 = vmul.f32 0.25, %v708_v55 }
 0x1e8   :  { %vm721_vm2 = vcmp.ge.f32.partialorder %v703_v57, 0.0  ;;  %v725_v59 = vmul.f32 0.25, %v703_v57  ;;  %v14735_v60 = vpop.f32.mrb[8].mxu1 }
 0x1e9   :  { %v730_v61 = vsel %vm722_vm1, %v708_v55, %v726_v58  ;;  %v718_v62 = vadd.f32 %v14735_v60, %v13123_v53  ;;  %v712_v63 = vpop.f32.mrb[9].mxu1  ;;  %v13153_v55 = vld [vmem:[%s19404_s3 + $0xb8] sm:$0xff]  ;;  %v1272_v60 = vld [vmem:[%s19405_s6 + $0x8] sm:$0xff] }
 0x1ea   :  { %v729_v5 = vsel %vm721_vm2, %v703_v57, %v725_v59  ;;  %v713_v7 = vadd.f32 %v13123_v53, %v712_v63  ;;  %v16264_v53 = vpack.c.bf16 %v13151_v52, %v13150_v51  ;;  %v16268_v56 = vpack.c.bf16 %v13153_v55, %v13152_v54  ;;  %v1271_v59 = vld [vmem:[%s19405_s6] sm:$0xff]  ;;  %v1274_v63 = vld [vmem:[%s19405_s6 + $0x18] sm:$0xff]  ;;  %v13178_v52 = vld [vmem:[%s19404_s3 + $0x168] sm:$0xff] }
 0x1eb   :  { %v17315_v8 = vpack.c.bf16 %v730_v61, %v729_v5  ;;  %vm724_vm3 = vcmp.ge.f32.partialorder %v718_v62, 0.0  ;;  %v728_v9 = vmul.f32 0.25, %v718_v62  ;;  %v16272_v61 = vpack.c.bf16 %v1272_v60, %v1271_v59  ;;  %v13177_v51 = vld [vmem:[%s19404_s3 + $0x160] sm:$0xff]  ;;  %v13179_v54 = vld [vmem:[%s19404_s3 + $0x170] sm:$0xff]  ;;  %v13180_v55 = vld [vmem:[%s19404_s3 + $0x178] sm:$0xff] }
 0x1ec   :  { %vm723_vm4 = vcmp.ge.f32.partialorder %v713_v7, 0.0  ;;  %v727_v10 = vmul.f32 0.25, %v713_v7  ;;  %v13196_v60 = vld [vmem:[%s19404_s3 + $0xc0] sm:$0xff] }
 0x1ed   :  { %v732_v11 = vsel %vm724_vm3, %v718_v62, %v728_v9  ;;  %16201 = vmatprep.subr.bf16.mxu1 %v17315_v8  ;;  %16273 = vmatprep.subr.bf16.mxu0 %v16272_v61  ;;  %v1273_v62 = vld [vmem:[%s19405_s6 + $0x10] sm:$0xff] }
 0x1ee   :  { %v731_v12 = vsel %vm723_vm4, %v713_v7, %v727_v10  ;;  %16203 = vmatpush3.bf16.msra.mxu1 %v17315_v8  ;;  %16275 = vmatpush3.bf16.msra.mxu0 %v16272_v61  ;;  %v16276_v5 = vpack.c.bf16 %v1274_v63, %v1273_v62  ;;  %v13156_v7 = vld [vmem:[%s19406_s5] ss:$0 sm:$0xff]  ;;  %v13197_v62 = vld [vmem:[%s19404_s3 + $0xc8] sm:$0xff]  ;;  %v13187_v63 = vld [vmem:[%s19404_s3 + $0x190] sm:$0xff]  ;;  %vm2520_vm4 = vcmask 64512  }
 0x1ef   :  { %v17319_v13 = vpack.c.bf16 %v732_v11, %v731_v12 }
 0x1f0   :  { %16277 = vmatprep.subr.bf16.mxu0 %v16276_v5 }
 0x1f1   :  { %16205 = vmatprep.subr.bf16.mxu1 %v17319_v13 }
 0x1f2   :  { %16207 = vmatpush3.bf16.msra.mxu1 %v17319_v13  ;;  %16279 = vmatpush3.bf16.msra.mxu0 %v16276_v5  ;;  %v13188_v5 = vld [vmem:[%s19404_s3 + $0x198] sm:$0xff] }
 0x1f3   :  { %16209 = vmatprep.subr.bf16.mxu1 %v17315_v8 }
 0x1f5   :  { %14745 = vmatmul.mubr.msk.f32.vlgmr.msra.gmra.mrb[10].mxu1 %vm69_vm0, %v734_v14 }
 0x1f6   :  { %16211 = vmatpush3.bf16.msra.mxu1 %v17315_v8  ;;  %14755 = vmatprep.mubr.msk.f32.mxu1 %vm69_vm0, %v13126_v15 }
 0x1f7   :  { %16213 = vmatprep.subr.bf16.mxu1 %v17319_v13 }
 0x1fa   :  { %16215 = vmatpush3.bf16.msra.mxu1 %v17319_v13 }
 0x1fb   :  { %16217 = vmatprep.subr.bf16.mxu1 %v16216_v19 }
 0x1fd   :  { %14756 = vmatmul.mubr.msk.f32.vlgmr.msra.gmra.mrb[12].mxu1 %vm69_vm0, %v13127_v16  ;;  %v16941_v16 = vmov 0.0|0.0  }
 0x1fe   :  { %16219 = vmatpush3.bf16.msra.mxu1 %v16216_v19  ;;  %16280 = vmatprep.subr.bf16.mxu0 %v16941_v16  ;;  %v16299_v19 = vpack.c.bf16 %v13164_v3, %v13163_v18  ;;  %v13200_v18 = vld [vmem:[%s19404_s3 + $0xe0] sm:$0xff]  ;;  %v13201_v3 = vld [vmem:[%s19404_s3 + $0xe8] sm:$0xff] }
 0x1ff   :  { %16221 = vmatprep.subr.bf16.mxu1 %v16220_v21 }
 0x202   :  { %16223 = vmatpush3.bf16.msra.mxu1 %v16220_v21  ;;  %v13166_v21 = vld [vmem:[%s19404_s3 + $0x118] sm:$0xff] }
 0x203   :  { %16225 = vmatprep.subr.bf16.mxu1 %v16224_v24  ;;  %v16302_v22 = vpack.c.bf16 %v13166_v21, %v13165_v20  ;;  %v13202_v20 = vld [vmem:[%s19404_s3 + $0xf0] sm:$0xff]  ;;  %v13203_v21 = vld [vmem:[%s19404_s3 + $0xf8] sm:$0xff] }
 0x206   :  { %16227 = vmatpush3.bf16.msra.mxu1 %v16224_v24  ;;  %v13168_v24 = vld [vmem:[%s19404_s3 + $0x128] sm:$0xff] }
 0x207   :  { %16229 = vmatprep.subr.bf16.mxu1 %v16228_v26  ;;  %v16305_v6 = vpack.c.bf16 %v13168_v24, %v13167_v23  ;;  %v13189_v23 = vld [vmem:[%s19404_s3 + $0x1a0] sm:$0xff]  ;;  %v13190_v24 = vld [vmem:[%s19404_s3 + $0x1a8] sm:$0xff] }
 0x20a   :  { %16231 = vmatpush3.bf16.msra.mxu1 %v16228_v26  ;;  %v13170_v26 = vld [vmem:[%s19404_s3 + $0x138] sm:$0xff] }
 0x20b   :  { %16233 = vmatprep.subr.bf16.mxu1 %v16232_v29  ;;  %v16308_v27 = vpack.c.bf16 %v13170_v26, %v13169_v25  ;;  %v13191_v25 = vld [vmem:[%s19404_s3 + $0x1b0] sm:$0xff]  ;;  %v13192_v26 = vld [vmem:[%s19404_s3 + $0x1b8] sm:$0xff] }
 0x29a   :  { %v14697_v30 = vpop.f32.mrb[2].mxu0 }
 0x29b   :  { %v17370_v0 = vadd.f32 %v14697_v30, %v17308_v49  ;;  %v586_v31 = vpop.f32.mrb[3].mxu0  ;;  %v13143_v49 = vld [vmem:[%s19429_s26 + $0x28] sm:$0xff] }
 0x29c   :  { %v17373_v32 = vadd.f32 %v586_v31, %v17310_v50  ;;  %v16260_v50 = vpack.c.bf16 %v13149_v4, %v13148_v2  ;;  %v16287_v2 = vpack.c.bf16 %v13174_v48, %v13173_v47  ;;  %v13175_v4 = vld [vmem:[%s19404_s3 + $0x150] sm:$0xff]  ;;  %v13209_v47 = vld [vmem:[%s19407_s8 + $0x8] sm:$0xff]  ;;  %v2035_v48 = vld [vmem:[%s19408_s7] sm:$0xff] }
 0x29e   :  { %v605_v30 = vadd.f32 %v17373_v32, %v13122_v28 }
 0x2a0   :  { %vm607_vm10 = vcmp.ge.f32.partialorder %v605_v30, 0.0 }
 0x2c8   :  { %v14746_v33 = vpop.f32.mrb[10].mxu1 }
 0x2c9   :  { %v807_v34 = vpop.f32.mrb[11].mxu1 }
 0x2d0   :  { %v14757_v37 = vpop.f32.mrb[12].mxu1 }
 0x2d1   :  { %v899_v38 = vpop.f32.mrb[13].mxu1 }
 0x2d2   :  { %14774 = vmatprep.mubr.msk.f32.mxu1 %vm917_vm5, %v899_v38 }
 0x2d3   :  { %14775 = vmatmul.mubr.msk.f32.vlgmr.msra.gmra.mrb[14].mxu1 %vm917_vm5, %v14757_v37 }
 0x2d4   :  { %16235 = vmatpush3.bf16.msra.mxu1 %v16232_v29  ;;  %14793 = vmatprep.mubr.msk.f32.mxu1 %vm917_vm5, %v807_v34  ;;  %v606_v29 = vadd.f32 %v17370_v0, %v13122_v28  ;;  %v609_v34 = vmul.f32 0.25, %v605_v30 }
 0x2d5   :  { %16237 = vmatprep.subr.bf16.mxu1 %v16236_v39 }
 0x2d6   :  { %v610_v31 = vmul.f32 0.25, %v606_v29  ;;  %vm608_vm9 = vcmp.ge.f32.partialorder %v606_v29, 0.0  ;;  %v611_v41 = vsel %vm607_vm10, %v605_v30, %v609_v34 }
 0x2d8   :  { %16239 = vmatpush3.bf16.msra.mxu1 %v16236_v39  ;;  %v612_v38 = vsel %vm608_vm9, %v606_v29, %v610_v31 }
 0x2d9   :  { %16241 = vmatprep.subr.bf16.mxu1 %v16240_v42 }
 0x2dc   :  { %16243 = vmatpush3.bf16.msra.mxu1 %v16240_v42 }
 0x2dd   :  { %16245 = vmatprep.subr.bf16.mxu1 %v16244_v45 }
 0x2e0   :  { %16247 = vmatpush3.bf16.msra.mxu1 %v16244_v45 }
 0x2e1   :  { %16249 = vmatprep.subr.bf16.mxu1 %v17315_v8 }
 0x2e3   :  { %14794 = vmatmul.mubr.msk.f32.vlgmr.msra.gmra.mrb[14].mxu1 %vm917_vm5, %v14746_v33  ;;  %v13158_v33 = vld [vmem:[%s19431_s25 + $0x2] ss:$0 sm:$0xff] }
 0x2e4   :  { %16251 = vmatpush3.bf16.msra.mxu1 %v17315_v8  ;;  %14804 = vmatprep.mubr.msk.f32.mxu1 %vm69_vm0, %v13142_v46  ;;  %v13161_v46 = vld [vmem:[%s19407_s8 + $0x18] sm:$0xff] }
 0x2e5   :  { %16253 = vmatprep.subr.bf16.mxu1 %v17319_v13 }
 0x2e8   :  { %16255 = vmatpush3.bf16.msra.mxu1 %v17319_v13 }
 0x2e9   :  { %16257 = vmatprep.subr.bf16.mxu1 %v16256_v1 }
 0x2eb   :  { %14805 = vmatmul.mubr.msk.f32.vlgmr.msra.gmra.mrb[16].mxu1 %vm69_vm0, %v13143_v49  ;;  %v13176_v49 = vld [vmem:[%s19404_s3 + $0x158] sm:$0xff] }
 0x2ec   :  { %16259 = vmatpush3.bf16.msra.mxu1 %v16256_v1  ;;  %v13171_v1 = vld [vmem:[%s19407_s8 + $0x20] sm:$0xff] }
 0x2ed   :  { %16261 = vmatprep.subr.bf16.mxu1 %v16260_v50 }
 0x2f0   :  { %16263 = vmatpush3.bf16.msra.mxu1 %v16260_v50  ;;  %v16290_v50 = vpack.c.bf16 %v13176_v49, %v13175_v4  ;;  %v13212_v49 = vld [vmem:[%s19408_s7 + $0x28] sm:$0xff] }
 0x2f1   :  { %16265 = vmatprep.subr.bf16.mxu1 %v16264_v53 }
 0x2f4   :  { %16267 = vmatpush3.bf16.msra.mxu1 %v16264_v53  ;;  %v16293_v53 = vpack.c.bf16 %v13178_v52, %v13177_v51  ;;  %v2038_v51 = vld [vmem:[%s19408_s7 + $0x18] sm:$0xff] }
 0x2f5   :  { %16269 = vmatprep.subr.bf16.mxu1 %v16268_v56 }
 0x2f8   :  { %16271 = vmatpush3.bf16.msra.mxu1 %v16268_v56  ;;  %v16296_v56 = vpack.c.bf16 %v13180_v55, %v13179_v54  ;;  %v13213_v54 = vld [vmem:[%s19408_s7 + $0x30] sm:$0xff]  ;;  %v13214_v55 = vld [vmem:[%s19408_s7 + $0x38] sm:$0xff] }
 0x2f9   :  { %16298 = vmatprep.subr.bf16.mxu1 %v16941_v16 }
 0x3be   :  { %v14806_v57 = vpop.f32.mrb[16].mxu1 }
 0x3bf   :  { %v1155_v58 = vpop.f32.mrb[17].mxu1 }
 0x3c0   :  { %14823 = vmatprep.mubr.msk.f32.mxu1 %vm917_vm5, %v1155_v58  ;;  %v13186_v58 = vld [vmem:[%s19404_s3 + $0x188] sm:$0xff] }
 0x3c1   :  { %14824 = vmatmul.mubr.msk.f32.vlgmr.msra.gmra.mrb[14].mxu1 %vm917_vm5, %v14806_v57  ;;  %v13185_v57 = vld [vmem:[%s19404_s3 + $0x180] sm:$0xff] }
 0x3c2   :  { %14886 = vmatprep.mubr.msk.f32.mxu1 %vm16942_vm8, %v16943_v17  ;;  %16300 = vmatpush3.bf16.msra.mxu1 %v16299_v19  ;;  %v16314_v59 = vpack.c.bf16 %v13186_v58, %v13185_v57  ;;  %v16333_v19 = vpack.c.bf16 %v13201_v3, %v13200_v18 }
 0x3c3   :  { %16301 = vmatprep.subr.bf16.mxu1 %v16941_v16 }
 0x3c6   :  { %16303 = vmatpush3.bf16.msra.mxu1 %v16302_v22  ;;  %v16337_v22 = vpack.c.bf16 %v13203_v21, %v13202_v20  ;;  %v13225_v21 = vld [vmem:[%s19429_s26 + $0x60] sm:$0xff] }
 0x3c7   :  { %16304 = vmatprep.subr.bf16.mxu1 %v16941_v16 }
 0x3ca   :  { %16306 = vmatpush3.bf16.msra.mxu1 %v16305_v6  ;;  %v16320_v6 = vpack.c.bf16 %v13190_v24, %v13189_v23 }
 0x3cb   :  { %16307 = vmatprep.subr.bf16.mxu1 %v16941_v16 }
 0x3ce   :  { %16309 = vmatpush3.bf16.msra.mxu1 %v16308_v27  ;;  %v16323_v27 = vpack.c.bf16 %v13192_v26, %v13191_v25 }
 0x3cf   :  { %16313 = vmatprep.subr.bf16.mxu1 %v16941_v16 }
 0x494   :  { %v14825_v8 = vpop.f32.mrb[14].mxu1 }
 0x495   :  { %v1264_v9 = vadd.f32 %v14825_v8, %v13156_v7  ;;  %v1245_v10 = vpop.f32.mrb[15].mxu1  ;;  %v16325_v8 = vpack.c.bf16 %v13197_v62, %v13196_v60 }
 0x496   :  { %v1263_v11 = vadd.f32 %v13156_v7, %v1245_v10 }
 0x497   :  { %v1268_v12 = vmul.f32 0.25, %v1264_v9  ;;  %vm1266_vm6 = vcmp.ge.f32.partialorder %v1264_v9, 0.0 }
 0x498   :  { %vm1265_vm7 = vcmp.ge.f32.partialorder %v1263_v11, 0.0  ;;  %v1267_v13 = vmul.f32 0.25, %v1263_v11 }
 0x499   :  { %v1270_v15 = vsel %vm1266_vm6, %v1264_v9, %v1268_v12  ;;  %v16317_v9 = vpack.c.bf16 %v13188_v5, %v13187_v63  ;;  %v13199_v12 = vld [vmem:[%s19404_s3 + $0xd8] sm:$0xff]  ;;  %v13217_v5 = vld [vmem:[%s19407_s8 + $0x10] sm:$0xff] }
 0x49a   :  { %v1269_v14 = vsel %vm1265_vm7, %v1263_v11, %v1267_v13  ;;  %v13198_v11 = vld [vmem:[%s19404_s3 + $0xd0] sm:$0xff] }
 0x49b   :  { %14834 = vmatprep.mubr.msk.f32.mxu0 %vm69_vm0, %v1269_v14  ;;  %v13183_v14 = vld [vmem:[%s19407_s8 + $0x28] sm:$0xff] }
 0x49c   :  { %14835 = vmatmul.mubr.msk.f32.vlgmr.msra.gmra.mrb[4].mxu0 %vm69_vm0, %v1270_v15  ;;  %v16329_v15 = vpack.c.bf16 %v13199_v12, %v13198_v11  ;;  %v13222_v11 = vld [vmem:[%s19408_s7 + $0x58] sm:$0xff] }
 0x49d   :  { %14841 = vmatprep.mubr.msk.f32.mxu0 %vm16942_vm8, %v16943_v17 }
 0x56f   :  { %v14836_v35 = vpop.f32.mrb[4].mxu0 }
 0x570   :  { %v1361_v36 = vadd.f32 %v14836_v35, %v13158_v33  ;;  %v1355_v37 = vpop.f32.mrb[5].mxu0 }
 0x571   :  { %v1356_v39 = vadd.f32 %v13158_v33, %v1355_v37 }
 0x572   :  { %v1365_v40 = vadd.f32 %v1361_v36, %v612_v38  ;;  %v13205_v36 = vld [vmem:[%s19406_s5 + $0x1] ss:$0 sm:$0xff] }
 0x573   :  { %v1364_v42 = vadd.f32 %v1356_v39, %v611_v41 }
 0x574   :  { %vm1367_vm11 = vcmp.ge.f32.partialorder %v1365_v40, 0.0  ;;  %v1369_v0 = vmul.f32 0.25, %v1365_v40 }
 0x575   :  { %vm1366_vm12 = vcmp.ge.f32.partialorder %v1364_v42, 0.0  ;;  %v1368_v32 = vmul.f32 0.25, %v1364_v42 }
 0x576   :  { %v17494_v43 = vsel %vm1367_vm11, %v1365_v40, %v1369_v0 }
 0x577   :  { %v17496_v44 = vsel %vm1366_vm12, %v1364_v42, %v1368_v32 }
 0x578   :  { %v16281_v45 = vpack.c.bf16 %v17494_v43, %v17496_v44 }
 0x57a   :  { %16282 = vmatpush3.bf16.msra.mxu0 %v16281_v45 }
 0x57b   :  { %16283 = vmatprep.subr.bf16.mxu0 %v16941_v16 }
 0x57d   :  { %14842 = vmatmul.mubr.msk.f32.vlgmr.msra.gmra.mrb[6].mxu0 %vm1374_vm13, %v13161_v46  ;;  %v1961_v46 = vld [vmem:[%s19407_s8] sm:$0xff] }
 0x57e   :  { %16285 = vmatpush3.bf16.msra.mxu0 %v16281_v45  ;;  %14848 = vmatprep.mubr.msk.f32.mxu0 %vm16942_vm8, %v16943_v17 }
 0x57f   :  { %16286 = vmatprep.subr.bf16.mxu0 %v16941_v16 }
 0x581   :  { %14849 = vmatmul.mubr.msk.f32.vlgmr.msra.gmra.mrb[8].mxu0 %vm1374_vm13, %v13171_v1  ;;  %v2036_v1 = vld [vmem:[%s19408_s7 + $0x8] sm:$0xff] }
 0x582   :  { %16288 = vmatpush3.bf16.msra.mxu0 %v16287_v2  ;;  %14867 = vmatprep.mubr.msk.f32.mxu0 %vm16942_vm8, %v16943_v17  ;;  %v13211_v2 = vld [vmem:[%s19408_s7 + $0x20] sm:$0xff]  ;;  %v16354_v4 = vpack.c.bf16 %v2036_v1, %v2035_v48 }
 0x583   :  { %16289 = vmatprep.subr.bf16.mxu0 %v16941_v16  ;;  %v16348_v52 = vpack.c.bf16 %v13212_v49, %v13211_v2  ;;  %v13240_v2 = vld [vmem:[%s19408_s7 + $0xb0] sm:$0xff] }
 0x584   :  { %v13234_v49 = vld [vmem:[%s19408_s7 + $0x90] sm:$0xff] }
 0x586   :  { %16291 = vmatpush3.bf16.msra.mxu0 %v16290_v50  ;;  %v2037_v50 = vld [vmem:[%s19408_s7 + $0x10] sm:$0xff] }
 0x587   :  { %16292 = vmatprep.subr.bf16.mxu0 %v16941_v16 }
 0x58a   :  { %16294 = vmatpush3.bf16.msra.mxu0 %v16293_v53  ;;  %v16357_v53 = vpack.c.bf16 %v2038_v51, %v2037_v50  ;;  %v13235_v50 = vld [vmem:[%s19408_s7 + $0x98] sm:$0xff] }
 0x58b   :  { %16295 = vmatprep.subr.bf16.mxu0 %v16941_v16 }
 0x58e   :  { %16297 = vmatpush3.bf16.msra.mxu0 %v16296_v56  ;;  %v16351_v56 = vpack.c.bf16 %v13214_v55, %v13213_v54  ;;  %v13247_v54 = vld [vmem:[%s19408_s7 + $0xc8] sm:$0xff]  ;;  %v13253_v55 = vld [vmem:[%s19408_s7 + $0x60] sm:$0xff] }
 0x58f   :  { %16310 = vmatprep.subr.bf16.mxu0 %v16941_v16 }
 0x650   :  { %v1444_v61 = vpop.f32.mrb[6].mxu0 }
 0x651   :  { %v14843_v7 = vpop.f32.mrb[7].mxu0  ;;  %14887 = vmatmul.mubr.msk.f32.vlgmr.msra.gmra.mrb[18].mxu1 %vm917_vm5, %v1444_v61 }
 0x652   :  { %16315 = vmatpush3.bf16.msra.mxu1 %v16314_v59  ;;  %14912 = vmatprep.mubr.msk.f32.mxu1 %vm16942_vm8, %v16943_v17  ;;  %v13219_v7 = vld [vmem:[%s19408_s7 + $0x40] sm:$0xff] }
 0x653   :  { %16316 = vmatprep.subr.bf16.mxu1 %v16941_v16 }
 0x654   :  { %v1528_v10 = vpop.f32.mrb[8].mxu0 }
 0x655   :  { %v14850_v13 = vpop.f32.mrb[9].mxu0  ;;  %14868 = vmatmul.mubr.msk.f32.vlgmr.msra.gmra.mrb[10].mxu0 %vm917_vm5, %v1528_v10  ;;  %v13221_v10 = vld [vmem:[%s19408_s7 + $0x50] sm:$0xff] }
 0x656   :  { %16312 = vmatpush3.bf16.msra.mxu0 %v16281_v45  ;;  %14893 = vmatprep.mubr.msk.f32.mxu0 %vm16942_vm8, %v16943_v17  ;;  %v16366_v12 = vpack.c.bf16 %v13222_v11, %v13221_v10  ;;  %v13249_v10 = vld [vmem:[%s19408_s7 + $0xd8] sm:$0xff] }
 0x657   :  { %16326 = vmatprep.subr.bf16.mxu0 %v16325_v8  ;;  %16318 = vmatpush3.bf16.msra.mxu1 %v16317_v9 }
 0x658   :  { %16319 = vmatprep.subr.bf16.mxu1 %v16941_v16 }
 0x659   :  { %14894 = vmatmul.mubr.msk.f32.vlgmr.msra.gmra.mrb[12].mxu0 %vm1374_vm13, %v13183_v14 }
 0x65a   :  { %16328 = vmatpush3.bf16.msra.mxu0 %v16325_v8  ;;  %14931 = vmatprep.mubr.msk.f32.mxu0 %vm917_vm5, %v17496_v44  ;;  %v13220_v8 = vld [vmem:[%s19408_s7 + $0x48] sm:$0xff] }
 0x65b   :  { %16330 = vmatprep.subr.bf16.mxu0 %v16329_v15  ;;  %16321 = vmatpush3.bf16.msra.mxu1 %v16320_v6  ;;  %v16363_v9 = vpack.c.bf16 %v13220_v8, %v13219_v7  ;;  %v13224_v6 = vld [vmem:[%s19409_s9] ss:$0 sm:$0xff]  ;;  %v13256_v7 = vld [vmem:[%s19408_s7 + $0x78] sm:$0xff] }
 0x65c   :  { %16322 = vmatprep.subr.bf16.mxu1 %v16941_v16 }
 0x65e   :  { %16332 = vmatpush3.bf16.msra.mxu0 %v16329_v15 }
 0x65f   :  { %16334 = vmatprep.subr.bf16.mxu0 %v16333_v19  ;;  %16324 = vmatpush3.bf16.msra.mxu1 %v16323_v27 }
 0x660   :  { %16347 = vmatprep.subr.bf16.mxu1 %v16941_v16 }
 0x662   :  { %16336 = vmatpush3.bf16.msra.mxu0 %v16333_v19 }
 0x663   :  { %16338 = vmatprep.subr.bf16.mxu0 %v16337_v22 }
 0x666   :  { %16340 = vmatpush3.bf16.msra.mxu0 %v16337_v22  ;;  %v13226_v22 = vld [vmem:[%s19429_s26 + $0x68] sm:$0xff] }
 0x667   :  { %16341 = vmatprep.subr.bf16.mxu0 %v16941_v16  ;;  %v16369_v23 = vpack.c.bf16 %v13226_v22, %v13225_v21 }
 0x669   :  { %14932 = vmatmul.mubr.msk.f32.vlgmr.msra.gmra.mrb[14].mxu0 %vm917_vm5, %v17494_v43 }
 0x66a   :  { %14938 = vmatprep.mubr.msk.f32.mxu0 %vm16942_vm8, %v16943_v17 }
 0x724   :  { %v1683_v28 = vpop.f32.mrb[18].mxu1 }
 0x725   :  { %v14888_v29 = vpop.f32.mrb[19].mxu1 }
 0x728   :  { %v1610_v30 = vpop.f32.mrb[10].mxu0 }
 0x729   :  { %v1684_v31 = vadd.f32 %v1683_v28, %v1610_v30  ;;  %v14869_v33 = vpop.f32.mrb[11].mxu0  ;;  %v13195_v30 = vld [vmem:[%s19406_s5 + $0x2] ss:$0 sm:$0xff] }
 0x72c   :  { %v1758_v34 = vpop.f32.mrb[12].mxu0 }
 0x72d   :  { %v14895_v35 = vpop.f32.mrb[13].mxu0  ;;  %14913 = vmatmul.mubr.msk.f32.vlgmr.msra.gmra.mrb[20].mxu1 %vm917_vm5, %v1758_v34  ;;  %v13228_v34 = vld [vmem:[%s19406_s5 + $0x3] ss:$0 sm:$0xff] }
 0x72e   :  { %14956 = vmatprep.mubr.msk.f32.mxu1 %vm16942_vm8, %v16943_v17  ;;  %16349 = vmatpush3.bf16.msra.mxu1 %v16348_v52  ;;  %v16381_v52 = vpack.c.bf16 %v13235_v50, %v13234_v49  ;;  %v13273_v50 = vld [vmem:[%s19407_s8 + $0x30] sm:$0xff] }
 0x72f   :  { %16350 = vmatprep.subr.bf16.mxu1 %v16941_v16 }
 0x732   :  { %16352 = vmatpush3.bf16.msra.mxu1 %v16351_v56  ;;  %v13254_v56 = vld [vmem:[%s19408_s7 + $0x68] sm:$0xff] }
 0x733   :  { %16359 = vmatprep.subr.bf16.mxu1 %v16941_v16 }
 0x73c   :  { %v14933_v37 = vpop.f32.mrb[14].mxu0 }
 0x73d   :  { %v1952_v38 = vadd.f32 %v14933_v37, %v13205_v36  ;;  %v1946_v39 = vpop.f32.mrb[15].mxu0 }
 0x73e   :  { %v1947_v40 = vadd.f32 %v13205_v36, %v1946_v39 }
 0x73f   :  { %vm1956_vm14 = vcmp.ge.f32.partialorder %v1952_v38, 0.0  ;;  %v1958_v41 = vmul.f32 0.25, %v1952_v38 }
 0x740   :  { %vm1955_vm15 = vcmp.ge.f32.partialorder %v1947_v40, 0.0  ;;  %v1957_v42 = vmul.f32 0.25, %v1947_v40 }
 0x741   :  { %v1960_v0 = vsel %vm1956_vm14, %v1952_v38, %v1958_v41  ;;  %v13239_v41 = vld [vmem:[%s19408_s7 + $0xa8] sm:$0xff] }
 0x742   :  { %v1959_v32 = vsel %vm1955_vm15, %v1947_v40, %v1957_v42  ;;  %v13238_v40 = vld [vmem:[%s19408_s7 + $0xa0] sm:$0xff] }
 0x743   :  { %v16342_v45 = vpack.c.bf16 %v1960_v0, %v1959_v32  ;;  %v13232_v42 = vld [vmem:[%s19408_s7 + $0x80] sm:$0xff]  ;;  %v13233_v0 = vld [vmem:[%s19408_s7 + $0x88] sm:$0xff]  ;;  %v16372_v48 = vpack.c.bf16 %v13239_v41, %v13238_v40  ;;  %v13267_v41 = vld [vmem:[%s19410_s11 + $0x10] sm:$0xff] }
 0x744   :  { %v16378_v1 = vpack.c.bf16 %v13233_v0, %v13232_v42  ;;  %v13269_v42 = vld [vmem:[%s19411_s10 + $0x20] sm:$0xff]  ;;  %v13270_v0 = vld [vmem:[%s19411_s10 + $0x28] sm:$0xff] }
 0x745   :  { %16343 = vmatpush3.bf16.msra.mxu0 %v16342_v45 }
 0x746   :  { %16344 = vmatprep.subr.bf16.mxu0 %v16941_v16 }
 0x748   :  { %14939 = vmatmul.mubr.msk.f32.vlgmr.msra.gmra.mrb[16].mxu0 %vm1374_vm13, %v1961_v46  ;;  %v13236_v46 = vld [vmem:[%s19410_s11 + $0x20] sm:$0xff] }
 0x749   :  { %16346 = vmatpush3.bf16.msra.mxu0 %v16342_v45  ;;  %14945 = vmatprep.mubr.msk.f32.mxu0 %vm16942_vm8, %v16943_v17 }
 0x74a   :  { %16353 = vmatprep.subr.bf16.mxu0 %v16941_v16 }
 0x74c   :  { %14946 = vmatmul.mubr.msk.f32.vlgmr.msra.gmra.mrb[18].mxu0 %vm1374_vm13, %v13209_v47 }
 0x74d   :  { %14967 = vmatprep.mubr.msk.f32.mxu0 %vm16942_vm8, %v16943_v17  ;;  %16355 = vmatpush3.bf16.msra.mxu0 %v16354_v4  ;;  %v13241_v4 = vld [vmem:[%s19408_s7 + $0xb8] sm:$0xff] }
 0x74e   :  { %16356 = vmatprep.subr.bf16.mxu0 %v16941_v16  ;;  %v16375_v51 = vpack.c.bf16 %v13241_v4, %v13240_v2 }
 0x751   :  { %16358 = vmatpush3.bf16.msra.mxu0 %v16357_v53  ;;  %v13246_v53 = vld [vmem:[%s19408_s7 + $0xc0] sm:$0xff] }
 0x752   :  { %16362 = vmatprep.subr.bf16.mxu0 %v16941_v16 }
 0x800   :  { %v1840_v57 = vpop.f32.mrb[20].mxu1 }
 0x801   :  { %v1844_v58 = vadd.f32 %v1840_v57, %v1684_v31  ;;  %v14914_v59 = vpop.f32.mrb[21].mxu1  ;;  %v16384_v57 = vpack.c.bf16 %v13247_v54, %v13246_v53 }
 0x803   :  { %v1853_v31 = vadd.f32 %v13195_v30, %v1844_v58 }
 0x805   :  { %v1855_v33 = vmul.f32 0.25, %v1853_v31  ;;  %vm1854_vm2 = vcmp.ge.f32.partialorder %v1853_v31, 0.0 }
 0x807   :  { %v1856_v38 = vsel %vm1854_vm2, %v1853_v31, %v1855_v33  ;;  %v3155_v31 = vld [vmem:[%s19411_s10 + $0x8] sm:$0xff] }
 0x81b   :  { %v2031_v60 = vpop.f32.mrb[16].mxu0 }
 0x81c   :  { %v14940_v61 = vpop.f32.mrb[17].mxu0  ;;  %14968 = vmatmul.mubr.msk.f32.vlgmr.msra.gmra.mrb[20].mxu0 %vm69_vm0, %v2031_v60 }
 0x81d   :  { %14985 = vmatprep.mubr.msk.f32.mxu0 %vm16942_vm8, %v16943_v17  ;;  %16364 = vmatpush3.bf16.msra.mxu0 %v16363_v9  ;;  %v13248_v9 = vld [vmem:[%s19408_s7 + $0xd0] sm:$0xff] }
 0x81e   :  { %16365 = vmatprep.subr.bf16.mxu0 %v16941_v16  ;;  %v16387_v11 = vpack.c.bf16 %v13249_v10, %v13248_v9  ;;  %v13283_v9 = vld [vmem:[%s19411_s10 + $0x50] sm:$0xff]  ;;  %v13284_v10 = vld [vmem:[%s19411_s10 + $0x58] sm:$0xff] }
 0x81f   :  { %v2110_v62 = vpop.f32.mrb[18].mxu0 }
 0x820   :  { %v14947_v63 = vpop.f32.mrb[19].mxu0  ;;  %14957 = vmatmul.mubr.msk.f32.vlgmr.msra.gmra.mrb[22].mxu1 %vm69_vm0, %v2110_v62  ;;  %v13244_v62 = vld [vmem:[%s19410_s11 + $0x28] sm:$0xff] }
 0x821   :  { %16361 = vmatpush3.bf16.msra.mxu1 %v16342_v45  ;;  %14974 = vmatprep.mubr.msk.f32.mxu1 %vm16942_vm8, %v16943_v17  ;;  %v13230_v45 = vld [vmem:[%s19410_s11 + $0x18] sm:$0xff]  ;;  %v16390_v63 = vpack.c.bf16 %v13254_v56, %v13253_v55 }
 0x822   :  { %16368 = vmatprep.subr.bf16.mxu1 %v16941_v16  ;;  %16367 = vmatpush3.bf16.msra.mxu0 %v16366_v12 }
 0x823   :  { %15000 = vmatprep.subr.mxu0 %v16943_v17 }
 0x824   :  { %14975 = vmatmul.mubr.msk.f32.vlgmr.msra.gmra.mrb[24].mxu1 %vm1374_vm13, %v13217_v5  ;;  %v13255_v5 = vld [vmem:[%s19408_s7 + $0x70] sm:$0xff] }
 0x825   :  { %14992 = vmatprep.mubr.msk.f32.mxu1 %vm16942_vm8, %v16943_v17  ;;  %16370 = vmatpush3.bf16.msra.mxu1 %v16369_v23  ;;  %v16393_v8 = vpack.c.bf16 %v13256_v7, %v13255_v5 }
 0x826   :  { %14995 = vmatprep.subr.mxu1 %v16943_v17 }
 0x8ef   :  { %v2261_v13 = vpop.f32.mrb[20].mxu0 }
 0x8f0   :  { %v14969_v14 = vpop.f32.mrb[21].mxu0 }
 0x8f3   :  { %v2188_v15 = vpop.f32.mrb[22].mxu1 }
 0x8f4   :  { %v2262_v18 = vadd.f32 %v2261_v13, %v2188_v15  ;;  %v14958_v3 = vpop.f32.mrb[23].mxu1 }
 0x8f7   :  { %v2336_v19 = vpop.f32.mrb[24].mxu1 }
 0x8f8   :  { %v14976_v20 = vpop.f32.mrb[25].mxu1  ;;  %14986 = vmatmul.mubr.msk.f32.vlgmr.msra.gmra.mrb[22].mxu0 %vm69_vm0, %v2336_v19 }
 0x8f9   :  { %15002 = vmatprep.mubr.msk.f32.mxu0 %vm16942_vm8, %v16943_v17  ;;  %v13258_v20 = vld [vmem:[%s19409_s9 + $0x1] ss:$0 sm:$0xff] }
 0x9cb   :  { %v2414_v24 = vpop.f32.mrb[22].mxu0 }
 0x9cc   :  { %v2418_v25 = vadd.f32 %v2414_v24, %v2262_v18  ;;  %v14987_v26 = vpop.f32.mrb[23].mxu0 }
 0x9ce   :  { %v2426_v27 = vadd.f32 %v13224_v6, %v2418_v25  ;;  %v3080_v6 = vld [vmem:[%s19410_s11] sm:$0xff]  ;;  %v13261_v25 = vld [vmem:[%s19410_s11 + $0x8] sm:$0xff] }
 0x9d0   :  { %vm2427_vm1 = vcmp.ge.f32.partialorder %v2426_v27, 0.0  ;;  %v2428_v28 = vmul.f32 0.25, %v2426_v27 }
 0x9d2   :  { %v2429_v29 = vsel %vm2427_vm1, %v2426_v27, %v2428_v28  ;;  %v13263_v27 = vld [vmem:[%s19411_s10 + $0x10] sm:$0xff]  ;;  %v13264_v28 = vld [vmem:[%s19411_s10 + $0x18] sm:$0xff] }
 0x9d3   :  { %14993 = vmatmul.mubr.msk.f32.vlgmr.msra.gmra.mrb[26].mxu1 %vm1374_vm13, %v2429_v29  ;;  %v3154_v29 = vld [vmem:[%s19411_s10] sm:$0xff]  ;;  %v16396_v30 = vpack.c.bf16 %v13264_v28, %v13263_v27 }
 0x9d4   :  { %14997 = vmatprep.mubr.msk.f32.mxu1 %vm16942_vm8, %v16943_v17  ;;  %v16399_v33 = vpack.c.bf16 %v3155_v31, %v3154_v29  ;;  %v13292_v31 = vld [vmem:[%s19412_s12 + $0x1] ss:$0 sm:$0xff] }
 0xaa6   :  { %v2510_v35 = vpop.f32.mrb[26].mxu1 }
 0xaa7   :  { %v2511_v36 = vadd.f32 %v13228_v34, %v2510_v35  ;;  %v14994_v37 = vpop.f32.mrb[27].mxu1 }
 0xaa9   :  { %v2514_v39 = vadd.f32 %v2511_v36, %v1856_v38 }
 0xaab   :  { %vm2515_vm3 = vcmp.ge.f32.partialorder %v2514_v39, 0.0  ;;  %v2516_v32 = vmul.f32 0.25, %v2514_v39 }
 0xaad   :  { %v17726_v47 = vsel %vm2515_vm3, %v2514_v39, %v2516_v32  ;;  %v16402_v32 = vpack.c.bf16 %v13270_v0, %v13269_v42 }
 0xaae   :  { %14996 = vmatpush3.msra.mxu1 %v17726_v47  ;;  %15001 = vmatpush3.msra.mxu0 %v17726_v47 }
 0xaaf   :  { %14998 = vmatmul.mubr.msk.f32.vlgmr.msra.gmra.mrb[28].mxu1 %vm2520_vm4, %v13230_v45  ;;  %15003 = vmatmul.mubr.msk.f32.vlgmr.msra.gmra.mrb[24].mxu0 %vm2520_vm4, %v13236_v46 }
 0xab0   :  { %16371 = vmatprep.subr.bf16.mxu1 %v16941_v16  ;;  %16377 = vmatprep.subr.bf16.mxu0 %v16941_v16 }
 0xab1   :  { %16373 = vmatpush3.bf16.msra.mxu1 %v16372_v48  ;;  %16379 = vmatpush3.bf16.msra.mxu0 %v16378_v1 }
 0xab2   :  { %16374 = vmatprep.subr.bf16.mxu1 %v16941_v16  ;;  %16380 = vmatprep.subr.bf16.mxu0 %v16941_v16 }
 0xab3   :  { %15013 = vmatprep.mubr.msk.f32.mxu1 %vm16942_vm8, %v16943_v17  ;;  %15024 = vmatprep.mubr.msk.f32.mxu0 %vm16942_vm8, %v16943_v17 }
 0xab5   :  { %16376 = vmatpush3.bf16.msra.mxu1 %v16375_v51  ;;  %16382 = vmatpush3.bf16.msra.mxu0 %v16381_v52  ;;  %v13272_v52 = vld [vmem:[%s19412_s12] ss:$0 sm:$0xff] }
 0xab6   :  { %15027 = vmatprep.subr.mxu1 %v16943_v17  ;;  %16383 = vmatprep.subr.bf16.mxu0 %v16941_v16 }
 0xb82   :  { %v2590_v58 = vpop.f32.mrb[28].mxu1  ;;  %v2670_v59 = vpop.f32.mrb[24].mxu0 }
 0xb83   :  { %v15004_v60 = vpop.f32.mrb[25].mxu0  ;;  %15014 = vmatmul.mubr.msk.f32.vlgmr.msra.gmra.mrb[30].mxu1 %vm69_vm0, %v2670_v59  ;;  %15025 = vmatmul.mubr.msk.f32.vlgmr.msra.gmra.mrb[26].mxu0 %vm69_vm0, %v2590_v58  ;;  %v14999_v61 = vpop.f32.mrb[29].mxu1  ;;  %v13252_v58 = vld [vmem:[%s19409_s9 + $0x2] ss:$0 sm:$0xff] }
 0xb84   :  { %15028 = vmatpush3.msra.mxu1 %v17726_v47  ;;  %15029 = vmatprep.mubr.msk.f32.mxu1 %vm16942_vm8, %v16943_v17  ;;  %v13275_v61 = vld [vmem:[%s19409_s9 + $0x3] ss:$0 sm:$0xff] }
 0xb85   :  { %16389 = vmatprep.subr.bf16.mxu1 %v16941_v16  ;;  %16385 = vmatpush3.bf16.msra.mxu0 %v16384_v57 }
 0xb86   :  { %16386 = vmatprep.subr.bf16.mxu0 %v16941_v16  ;;  %15040 = vmatprep.mubr.msk.f32.mxu0 %vm16942_vm8, %v16943_v17 }
 0xb87   :  { %15030 = vmatmul.mubr.msk.f32.vlgmr.msra.gmra.mrb[32].mxu1 %vm2520_vm4, %v13244_v62 }
 0xb88   :  { %16391 = vmatpush3.bf16.msra.mxu1 %v16390_v63  ;;  %15051 = vmatprep.mubr.msk.f32.mxu1 %vm16942_vm8, %v16943_v17 }
 0xb89   :  { %16392 = vmatprep.subr.bf16.mxu1 %v16941_v16  ;;  %16388 = vmatpush3.bf16.msra.mxu0 %v16387_v11  ;;  %v13279_v11 = vld [vmem:[%s19411_s10 + $0x40] sm:$0xff] }
 0xb8a   :  { %15054 = vmatprep.subr.mxu0 %v16943_v17 }
 0xb8c   :  { %16394 = vmatpush3.bf16.msra.mxu1 %v16393_v8 }
 0xb8d   :  { %15059 = vmatprep.subr.mxu1 %v16943_v17 }
 0xb8f   :  { %15052 = vmatmul.mubr.msk.f32.vlgmr.msra.gmra.mrb[34].mxu1 %vm69_vm0, %v17726_v47 }
 0xb90   :  { %15061 = vmatprep.mubr.msk.f32.mxu1 %vm16942_vm8, %v16943_v17 }
 0xc56   :  { %v2748_v12 = vpop.f32.mrb[30].mxu1  ;;  %v2821_v13 = vpop.f32.mrb[26].mxu0 }
 0xc57   :  { %v2822_v14 = vadd.f32 %v2821_v13, %v2748_v12  ;;  %v15015_v15 = vpop.f32.mrb[31].mxu1  ;;  %v15026_v18 = vpop.f32.mrb[27].mxu0  ;;  %v13280_v12 = vld [vmem:[%s19411_s10 + $0x48] sm:$0xff] }
 0xc58   :  { %v13281_v15 = vld [vmem:[%s19410_s11 + $0x58] sm:$0xff] }
 0xc5a   :  { %v2896_v3 = vpop.f32.mrb[32].mxu1 }
 0xc5b   :  { %v15031_v19 = vpop.f32.mrb[33].mxu1  ;;  %15041 = vmatmul.mubr.msk.f32.vlgmr.msra.gmra.mrb[28].mxu0 %vm69_vm0, %v2896_v3  ;;  %v16405_v3 = vpack.c.bf16 %v13284_v10, %v13283_v9  ;;  %v13316_v9 = vld [vmem:[%s19410_s11 + $0x70] sm:$0xff]  ;;  %v13314_v10 = vld [vmem:[%s19412_s12 + $0x5] ss:$0 sm:$0xff] }
 0xc5c   :  { %15056 = vmatprep.mubr.msk.f32.mxu0 %vm16942_vm8, %v16943_v17  ;;  %v16408_v19 = vpack.c.bf16 %v13280_v12, %v13279_v11 }
 0xc62   :  { %v3073_v21 = vpop.f32.mrb[34].mxu1 }
 0xc63   :  { %v3074_v22 = vadd.f32 %v13258_v20, %v3073_v21  ;;  %v15053_v23 = vpop.f32.mrb[35].mxu1  ;;  %v13289_v20 = vld [vmem:[%s19411_s10 + $0x30] sm:$0xff]  ;;  %v13290_v21 = vld [vmem:[%s19411_s10 + $0x38] sm:$0xff] }
 0xc65   :  { %vm3077_vm6 = vcmp.ge.f32.partialorder %v3074_v22, 0.0  ;;  %v3078_v24 = vmul.f32 0.25, %v3074_v22 }
 0xc67   :  { %v3079_v26 = vsel %vm3077_vm6, %v3074_v22, %v3078_v24  ;;  %v16411_v22 = vpack.c.bf16 %v13290_v21, %v13289_v20 }
 0xc68   :  { %15055 = vmatpush3.msra.mxu0 %v3079_v26  ;;  %15060 = vmatpush3.msra.mxu1 %v3079_v26 }
 0xc69   :  { %15057 = vmatmul.mubr.msk.f32.vlgmr.msra.gmra.mrb[30].mxu0 %vm2520_vm4, %v3080_v6  ;;  %15062 = vmatmul.mubr.msk.f32.vlgmr.msra.gmra.mrb[36].mxu1 %vm2520_vm4, %v13261_v25 }
 0xc6a   :  { %16395 = vmatprep.subr.bf16.mxu0 %v16941_v16  ;;  %16398 = vmatprep.subr.bf16.mxu1 %v16941_v16 }
 0xc6b   :  { %15068 = vmatprep.mubr.msk.f32.mxu0 %vm16942_vm8, %v16943_v17  ;;  %15075 = vmatprep.mubr.msk.f32.mxu1 %vm16942_vm8, %v16943_v17 }
 0xc6c   :  { %16397 = vmatpush3.bf16.msra.mxu0 %v16396_v30  ;;  %16400 = vmatpush3.bf16.msra.mxu1 %v16399_v33 }
 0xc6d   :  { %15078 = vmatprep.subr.mxu0 %v16943_v17  ;;  %16401 = vmatprep.subr.bf16.mxu1 %v16941_v16 }
 0xd2e   :  { %v2974_v34 = vpop.f32.mrb[28].mxu0 }
 0xd2f   :  { %v2978_v35 = vadd.f32 %v2974_v34, %v2822_v14  ;;  %v15042_v36 = vpop.f32.mrb[29].mxu0  ;;  %v13277_v14 = vld [vmem:[%s19410_s11 + $0x50] sm:$0xff] }
 0xd31   :  { %v2987_v59 = vadd.f32 %v13252_v58, %v2978_v35 }
 0xd33   :  { %v2989_v60 = vmul.f32 0.25, %v2987_v59  ;;  %vm2988_vm9 = vcmp.ge.f32.partialorder %v2987_v59, 0.0 }
 0xd35   :  { %v2990_v7 = vsel %vm2988_vm9, %v2987_v59, %v2989_v60  ;;  %v13306_v59 = vld [vmem:[%s19412_s12 + $0x4] ss:$0 sm:$0xff] }
 0xd3c   :  { %v3150_v37 = vpop.f32.mrb[30].mxu0  ;;  %v3227_v38 = vpop.f32.mrb[36].mxu1 }
 0xd3d   :  { %v15063_v39 = vpop.f32.mrb[37].mxu1  ;;  %15069 = vmatmul.mubr.msk.f32.vlgmr.msra.gmra.mrb[32].mxu0 %vm1374_vm13, %v3227_v38  ;;  %15076 = vmatmul.mubr.msk.f32.vlgmr.msra.gmra.mrb[38].mxu1 %vm1374_vm13, %v3150_v37  ;;  %v15058_v40 = vpop.f32.mrb[31].mxu0  ;;  %v13294_v37 = vld [vmem:[%s19410_s11 + $0x38] sm:$0xff]  ;;  %v13297_v38 = vld [vmem:[%s19410_s11 + $0x48] sm:$0xff] }
 0xd3e   :  { %15079 = vmatpush3.msra.mxu0 %v3079_v26  ;;  %15080 = vmatprep.mubr.msk.f32.mxu0 %vm16942_vm8, %v16943_v17  ;;  %v13299_v40 = vld [vmem:[%s19410_s11 + $0x40] sm:$0xff] }
 0xd3f   :  { %15087 = vmatprep.mubr.msk.f32.mxu1 %vm16942_vm8, %v16943_v17  ;;  %15090 = vmatprep.subr.mxu0 %v16943_v17 }
 0xd40   :  { %16403 = vmatpush3.bf16.msra.mxu1 %v16402_v32 }
 0xd41   :  { %15081 = vmatmul.mubr.msk.f32.vlgmr.msra.gmra.mrb[34].mxu0 %vm2520_vm4, %v13267_v41  ;;  %15095 = vmatprep.subr.mxu1 %v16943_v17  ;;  %v13296_v41 = vld [vmem:[%s19410_s11 + $0x30] sm:$0xff] }
 0xd42   :  { %15092 = vmatprep.mubr.msk.f32.mxu0 %vm16942_vm8, %v16943_v17  ;;  %15091 = vmatpush3.msra.mxu0 %v13273_v50 }
 0xd43   :  { %15100 = vmatprep.subr.mxu0 %v16943_v17 }
 0xe10   :  { %v3303_v45 = vpop.f32.mrb[32].mxu0  ;;  %v3376_v46 = vpop.f32.mrb[38].mxu1 }
 0xe11   :  { %v3377_v48 = vadd.f32 %v3376_v46, %v3303_v45  ;;  %v15070_v1 = vpop.f32.mrb[33].mxu0  ;;  %v15077_v2 = vpop.f32.mrb[39].mxu1  ;;  %v13304_v46 = vld [vmem:[%s19410_s11 + $0x60] sm:$0xff] }
 0xe12   :  { %v13303_v2 = vld [vmem:[%s19412_s12 + $0x2] ss:$0 sm:$0xff] }
 0xe14   :  { %v3451_v4 = vpop.f32.mrb[34].mxu0 }
 0xe15   :  { %v15082_v49 = vpop.f32.mrb[35].mxu0  ;;  %15088 = vmatmul.mubr.msk.f32.vlgmr.msra.gmra.mrb[40].mxu1 %vm1374_vm13, %v3451_v4 }
 0xe16   :  { %15097 = vmatprep.mubr.msk.f32.mxu1 %vm16942_vm8, %v16943_v17 }
 0xee8   :  { %v3527_v51 = vpop.f32.mrb[40].mxu1 }
 0xee9   :  { %v3531_v53 = vadd.f32 %v3527_v51, %v3377_v48  ;;  %v15089_v54 = vpop.f32.mrb[41].mxu1 }
 0xeea   :  { %v13308_v54 = vld [vmem:[%s19410_s11 + $0x78] sm:$0xff] }
 0xeeb   :  { %v3539_v55 = vadd.f32 %v13272_v52, %v3531_v53 }
 0xeed   :  { %vm3540_vm7 = vcmp.ge.f32.partialorder %v3539_v55, 0.0  ;;  %v3541_v56 = vmul.f32 0.25, %v3539_v55 }
 0xeef   :  { %v3542_v57 = vsel %vm3540_vm7, %v3539_v55, %v3541_v56  ;;  %v13312_v55 = vld [vmem:[%s19410_s11 + $0x68] sm:$0xff]  ;;  %v13288_v56 = vld [vmem:[%s19412_s12 + $0x3] ss:$0 sm:$0xff] }
 0xef0   :  { %15093 = vmatmul.mubr.msk.f32.vlgmr.msra.gmra.mrb[36].mxu0 %vm2520_vm4, %v3542_v57 }
 0xef1   :  { %15102 = vmatprep.mubr.msk.f32.mxu0 %vm16942_vm8, %v16943_v17 }
 0xfc3   :  { %v3622_v62 = vpop.f32.mrb[36].mxu0 }
 0xfc4   :  { %v3623_v63 = vadd.f32 %v13275_v61, %v3622_v62  ;;  %v15094_v5 = vpop.f32.mrb[37].mxu0 }
 0xfc6   :  { %v3626_v8 = vadd.f32 %v3623_v63, %v2990_v7 }
 0xfc8   :  { %vm3627_vm10 = vcmp.ge.f32.partialorder %v3626_v8, 0.0  ;;  %v3628_v13 = vmul.f32 0.25, %v3626_v8 }
 0xfca   :  { %v17891_v18 = vsel %vm3627_vm10, %v3626_v8, %v3628_v13 }
 0xfcb   :  { %15096 = vmatpush3.msra.mxu1 %v17891_v18  ;;  %15101 = vmatpush3.msra.mxu0 %v17891_v18 }
 0xfcc   :  { %15098 = vmatmul.mubr.msk.f32.vlgmr.msra.gmra.mrb[42].mxu1 %vm2520_vm4, %v13277_v14  ;;  %15103 = vmatmul.mubr.msk.f32.vlgmr.msra.gmra.mrb[38].mxu0 %vm2520_vm4, %v13281_v15 }
 0xfcd   :  { %16404 = vmatprep.subr.bf16.mxu1 %v16941_v16  ;;  %16407 = vmatprep.subr.bf16.mxu0 %v16941_v16 }
 0xfce   :  { %16406 = vmatpush3.bf16.msra.mxu1 %v16405_v3  ;;  %16409 = vmatpush3.bf16.msra.mxu0 %v16408_v19  ;;  %v13320_v3 = vld [vmem:[%s19410_s11 + $0x80] sm:$0xff] }
 0xfcf   :  { %15109 = vmatprep.mubr.msk.f32.mxu1 %vm16942_vm8, %v16943_v17  ;;  %15116 = vmatprep.mubr.msk.f32.mxu0 %vm16942_vm8, %v16943_v17  ;;  %v13318_v19 = vld [vmem:[%s19412_s12 + $0x6] ss:$0 sm:$0xff] }
 0xfd0   :  { %16410 = vmatprep.subr.bf16.mxu1 %v16941_v16  ;;  %15126 = vmatprep.subr.mxu0 %v16943_v17 }
0x109f   :  { %v3701_v23 = vpop.f32.mrb[42].mxu1  ;;  %v3779_v24 = vpop.f32.mrb[38].mxu0 }
0x10a0   :  { %v15104_v6 = vpop.f32.mrb[39].mxu0  ;;  %15110 = vmatmul.mubr.msk.f32.vlgmr.msra.gmra.mrb[44].mxu1 %vm1374_vm13, %v3779_v24  ;;  %15117 = vmatmul.mubr.msk.f32.vlgmr.msra.gmra.mrb[40].mxu0 %vm1374_vm13, %v3701_v23  ;;  %v15099_v25 = vpop.f32.mrb[43].mxu1 }
0x10a1   :  { %16412 = vmatpush3.bf16.msra.mxu1 %v16411_v22  ;;  %15123 = vmatprep.mubr.msk.f32.mxu1 %vm16942_vm8, %v16943_v17  ;;  %v13324_v6 = vld [vmem:[%s19410_s11 + $0x98] sm:$0xff]  ;;  %v13310_v25 = vld [vmem:[%s19412_s12 + $0x7] ss:$0 sm:$0xff] }
0x10a2   :  { %15131 = vmatprep.subr.mxu1 %v16943_v17  ;;  %15128 = vmatprep.mubr.msk.f32.mxu0 %vm16942_vm8, %v16943_v17 }
0x10a4   :  { %15124 = vmatmul.mubr.msk.f32.vlgmr.msra.gmra.mrb[46].mxu1 %vm1374_vm13, %v17891_v18 }
0x10a5   :  { %15133 = vmatprep.mubr.msk.f32.mxu1 %vm16942_vm8, %v16943_v17 }
0x1173   :  { %v3855_v26 = vpop.f32.mrb[44].mxu1  ;;  %v3928_v27 = vpop.f32.mrb[40].mxu0 }
0x1174   :  { %v3929_v28 = vadd.f32 %v3928_v27, %v3855_v26  ;;  %v15111_v29 = vpop.f32.mrb[45].mxu1  ;;  %v15118_v30 = vpop.f32.mrb[41].mxu0  ;;  %v13322_v26 = vld [vmem:[%s19412_s12 + $0x8] ss:$0 sm:$0xff] }
0x1175   :  { %v16854_v27 = vadd.f32 %v13322_v26, %v13310_v25  ;;  %v13361_v25 = vld [vmem:[%s19407_s8 + $0x40] sm:$0xff] }
0x1176   :  { %v3940_v57 = vadd.f32 %v13288_v56, %v3929_v28 }
0x1177   :  { %v4024_v33 = vpop.f32.mrb[46].mxu1 }
0x1178   :  { %v4025_v34 = vadd.f32 %v13292_v31, %v4024_v33  ;;  %v15125_v35 = vpop.f32.mrb[47].mxu1  ;;  %v3942_v58 = vmul.f32 0.25, %v3940_v57  ;;  %vm3941_vm14 = vcmp.ge.f32.partialorder %v3940_v57, 0.0  ;;  %v13328_v33 = vld [vmem:[%s19410_s11 + $0x88] sm:$0xff] }
0x1179   :  { %v13332_v35 = vld [vmem:[%s19410_s11 + $0x90] sm:$0xff] }
0x117a   :  { %vm4028_vm11 = vcmp.ge.f32.partialorder %v4025_v34, 0.0  ;;  %v4029_v36 = vmul.f32 0.25, %v4025_v34  ;;  %v3943_v63 = vsel %vm3941_vm14, %v3940_v57, %v3942_v58  ;;  %v13348_v57 = vld [vmem:[%s19410_s11 + $0xb0] sm:$0xff]  ;;  %v13346_v58 = vld [vmem:[%s19412_s12 + $0xd] ss:$0 sm:$0xff] }
0x117c   :  { %v4030_v39 = vsel %vm4028_vm11, %v4025_v34, %v4029_v36  ;;  %v13330_v36 = vld [vmem:[%s19412_s12 + $0x9] ss:$0 sm:$0xff] }
0x117d   :  { %15127 = vmatpush3.msra.mxu0 %v4030_v39  ;;  %15132 = vmatpush3.msra.mxu1 %v4030_v39 }
0x117e   :  { %15129 = vmatmul.mubr.msk.f32.vlgmr.msra.gmra.mrb[42].mxu0 %vm2520_vm4, %v13294_v37  ;;  %15134 = vmatmul.mubr.msk.f32.vlgmr.msra.gmra.mrb[48].mxu1 %vm2520_vm4, %v13297_v38 }
0x117f   :  { %15136 = vmatprep.subr.mxu0 %v16943_v17  ;;  %15141 = vmatprep.subr.mxu1 %v16943_v17 }
0x1180   :  { %15138 = vmatprep.mubr.msk.f32.mxu0 %vm16942_vm8, %v16943_v17  ;;  %15143 = vmatprep.mubr.msk.f32.mxu1 %vm16942_vm8, %v16943_v17 }
0x1181   :  { %15137 = vmatpush3.msra.mxu0 %v13299_v40  ;;  %15142 = vmatpush3.msra.mxu1 %v13296_v41 }
0x1182   :  { %15146 = vmatprep.subr.mxu0 %v16943_v17  ;;  %15151 = vmatprep.subr.mxu1 %v16943_v17 }
0x1251   :  { %v4102_v42 = vpop.f32.mrb[42].mxu0  ;;  %v4179_v0 = vpop.f32.mrb[48].mxu1 }
0x1252   :  { %v15130_v32 = vpop.f32.mrb[43].mxu0  ;;  %v15135_v45 = vpop.f32.mrb[49].mxu1  ;;  %15139 = vmatmul.mubr.msk.f32.vlgmr.msra.gmra.mrb[44].mxu0 %vm2520_vm4, %v4179_v0  ;;  %15144 = vmatmul.mubr.msk.f32.vlgmr.msra.gmra.mrb[50].mxu1 %vm2520_vm4, %v4102_v42  ;;  %v13336_v42 = vld [vmem:[%s19410_s11 + $0xa0] sm:$0xff]  ;;  %v13334_v0 = vld [vmem:[%s19412_s12 + $0xa] ss:$0 sm:$0xff] }
0x1253   :  { %15148 = vmatprep.mubr.msk.f32.mxu0 %vm16942_vm8, %v16943_v17  ;;  %15153 = vmatprep.mubr.msk.f32.mxu1 %vm16942_vm8, %v16943_v17 }
0x1254   :  { %15147 = vmatpush3.msra.mxu0 %v13304_v46  ;;  %15152 = vmatpush3.msra.mxu1 %v13308_v54 }
0x1255   :  { %15156 = vmatprep.subr.mxu0 %v16943_v17  ;;  %15161 = vmatprep.subr.mxu1 %v16943_v17 }
0x1325   :  { %v4254_v48 = vpop.f32.mrb[44].mxu0  ;;  %v4327_v1 = vpop.f32.mrb[50].mxu1 }
0x1326   :  { %v4328_v4 = vadd.f32 %v4327_v1, %v4254_v48  ;;  %v15140_v49 = vpop.f32.mrb[45].mxu0  ;;  %v15145_v50 = vpop.f32.mrb[51].mxu1 }
0x1327   :  { %v13326_v49 = vld [vmem:[%s19412_s12 + $0xb] ss:$0 sm:$0xff]  ;;  %v13338_v50 = vld [vmem:[%s19412_s12 + $0xc] ss:$0 sm:$0xff] }
0x1328   :  { %v4339_v51 = vadd.f32 %v13303_v2, %v4328_v4  ;;  %v13340_v2 = vld [vmem:[%s19410_s11 + $0xb8] sm:$0xff]  ;;  %v13344_v4 = vld [vmem:[%s19410_s11 + $0xa8] sm:$0xff] }
0x132a   :  { %vm4340_vm12 = vcmp.ge.f32.partialorder %v4339_v51, 0.0  ;;  %v4341_v52 = vmul.f32 0.25, %v4339_v51 }
0x132c   :  { %v4342_v53 = vsel %vm4340_vm12, %v4339_v51, %v4341_v52  ;;  %v16856_v51 = vadd.f32 %v13338_v50, %v13326_v49 }
0x132d   :  { %15149 = vmatmul.mubr.msk.f32.vlgmr.msra.gmra.mrb[46].mxu0 %vm2520_vm4, %v4342_v53 }
0x132e   :  { %15158 = vmatprep.mubr.msk.f32.mxu0 %vm16942_vm8, %v16943_v17  ;;  %15157 = vmatpush3.msra.mxu0 %v13312_v55 }
0x132f   :  { %15171 = vmatprep.subr.mxu0 %v16943_v17 }
0x1400   :  { %v4422_v60 = vpop.f32.mrb[46].mxu0 }
0x1401   :  { %v4423_v61 = vadd.f32 %v13306_v59, %v4422_v60  ;;  %v15150_v62 = vpop.f32.mrb[47].mxu0 }
0x1403   :  { %v4426_v5 = vadd.f32 %v4423_v61, %v3943_v63 }
0x1405   :  { %vm4427_vm15 = vcmp.ge.f32.partialorder %v4426_v5, 0.0  ;;  %v4428_v7 = vmul.f32 0.25, %v4426_v5 }
0x1407   :  { %v4429_v8 = vsel %vm4427_vm15, %v4426_v5, %v4428_v7  ;;  %v13352_v5 = vld [vmem:[%s19410_s11 + $0xc0] sm:$0xff]  ;;  %v13350_v7 = vld [vmem:[%s19412_s12 + $0xe] ss:$0 sm:$0xff] }
0x1408   :  { %15154 = vmatmul.mubr.msk.f32.vlgmr.msra.gmra.mrb[52].mxu1 %vm2520_vm4, %v4429_v8  ;;  %15159 = vmatmul.mubr.msk.f32.vlgmr.msra.gmra.mrb[48].mxu0 %vm2520_vm4, %v4429_v8 }
0x1409   :  { %15163 = vmatprep.mubr.msk.f32.mxu1 %vm16942_vm8, %v16943_v17  ;;  %15173 = vmatprep.mubr.msk.f32.mxu0 %vm16942_vm8, %v16943_v17 }
0x140a   :  { %15162 = vmatpush3.msra.mxu1 %v13316_v9  ;;  %15172 = vmatpush3.msra.mxu0 %v13324_v6  ;;  %v13358_v6 = vld [vmem:[%s19407_s8 + $0x38] sm:$0xff] }
0x140b   :  { %15166 = vmatprep.subr.mxu1 %v16943_v17  ;;  %15176 = vmatprep.subr.mxu0 %v16943_v17 }
0x14db   :  { %v4589_v11 = vpop.f32.mrb[48].mxu0 }
0x14dc   :  { %v4590_v12 = vadd.f32 %v13314_v10, %v4589_v11  ;;  %v15160_v13 = vpop.f32.mrb[49].mxu0 }
0x14dd   :  { %v13342_v13 = vld [vmem:[%s19412_s12 + $0xf] ss:$0 sm:$0xff] }
0x14de   :  { %vm4593_vm1 = vcmp.ge.f32.partialorder %v4590_v12, 0.0  ;;  %v4594_v14 = vmul.f32 0.25, %v4590_v12 }
0x14e0   :  { %v4595_v15 = vsel %vm4593_vm1, %v4590_v12, %v4594_v14  ;;  %v13354_v14 = vld [vmem:[%s19412_s12 + $0x10] ss:$0 sm:$0xff] }
0x14e1   :  { %15164 = vmatmul.mubr.msk.f32.vlgmr.msra.gmra.mrb[54].mxu1 %vm2520_vm4, %v4595_v15  ;;  %v16858_v15 = vadd.f32 %v13354_v14, %v13342_v13 }
0x14e2   :  { %15168 = vmatprep.mubr.msk.f32.mxu1 %vm16942_vm8, %v16943_v17  ;;  %15167 = vmatpush3.msra.mxu1 %v13320_v3 }
0x14e3   :  { %15181 = vmatprep.subr.mxu1 %v16943_v17 }
0x15b4   :  { %v4675_v20 = vpop.f32.mrb[54].mxu1 }
0x15b5   :  { %v4676_v21 = vadd.f32 %v13318_v19, %v4675_v20  ;;  %v15165_v22 = vpop.f32.mrb[55].mxu1 }
0x15b6   :  { %v13356_v22 = vld [vmem:[%s19410_s11 + $0xf0] sm:$0xff] }
0x15b7   :  { %vm4679_vm2 = vcmp.ge.f32.partialorder %v4676_v21, 0.0  ;;  %v4680_v23 = vmul.f32 0.25, %v4676_v21 }
0x15b9   :  { %v4681_v24 = vsel %vm4679_vm2, %v4676_v21, %v4680_v23 }
0x15ba   :  { %15169 = vmatmul.mubr.msk.f32.vlgmr.msra.gmra.mrb[52].mxu1 %vm2520_vm4, %v4681_v24  ;;  %v13359_v24 = vld [vmem:[%s19410_s11 + $0xf8] sm:$0xff] }
0x15bb   :  { %15183 = vmatprep.mubr.msk.f32.mxu1 %vm16942_vm8, %v16943_v17  ;;  %15182 = vmatpush3.msra.mxu1 %v13332_v35 }
0x15bc   :  { %15191 = vmatprep.subr.mxu1 %v16943_v17 }
0x168d   :  { %v4761_v28 = vpop.f32.mrb[52].mxu1 }
0x168e   :  { %v16855_v29 = vadd.f32 %v16854_v27, %v4761_v28  ;;  %v15170_v30 = vpop.f32.mrb[53].mxu1  ;;  %v13366_v28 = vld [vmem:[%s19410_s11 + $0xc8] sm:$0xff] }
0x1690   :  { %vm4766_vm3 = vcmp.ge.f32.partialorder %v16855_v29, 0.0  ;;  %v4767_v31 = vmul.f32 0.25, %v16855_v29 }
0x1692   :  { %v4768_v34 = vsel %vm4766_vm3, %v16855_v29, %v4767_v31 }
0x1693   :  { %15174 = vmatmul.mubr.msk.f32.vlgmr.msra.gmra.mrb[50].mxu0 %vm2520_vm4, %v4768_v34 }
0x1694   :  { %15177 = vmatpush3.msra.mxu0 %v13328_v33  ;;  %15178 = vmatprep.mubr.msk.f32.mxu0 %vm16942_vm8, %v16943_v17 }
0x1695   :  { %15186 = vmatprep.subr.mxu0 %v16943_v17 }
0x1697   :  { %15179 = vmatmul.mubr.msk.f32.vlgmr.msra.gmra.mrb[52].mxu0 %vm2520_vm4, %v4768_v34 }
0x1698   :  { %15188 = vmatprep.mubr.msk.f32.mxu0 %vm16942_vm8, %v16943_v17  ;;  %15187 = vmatpush3.msra.mxu0 %v13336_v42  ;;  %v13370_v42 = vld [vmem:[%s19410_s11 + $0xd8] sm:$0xff] }
0x1699   :  { %15196 = vmatprep.subr.mxu0 %v16943_v17 }
0x176a   :  { %v4928_v37 = vpop.f32.mrb[52].mxu0 }
0x176b   :  { %v4929_v38 = vadd.f32 %v13330_v36, %v4928_v37  ;;  %v15180_v39 = vpop.f32.mrb[53].mxu0  ;;  %v13368_v37 = vld [vmem:[%s19412_s12 + $0x11] ss:$0 sm:$0xff] }
0x176d   :  { %vm4932_vm6 = vcmp.ge.f32.partialorder %v4929_v38, 0.0  ;;  %v4933_v40 = vmul.f32 0.25, %v4929_v38 }
0x176f   :  { %v4934_v41 = vsel %vm4932_vm6, %v4929_v38, %v4933_v40 }
0x1770   :  { %15184 = vmatmul.mubr.msk.f32.vlgmr.msra.gmra.mrb[56].mxu1 %vm2520_vm4, %v4934_v41 }
0x1771   :  { %15193 = vmatprep.mubr.msk.f32.mxu1 %vm16942_vm8, %v16943_v17  ;;  %15192 = vmatpush3.msra.mxu1 %v13340_v2 }
0x1772   :  { %15201 = vmatprep.subr.mxu1 %v16943_v17 }
0x1843   :  { %v5014_v32 = vpop.f32.mrb[56].mxu1 }
0x1844   :  { %v5015_v45 = vadd.f32 %v13334_v0, %v5014_v32  ;;  %v15185_v46 = vpop.f32.mrb[57].mxu1  ;;  %v13373_v0 = vld [vmem:[%s19410_s11 + $0xe8] sm:$0xff] }
0x1845   :  { %v13372_v46 = vld [vmem:[%s19410_s11 + $0xd0] sm:$0xff] }
0x1846   :  { %vm5018_vm7 = vcmp.ge.f32.partialorder %v5015_v45, 0.0  ;;  %v5019_v48 = vmul.f32 0.25, %v5015_v45 }
0x1848   :  { %v5020_v1 = vsel %vm5018_vm7, %v5015_v45, %v5019_v48  ;;  %v13375_v45 = vld [vmem:[%s19410_s11 + $0xe0] sm:$0xff]  ;;  %v13384_v48 = vld [vmem:[%s19413_s18 + $0x50] sm:$0xff] }
0x1849   :  { %15189 = vmatmul.mubr.msk.f32.vlgmr.msra.gmra.mrb[50].mxu0 %vm2520_vm4, %v5020_v1  ;;  %v13385_v1 = vld [vmem:[%s19413_s18 + $0x58] sm:$0xff] }
0x184a   :  { %15198 = vmatprep.mubr.msk.f32.mxu0 %vm16942_vm8, %v16943_v17  ;;  %15197 = vmatpush3.msra.mxu0 %v13344_v4  ;;  %v16414_v2 = vpack.c.bf16 %v13385_v1, %v13384_v48 }
0x184b   :  { %15211 = vmatprep.subr.mxu0 %v16943_v17 }
0x191c   :  { %v5100_v52 = vpop.f32.mrb[50].mxu0 }
0x191d   :  { %v16857_v53 = vadd.f32 %v16856_v51, %v5100_v52  ;;  %v15190_v54 = vpop.f32.mrb[51].mxu0  ;;  %v13380_v52 = vld [vmem:[%s19407_s8 + $0x48] sm:$0xff] }
0x191f   :  { %vm5105_vm9 = vcmp.ge.f32.partialorder %v16857_v53, 0.0  ;;  %v5106_v55 = vmul.f32 0.25, %v16857_v53 }
0x1921   :  { %v5107_v56 = vsel %vm5105_vm9, %v16857_v53, %v5106_v55  ;;  %v13379_v55 = vld [vmem:[%s19412_s12 + $0x12] ss:$0 sm:$0xff] }
0x1922   :  { %15194 = vmatmul.mubr.msk.f32.vlgmr.msra.gmra.mrb[58].mxu1 %vm2520_vm4, %v5107_v56  ;;  %15199 = vmatmul.mubr.msk.f32.vlgmr.msra.gmra.mrb[54].mxu0 %vm2520_vm4, %v5107_v56 }
0x1923   :  { %15203 = vmatprep.mubr.msk.f32.mxu1 %vm16942_vm8, %v16943_v17  ;;  %15213 = vmatprep.mubr.msk.f32.mxu0 %vm16942_vm8, %v16943_v17 }
0x1924   :  { %15202 = vmatpush3.msra.mxu1 %v13348_v57 }
0x1925   :  { %15206 = vmatprep.subr.mxu1 %v16943_v17 }
0x19f5   :  { %v5267_v59 = vpop.f32.mrb[54].mxu0 }
0x19f6   :  { %v5268_v60 = vadd.f32 %v13346_v58, %v5267_v59  ;;  %v15200_v61 = vpop.f32.mrb[55].mxu0  ;;  %v13389_v59 = vld [vmem:[%s19411_s10 + $0xd0] sm:$0xff] }
0x19f8   :  { %vm5271_vm10 = vcmp.ge.f32.partialorder %v5268_v60, 0.0  ;;  %v5272_v62 = vmul.f32 0.25, %v5268_v60 }
0x19fa   :  { %v5273_v63 = vsel %vm5271_vm10, %v5268_v60, %v5272_v62  ;;  %v13390_v60 = vld [vmem:[%s19411_s10 + $0xd8] sm:$0xff] }
0x19fb   :  { %15204 = vmatmul.mubr.msk.f32.vlgmr.msra.gmra.mrb[60].mxu1 %vm2520_vm4, %v5273_v63  ;;  %v16417_v63 = vpack.c.bf16 %v13390_v60, %v13389_v59  ;;  %v13416_v59 = vld [vmem:[%s19429_s26 + $0x80] sm:$0xff]  ;;  %v13417_v60 = vld [vmem:[%s19429_s26 + $0x88] sm:$0xff] }
0x19fc   :  { %15208 = vmatprep.mubr.msk.f32.mxu1 %vm16942_vm8, %v16943_v17  ;;  %15207 = vmatpush3.msra.mxu1 %v13352_v5 }
0x19fd   :  { %15221 = vmatprep.subr.mxu1 %v16943_v17 }
0x1ace   :  { %v5353_v8 = vpop.f32.mrb[60].mxu1 }
0x1acf   :  { %v5354_v9 = vadd.f32 %v13350_v7, %v5353_v8  ;;  %v15205_v10 = vpop.f32.mrb[61].mxu1  ;;  %v13397_v7 = vld [vmem:[%s19410_s11 + $0x150] sm:$0xff]  ;;  %v13365_v8 = vld [vmem:[%s19409_s9 + $0x4] ss:$0 sm:$0xff] }
0x1ad1   :  { %vm5357_vm11 = vcmp.ge.f32.partialorder %v5354_v9, 0.0  ;;  %v5358_v11 = vmul.f32 0.25, %v5354_v9 }
0x1ad3   :  { %v5359_v12 = vsel %vm5357_vm11, %v5354_v9, %v5358_v11 }
0x1ad4   :  { %15209 = vmatmul.mubr.msk.f32.vlgmr.msra.gmra.mrb[58].mxu1 %vm2520_vm4, %v5359_v12 }
0x1ad5   :  { %15223 = vmatprep.mubr.msk.f32.mxu1 %vm16942_vm8, %v16943_v17  ;;  %15222 = vmatpush3.msra.mxu1 %v13361_v25  ;;  %v13396_v25 = vld [vmem:[%s19410_s11 + $0x140] sm:$0xff] }
0x1ad6   :  { %15231 = vmatprep.subr.mxu1 %v16943_v17 }
0x1ba7   :  { %v5439_v3 = vpop.f32.mrb[58].mxu1 }
0x1ba8   :  { %v16859_v19 = vadd.f32 %v16858_v15, %v5439_v3  ;;  %v15210_v20 = vpop.f32.mrb[59].mxu1  ;;  %v13392_v15 = vld [vmem:[%s19412_s12 + $0x14] ss:$0 sm:$0xff] }
0x1baa   :  { %vm5444_vm12 = vcmp.ge.f32.partialorder %v16859_v19, 0.0  ;;  %v5445_v21 = vmul.f32 0.25, %v16859_v19 }
0x1bac   :  { %v5446_v23 = vsel %vm5444_vm12, %v16859_v19, %v5445_v21 }
0x1bad   :  { %15212 = vmatpush3.msra.mxu0 %v5446_v23 }
0x1bae   :  { %15214 = vmatmul.mubr.msk.f32.vlgmr.msra.gmra.mrb[56].mxu0 %vm2520_vm4, %v13356_v22  ;;  %15216 = vmatprep.subr.mxu0 %v16943_v17 }
0x1baf   :  { %15217 = vmatpush3.msra.mxu0 %v5446_v23  ;;  %15218 = vmatprep.mubr.msk.f32.mxu0 %vm16942_vm8, %v16943_v17 }
0x1bb0   :  { %15226 = vmatprep.subr.mxu0 %v16943_v17 }
0x1bb2   :  { %15219 = vmatmul.mubr.msk.f32.vlgmr.msra.gmra.mrb[58].mxu0 %vm2520_vm4, %v13359_v24 }
0x1bb3   :  { %15228 = vmatprep.mubr.msk.f32.mxu0 %vm16942_vm8, %v16943_v17  ;;  %15227 = vmatpush3.msra.mxu0 %v13358_v6  ;;  %v13400_v6 = vld [vmem:[%s19410_s11 + $0x160] sm:$0xff] }
0x1bb4   :  { %15236 = vmatprep.subr.mxu0 %v16943_v17 }
0x1c81   :  { %v5518_v26 = vpop.f32.mrb[56].mxu0 }
0x1c82   :  { %v15215_v27 = vpop.f32.mrb[57].mxu0  ;;  %15229 = vmatmul.mubr.msk.f32.vlgmr.msra.gmra.mrb[60].mxu0 %vm2520_vm4, %v5518_v26 }
0x1c83   :  { %15238 = vmatprep.mubr.msk.f32.mxu0 %vm16942_vm8, %v16943_v17  ;;  %v13402_v27 = vld [vmem:[%s19410_s11 + $0x158] sm:$0xff] }
0x1c85   :  { %v5595_v29 = vpop.f32.mrb[58].mxu0 }
0x1c86   :  { %v15220_v30 = vpop.f32.mrb[59].mxu0  ;;  %15224 = vmatmul.mubr.msk.f32.vlgmr.msra.gmra.mrb[62].mxu1 %vm2520_vm4, %v5595_v29 }
0x1c87   :  { %15232 = vmatpush3.msra.mxu1 %v13366_v28  ;;  %15233 = vmatprep.mubr.msk.f32.mxu1 %vm16942_vm8, %v16943_v17 }
0x1c88   :  { %15241 = vmatprep.subr.mxu1 %v16943_v17 }
0x1c8a   :  { %15234 = vmatmul.mubr.msk.f32.vlgmr.msra.gmra.mrb[64].mxu1 %vm2520_vm4, %v5446_v23  ;;  %v13394_v23 = vld [vmem:[%s19410_s11 + $0x148] sm:$0xff] }
0x1c8b   :  { %15243 = vmatprep.mubr.msk.f32.mxu1 %vm16942_vm8, %v16943_v17 }
0x1d55   :  { %v5743_v31 = vpop.f32.mrb[60].mxu0 }
0x1d56   :  { %v15230_v33 = vpop.f32.mrb[61].mxu0 }
0x1d59   :  { %v5670_v34 = vpop.f32.mrb[62].mxu1 }
0x1d5a   :  { %v18124_v35 = vadd.f32 %v5743_v31, %v5670_v34  ;;  %v15225_v36 = vpop.f32.mrb[63].mxu1  ;;  %v13406_v34 = vld [vmem:[%s19407_s8 + $0x68] sm:$0xff] }
0x1d5c   :  { %v5755_v9 = vadd.f32 %v13365_v8, %v18124_v35 }
0x1d5d   :  { %v5838_v38 = vpop.f32.mrb[64].mxu1 }
0x1d5e   :  { %v5839_v39 = vadd.f32 %v13368_v37, %v5838_v38  ;;  %v15235_v40 = vpop.f32.mrb[65].mxu1  ;;  %v5757_v10 = vmul.f32 0.25, %v5755_v9  ;;  %vm5756_vm1 = vcmp.ge.f32.partialorder %v5755_v9, 0.0 }
0x1d60   :  { %vm5842_vm14 = vcmp.ge.f32.partialorder %v5839_v39, 0.0  ;;  %v5843_v41 = vmul.f32 0.25, %v5839_v39  ;;  %v5758_v14 = vsel %vm5756_vm1, %v5755_v9, %v5757_v10  ;;  %v13420_v10 = vld [vmem:[%s19410_s11 + $0x128] sm:$0xff] }
0x1d62   :  { %v5844_v32 = vsel %vm5842_vm14, %v5839_v39, %v5843_v41  ;;  %v13405_v39 = vld [vmem:[%s19412_s12 + $0x15] ss:$0 sm:$0xff] }
0x1d63   :  { %15237 = vmatpush3.msra.mxu0 %v5844_v32  ;;  %15242 = vmatpush3.msra.mxu1 %v5844_v32 }
0x1d64   :  { %15239 = vmatmul.mubr.msk.f32.vlgmr.msra.gmra.mrb[62].mxu0 %vm2520_vm4, %v13370_v42  ;;  %15244 = vmatmul.mubr.msk.f32.vlgmr.msra.gmra.mrb[66].mxu1 %vm2520_vm4, %v13373_v0 }
0x1d65   :  { %15246 = vmatprep.subr.mxu0 %v16943_v17  ;;  %15251 = vmatprep.subr.mxu1 %v16943_v17 }
0x1d66   :  { %15248 = vmatprep.mubr.msk.f32.mxu0 %vm16942_vm8, %v16943_v17  ;;  %15253 = vmatprep.mubr.msk.f32.mxu1 %vm16942_vm8, %v16943_v17 }
0x1d67   :  { %15247 = vmatpush3.msra.mxu0 %v13375_v45  ;;  %15252 = vmatpush3.msra.mxu1 %v13372_v46  ;;  %v13387_v45 = vld [vmem:[%s19409_s9 + $0xa] ss:$0 sm:$0xff]  ;;  %v13408_v46 = vld [vmem:[%s19409_s9 + $0xb] ss:$0 sm:$0xff] }
0x1d68   :  { %16413 = vmatprep.subr.bf16.mxu1 %v16941_v16  ;;  %15256 = vmatprep.subr.mxu0 %v16943_v17  ;;  %v16860_v48 = vadd.f32 %v13408_v46, %v13387_v45 }
0x1e37   :  { %v5916_v4 = vpop.f32.mrb[62].mxu0  ;;  %v5993_v49 = vpop.f32.mrb[66].mxu1 }
0x1e38   :  { %v15240_v50 = vpop.f32.mrb[63].mxu0  ;;  %v15245_v51 = vpop.f32.mrb[67].mxu1  ;;  %15249 = vmatmul.mubr.msk.f32.vlgmr.msra.gmra.mrb[64].mxu0 %vm2520_vm4, %v5993_v49  ;;  %15254 = vmatmul.mubr.msk.f32.vlgmr.msra.gmra.mrb[68].mxu1 %vm2520_vm4, %v5916_v4 }
0x1e39   :  { %16415 = vmatpush3.bf16.msra.mxu1 %v16414_v2  ;;  %15265 = vmatprep.mubr.msk.f32.mxu1 %vm16942_vm8, %v16943_v17 }
0x1e3a   :  { %15258 = vmatprep.mubr.msk.f32.mxu0 %vm16942_vm8, %v16943_v17  ;;  %15275 = vmatprep.subr.mxu1 %v16943_v17 }
0x1e3b   :  { %15257 = vmatpush3.msra.mxu0 %v13380_v52 }
0x1e3c   :  { %15266 = vmatmul.mubr.msk.f32.vlgmr.msra.gmra.mrb[70].mxu1 %vm1374_vm13, %v17891_v18  ;;  %16416 = vmatprep.subr.bf16.mxu0 %v16941_v16 }
0x1e3d   :  { %15277 = vmatprep.mubr.msk.f32.mxu1 %vm16942_vm8, %v16943_v17 }
0x1f0b   :  { %v6068_v53 = vpop.f32.mrb[64].mxu0  ;;  %v6141_v54 = vpop.f32.mrb[68].mxu1 }
0x1f0c   :  { %v6142_v56 = vadd.f32 %v6141_v54, %v6068_v53  ;;  %v15250_v57 = vpop.f32.mrb[65].mxu0  ;;  %v15255_v58 = vpop.f32.mrb[69].mxu1  ;;  %v13410_v54 = vld [vmem:[%s19410_s11 + $0x118] sm:$0xff] }
0x1f0d   :  { %v13414_v57 = vld [vmem:[%s19410_s11 + $0x120] sm:$0xff] }
0x1f0e   :  { %v6153_v61 = vadd.f32 %v13379_v55, %v6142_v56  ;;  %v13412_v55 = vld [vmem:[%s19429_s26 + $0x70] sm:$0xff]  ;;  %v13413_v56 = vld [vmem:[%s19429_s26 + $0x78] sm:$0xff] }
0x1f0f   :  { %v16423_v58 = vpack.c.bf16 %v13413_v56, %v13412_v55 }
0x1f10   :  { %vm6154_vm15 = vcmp.ge.f32.partialorder %v6153_v61, 0.0  ;;  %v6155_v62 = vmul.f32 0.25, %v6153_v61 }
0x1f12   :  { %v6156_v5 = vsel %vm6154_vm15, %v6153_v61, %v6155_v62  ;;  %v16420_v61 = vpack.c.bf16 %v13417_v60, %v13416_v59  ;;  %v13458_v60 = vld [vmem:[%s19408_s7 + $0x1c0] sm:$0xff] }
0x1f13   :  { %15259 = vmatmul.mubr.msk.f32.vlgmr.msra.gmra.mrb[66].mxu0 %vm2520_vm4, %v6156_v5  ;;  %v13427_v5 = vld [vmem:[%s19411_s10 + $0x60] sm:$0xff] }
0x1f14   :  { %16418 = vmatpush3.bf16.msra.mxu0 %v16417_v63  ;;  %15272 = vmatprep.mubr.msk.f32.mxu0 %vm16942_vm8, %v16943_v17 }
0x1f15   :  { %15280 = vmatprep.subr.mxu0 %v16943_v17 }
0x1f17   :  { %15273 = vmatmul.mubr.msk.f32.vlgmr.msra.gmra.mrb[68].mxu0 %vm1374_vm13, %v17891_v18  ;;  %v13382_v18 = vld [vmem:[%s19409_s9 + $0x5] ss:$0 sm:$0xff] }
0x1f18   :  { %15282 = vmatprep.mubr.msk.f32.mxu0 %vm16942_vm8, %v16943_v17  ;;  %15281 = vmatpush3.msra.mxu0 %v13397_v7  ;;  %v13428_v7 = vld [vmem:[%s19411_s10 + $0x68] sm:$0xff] }
0x1f19   :  { %15290 = vmatprep.subr.mxu0 %v16943_v17 }
0x1fe6   :  { %v6236_v11 = vpop.f32.mrb[66].mxu0 }
0x1fe7   :  { %v6237_v12 = vadd.f32 %v13382_v18, %v6236_v11  ;;  %v15260_v13 = vpop.f32.mrb[67].mxu0  ;;  %v16429_v18 = vpack.c.bf16 %v13428_v7, %v13427_v5  ;;  %v13422_v11 = vld [vmem:[%s19429_s26 + $0x90] sm:$0xff] }
0x1fe8   :  { %v13460_v7 = vld [vmem:[%s19408_s7 + $0x1d0] sm:$0xff] }
0x1fe9   :  { %v6240_v3 = vadd.f32 %v6237_v12, %v5758_v14  ;;  %v13423_v12 = vld [vmem:[%s19429_s26 + $0x98] sm:$0xff] }
0x1fea   :  { %v6402_v19 = vpop.f32.mrb[68].mxu0  ;;  %v16426_v13 = vpack.c.bf16 %v13423_v12, %v13422_v11  ;;  %v13470_v11 = vld [vmem:[%s19413_s18 + $0x38] sm:$0xff] }
0x1feb   :  { %v6403_v20 = vadd.f32 %v13392_v15, %v6402_v19  ;;  %v15274_v21 = vpop.f32.mrb[69].mxu0  ;;  %v6242_v2 = vmul.f32 0.25, %v6240_v3  ;;  %vm6241_vm6 = vcmp.ge.f32.partialorder %v6240_v3, 0.0 }
0x1fed   :  { %vm6406_vm2 = vcmp.ge.f32.partialorder %v6403_v20, 0.0  ;;  %v6407_v22 = vmul.f32 0.25, %v6403_v20  ;;  %v6243_v51 = vsel %vm6241_vm6, %v6240_v3, %v6242_v2 }
0x1fef   :  { %v6408_v24 = vsel %vm6406_vm2, %v6403_v20, %v6407_v22 }
0x1ff0   :  { %15276 = vmatpush3.msra.mxu1 %v6408_v24  ;;  %15283 = vmatmul.mubr.msk.f32.vlgmr.msra.gmra.mrb[70].mxu0 %vm2520_vm4, %v6408_v24 }
0x1ff1   :  { %15291 = vmatpush3.msra.mxu0 %v6408_v24  ;;  %15278 = vmatmul.mubr.msk.f32.vlgmr.msra.gmra.mrb[72].mxu1 %vm2520_vm4, %v13394_v23  ;;  %v13430_v23 = vld [vmem:[%s19412_s12 + $0x13] ss:$0 sm:$0xff] }
0x1ff2   :  { %15292 = vmatprep.mubr.msk.f32.mxu0 %vm16942_vm8, %v16943_v17  ;;  %15285 = vmatprep.subr.mxu1 %v16943_v17 }
0x1ff3   :  { %15287 = vmatprep.mubr.msk.f32.mxu1 %vm16942_vm8, %v16943_v17  ;;  %15305 = vmatprep.subr.mxu0 %v16943_v17 }
0x1ff4   :  { %15293 = vmatmul.mubr.msk.f32.vlgmr.msra.gmra.mrb[72].mxu0 %vm2520_vm4, %v13400_v6  ;;  %15286 = vmatpush3.msra.mxu1 %v13396_v25 }
0x1ff5   :  { %15307 = vmatprep.mubr.msk.f32.mxu0 %vm16942_vm8, %v16943_v17  ;;  %15295 = vmatprep.subr.mxu1 %v16943_v17 }
0x20c3   :  { %v6557_v26 = vpop.f32.mrb[70].mxu0 }
0x20c4   :  { %v6480_v28 = vpop.f32.mrb[72].mxu1  ;;  %v15284_v29 = vpop.f32.mrb[71].mxu0 }
0x20c5   :  { %v15279_v30 = vpop.f32.mrb[73].mxu1  ;;  %15288 = vmatmul.mubr.msk.f32.vlgmr.msra.gmra.mrb[74].mxu1 %vm2520_vm4, %v6480_v28  ;;  %v13435_v28 = vld [vmem:[%s19410_s11 + $0x108] sm:$0xff] }
0x20c6   :  { %15296 = vmatpush3.msra.mxu1 %v13402_v27  ;;  %15297 = vmatprep.mubr.msk.f32.mxu1 %vm16942_vm8, %v16943_v17  ;;  %v13432_v27 = vld [vmem:[%s19410_s11 + $0x100] sm:$0xff]  ;;  %v13437_v30 = vld [vmem:[%s19407_s8 + $0x58] sm:$0xff] }
0x20c7   :  { %v6705_v31 = vpop.f32.mrb[72].mxu0  ;;  %15300 = vmatprep.subr.mxu1 %v16943_v17 }
0x20c8   :  { %v15294_v33 = vpop.f32.mrb[73].mxu0 }
0x20c9   :  { %15298 = vmatmul.mubr.msk.f32.vlgmr.msra.gmra.mrb[76].mxu1 %vm2520_vm4, %v6705_v31  ;;  %v13434_v31 = vld [vmem:[%s19407_s8 + $0x50] sm:$0xff] }
0x20ca   :  { %15302 = vmatprep.mubr.msk.f32.mxu1 %vm16942_vm8, %v16943_v17  ;;  %15301 = vmatpush3.msra.mxu1 %v13406_v34 }
0x20cb   :  { %16419 = vmatprep.subr.bf16.mxu1 %v16941_v16 }
0x2198   :  { %v6630_v35 = vpop.f32.mrb[74].mxu1 }
0x2199   :  { %v6631_v36 = vadd.f32 %v6630_v35, %v6557_v26  ;;  %v15289_v37 = vpop.f32.mrb[75].mxu1 }
0x219c   :  { %v6780_v38 = vpop.f32.mrb[76].mxu1 }
0x219d   :  { %v6784_v40 = vadd.f32 %v6780_v38, %v6631_v36  ;;  %v15299_v41 = vpop.f32.mrb[77].mxu1 }
0x219e   :  { %v13442_v41 = vld [vmem:[%s19407_s8 + $0x60] sm:$0xff] }
0x219f   :  { %v6793_v42 = vadd.f32 %v13405_v39, %v6784_v40  ;;  %v13440_v40 = vld [vmem:[%s19410_s11 + $0x110] sm:$0xff] }
0x21a1   :  { %vm6794_vm3 = vcmp.ge.f32.partialorder %v6793_v42, 0.0  ;;  %v6795_v0 = vmul.f32 0.25, %v6793_v42 }
0x21a3   :  { %v6796_v32 = vsel %vm6794_vm3, %v6793_v42, %v6795_v0  ;;  %v13451_v42 = vld [vmem:[%s19414_s16 + $0xa0] sm:$0xff]  ;;  %v13452_v0 = vld [vmem:[%s19414_s16 + $0xa8] sm:$0xff] }
0x21a4   :  { %15303 = vmatmul.mubr.msk.f32.vlgmr.msra.gmra.mrb[70].mxu1 %vm2520_vm4, %v6796_v32  ;;  %v16435_v2 = vpack.c.bf16 %v13452_v0, %v13451_v42  ;;  %v13480_v0 = vld [vmem:[%s19429_s26 + $0xe0] sm:$0xff] }
0x21a5   :  { %15319 = vmatprep.mubr.msk.f32.mxu1 %vm16942_vm8, %v16943_v17  ;;  %16421 = vmatpush3.bf16.msra.mxu1 %v16420_v61  ;;  %v13459_v61 = vld [vmem:[%s19408_s7 + $0x1c8] sm:$0xff] }
0x21a6   :  { %15329 = vmatprep.subr.mxu1 %v16943_v17  ;;  %v16441_v5 = vpack.c.bf16 %v13459_v61, %v13458_v60 }
0x2277   :  { %v6876_v1 = vpop.f32.mrb[70].mxu1 }
0x2278   :  { %v16861_v4 = vadd.f32 %v16860_v48, %v6876_v1  ;;  %v15304_v49 = vpop.f32.mrb[71].mxu1 }
0x2279   :  { %v13454_v49 = vld [vmem:[%s19414_s16 + $0xb8] sm:$0xff] }
0x227a   :  { %vm6881_vm7 = vcmp.ge.f32.partialorder %v16861_v4, 0.0  ;;  %v6882_v50 = vmul.f32 0.25, %v16861_v4 }
0x227c   :  { %v6883_v52 = vsel %vm6881_vm7, %v16861_v4, %v6882_v50  ;;  %v13453_v4 = vld [vmem:[%s19414_s16 + $0xb0] sm:$0xff] }
0x227d   :  { %v6884_v53 = vadd.f32 %v6883_v52, %v6243_v51  ;;  %v16438_v52 = vpack.c.bf16 %v13454_v49, %v13453_v4  ;;  %v13479_v4 = vld [vmem:[%s19409_s9 + $0x9] ss:$0 sm:$0xff] }
0x227f   :  { %15306 = vmatpush3.msra.mxu0 %v6884_v53 }
0x2280   :  { %15308 = vmatmul.mubr.msk.f32.vlgmr.msra.gmra.mrb[74].mxu0 %vm2520_vm4, %v13410_v54  ;;  %15310 = vmatprep.subr.mxu0 %v16943_v17  ;;  %v13447_v54 = vld [vmem:[%s19429_s26 + $0xa8] sm:$0xff] }
0x2281   :  { %15311 = vmatpush3.msra.mxu0 %v6884_v53  ;;  %15312 = vmatprep.mubr.msk.f32.mxu0 %vm16942_vm8, %v16943_v17 }
0x2282   :  { %16422 = vmatprep.subr.bf16.mxu0 %v16941_v16 }
0x2284   :  { %15313 = vmatmul.mubr.msk.f32.vlgmr.msra.gmra.mrb[76].mxu0 %vm2520_vm4, %v13414_v57  ;;  %v13445_v57 = vld [vmem:[%s19409_s9 + $0x6] ss:$0 sm:$0xff] }
0x2285   :  { %16424 = vmatpush3.bf16.msra.mxu0 %v16423_v58  ;;  %15326 = vmatprep.mubr.msk.f32.mxu0 %vm16942_vm8, %v16943_v17 }
0x2286   :  { %16425 = vmatprep.subr.bf16.mxu0 %v16941_v16 }
0x2353   :  { %v6956_v62 = vpop.f32.mrb[74].mxu0 }
0x2354   :  { %v15309_v63 = vpop.f32.mrb[75].mxu0  ;;  %15327 = vmatmul.mubr.msk.f32.vlgmr.msra.gmra.mrb[78].mxu0 %vm1374_vm13, %v6956_v62 }
0x2355   :  { %15338 = vmatprep.mubr.msk.f32.mxu0 %vm16942_vm8, %v16943_v17  ;;  %16427 = vmatpush3.bf16.msra.mxu0 %v16426_v13  ;;  %v13426_v13 = vld [vmem:[%s19406_s5 + $0x4] ss:$0 sm:$0xff] }
0x2356   :  { %15348 = vmatprep.subr.mxu0 %v16943_v17 }
0x2357   :  { %v7034_v8 = vpop.f32.mrb[76].mxu0 }
0x2358   :  { %v15314_v9 = vpop.f32.mrb[77].mxu0  ;;  %15320 = vmatmul.mubr.msk.f32.vlgmr.msra.gmra.mrb[78].mxu1 %vm1374_vm13, %v7034_v8  ;;  %v13461_v8 = vld [vmem:[%s19408_s7 + $0x1d8] sm:$0xff] }
0x2359   :  { %15330 = vmatpush3.msra.mxu1 %v6884_v53  ;;  %15331 = vmatprep.mubr.msk.f32.mxu1 %vm16942_vm8, %v16943_v17 }
0x235a   :  { %16428 = vmatprep.subr.bf16.mxu1 %v16941_v16 }
0x235c   :  { %15332 = vmatmul.mubr.msk.f32.vlgmr.msra.gmra.mrb[80].mxu1 %vm2520_vm4, %v13420_v10  ;;  %v16444_v10 = vpack.c.bf16 %v13461_v8, %v13460_v7 }
0x235d   :  { %16430 = vmatpush3.bf16.msra.mxu1 %v16429_v18  ;;  %15345 = vmatprep.mubr.msk.f32.mxu1 %vm16942_vm8, %v16943_v17  ;;  %v13469_v18 = vld [vmem:[%s19413_s18 + $0x30] sm:$0xff] }
0x235e   :  { %15353 = vmatprep.subr.mxu1 %v16943_v17  ;;  %v16447_v12 = vpack.c.bf16 %v13470_v11, %v13469_v18  ;;  %v13486_v18 = vld [vmem:[%s19411_s10 + $0xa8] sm:$0xff]  ;;  %v13493_v11 = vld [vmem:[%s19411_s10 + $0xb0] sm:$0xff] }
0x2360   :  { %15346 = vmatmul.mubr.msk.f32.vlgmr.msra.gmra.mrb[82].mxu1 %vm1374_vm13, %v6884_v53  ;;  %v13446_v53 = vld [vmem:[%s19429_s26 + $0xa0] sm:$0xff] }
0x2361   :  { %15355 = vmatprep.mubr.msk.f32.mxu1 %vm16942_vm8, %v16943_v17  ;;  %v16432_v55 = vpack.c.bf16 %v13447_v54, %v13446_v53  ;;  %v13485_v54 = vld [vmem:[%s19411_s10 + $0xa0] sm:$0xff] }
0x2427   :  { %v7183_v14 = vpop.f32.mrb[78].mxu0 }
0x2428   :  { %v15328_v15 = vpop.f32.mrb[79].mxu0 }
0x2429   :  { %v13449_v15 = vld [vmem:[%s19406_s5 + $0x5] ss:$0 sm:$0xff] }
0x242b   :  { %v7110_v3 = vpop.f32.mrb[78].mxu1 }
0x242c   :  { %v7184_v19 = vadd.f32 %v7183_v14, %v7110_v3  ;;  %v15321_v20 = vpop.f32.mrb[79].mxu1 }
0x242f   :  { %v7258_v21 = vpop.f32.mrb[80].mxu1 }
0x2430   :  { %v15333_v22 = vpop.f32.mrb[81].mxu1  ;;  %15339 = vmatmul.mubr.msk.f32.vlgmr.msra.gmra.mrb[80].mxu0 %vm1374_vm13, %v7258_v21 }
0x2431   :  { %15350 = vmatprep.mubr.msk.f32.mxu0 %vm16942_vm8, %v16943_v17 }
0x2433   :  { %v7431_v24 = vpop.f32.mrb[82].mxu1 }
0x2434   :  { %v7432_v6 = vadd.f32 %v13430_v23, %v7431_v24  ;;  %v15347_v25 = vpop.f32.mrb[83].mxu1  ;;  %v13463_v23 = vld [vmem:[%s19409_s9 + $0x8] ss:$0 sm:$0xff] }
0x2436   :  { %vm7435_vm9 = vcmp.ge.f32.partialorder %v7432_v6, 0.0  ;;  %v7436_v26 = vmul.f32 0.25, %v7432_v6 }
0x2438   :  { %v7437_v29 = vsel %vm7435_vm9, %v7432_v6, %v7436_v26  ;;  %v13467_v26 = vld [vmem:[%s19413_s18 + $0x20] sm:$0xff] }
0x2439   :  { %15349 = vmatpush3.msra.mxu0 %v7437_v29  ;;  %15354 = vmatpush3.msra.mxu1 %v7437_v29 }
0x243a   :  { %15351 = vmatmul.mubr.msk.f32.vlgmr.msra.gmra.mrb[82].mxu0 %vm2520_vm4, %v13432_v27  ;;  %15356 = vmatmul.mubr.msk.f32.vlgmr.msra.gmra.mrb[84].mxu1 %vm2520_vm4, %v13435_v28  ;;  %v13468_v27 = vld [vmem:[%s19413_s18 + $0x28] sm:$0xff] }
0x243b   :  { %15358 = vmatprep.subr.mxu0 %v16943_v17  ;;  %15363 = vmatprep.subr.mxu1 %v16943_v17 }
0x243c   :  { %15360 = vmatprep.mubr.msk.f32.mxu0 %vm16942_vm8, %v16943_v17  ;;  %15365 = vmatprep.mubr.msk.f32.mxu1 %vm16942_vm8, %v16943_v17 }
0x243d   :  { %15359 = vmatpush3.msra.mxu0 %v13437_v30  ;;  %15364 = vmatpush3.msra.mxu1 %v13434_v31  ;;  %v16450_v31 = vpack.c.bf16 %v13468_v27, %v13467_v26 }
0x243e   :  { %15368 = vmatprep.subr.mxu0 %v16943_v17  ;;  %15373 = vmatprep.subr.mxu1 %v16943_v17 }
0x2503   :  { %v7334_v33 = vpop.f32.mrb[80].mxu0 }
0x2504   :  { %v18336_v34 = vadd.f32 %v7334_v33, %v7184_v19  ;;  %v15340_v35 = vpop.f32.mrb[81].mxu0  ;;  %v13473_v33 = vld [vmem:[%s19410_s11 + $0x138] sm:$0xff] }
0x2505   :  { %v13476_v35 = vld [vmem:[%s19413_s18 + $0x48] sm:$0xff] }
0x250d   :  { %v7509_v36 = vpop.f32.mrb[82].mxu0  ;;  %v7586_v37 = vpop.f32.mrb[84].mxu1 }
0x250e   :  { %v15357_v38 = vpop.f32.mrb[85].mxu1  ;;  %15361 = vmatmul.mubr.msk.f32.vlgmr.msra.gmra.mrb[84].mxu0 %vm2520_vm4, %v7586_v37  ;;  %15366 = vmatmul.mubr.msk.f32.vlgmr.msra.gmra.mrb[86].mxu1 %vm2520_vm4, %v7509_v36  ;;  %v15352_v39 = vpop.f32.mrb[83].mxu0 }
0x250f   :  { %15369 = vmatpush3.msra.mxu0 %v7437_v29  ;;  %15370 = vmatprep.mubr.msk.f32.mxu0 %vm16942_vm8, %v16943_v17  ;;  %v13465_v29 = vld [vmem:[%s19410_s11 + $0x130] sm:$0xff] }
0x2510   :  { %15375 = vmatprep.mubr.msk.f32.mxu1 %vm16942_vm8, %v16943_v17  ;;  %16431 = vmatprep.subr.bf16.mxu0 %v16941_v16 }
0x2511   :  { %15374 = vmatpush3.msra.mxu1 %v13442_v41 }
0x2512   :  { %15371 = vmatmul.mubr.msk.f32.vlgmr.msra.gmra.mrb[86].mxu0 %vm2520_vm4, %v13440_v40  ;;  %16434 = vmatprep.subr.bf16.mxu1 %v16941_v16 }
0x2513   :  { %15382 = vmatprep.mubr.msk.f32.mxu0 %vm16942_vm8, %v16943_v17  ;;  %16433 = vmatpush3.bf16.msra.mxu0 %v16432_v55  ;;  %v13497_v55 = vld [vmem:[%s19405_s6 + $0x40] sm:$0xff] }
0x2514   :  { %16440 = vmatprep.subr.bf16.mxu0 %v16941_v16 }
0x25e1   :  { %v7661_v32 = vpop.f32.mrb[84].mxu0  ;;  %v7734_v45 = vpop.f32.mrb[86].mxu1 }
0x25e2   :  { %v7735_v46 = vadd.f32 %v7734_v45, %v7661_v32  ;;  %v15362_v48 = vpop.f32.mrb[85].mxu0  ;;  %v15367_v1 = vpop.f32.mrb[87].mxu1  ;;  %v13481_v32 = vld [vmem:[%s19429_s26 + $0xe8] sm:$0xff] }
0x25e3   :  { %v16456_v45 = vpack.c.bf16 %v13481_v32, %v13480_v0 }
0x25e5   :  { %v7809_v50 = vpop.f32.mrb[86].mxu0 }
0x25e6   :  { %v15372_v51 = vpop.f32.mrb[87].mxu0  ;;  %15376 = vmatmul.mubr.msk.f32.vlgmr.msra.gmra.mrb[88].mxu1 %vm2520_vm4, %v7809_v50 }
0x25e7   :  { %16436 = vmatpush3.bf16.msra.mxu1 %v16435_v2  ;;  %15393 = vmatprep.mubr.msk.f32.mxu1 %vm16942_vm8, %v16943_v17 }
0x25e8   :  { %16437 = vmatprep.subr.bf16.mxu1 %v16941_v16 }
0x25eb   :  { %16439 = vmatpush3.bf16.msra.mxu1 %v16438_v52 }
0x25ec   :  { %15407 = vmatprep.subr.mxu1 %v16943_v17 }
0x25ee   :  { %15394 = vmatmul.mubr.msk.f32.vlgmr.msra.gmra.mrb[90].mxu1 %vm69_vm0, %v17726_v47 }
0x25ef   :  { %15409 = vmatprep.mubr.msk.f32.mxu1 %vm16942_vm8, %v16943_v17 }
0x26b9   :  { %v7884_v56 = vpop.f32.mrb[88].mxu1 }
0x26ba   :  { %v7888_v58 = vadd.f32 %v7884_v56, %v7735_v46  ;;  %v15377_v59 = vpop.f32.mrb[89].mxu1  ;;  %v13498_v56 = vld [vmem:[%s19405_s6 + $0x48] sm:$0xff] }
0x26bb   :  { %v13483_v59 = vld [vmem:[%s19406_s5 + $0xb] ss:$0 sm:$0xff] }
0x26bc   :  { %v7897_v62 = vadd.f32 %v13445_v57, %v7888_v58  ;;  %v16458_v57 = vpack.c.bf16 %v13498_v56, %v13497_v55  ;;  %v13456_v58 = vld [vmem:[%s19406_s5 + $0xa] ss:$0 sm:$0xff]  ;;  %v13529_v55 = vld [vmem:[%s19429_s26 + $0xb8] sm:$0xff] }
0x26bd   :  { %v16862_v60 = vadd.f32 %v13483_v59, %v13456_v58  ;;  %v13551_v58 = vld [vmem:[%s19405_s6 + $0x88] sm:$0xff] }
0x26be   :  { %vm7898_vm10 = vcmp.ge.f32.partialorder %v7897_v62, 0.0  ;;  %v7899_v63 = vmul.f32 0.25, %v7897_v62 }
0x26c0   :  { %v7900_v9 = vsel %vm7898_vm10, %v7897_v62, %v7899_v63 }
0x26c1   :  { %15383 = vmatmul.mubr.msk.f32.vlgmr.msra.gmra.mrb[88].mxu0 %vm1374_vm13, %v7900_v9 }
0x26c2   :  { %16442 = vmatpush3.bf16.msra.mxu0 %v16441_v5  ;;  %15404 = vmatprep.mubr.msk.f32.mxu0 %vm16942_vm8, %v16943_v17 }
0x26c3   :  { %16443 = vmatprep.subr.bf16.mxu0 %v16941_v16 }
0x26c6   :  { %16445 = vmatpush3.bf16.msra.mxu0 %v16444_v10 }
0x26c7   :  { %16446 = vmatprep.subr.bf16.mxu0 %v16941_v16 }
0x26c9   :  { %15405 = vmatmul.mubr.msk.f32.vlgmr.msra.gmra.mrb[90].mxu0 %vm69_vm0, %v17726_v47  ;;  %v7347_v47 = vadd.f32 %v13426_v13, %v18336_v34  ;;  %v13475_v34 = vld [vmem:[%s19413_s18 + $0x40] sm:$0xff] }
0x26ca   :  { %15416 = vmatprep.mubr.msk.f32.mxu0 %vm16942_vm8, %v16943_v17  ;;  %16448 = vmatpush3.bf16.msra.mxu0 %v16447_v12  ;;  %v16453_v36 = vpack.c.bf16 %v13476_v35, %v13475_v34  ;;  %v13494_v12 = vld [vmem:[%s19411_s10 + $0xb8] sm:$0xff]  ;;  %v13505_v13 = vld [vmem:[%s19411_s10 + $0xc0] sm:$0xff]  ;;  %v13510_v35 = vld [vmem:[%s19405_s6 + $0x68] sm:$0xff] }
0x26cb   :  { %15426 = vmatprep.subr.mxu0 %v16943_v17  ;;  %v7349_v14 = vmul.f32 0.25, %v7347_v47  ;;  %vm7348_vm11 = vcmp.ge.f32.partialorder %v7347_v47, 0.0  ;;  %v13509_v34 = vld [vmem:[%s19405_s6 + $0x60] sm:$0xff] }
0x26cd   :  { %v7350_v21 = vsel %vm7348_vm11, %v7347_v47, %v7349_v14  ;;  %v13517_v47 = vld [vmem:[%s19408_s7 + $0xe0] sm:$0xff]  ;;  %v13518_v14 = vld [vmem:[%s19408_s7 + $0xe8] sm:$0xff] }
0x2794   :  { %v7981_v3 = vpop.f32.mrb[88].mxu0 }
0x2795   :  { %v7982_v19 = vadd.f32 %v13449_v15, %v7981_v3  ;;  %v15384_v20 = vpop.f32.mrb[89].mxu0  ;;  %v13506_v15 = vld [vmem:[%s19411_s10 + $0xc8] sm:$0xff]  ;;  %v16483_v3 = vpack.c.bf16 %v13518_v14, %v13517_v47  ;;  %v13560_v14 = vld [vmem:[%s19415_s15 + $0xd0] sm:$0xff] }
0x2796   :  { %v13520_v20 = vld [vmem:[%s19408_s7 + $0xf8] sm:$0xff] }
0x2797   :  { %v18421_v22 = vadd.f32 %v7982_v19, %v7350_v21  ;;  %v13519_v19 = vld [vmem:[%s19408_s7 + $0xf0] sm:$0xff] }
0x2798   :  { %v16486_v21 = vpack.c.bf16 %v13520_v20, %v13519_v19  ;;  %v13562_v19 = vld [vmem:[%s19415_s15 + $0xe0] sm:$0xff]  ;;  %v13563_v20 = vld [vmem:[%s19415_s15 + $0xe8] sm:$0xff] }
0x2799   :  { %v7987_v62 = vmul.f32 0.25, %v18421_v22  ;;  %vm7986_vm15 = vcmp.ge.f32.partialorder %v18421_v22, 0.0 }
0x279b   :  { %v7988_v8 = vsel %vm7986_vm15, %v18421_v22, %v7987_v62  ;;  %v13499_v22 = vld [vmem:[%s19405_s6 + $0x50] sm:$0xff] }
0x279c   :  { %v8151_v24 = vpop.f32.mrb[90].mxu0 }
0x279d   :  { %v8152_v6 = vadd.f32 %v13463_v23, %v8151_v24  ;;  %v15406_v25 = vpop.f32.mrb[91].mxu0  ;;  %v13500_v23 = vld [vmem:[%s19405_s6 + $0x58] sm:$0xff] }
0x279e   :  { %v16462_v24 = vpack.c.bf16 %v13500_v23, %v13499_v22  ;;  %v13524_v25 = vld [vmem:[%s19411_s10 + $0x70] sm:$0xff]  ;;  %v13565_v23 = vld [vmem:[%s19415_s15 + $0xf8] sm:$0xff] }
0x279f   :  { %vm8155_vm12 = vcmp.ge.f32.partialorder %v8152_v6, 0.0  ;;  %v8156_v28 = vmul.f32 0.25, %v8152_v6  ;;  %v13564_v22 = vld [vmem:[%s19415_s15 + $0xf0] sm:$0xff] }
0x27a1   :  { %v8157_v30 = vsel %vm8155_vm12, %v8152_v6, %v8156_v28  ;;  %v13491_v28 = vld [vmem:[%s19405_s6 + $0x30] sm:$0xff] }
0x27a2   :  { %15408 = vmatpush3.msra.mxu1 %v8157_v30  ;;  %15417 = vmatmul.mubr.msk.f32.vlgmr.msra.gmra.mrb[92].mxu0 %vm1374_vm13, %v8157_v30 }
0x27a3   :  { %15427 = vmatpush3.msra.mxu0 %v8157_v30  ;;  %15410 = vmatmul.mubr.msk.f32.vlgmr.msra.gmra.mrb[92].mxu1 %vm2520_vm4, %v13465_v29  ;;  %v13492_v29 = vld [vmem:[%s19405_s6 + $0x38] sm:$0xff] }
0x27a4   :  { %15428 = vmatprep.mubr.msk.f32.mxu0 %vm16942_vm8, %v16943_v17  ;;  %16449 = vmatprep.subr.bf16.mxu1 %v16941_v16 }
0x27a5   :  { %16451 = vmatpush3.bf16.msra.mxu1 %v16450_v31  ;;  %15423 = vmatprep.mubr.msk.f32.mxu1 %vm16942_vm8, %v16943_v17 }
0x27a6   :  { %15429 = vmatmul.mubr.msk.f32.vlgmr.msra.gmra.mrb[94].mxu0 %vm2520_vm4, %v13473_v33  ;;  %16452 = vmatprep.subr.bf16.mxu1 %v16941_v16  ;;  %v16470_v33 = vpack.c.bf16 %v13492_v29, %v13491_v28  ;;  %v13549_v28 = vld [vmem:[%s19406_s5 + $0x6] ss:$0 sm:$0xff] }
0x27a7   :  { %15447 = vmatprep.mubr.msk.f32.mxu0 %vm2520_vm4, %v13485_v54  ;;  %v13528_v54 = vld [vmem:[%s19429_s26 + $0xb0] sm:$0xff] }
0x27a8   :  { %v16492_v56 = vpack.c.bf16 %v13529_v55, %v13528_v54 }
0x2875   :  { %v8308_v37 = vpop.f32.mrb[92].mxu0 }
0x2876   :  { %v8229_v38 = vpop.f32.mrb[92].mxu1  ;;  %v15418_v39 = vpop.f32.mrb[93].mxu0 }
0x2877   :  { %v15411_v40 = vpop.f32.mrb[93].mxu1  ;;  %15424 = vmatmul.mubr.msk.f32.vlgmr.msra.gmra.mrb[94].mxu1 %vm1374_vm13, %v8229_v38  ;;  %v16474_v38 = vpack.c.bf16 %v13510_v35, %v13509_v34  ;;  %v13511_v39 = vld [vmem:[%s19405_s6 + $0x70] sm:$0xff] }
0x2878   :  { %16454 = vmatpush3.bf16.msra.mxu1 %v16453_v36  ;;  %15435 = vmatprep.mubr.msk.f32.mxu1 %vm16942_vm8, %v16943_v17  ;;  %v13512_v40 = vld [vmem:[%s19405_s6 + $0x78] sm:$0xff]  ;;  %v13572_v35 = vld [vmem:[%s19404_s3 + $0x210] sm:$0xff] }
0x2879   :  { %v8456_v41 = vpop.f32.mrb[94].mxu0  ;;  %16455 = vmatprep.subr.bf16.mxu1 %v16941_v16 }
0x287a   :  { %v15430_v42 = vpop.f32.mrb[95].mxu0 }
0x287b   :  { %15436 = vmatmul.mubr.msk.f32.vlgmr.msra.gmra.mrb[96].mxu1 %vm1374_vm13, %v8456_v41  ;;  %v16478_v41 = vpack.c.bf16 %v13512_v40, %v13511_v39  ;;  %v13522_v42 = vld [vmem:[%s19409_s9 + $0x7] ss:$0 sm:$0xff] }
0x287c   :  { %15442 = vmatprep.mubr.msk.f32.mxu1 %vm16942_vm8, %v16943_v17  ;;  %16457 = vmatpush3.bf16.msra.mxu1 %v16456_v45 }
0x287d   :  { %16459 = vmatprep.subr.bf16.mxu1 %v16458_v57 }
0x294a   :  { %v8381_v46 = vpop.f32.mrb[94].mxu1 }
0x294b   :  { %v8382_v48 = vadd.f32 %v8381_v46, %v8308_v37  ;;  %v15425_v1 = vpop.f32.mrb[95].mxu1 }
0x294c   :  { %v13525_v1 = vld [vmem:[%s19411_s10 + $0x78] sm:$0xff] }
0x294e   :  { %v8532_v2 = vpop.f32.mrb[96].mxu1 }
0x294f   :  { %v8536_v49 = vadd.f32 %v8532_v2, %v8382_v48  ;;  %v15437_v50 = vpop.f32.mrb[97].mxu1  ;;  %v13530_v2 = vld [vmem:[%s19411_s10 + $0x80] sm:$0xff] }
0x2950   :  { %v13531_v50 = vld [vmem:[%s19411_s10 + $0x88] sm:$0xff] }
0x2951   :  { %v8545_v51 = vadd.f32 %v13479_v4, %v8536_v49  ;;  %v13540_v4 = vld [vmem:[%s19411_s10 + $0x90] sm:$0xff]  ;;  %v13541_v49 = vld [vmem:[%s19411_s10 + $0x98] sm:$0xff] }
0x2953   :  { %vm8546_vm14 = vcmp.ge.f32.partialorder %v8545_v51, 0.0  ;;  %v8547_v52 = vmul.f32 0.25, %v8545_v51 }
0x2955   :  { %v8548_v53 = vsel %vm8546_vm14, %v8545_v51, %v8547_v52  ;;  %v13534_v51 = vld [vmem:[%s19429_s26 + $0xc0] sm:$0xff]  ;;  %v13535_v52 = vld [vmem:[%s19429_s26 + $0xc8] sm:$0xff] }
0x2956   :  { %15443 = vmatmul.mubr.msk.f32.vlgmr.msra.gmra.mrb[90].mxu1 %vm1374_vm13, %v8548_v53  ;;  %v16488_v53 = vpack.c.bf16 %v13535_v52, %v13534_v51  ;;  %v13585_v51 = vld [vmem:[%s19414_s16 + $0x48] sm:$0xff] }
0x2957   :  { %16461 = vmatpush3.bf16.msra.mxu1 %v16458_v57  ;;  %v13550_v57 = vld [vmem:[%s19405_s6 + $0x80] sm:$0xff] }
0x2958   :  { %16463 = vmatprep.subr.bf16.mxu1 %v16462_v24  ;;  %v16500_v59 = vpack.c.bf16 %v13551_v58, %v13550_v57  ;;  %v13555_v57 = vld [vmem:[%s19431_s25 + $0x4] ss:$0 sm:$0xff] }
0x295b   :  { %16465 = vmatpush3.bf16.msra.mxu1 %v16462_v24  ;;  %v16520_v24 = vpack.c.bf16 %v13565_v23, %v13564_v22  ;;  %v10070_v22 = vld [vmem:[%s19413_s18 + $0x8] sm:$0xff]  ;;  %v13596_v23 = vld [vmem:[%s19413_s18 + $0x10] sm:$0xff] }
0x2a29   :  { %v8629_v61 = vpop.f32.mrb[90].mxu1 }
0x2a2a   :  { %v16863_v63 = vadd.f32 %v16862_v60, %v8629_v61  ;;  %v15444_v5 = vpop.f32.mrb[91].mxu1 }
0x2a2b   :  { %v13544_v5 = vld [vmem:[%s19429_s26 + $0xd0] sm:$0xff] }
0x2a2c   :  { %vm8634_vm1 = vcmp.ge.f32.partialorder %v16863_v63, 0.0  ;;  %v8635_v7 = vmul.f32 0.25, %v16863_v63 }
0x2a2e   :  { %v8636_v9 = vsel %vm8634_vm1, %v16863_v63, %v8635_v7  ;;  %v13545_v7 = vld [vmem:[%s19429_s26 + $0xd8] sm:$0xff] }
0x2a2f   :  { %v8637_v10 = vadd.f32 %v8636_v9, %v7988_v8 }
0x2a31   :  { %15445 = vmatprep.subr.mxu0 %v8637_v10 }
0x2a32   :  { %15446 = vmatpush3.msra.mxu0 %v8637_v10 }
0x2a33   :  { %15448 = vmatmul.mubr.msk.f32.vlgmr.msra.gmra.mrb[96].mxu0 %vm2520_vm4, %v13486_v18  ;;  %15450 = vmatprep.subr.mxu0 %v8637_v10 }
0x2a34   :  { %15451 = vmatpush3.msra.mxu0 %v8637_v10  ;;  %15452 = vmatprep.mubr.msk.f32.mxu0 %vm2520_vm4, %v13493_v11  ;;  %v16496_v11 = vpack.c.bf16 %v13545_v7, %v13544_v5 }
0x2a35   :  { %15477 = vmatprep.subr.mxu0 %v8637_v10 }
0x2a37   :  { %15453 = vmatmul.mubr.msk.f32.vlgmr.msra.gmra.mrb[98].mxu0 %vm2520_vm4, %v13494_v12  ;;  %v13558_v12 = vld [vmem:[%s19415_s15 + $0xc0] sm:$0xff] }
0x2a38   :  { %15478 = vmatpush3.msra.mxu0 %v8637_v10  ;;  %15479 = vmatprep.mubr.msk.f32.mxu0 %vm2520_vm4, %v13505_v13  ;;  %v13559_v13 = vld [vmem:[%s19415_s15 + $0xc8] sm:$0xff] }
0x2a39   :  { %16482 = vmatprep.subr.bf16.mxu0 %v16941_v16  ;;  %v16508_v47 = vpack.c.bf16 %v13559_v13, %v13558_v12 }
0x2a3b   :  { %15480 = vmatmul.mubr.msk.f32.vlgmr.msra.gmra.mrb[100].mxu0 %vm2520_vm4, %v13506_v15  ;;  %v13561_v15 = vld [vmem:[%s19415_s15 + $0xd8] sm:$0xff] }
0x2a3c   :  { %16484 = vmatpush3.bf16.msra.mxu0 %v16483_v3  ;;  %15501 = vmatprep.mubr.msk.f32.mxu0 %vm16942_vm8, %v16943_v17  ;;  %v13489_v17 = vld [vmem:[%s19405_s6 + $0x20] sm:$0xff]  ;;  %v16512_v3 = vpack.c.bf16 %v13561_v15, %v13560_v14  ;;  %v13587_v14 = vld [vmem:[%s19414_s16 + $0x58] sm:$0xff] }
0x2a3d   :  { %16485 = vmatprep.subr.bf16.mxu0 %v16941_v16  ;;  %v13490_v16 = vld [vmem:[%s19405_s6 + $0x28] sm:$0xff] }
0x2a3e   :  { %v16466_v6 = vpack.c.bf16 %v13490_v16, %v13489_v17  ;;  %v13552_v17 = vld [vmem:[%s19405_s6 + $0x90] sm:$0xff]  ;;  %v13553_v16 = vld [vmem:[%s19405_s6 + $0x98] sm:$0xff] }
0x2a40   :  { %16487 = vmatpush3.bf16.msra.mxu0 %v16486_v21  ;;  %16467 = vmatprep.subr.bf16.mxu1 %v16466_v6  ;;  %v16516_v21 = vpack.c.bf16 %v13563_v20, %v13562_v19 }
0x2a43   :  { %15502 = vmatmul.mubr.msk.f32.vlgmr.msra.gmra.mrb[102].mxu0 %vm69_vm0, %v8637_v10 }
0x2a44   :  { %15506 = vmatprep.mubr.msk.f32.mxu0 %vm2520_vm4, %v13524_v25  ;;  %v13570_v25 = vld [vmem:[%s19404_s3 + $0x200] sm:$0xff] }
0x2b06   :  { %v15449_v26 = vpop.f32.mrb[96].mxu0 }
0x2b07   :  { %v8713_v27 = vpop.f32.mrb[97].mxu0 }
0x2b0a   :  { %v15454_v30 = vpop.f32.mrb[98].mxu0 }
0x2b0b   :  { %v8802_v31 = vpop.f32.mrb[99].mxu0 }
0x2b0c   :  { %15463 = vmatprep.mubr.msk.f32.mxu1 %vm69_vm0, %v8802_v31 }
0x2b0d   :  { %15464 = vmatmul.mubr.msk.f32.vlgmr.msra.gmra.mrb[98].mxu1 %vm69_vm0, %v15454_v30 }
0x2b0e   :  { %16469 = vmatpush3.bf16.msra.mxu1 %v16466_v6  ;;  %15474 = vmatprep.mubr.msk.f32.mxu1 %vm69_vm0, %v8713_v27  ;;  %v15481_v36 = vpop.f32.mrb[100].mxu0  ;;  %v16504_v6 = vpack.c.bf16 %v13553_v16, %v13552_v17  ;;  %v13600_v17 = vld [vmem:[%s19414_s16 + $0x80] sm:$0xff]  ;;  %v13601_v16 = vld [vmem:[%s19414_s16 + $0x88] sm:$0xff] }
0x2b0f   :  { %v9053_v37 = vpop.f32.mrb[101].mxu0  ;;  %16471 = vmatprep.subr.bf16.mxu1 %v16470_v33 }
0x2b12   :  { %16473 = vmatpush3.bf16.msra.mxu1 %v16470_v33 }
0x2b13   :  { %16475 = vmatprep.subr.bf16.mxu1 %v16474_v38 }
0x2b15   :  { %15475 = vmatmul.mubr.msk.f32.vlgmr.msra.gmra.mrb[98].mxu1 %vm69_vm0, %v15449_v26  ;;  %v13571_v26 = vld [vmem:[%s19404_s3 + $0x208] sm:$0xff] }
0x2b16   :  { %16477 = vmatpush3.bf16.msra.mxu1 %v16474_v38  ;;  %v9248_v0 = vpop.f32.mrb[102].mxu0  ;;  %15490 = vmatprep.mubr.msk.f32.mxu1 %vm69_vm0, %v9053_v37  ;;  %v16524_v27 = vpack.c.bf16 %v13571_v26, %v13570_v25  ;;  %v13602_v25 = vld [vmem:[%s19414_s16 + $0x90] sm:$0xff]  ;;  %v13603_v26 = vld [vmem:[%s19414_s16 + $0x98] sm:$0xff] }
0x2b17   :  { %v9249_v32 = vadd.f32 %v13522_v42, %v9248_v0  ;;  %v15503_v45 = vpop.f32.mrb[103].mxu0  ;;  %16479 = vmatprep.subr.bf16.mxu1 %v16478_v41  ;;  %v13575_v42 = vld [vmem:[%s19404_s3 + $0x228] sm:$0xff] }
0x2b18   :  { %v13577_v45 = vld [vmem:[%s19404_s3 + $0x238] sm:$0xff] }
0x2b19   :  { %vm9252_vm8 = vcmp.ge.f32.partialorder %v9249_v32, 0.0  ;;  %v9253_v46 = vmul.f32 0.25, %v9249_v32 }
0x2b1a   :  { %16481 = vmatpush3.bf16.msra.mxu1 %v16478_v41  ;;  %v13574_v41 = vld [vmem:[%s19404_s3 + $0x220] sm:$0xff] }
0x2b1b   :  { %v9254_v48 = vsel %vm9252_vm8, %v9249_v32, %v9253_v46  ;;  %v16532_v0 = vpack.c.bf16 %v13575_v42, %v13574_v41  ;;  %v13576_v32 = vld [vmem:[%s19404_s3 + $0x230] sm:$0xff] }
0x2b1c   :  { %15504 = vmatprep.subr.mxu0 %v9254_v48  ;;  %15528 = vmatprep.subr.mxu1 %v9254_v48  ;;  %v16536_v46 = vpack.c.bf16 %v13577_v45, %v13576_v32 }
0x2b1d   :  { %15505 = vmatpush3.msra.mxu0 %v9254_v48  ;;  %15491 = vmatmul.mubr.msk.f32.vlgmr.msra.gmra.mrb[98].mxu1 %vm69_vm0, %v15481_v36  ;;  %v13573_v36 = vld [vmem:[%s19404_s3 + $0x218] sm:$0xff] }
0x2b1e   :  { %15507 = vmatmul.mubr.msk.f32.vlgmr.msra.gmra.mrb[104].mxu0 %vm2520_vm4, %v13525_v1  ;;  %15509 = vmatprep.subr.mxu0 %v9254_v48  ;;  %v16528_v39 = vpack.c.bf16 %v13573_v36, %v13572_v35  ;;  %v13610_v36 = vld [vmem:[%s19405_s6 + $0x110] sm:$0xff] }
0x2b1f   :  { %15529 = vmatpush3.msra.mxu1 %v9254_v48  ;;  %15510 = vmatpush3.msra.mxu0 %v9254_v48  ;;  %v13589_v48 = vld [vmem:[%s19414_s16 + $0x68] sm:$0xff] }
0x2b20   :  { %15511 = vmatprep.mubr.msk.f32.mxu0 %vm2520_vm4, %v13530_v2  ;;  %15530 = vmatprep.mubr.msk.f32.mxu1 %vm2520_vm4, %v13540_v4  ;;  %v13590_v2 = vld [vmem:[%s19414_s16 + $0x70] sm:$0xff]  ;;  %v13591_v4 = vld [vmem:[%s19414_s16 + $0x78] sm:$0xff] }
0x2b21   :  { %15531 = vmatmul.mubr.msk.f32.vlgmr.msra.gmra.mrb[100].mxu1 %vm2520_vm4, %v13541_v49  ;;  %16489 = vmatprep.subr.bf16.mxu0 %v16488_v53  ;;  %v10069_v49 = vld [vmem:[%s19413_s18] sm:$0xff] }
0x2b22   :  { %15512 = vmatmul.mubr.msk.f32.vlgmr.msra.gmra.mrb[106].mxu0 %vm2520_vm4, %v13531_v50  ;;  %16501 = vmatprep.subr.bf16.mxu1 %v16500_v59  ;;  %v13584_v50 = vld [vmem:[%s19414_s16 + $0x40] sm:$0xff] }
0x2b23   :  { %16491 = vmatpush3.bf16.msra.mxu0 %v16488_v53  ;;  %16503 = vmatpush3.bf16.msra.mxu1 %v16500_v59  ;;  %v16552_v52 = vpack.c.bf16 %v13585_v51, %v13584_v50  ;;  %v13516_v53 = vld [vmem:[%s19431_s25 + $0x3] ss:$0 sm:$0xff]  ;;  %v13567_v51 = vld [vmem:[%s19431_s25 + $0x8] ss:$0 sm:$0xff] }
0x2b24   :  { %16493 = vmatprep.subr.bf16.mxu0 %v16492_v56  ;;  %16505 = vmatprep.subr.bf16.mxu1 %v16504_v6 }
0x2b27   :  { %16507 = vmatpush3.bf16.msra.mxu1 %v16504_v6  ;;  %v16564_v6 = vpack.c.bf16 %v13601_v16, %v13600_v17  ;;  %v13649_v17 = vld [vmem:[%s19408_s7 + $0x1a8] sm:$0xff]  ;;  %v13650_v16 = vld [vmem:[%s19408_s7 + $0x1b0] sm:$0xff] }
0x2b28   :  { %16525 = vmatprep.subr.bf16.mxu1 %v16524_v27 }
0x2bf0   :  { %v18607_v60 = vpop.f32.mrb[98].mxu1 }
0x2bf1   :  { %v18609_v61 = vpop.f32.mrb[99].mxu1  ;;  %v15508_v62 = vpop.f32.mrb[104].mxu0  ;;  %v9159_v54 = vadd.f32 %v18607_v60, %v13516_v53  ;;  %v13579_v60 = vld [vmem:[%s19406_s5 + $0x8] ss:$0 sm:$0xff] }
0x2bf2   :  { %v9330_v63 = vpop.f32.mrb[105].mxu0  ;;  %v9158_v55 = vadd.f32 %v13516_v53, %v18609_v61  ;;  %v13613_v53 = vld [vmem:[%s19431_s25 + $0x9] ss:$0 sm:$0xff] }
0x2bf3   :  { %vm9161_vm3 = vcmp.ge.f32.partialorder %v9159_v54, 0.0 }
0x2bf4   :  { %v15532_v8 = vpop.f32.mrb[100].mxu1  ;;  %v9162_v58 = vmul.f32 0.25, %v9158_v55  ;;  %vm9160_vm6 = vcmp.ge.f32.partialorder %v9158_v55, 0.0 }
0x2bf5   :  { %v15513_v9 = vpop.f32.mrb[106].mxu0  ;;  %v9666_v10 = vpop.f32.mrb[101].mxu1 }
0x2bf6   :  { %v9417_v18 = vpop.f32.mrb[107].mxu0 }
0x2bf7   :  { %15518 = vmatprep.mubr.msk.f32.mxu0 %vm1374_vm13, %v9417_v18 }
0x2bf8   :  { %15519 = vmatmul.mubr.msk.f32.vlgmr.msra.gmra.mrb[108].mxu0 %vm1374_vm13, %v15513_v9  ;;  %v9164_v9 = vsel %vm9160_vm6, %v9158_v55, %v9162_v58 }
0x2bf9   :  { %15525 = vmatprep.mubr.msk.f32.mxu0 %vm1374_vm13, %v9330_v63  ;;  %16495 = vmatpush3.bf16.msra.mxu0 %v16492_v56  ;;  %v9163_v56 = vmul.f32 0.25, %v9159_v54 }
0x2bfa   :  { %16497 = vmatprep.subr.bf16.mxu0 %v16496_v11 }
0x2bfb   :  { %v9165_v5 = vsel %vm9161_vm3, %v9159_v54, %v9163_v56 }
0x2c00   :  { %15526 = vmatmul.mubr.msk.f32.vlgmr.msra.gmra.mrb[108].mxu0 %vm1374_vm13, %v15508_v62 }
0x2c01   :  { %16499 = vmatpush3.bf16.msra.mxu0 %v16496_v11  ;;  %15537 = vmatprep.mubr.msk.f32.mxu0 %vm1374_vm13, %v9666_v10 }
0x2c02   :  { %16509 = vmatprep.subr.bf16.mxu0 %v16508_v47 }
0x2c08   :  { %15538 = vmatmul.mubr.msk.f32.vlgmr.msra.gmra.mrb[108].mxu0 %vm1374_vm13, %v15532_v8 }
0x2c09   :  { %16511 = vmatpush3.bf16.msra.mxu0 %v16508_v47  ;;  %15567 = vmatprep.mubr.msk.f32.mxu0 %vm917_vm5, %v17496_v44  ;;  %v13586_v47 = vld [vmem:[%s19414_s16 + $0x50] sm:$0xff] }
0x2c0a   :  { %16513 = vmatprep.subr.bf16.mxu0 %v16512_v3  ;;  %v16556_v20 = vpack.c.bf16 %v13587_v14, %v13586_v47  ;;  %v13618_v47 = vld [vmem:[%s19408_s7 + $0x170] sm:$0xff]  ;;  %v13669_v14 = vld [vmem:[%s19404_s3 + $0x1c0] sm:$0xff] }
0x2c0d   :  { %16515 = vmatpush3.bf16.msra.mxu0 %v16512_v3 }
0x2c0e   :  { %16517 = vmatprep.subr.bf16.mxu0 %v16516_v21 }
0x2c11   :  { %16519 = vmatpush3.bf16.msra.mxu0 %v16516_v21 }
0x2c12   :  { %16521 = vmatprep.subr.bf16.mxu0 %v16520_v24 }
0x2c15   :  { %16523 = vmatpush3.bf16.msra.mxu0 %v16520_v24  ;;  %v13597_v24 = vld [vmem:[%s19413_s18 + $0x18] sm:$0xff] }
0x2c18   :  { %15568 = vmatmul.mubr.msk.f32.vlgmr.msra.gmra.mrb[110].mxu0 %vm917_vm5, %v17494_v43 }
0x2c19   :  { %15593 = vmatprep.mubr.msk.f32.mxu0 %vm1374_vm13, %v10069_v49  ;;  %v13635_v49 = vld [vmem:[%s19416_s13 + $0x58] sm:$0xff] }
0x2cdb   :  { %v15539_v29 = vpop.f32.mrb[108].mxu0 }
0x2cdc   :  { %v9770_v30 = vadd.f32 %v15539_v29, %v13549_v28  ;;  %v9750_v31 = vpop.f32.mrb[109].mxu0  ;;  %v16568_v29 = vpack.c.bf16 %v13603_v26, %v13602_v25  ;;  %v13673_v25 = vld [vmem:[%s19404_s3 + $0x1e0] sm:$0xff]  ;;  %v13674_v26 = vld [vmem:[%s19404_s3 + $0x1e8] sm:$0xff] }
0x2cdd   :  { %v9769_v33 = vadd.f32 %v13549_v28, %v9750_v31 }
0x2cde   :  { %v9774_v34 = vmul.f32 0.25, %v9770_v30  ;;  %vm9772_vm4 = vcmp.ge.f32.partialorder %v9770_v30, 0.0 }
0x2cdf   :  { %vm9771_vm2 = vcmp.ge.f32.partialorder %v9769_v33, 0.0  ;;  %v9773_v37 = vmul.f32 0.25, %v9769_v33 }
0x2ce0   :  { %v9776_v40 = vsel %vm9772_vm4, %v9770_v30, %v9774_v34  ;;  %v13609_v34 = vld [vmem:[%s19405_s6 + $0x108] sm:$0xff] }
0x2ce1   :  { %v9775_v38 = vsel %vm9771_vm2, %v9769_v33, %v9773_v37  ;;  %v13608_v33 = vld [vmem:[%s19405_s6 + $0x100] sm:$0xff]  ;;  %v13611_v37 = vld [vmem:[%s19405_s6 + $0x118] sm:$0xff] }
0x2ce2   :  { %15548 = vmatprep.mubr.msk.f32.mxu1 %vm69_vm0, %v9775_v38  ;;  %v16572_v35 = vpack.c.bf16 %v13609_v34, %v13608_v33  ;;  %v16576_v38 = vpack.c.bf16 %v13611_v37, %v13610_v36  ;;  %v13636_v33 = vld [vmem:[%s19416_s13 + $0x60] sm:$0xff]  ;;  %v13637_v34 = vld [vmem:[%s19416_s13 + $0x68] sm:$0xff]  ;;  %v13638_v36 = vld [vmem:[%s19416_s13 + $0x70] sm:$0xff] }
0x2ce3   :  { %15549 = vmatmul.mubr.msk.f32.vlgmr.msra.gmra.mrb[102].mxu1 %vm69_vm0, %v9776_v40  ;;  %v13639_v37 = vld [vmem:[%s19416_s13 + $0x78] sm:$0xff] }
0x2ce4   :  { %16527 = vmatpush3.bf16.msra.mxu1 %v16524_v27  ;;  %15586 = vmatprep.mubr.msk.f32.mxu1 %vm917_vm5, %v17496_v44  ;;  %v13588_v44 = vld [vmem:[%s19414_s16 + $0x60] sm:$0xff] }
0x2ce5   :  { %16529 = vmatprep.subr.bf16.mxu1 %v16528_v39  ;;  %v16544_v1 = vpack.c.bf16 %v13589_v48, %v13588_v44  ;;  %v13616_v48 = vld [vmem:[%s19408_s7 + $0x160] sm:$0xff] }
0x2ce8   :  { %16531 = vmatpush3.bf16.msra.mxu1 %v16528_v39  ;;  %v13607_v39 = vld [vmem:[%s19406_s5 + $0x9] ss:$0 sm:$0xff] }
0x2ce9   :  { %16533 = vmatprep.subr.bf16.mxu1 %v16532_v0 }
0x2cec   :  { %16535 = vmatpush3.bf16.msra.mxu1 %v16532_v0 }
0x2ced   :  { %16537 = vmatprep.subr.bf16.mxu1 %v16536_v46 }
0x2cf0   :  { %16539 = vmatpush3.bf16.msra.mxu1 %v16536_v46 }
0x2cf1   :  { %16545 = vmatprep.subr.bf16.mxu1 %v16544_v1 }
0x2cf3   :  { %15587 = vmatmul.mubr.msk.f32.vlgmr.msra.gmra.mrb[104].mxu1 %vm917_vm5, %v17494_v43  ;;  %v16548_v43 = vpack.c.bf16 %v13591_v4, %v13590_v2  ;;  %v13633_v2 = vld [vmem:[%s19416_s13 + $0x48] sm:$0xff]  ;;  %v13634_v4 = vld [vmem:[%s19416_s13 + $0x50] sm:$0xff] }
0x2cf4   :  { %16547 = vmatpush3.bf16.msra.mxu1 %v16544_v1  ;;  %v13632_v1 = vld [vmem:[%s19416_s13 + $0x40] sm:$0xff]  ;;  %v16592_v50 = vpack.c.bf16 %v13635_v49, %v13634_v4  ;;  %v10723_v49 = vld [vmem:[%s19416_s13 + $0x28] sm:$0xff] }
0x2cf5   :  { %16549 = vmatprep.subr.bf16.mxu1 %v16548_v43 }
0x2cf8   :  { %16551 = vmatpush3.bf16.msra.mxu1 %v16548_v43  ;;  %v16588_v43 = vpack.c.bf16 %v13633_v2, %v13632_v1 }
0x2cf9   :  { %16553 = vmatprep.subr.bf16.mxu1 %v16552_v52 }
0x2db6   :  { %v15550_v59 = vpop.f32.mrb[102].mxu1 }
0x2db7   :  { %v9868_v62 = vadd.f32 %v15550_v59, %v13555_v57  ;;  %v9862_v63 = vpop.f32.mrb[103].mxu1 }
0x2db8   :  { %v9863_v7 = vadd.f32 %v13555_v57, %v9862_v63 }
0x2db9   :  { %v18720_v8 = vadd.f32 %v9868_v62, %v9165_v5 }
0x2dba   :  { %v18722_v10 = vadd.f32 %v9863_v7, %v9164_v9 }
0x2dbb   :  { %v9876_v57 = vmul.f32 0.25, %v18720_v8  ;;  %vm9874_vm12 = vcmp.ge.f32.partialorder %v18720_v8, 0.0 }
0x2dbc   :  { %v9875_v59 = vmul.f32 0.25, %v18722_v10  ;;  %vm9873_vm14 = vcmp.ge.f32.partialorder %v18722_v10, 0.0 }
0x2dbd   :  { %v9878_v7 = vsel %vm9874_vm12, %v18720_v8, %v9876_v57  ;;  %v13619_v8 = vld [vmem:[%s19408_s7 + $0x178] sm:$0xff] }
0x2dc6   :  { %v15588_v61 = vpop.f32.mrb[104].mxu1 }
0x2dc7   :  { %v10060_v18 = vadd.f32 %v15588_v61, %v13579_v60  ;;  %v10054_v11 = vpop.f32.mrb[105].mxu1 }
0x2dc8   :  { %v10055_v12 = vadd.f32 %v13579_v60, %v10054_v11  ;;  %v9877_v60 = vsel %vm9873_vm14, %v18722_v10, %v9875_v59  ;;  %v13624_v10 = vld [vmem:[%s19408_s7 + $0x180] sm:$0xff]  ;;  %v13657_v59 = vld [vmem:[%s19416_s13 + $0x88] sm:$0xff] }
0x2dc9   :  { %vm10064_vm7 = vcmp.ge.f32.partialorder %v10060_v18, 0.0  ;;  %v10066_v13 = vmul.f32 0.25, %v10060_v18 }
0x2dca   :  { %vm10063_vm9 = vcmp.ge.f32.partialorder %v10055_v12, 0.0  ;;  %v10065_v15 = vmul.f32 0.25, %v10055_v12 }
0x2dcb   :  { %v10068_v3 = vsel %vm10064_vm7, %v10060_v18, %v10066_v13  ;;  %v13617_v13 = vld [vmem:[%s19408_s7 + $0x168] sm:$0xff] }
0x2dcc   :  { %v10067_v19 = vsel %vm10063_vm9, %v10055_v12, %v10065_v15  ;;  %v13670_v15 = vld [vmem:[%s19404_s3 + $0x1c8] sm:$0xff] }
0x2dcd   :  { %v16540_v21 = vpack.c.bf16 %v10068_v3, %v10067_v19  ;;  %15604 = vmatprep.mubr.msk.f32.mxu1 %vm69_vm0, %v10067_v19  ;;  %v13626_v19 = vld [vmem:[%s19408_s7 + $0x190] sm:$0xff] }
0x2dce   :  { %15605 = vmatmul.mubr.msk.f32.vlgmr.msra.gmra.mrb[106].mxu1 %vm69_vm0, %v10068_v3  ;;  %v13625_v3 = vld [vmem:[%s19408_s7 + $0x188] sm:$0xff] }
0x2dcf   :  { %16541 = vmatprep.subr.bf16.mxu0 %v16540_v21  ;;  %16555 = vmatpush3.bf16.msra.mxu1 %v16552_v52 }
0x2dd0   :  { %16543 = vmatpush3.bf16.msra.mxu0 %v16540_v21  ;;  %16557 = vmatprep.subr.bf16.mxu1 %v16556_v20 }
0x2dd1   :  { %16561 = vmatprep.subr.bf16.mxu0 %v16540_v21 }
0x2dd3   :  { %15594 = vmatmul.mubr.msk.f32.vlgmr.msra.gmra.mrb[112].mxu0 %vm1374_vm13, %v10070_v22  ;;  %16559 = vmatpush3.bf16.msra.mxu1 %v16556_v20  ;;  %v16640_v20 = vpack.c.bf16 %v13670_v15, %v13669_v14  ;;  %v13648_v22 = vld [vmem:[%s19408_s7 + $0x1a0] sm:$0xff] }
0x2dd4   :  { %16563 = vmatpush3.bf16.msra.mxu0 %v16540_v21  ;;  %15622 = vmatprep.mubr.msk.f32.mxu0 %vm1374_vm13, %v13596_v23  ;;  %v13627_v21 = vld [vmem:[%s19408_s7 + $0x198] sm:$0xff]  ;;  %v13671_v23 = vld [vmem:[%s19404_s3 + $0x1d0] sm:$0xff] }
0x2dd5   :  { %16565 = vmatprep.subr.bf16.mxu1 %v16564_v6  ;;  %16573 = vmatprep.subr.bf16.mxu0 %v16572_v35 }
0x2dd7   :  { %15623 = vmatmul.mubr.msk.f32.vlgmr.msra.gmra.mrb[114].mxu0 %vm1374_vm13, %v13597_v24  ;;  %v13672_v24 = vld [vmem:[%s19404_s3 + $0x1d8] sm:$0xff] }
0x2dd8   :  { %16575 = vmatpush3.bf16.msra.mxu0 %v16572_v35  ;;  %v16596_v35 = vpack.c.bf16 %v13637_v34, %v13636_v33  ;;  %v13701_v33 = vld [vmem:[%s19405_s6 + $0xc0] sm:$0xff]  ;;  %v13702_v34 = vld [vmem:[%s19405_s6 + $0xc8] sm:$0xff] }
0x2dd9   :  { %16577 = vmatprep.subr.bf16.mxu0 %v16576_v38 }
0x2ddc   :  { %16579 = vmatpush3.bf16.msra.mxu0 %v16576_v38  ;;  %v16600_v38 = vpack.c.bf16 %v13639_v37, %v13638_v36  ;;  %v13703_v36 = vld [vmem:[%s19405_s6 + $0xd0] sm:$0xff]  ;;  %v13704_v37 = vld [vmem:[%s19405_s6 + $0xd8] sm:$0xff] }
0x2ea6   :  { %v15595_v27 = vpop.f32.mrb[112].mxu0 }
0x2ea7   :  { %v10143_v28 = vpop.f32.mrb[113].mxu0 }
0x2ea8   :  { %15615 = vmatprep.mubr.msk.f32.mxu1 %vm69_vm0, %v10143_v28  ;;  %v16648_v28 = vpack.c.bf16 %v13674_v26, %v13673_v25  ;;  %v13693_v25 = vld [vmem:[%s19408_s7 + $0x120] sm:$0xff]  ;;  %v13714_v26 = vld [vmem:[%s19408_s7 + $0x148] sm:$0xff] }
0x2ea9   :  { %15616 = vmatmul.mubr.msk.f32.vlgmr.msra.gmra.mrb[106].mxu1 %vm69_vm0, %v15595_v27  ;;  %v13651_v27 = vld [vmem:[%s19408_s7 + $0x1b8] sm:$0xff] }
0x2eaa   :  { %16567 = vmatpush3.bf16.msra.mxu1 %v16564_v6  ;;  %v15624_v30 = vpop.f32.mrb[114].mxu0  ;;  %v16644_v6 = vpack.c.bf16 %v13672_v24, %v13671_v23  ;;  %v13682_v24 = vld [vmem:[%s19408_s7 + $0x108] sm:$0xff] }
0x2eab   :  { %16569 = vmatprep.subr.bf16.mxu1 %v16568_v29  ;;  %v10399_v31 = vpop.f32.mrb[115].mxu0 }
0x2eac   :  { %15633 = vmatprep.mubr.msk.f32.mxu1 %vm69_vm0, %v10399_v31 }
0x2eae   :  { %16571 = vmatpush3.bf16.msra.mxu1 %v16568_v29  ;;  %v13675_v29 = vld [vmem:[%s19404_s3 + $0x1f0] sm:$0xff] }
0x2eaf   :  { %16589 = vmatprep.subr.bf16.mxu1 %v16588_v43 }
0x2eb1   :  { %15634 = vmatmul.mubr.msk.f32.vlgmr.msra.gmra.mrb[106].mxu1 %vm69_vm0, %v15624_v30  ;;  %v13676_v30 = vld [vmem:[%s19404_s3 + $0x1f8] sm:$0xff] }
0x2eb2   :  { %16591 = vmatpush3.bf16.msra.mxu1 %v16588_v43  ;;  %v16652_v31 = vpack.c.bf16 %v13676_v30, %v13675_v29  ;;  %v10722_v43 = vld [vmem:[%s19416_s13 + $0x20] sm:$0xff]  ;;  %v13695_v29 = vld [vmem:[%s19408_s7 + $0x130] sm:$0xff]  ;;  %v13716_v30 = vld [vmem:[%s19408_s7 + $0x158] sm:$0xff] }
0x2eb3   :  { %16593 = vmatprep.subr.bf16.mxu1 %v16592_v50 }
0x2eb6   :  { %16595 = vmatpush3.bf16.msra.mxu1 %v16592_v50 }
0x2eb7   :  { %16597 = vmatprep.subr.bf16.mxu1 %v16596_v35 }
0x2eba   :  { %16599 = vmatpush3.bf16.msra.mxu1 %v16596_v35  ;;  %v16664_v35 = vpack.c.bf16 %v13702_v34, %v13701_v33 }
0x2ebb   :  { %16601 = vmatprep.subr.bf16.mxu1 %v16600_v38 }
0x2ebe   :  { %16603 = vmatpush3.bf16.msra.mxu1 %v16600_v38  ;;  %v16668_v38 = vpack.c.bf16 %v13704_v37, %v13703_v36  ;;  %v13751_v36 = vld [vmem:[%s19430_s29 + $0x220] sm:$0xff]  ;;  %v13752_v37 = vld [vmem:[%s19430_s29 + $0x228] sm:$0xff] }
0x2f84   :  { %v15635_v40 = vpop.f32.mrb[106].mxu1 }
0x2f85   :  { %v10505_v41 = vadd.f32 %v15635_v40, %v13607_v39  ;;  %v10485_v42 = vpop.f32.mrb[107].mxu1  ;;  %v10719_v40 = vld [vmem:[%s19416_s13 + $0x8] sm:$0xff] }
0x2f86   :  { %v10504_v0 = vadd.f32 %v13607_v39, %v10485_v42  ;;  %v10718_v39 = vld [vmem:[%s19416_s13] sm:$0xff] }
0x2f87   :  { %v10509_v32 = vmul.f32 0.25, %v10505_v41  ;;  %vm10507_vm10 = vcmp.ge.f32.partialorder %v10505_v41, 0.0  ;;  %v13681_v42 = vld [vmem:[%s19408_s7 + $0x100] sm:$0xff] }
0x2f88   :  { %vm10506_vm11 = vcmp.ge.f32.partialorder %v10504_v0, 0.0  ;;  %v10508_v45 = vmul.f32 0.25, %v10504_v0 }
0x2f89   :  { %v10511_v44 = vsel %vm10507_vm10, %v10505_v41, %v10509_v32  ;;  %v16604_v41 = vpack.c.bf16 %v10719_v40, %v10718_v39  ;;  %v13689_v39 = vld [vmem:[%s19405_s6 + $0xa0] sm:$0xff]  ;;  %v13690_v40 = vld [vmem:[%s19405_s6 + $0xa8] sm:$0xff] }
0x2f8a   :  { %v10510_v46 = vsel %vm10506_vm11, %v10504_v0, %v10508_v45 }
0x2f8b   :  { %15644 = vmatprep.mubr.msk.f32.mxu0 %vm69_vm0, %v10510_v46  ;;  %16605 = vmatprep.subr.bf16.mxu1 %v16604_v41 }
0x2f8c   :  { %15645 = vmatmul.mubr.msk.f32.vlgmr.msra.gmra.mrb[110].mxu0 %vm69_vm0, %v10511_v44  ;;  %v10720_v44 = vld [vmem:[%s19416_s13 + $0x10] sm:$0xff] }
0x2f8d   :  { %15651 = vmatprep.mubr.msk.f32.mxu0 %vm1374_vm13, %v13616_v48  ;;  %v10721_v48 = vld [vmem:[%s19416_s13 + $0x18] sm:$0xff] }
0x2f8e   :  { %v16608_v4 = vpack.c.bf16 %v10721_v48, %v10720_v44  ;;  %v13735_v48 = vld [vmem:[%s19416_s13 + $0xe0] sm:$0xff] }
0x305f   :  { %v15646_v52 = vpop.f32.mrb[110].mxu0 }
0x3060   :  { %v16864_v54 = vadd.f32 %v15646_v52, %v13567_v51  ;;  %v10597_v55 = vpop.f32.mrb[111].mxu0  ;;  %v16612_v52 = vpack.c.bf16 %v10723_v49, %v10722_v43 }
0x3061   :  { %v16866_v56 = vadd.f32 %v13567_v51, %v10597_v55 }
0x3062   :  { %v16865_v58 = vadd.f32 %v16864_v54, %v13613_v53  ;;  %v10725_v54 = vld [vmem:[%s19416_s13 + $0x38] sm:$0xff] }
0x3063   :  { %v16867_v62 = vadd.f32 %v16866_v56, %v13613_v53  ;;  %v10724_v53 = vld [vmem:[%s19416_s13 + $0x30] sm:$0xff] }
0x3064   :  { %vm10609_vm15 = vcmp.ge.f32.partialorder %v16865_v58, 0.0  ;;  %v10611_v63 = vmul.f32 0.25, %v16865_v58  ;;  %v16616_v57 = vpack.c.bf16 %v10725_v54, %v10724_v53 }
0x3065   :  { %vm10608_vm1 = vcmp.ge.f32.partialorder %v16867_v62, 0.0  ;;  %v10610_v5 = vmul.f32 0.25, %v16867_v62 }
0x3066   :  { %v10613_v9 = vsel %vm10609_vm15, %v16865_v58, %v10611_v63  ;;  %v13656_v58 = vld [vmem:[%s19416_s13 + $0x80] sm:$0xff] }
0x3067   :  { %v10615_v61 = vadd.f32 %v10613_v9, %v9878_v7  ;;  %v10612_v18 = vsel %vm10608_vm1, %v16867_v62, %v10610_v5  ;;  %v16624_v63 = vpack.c.bf16 %v13657_v59, %v13656_v58  ;;  %v13658_v7 = vld [vmem:[%s19416_s13 + $0x90] sm:$0xff]  ;;  %v13659_v9 = vld [vmem:[%s19416_s13 + $0x98] sm:$0xff] }
0x3068   :  { %v10614_v11 = vadd.f32 %v10612_v18, %v9877_v60  ;;  %v16628_v60 = vpack.c.bf16 %v13659_v9, %v13658_v7  ;;  %v13661_v18 = vld [vmem:[%s19416_s13 + $0xa8] sm:$0xff] }
0x3069   :  { %v13722_v7 = vld [vmem:[%s19405_s6 + $0xe8] sm:$0xff] }
0x306a   :  { %v16580_v12 = vpack.c.bf16 %v10615_v61, %v10614_v11 }
0x306c   :  { %16581 = vmatprep.subr.bf16.mxu0 %v16580_v12 }
0x306d   :  { %16583 = vmatpush3.bf16.msra.mxu0 %v16580_v12 }
0x306e   :  { %16585 = vmatprep.subr.bf16.mxu0 %v16580_v12 }
0x3070   :  { %15652 = vmatmul.mubr.msk.f32.vlgmr.msra.gmra.mrb[116].mxu0 %vm1374_vm13, %v13617_v13  ;;  %v13662_v13 = vld [vmem:[%s19416_s13 + $0xb0] sm:$0xff] }
0x3071   :  { %16587 = vmatpush3.bf16.msra.mxu0 %v16580_v12  ;;  %15654 = vmatprep.mubr.msk.f32.mxu0 %vm1374_vm13, %v13618_v47  ;;  %v13663_v47 = vld [vmem:[%s19416_s13 + $0xb8] sm:$0xff] }
0x3072   :  { %16621 = vmatprep.subr.bf16.mxu0 %v16580_v12  ;;  %v16636_v15 = vpack.c.bf16 %v13663_v47, %v13662_v13  ;;  %v13724_v13 = vld [vmem:[%s19405_s6 + $0xf8] sm:$0xff] }
0x3074   :  { %15655 = vmatmul.mubr.msk.f32.gmra.mrb[118].mxu0 %vm1374_vm13, %v13619_v8 }
0x3075   :  { %15661 = vmatprep.mubr.msk.f32.mxu0 %vm1374_vm13, %v13624_v10 }
0x3078   :  { %15662 = vmatmul.mubr.msk.f32.vlgmr.msra.gmra.mrb[120].mxu0 %vm1374_vm13, %v13625_v3 }
0x3079   :  { %16623 = vmatpush3.bf16.msra.mxu0 %v16580_v12  ;;  %15664 = vmatprep.mubr.msk.f32.mxu0 %vm1374_vm13, %v13626_v19  ;;  %v13678_v12 = vld [vmem:[%s19406_s5 + $0x7] ss:$0 sm:$0xff] }
0x307a   :  { %16641 = vmatprep.subr.bf16.mxu0 %v16640_v20 }
0x307c   :  { %15665 = vmatmul.mubr.msk.f32.gmra.mrb[122].mxu0 %vm1374_vm13, %v13627_v21 }
0x307d   :  { %15715 = vmatprep.mubr.msk.f32.mxu0 %vm1374_vm13, %v13648_v22 }
0x3080   :  { %15716 = vmatmul.mubr.msk.f32.vlgmr.msra.gmra.mrb[124].mxu0 %vm1374_vm13, %v13649_v17  ;;  %v13683_v17 = vld [vmem:[%s19408_s7 + $0x110] sm:$0xff] }
0x3081   :  { %16643 = vmatpush3.bf16.msra.mxu0 %v16640_v20  ;;  %15718 = vmatprep.mubr.msk.f32.mxu0 %vm1374_vm13, %v13650_v16  ;;  %v13713_v16 = vld [vmem:[%s19408_s7 + $0x140] sm:$0xff] }
0x3082   :  { %16645 = vmatprep.subr.bf16.mxu0 %v16644_v6 }
0x3084   :  { %15719 = vmatmul.mubr.msk.f32.gmra.mrb[126].mxu0 %vm1374_vm13, %v13651_v27  ;;  %v13715_v27 = vld [vmem:[%s19408_s7 + $0x150] sm:$0xff] }
0x3085   :  { %16647 = vmatpush3.bf16.msra.mxu0 %v16644_v6  ;;  %15759 = vmatprep.mubr.msk.f32.mxu0 %vm917_vm5, %v10614_v11  ;;  %v13684_v6 = vld [vmem:[%s19408_s7 + $0x118] sm:$0xff] }
0x3086   :  { %16649 = vmatprep.subr.bf16.mxu0 %v16648_v28 }
0x3089   :  { %16651 = vmatpush3.bf16.msra.mxu0 %v16648_v28  ;;  %v13694_v28 = vld [vmem:[%s19408_s7 + $0x128] sm:$0xff] }
0x308a   :  { %16653 = vmatprep.subr.bf16.mxu0 %v16652_v31 }
0x308d   :  { %16655 = vmatpush3.bf16.msra.mxu0 %v16652_v31  ;;  %v13696_v31 = vld [vmem:[%s19408_s7 + $0x138] sm:$0xff] }
0x3090   :  { %15760 = vmatmul.mubr.msk.f32.vlgmr.msra.gmra.mrb[128].mxu0 %vm917_vm5, %v10615_v61  ;;  %v13660_v61 = vld [vmem:[%s19416_s13 + $0xa0] sm:$0xff] }
0x3091   :  { %15766 = vmatprep.mubr.msk.f32.mxu0 %vm1374_vm13, %v13681_v42  ;;  %v16632_v11 = vpack.c.bf16 %v13661_v18, %v13660_v61  ;;  %v13731_v42 = vld [vmem:[%s19416_s13 + $0xc0] sm:$0xff] }
0x3143   :  { %v15653_v0 = vpop.f32.mrb[116].mxu0 }
0x3144   :  { %v10699_v32 = vpop.f32.mrb[117].mxu0 }
0x3147   :  { %v15656_v45 = vpop.f32.mrb[118].mxu0 }
0x3148   :  { %v10709_v46 = vpop.f32.mrb[119].mxu0 }
0x314b   :  { %v15663_v1 = vpop.f32.mrb[120].mxu0 }
0x314c   :  { %v10809_v2 = vpop.f32.mrb[121].mxu0 }
0x314d   :  { %15683 = vmatprep.mubr.msk.f32.mxu1 %vm917_vm5, %v10809_v2 }
0x314e   :  { %15684 = vmatmul.mubr.msk.f32.vlgmr.msra.gmra.mrb[108].mxu1 %vm917_vm5, %v15663_v1  ;;  %v13736_v1 = vld [vmem:[%s19416_s13 + $0xe8] sm:$0xff] }
0x314f   :  { %16607 = vmatpush3.bf16.msra.mxu1 %v16604_v41  ;;  %v15666_v50 = vpop.f32.mrb[122].mxu0  ;;  %v16672_v41 = vpack.c.bf16 %v13690_v40, %v13689_v39  ;;  %v16700_v2 = vpack.c.bf16 %v13736_v1, %v13735_v48  ;;  %v16748_v40 = vpack.c.bf16 %v13752_v37, %v13751_v36  ;;  %v13757_v48 = vld [vmem:[%s19430_s29 + $0x250] sm:$0xff]  ;;  %v13758_v1 = vld [vmem:[%s19430_s29 + $0x258] sm:$0xff] }
0x3150   :  { %v10819_v51 = vpop.f32.mrb[123].mxu0  ;;  %16609 = vmatprep.subr.bf16.mxu1 %v16608_v4 }
0x3151   :  { %15686 = vmatprep.mubr.msk.f32.mxu1 %vm917_vm5, %v10819_v51 }
0x3152   :  { %15687 = vmatmul.mubr.msk.f32.gmra.mrb[110].mxu1 %vm917_vm5, %v15666_v50 }
0x3153   :  { %16611 = vmatpush3.bf16.msra.mxu1 %v16608_v4  ;;  %15705 = vmatprep.mubr.msk.f32.mxu1 %vm917_vm5, %v10699_v32  ;;  %v15717_v55 = vpop.f32.mrb[124].mxu0  ;;  %v13733_v32 = vld [vmem:[%s19416_s13 + $0xd0] sm:$0xff] }
0x3154   :  { %16613 = vmatprep.subr.bf16.mxu1 %v16612_v52  ;;  %v11114_v56 = vpop.f32.mrb[125].mxu0 }
0x3157   :  { %16615 = vmatpush3.bf16.msra.mxu1 %v16612_v52  ;;  %v15720_v62 = vpop.f32.mrb[126].mxu0 }
0x3158   :  { %16617 = vmatprep.subr.bf16.mxu1 %v16616_v57  ;;  %v11124_v5 = vpop.f32.mrb[127].mxu0 }
0x315b   :  { %16619 = vmatpush3.bf16.msra.mxu1 %v16616_v57 }
0x315c   :  { %16625 = vmatprep.subr.bf16.mxu1 %v16624_v63 }
0x315e   :  { %15706 = vmatmul.mubr.msk.f32.vlgmr.msra.gmra.mrb[108].mxu1 %vm917_vm5, %v15653_v0  ;;  %v13732_v0 = vld [vmem:[%s19416_s13 + $0xc8] sm:$0xff] }
0x315f   :  { %15708 = vmatprep.mubr.msk.f32.mxu1 %vm917_vm5, %v10709_v46  ;;  %16627 = vmatpush3.bf16.msra.mxu1 %v16624_v63  ;;  %v13734_v46 = vld [vmem:[%s19416_s13 + $0xd8] sm:$0xff] }
0x3160   :  { %16629 = vmatprep.subr.bf16.mxu1 %v16628_v60  ;;  %v16696_v44 = vpack.c.bf16 %v13734_v46, %v13733_v32  ;;  %v13756_v46 = vld [vmem:[%s19430_s29 + $0x248] sm:$0xff] }
0x3162   :  { %15709 = vmatmul.mubr.msk.f32.gmra.mrb[110].mxu1 %vm917_vm5, %v15656_v45  ;;  %v16692_v45 = vpack.c.bf16 %v13732_v0, %v13731_v42  ;;  %v13753_v42 = vld [vmem:[%s19430_s29 + $0x230] sm:$0xff]  ;;  %v13754_v0 = vld [vmem:[%s19430_s29 + $0x238] sm:$0xff] }
0x3163   :  { %16631 = vmatpush3.bf16.msra.mxu1 %v16628_v60  ;;  %15737 = vmatprep.mubr.msk.f32.mxu1 %vm917_vm5, %v11114_v56  ;;  %v15761_v8 = vpop.f32.mrb[128].mxu0  ;;  %v13692_v56 = vld [vmem:[%s19405_s6 + $0xb8] sm:$0xff]  ;;  %v16752_v32 = vpack.c.bf16 %v13754_v0, %v13753_v42 }
0x3164   :  { %v11361_v10 = vadd.f32 %v15761_v8, %v13678_v12  ;;  %v11355_v14 = vpop.f32.mrb[129].mxu0  ;;  %16633 = vmatprep.subr.bf16.mxu1 %v16632_v11  ;;  %v16937_v8 = vld [vmem:[%s19428_s20] sm:$0xff] }
0x3165   :  { %v11356_v3 = vadd.f32 %v13678_v12, %v11355_v14  ;;  %v13723_v12 = vld [vmem:[%s19405_s6 + $0xf0] sm:$0xff]  ;;  %v13738_v14 = vld [vmem:[%s19416_s13 + $0xf8] sm:$0xff] }
0x3166   :  { %vm11365_vm8 = vcmp.ge.f32.partialorder %v11361_v10, 0.0  ;;  %v11367_v19 = vmul.f32 0.25, %v11361_v10  ;;  %v16688_v47 = vpack.c.bf16 %v13724_v13, %v13723_v12  ;;  %v12146_v12 = vld [vmem:[%s19417_s17 + $0x30] sm:$0xff]  ;;  %v12147_v13 = vld [vmem:[%s19417_s17 + $0x38] sm:$0xff] }
0x3167   :  { %vm11364_vm4 = vcmp.ge.f32.partialorder %v11356_v3, 0.0  ;;  %v11366_v20 = vmul.f32 0.25, %v11356_v3  ;;  %16635 = vmatpush3.bf16.msra.mxu1 %v16632_v11 }
0x3168   :  { %v11369_v21 = vsel %vm11365_vm8, %v11361_v10, %v11367_v19  ;;  %16637 = vmatprep.subr.bf16.mxu1 %v16636_v15  ;;  %v13737_v10 = vld [vmem:[%s19416_s13 + $0xf0] sm:$0xff]  ;;  %v13748_v19 = vld [vmem:[%s19430_s29 + $0x208] sm:$0xff] }
0x3169   :  { %v11368_v22 = vsel %vm11364_vm4, %v11356_v3, %v11366_v20  ;;  %v13747_v3 = vld [vmem:[%s19430_s29 + $0x200] sm:$0xff] }
0x316a   :  { %v16656_v23 = vpack.c.bf16 %v11369_v21, %v11368_v22  ;;  %v16740_v20 = vpack.c.bf16 %v13748_v19, %v13747_v3  ;;  %v13730_v21 = vld [vmem:[%s19431_s25 + $0x5] ss:$0 sm:$0xff]  ;;  %v12151_v3 = vld [vmem:[%s19417_s17 + $0x58] sm:$0xff] }
0x316b   :  { %16639 = vmatpush3.bf16.msra.mxu1 %v16636_v15  ;;  %v16704_v15 = vpack.c.bf16 %v13738_v14, %v13737_v10  ;;  %v12149_v10 = vld [vmem:[%s19417_s17 + $0x48] sm:$0xff] }
0x316c   :  { %16657 = vmatprep.subr.bf16.mxu0 %v16656_v23  ;;  %16681 = vmatprep.subr.bf16.mxu1 %v16656_v23 }
0x316d   :  { %16659 = vmatpush3.bf16.msra.mxu0 %v16656_v23 }
0x316e   :  { %15738 = vmatmul.mubr.msk.f32.vlgmr.msra.gmra.mrb[108].mxu1 %vm917_vm5, %v15717_v55  ;;  %16661 = vmatprep.subr.bf16.mxu0 %v16656_v23  ;;  %v13691_v55 = vld [vmem:[%s19405_s6 + $0xb0] sm:$0xff] }
0x316f   :  { %15740 = vmatprep.mubr.msk.f32.mxu1 %vm917_vm5, %v11124_v5  ;;  %16683 = vmatpush3.bf16.msra.mxu1 %v16656_v23  ;;  %v16676_v63 = vpack.c.bf16 %v13692_v56, %v13691_v55  ;;  %v13721_v5 = vld [vmem:[%s19405_s6 + $0xe0] sm:$0xff]  ;;  %v13762_v55 = vld [vmem:[%s19430_s29 + $0x278] sm:$0xff] }
0x3170   :  { %15767 = vmatmul.mubr.msk.f32.vlgmr.msra.gmra.mrb[130].mxu0 %vm1374_vm13, %v13682_v24  ;;  %16693 = vmatprep.subr.bf16.mxu1 %v16692_v45  ;;  %v16684_v11 = vpack.c.bf16 %v13722_v7, %v13721_v5  ;;  %v12142_v7 = vld [vmem:[%s19417_s17 + $0x10] sm:$0xff] }
0x3171   :  { %16663 = vmatpush3.bf16.msra.mxu0 %v16656_v23  ;;  %15769 = vmatprep.mubr.msk.f32.mxu0 %vm1374_vm13, %v13683_v17 }
0x3172   :  { %15741 = vmatmul.mubr.msk.f32.gmra.mrb[110].mxu1 %vm917_vm5, %v15720_v62  ;;  %16665 = vmatprep.subr.bf16.mxu0 %v16664_v35 }
0x3173   :  { %15814 = vmatprep.mubr.msk.f32.mxu1 %vm1374_vm13, %v13713_v16 }
0x3174   :  { %15770 = vmatmul.mubr.msk.f32.gmra.mrb[132].mxu0 %vm1374_vm13, %v13684_v6  ;;  %v13749_v6 = vld [vmem:[%s19430_s29 + $0x210] sm:$0xff] }
0x3175   :  { %15776 = vmatprep.mubr.msk.f32.mxu0 %vm1374_vm13, %v13693_v25  ;;  %v13750_v25 = vld [vmem:[%s19430_s29 + $0x218] sm:$0xff] }
0x3176   :  { %15815 = vmatmul.mubr.msk.f32.vlgmr.msra.gmra.mrb[112].mxu1 %vm1374_vm13, %v13714_v26  ;;  %v16744_v33 = vpack.c.bf16 %v13750_v25, %v13749_v6  ;;  %v13785_v6 = vld [vmem:[%s19414_s16 + $0x20] sm:$0xff] }
0x3177   :  { %15817 = vmatprep.mubr.msk.f32.mxu1 %vm1374_vm13, %v13715_v27  ;;  %16695 = vmatpush3.bf16.msra.mxu1 %v16692_v45  ;;  %v13755_v45 = vld [vmem:[%s19430_s29 + $0x240] sm:$0xff] }
0x3178   :  { %15777 = vmatmul.mubr.msk.f32.vlgmr.msra.gmra.mrb[134].mxu0 %vm1374_vm13, %v13694_v28  ;;  %16697 = vmatprep.subr.bf16.mxu1 %v16696_v44  ;;  %v13668_v25 = vld [vmem:[%s19418_s14] ss:$0 sm:$0xff] }
0x3179   :  { %15779 = vmatprep.mubr.msk.f32.mxu0 %vm1374_vm13, %v13695_v29  ;;  %16667 = vmatpush3.bf16.msra.mxu0 %v16664_v35 }
0x317a   :  { %15818 = vmatmul.mubr.msk.f32.gmra.mrb[114].mxu1 %vm1374_vm13, %v13716_v30  ;;  %16669 = vmatprep.subr.bf16.mxu0 %v16668_v38 }
0x317b   :  { %16699 = vmatpush3.bf16.msra.mxu1 %v16696_v44  ;;  %v16756_v44 = vpack.c.bf16 %v13756_v46, %v13755_v45 }
0x317c   :  { %15780 = vmatmul.mubr.msk.f32.gmra.mrb[136].mxu0 %vm1374_vm13, %v13696_v31  ;;  %16701 = vmatprep.subr.bf16.mxu1 %v16700_v2 }
0x317d   :  { %16671 = vmatpush3.bf16.msra.mxu0 %v16668_v38 }
0x317e   :  { %16673 = vmatprep.subr.bf16.mxu0 %v16672_v41 }
0x317f   :  { %16703 = vmatpush3.bf16.msra.mxu1 %v16700_v2  ;;  %v16760_v2 = vpack.c.bf16 %v13758_v1, %v13757_v48  ;;  %v13764_v48 = vld [vmem:[%s19431_s25 + $0x6] ss:$0 sm:$0xff] }
0x3180   :  { %16705 = vmatprep.subr.bf16.mxu1 %v16704_v15 }
0x3183   :  { %16707 = vmatpush3.bf16.msra.mxu1 %v16704_v15  ;;  %v12150_v15 = vld [vmem:[%s19417_s17 + $0x50] sm:$0xff] }
0x3184   :  { %16741 = vmatprep.subr.bf16.mxu1 %v16740_v20  ;;  %v16728_v19 = vpack.c.bf16 %v12151_v3, %v12150_v15  ;;  %v13773_v3 = vld [vmem:[%s19415_s15 + $0x60] sm:$0xff] }
0x3241   :  { %v19037_v4 = vpop.f32.mrb[108].mxu1 }
0x3242   :  { %v19039_v43 = vpop.f32.mrb[109].mxu1 }
0x3243   :  { %v15768_v49 = vpop.f32.mrb[130].mxu0 }
0x3244   :  { %v11453_v50 = vpop.f32.mrb[131].mxu0 }
0x3245   :  { %v19041_v51 = vpop.f32.mrb[110].mxu1 }
0x3246   :  { %v19043_v52 = vpop.f32.mrb[111].mxu1 }
0x3247   :  { %v15771_v53 = vpop.f32.mrb[132].mxu0 }
0x3248   :  { %v11463_v54 = vpop.f32.mrb[133].mxu0 }
0x3249   :  { %v15816_v57 = vpop.f32.mrb[112].mxu1 }
0x324a   :  { %v11861_v58 = vpop.f32.mrb[113].mxu1 }
0x324b   :  { %v15778_v59 = vpop.f32.mrb[134].mxu0 }
0x324c   :  { %v11560_v62 = vpop.f32.mrb[135].mxu0 }
0x324d   :  { %15790 = vmatprep.mubr.msk.f32.mxu0 %vm69_vm0, %v11560_v62  ;;  %v15819_v9 = vpop.f32.mrb[114].mxu1  ;;  %v12140_v62 = vld [vmem:[%s19417_s17] sm:$0xff] }
0x324e   :  { %15791 = vmatmul.mubr.msk.f32.vlgmr.msra.gmra.mrb[138].mxu0 %vm69_vm0, %v15778_v59  ;;  %v11871_v60 = vpop.f32.mrb[115].mxu1  ;;  %v16940_v59 = vld [vmem:[%s19428_s20 + $0x18] sm:$0xff] }
0x324f   :  { %v15781_v61 = vpop.f32.mrb[136].mxu0  ;;  %16675 = vmatpush3.bf16.msra.mxu0 %v16672_v41 }
0x3250   :  { %v11570_v18 = vpop.f32.mrb[137].mxu0  ;;  %16677 = vmatprep.subr.bf16.mxu0 %v16676_v63 }
0x3251   :  { %15793 = vmatprep.mubr.msk.f32.mxu0 %vm69_vm0, %v11570_v18  ;;  %v12145_v18 = vld [vmem:[%s19417_s17 + $0x28] sm:$0xff] }
0x3252   :  { %15794 = vmatmul.mubr.msk.f32.gmra.mrb[140].mxu0 %vm69_vm0, %v15781_v61 }
0x3253   :  { %16679 = vmatpush3.bf16.msra.mxu0 %v16676_v63  ;;  %15804 = vmatprep.mubr.msk.f32.mxu0 %vm69_vm0, %v11453_v50  ;;  %v13760_v50 = vld [vmem:[%s19430_s29 + $0x268] sm:$0xff] }
0x3254   :  { %16685 = vmatprep.subr.bf16.mxu0 %v16684_v11  ;;  %v12141_v63 = vld [vmem:[%s19417_s17 + $0x8] sm:$0xff] }
0x3255   :  { %v16708_v5 = vpack.c.bf16 %v12141_v63, %v12140_v62 }
0x3256   :  { %15805 = vmatmul.mubr.msk.f32.vlgmr.msra.gmra.mrb[138].mxu0 %vm69_vm0, %v15768_v49  ;;  %v13759_v49 = vld [vmem:[%s19430_s29 + $0x260] sm:$0xff] }
0x3257   :  { %15807 = vmatprep.mubr.msk.f32.mxu0 %vm69_vm0, %v11463_v54  ;;  %16687 = vmatpush3.bf16.msra.mxu0 %v16684_v11  ;;  %v13761_v54 = vld [vmem:[%s19430_s29 + $0x270] sm:$0xff] }
0x3258   :  { %16689 = vmatprep.subr.bf16.mxu0 %v16688_v47  ;;  %v16768_v56 = vpack.c.bf16 %v13762_v55, %v13761_v54 }
0x325a   :  { %15808 = vmatmul.mubr.msk.f32.gmra.mrb[140].mxu0 %vm69_vm0, %v15771_v53  ;;  %v16764_v53 = vpack.c.bf16 %v13760_v50, %v13759_v49 }
0x325b   :  { %16691 = vmatpush3.bf16.msra.mxu0 %v16688_v47  ;;  %15828 = vmatprep.mubr.msk.f32.mxu0 %vm69_vm0, %v11861_v58  ;;  %v16939_v58 = vld [vmem:[%s19428_s20 + $0x10] sm:$0xff]  ;;  %v16720_v47 = vpack.c.bf16 %v12147_v13, %v12146_v12 }
0x325c   :  { %16709 = vmatprep.subr.bf16.mxu0 %v16708_v5  ;;  %v13771_v13 = vld [vmem:[%s19415_s15 + $0x50] sm:$0xff] }
0x325e   :  { %15829 = vmatmul.mubr.msk.f32.vlgmr.msra.gmra.mrb[138].mxu0 %vm69_vm0, %v15816_v57  ;;  %v16938_v57 = vld [vmem:[%s19428_s20 + $0x8] sm:$0xff] }
0x325f   :  { %15831 = vmatprep.mubr.msk.f32.mxu0 %vm69_vm0, %v11871_v60  ;;  %16711 = vmatpush3.bf16.msra.mxu0 %v16708_v5  ;;  %v12144_v60 = vld [vmem:[%s19417_s17 + $0x20] sm:$0xff] }
0x3260   :  { %v16716_v11 = vpack.c.bf16 %v12145_v18, %v12144_v60  ;;  %v13770_v60 = vld [vmem:[%s19415_s15 + $0x48] sm:$0xff] }
0x3262   :  { %15832 = vmatmul.mubr.msk.f32.gmra.mrb[140].mxu0 %vm69_vm0, %v15819_v9  ;;  %v12143_v9 = vld [vmem:[%s19417_s17 + $0x18] sm:$0xff] }
0x3263   :  { %15888 = vmatprep.mubr.f32.mxu0 %v16937_v8  ;;  %v16712_v61 = vpack.c.bf16 %v12143_v9, %v12142_v7  ;;  %v13769_v9 = vld [vmem:[%s19415_s15 + $0x40] sm:$0xff] }
0x3264   :  { %v16780_v12 = vpack.c.bf16 %v13770_v60, %v13769_v9  ;;  %v13812_v9 = vld [vmem:[%s19416_s13 + $0x128] sm:$0xff] }
0x3265   :  { %16713 = vmatprep.subr.bf16.mxu0 %v16712_v61 }
0x3266   :  { %16715 = vmatpush3.bf16.msra.mxu0 %v16712_v61 }
0x3267   :  { %16717 = vmatprep.subr.bf16.mxu0 %v16716_v11 }
0x326a   :  { %16719 = vmatpush3.bf16.msra.mxu0 %v16716_v11 }
0x326b   :  { %16721 = vmatprep.subr.bf16.mxu0 %v16720_v47 }
0x326e   :  { %16723 = vmatpush3.bf16.msra.mxu0 %v16720_v47  ;;  %v13772_v47 = vld [vmem:[%s19415_s15 + $0x58] sm:$0xff] }
0x326f   :  { %v16784_v15 = vpack.c.bf16 %v13772_v47, %v13771_v13 }
0x3331   :  { %v15830_v22 = vpop.f32.mrb[138].mxu0 }
0x3332   :  { %v11995_v23 = vadd.f32 %v15830_v22, %v13730_v21  ;;  %v11963_v24 = vpop.f32.mrb[139].mxu0 }
0x3333   :  { %v11994_v17 = vadd.f32 %v13730_v21, %v11963_v24  ;;  %v12155_v24 = vld [vmem:[%s19417_s17 + $0x78] sm:$0xff] }
0x3334   :  { %v12003_v16 = vmul.f32 0.25, %v11995_v23  ;;  %vm11999_vm13 = vcmp.ge.f32.partialorder %v11995_v23, 0.0 }
0x3335   :  { %vm11998_vm2 = vcmp.ge.f32.partialorder %v11994_v17, 0.0  ;;  %v12002_v26 = vmul.f32 0.25, %v11994_v17  ;;  %v15833_v27 = vpop.f32.mrb[140].mxu0 }
0x3336   :  { %v11997_v28 = vadd.f32 %v15833_v27, %v13730_v21  ;;  %v11973_v29 = vpop.f32.mrb[141].mxu0  ;;  %v12007_v34 = vsel %vm11999_vm13, %v11995_v23, %v12003_v16  ;;  %v12154_v23 = vld [vmem:[%s19417_s17 + $0x70] sm:$0xff]  ;;  %v12371_v16 = vld [vmem:[%s19414_s16] sm:$0xff]  ;;  %v11250_v27 = vadd.f32 %v13668_v25, %v19039_v43 }
0x3337   :  { %v11996_v30 = vadd.f32 %v13730_v21, %v11973_v29  ;;  %v12006_v31 = vsel %vm11998_vm2, %v11994_v17, %v12002_v26  ;;  %v12153_v21 = vld [vmem:[%s19417_s17 + $0x68] sm:$0xff]  ;;  %v16736_v17 = vpack.c.bf16 %v12155_v24, %v12154_v23  ;;  %v11251_v26 = vadd.f32 %v19037_v4, %v13668_v25  ;;  %v13775_v24 = vld [vmem:[%s19415_s15 + $0x70] sm:$0xff] }
0x3338   :  { %v12005_v35 = vmul.f32 0.25, %v11997_v28  ;;  %15850 = vmatprep.mubr.msk.f32.mxu1 %vm917_vm5, %v12006_v31  ;;  %vm12001_vm3 = vcmp.ge.f32.partialorder %v11997_v28, 0.0  ;;  %v11253_v29 = vadd.f32 %v19041_v51, %v13668_v25  ;;  %v11258_v31 = vmul.f32 0.25, %v11250_v27 }
0x3339   :  { %vm12000_vm6 = vcmp.ge.f32.partialorder %v11996_v30, 0.0  ;;  %v12004_v38 = vmul.f32 0.25, %v11996_v30  ;;  %15851 = vmatmul.mubr.msk.f32.vlgmr.msra.gmra.mrb[116].mxu1 %vm917_vm5, %v12007_v34  ;;  %vm11255_vm7 = vcmp.ge.f32.partialorder %v11251_v26, 0.0  ;;  %vm11254_vm9 = vcmp.ge.f32.partialorder %v11250_v27, 0.0 }
0x333a   :  { %16743 = vmatpush3.bf16.msra.mxu1 %v16740_v20  ;;  %v12009_v41 = vsel %vm12001_vm3, %v11997_v28, %v12005_v35  ;;  %v12152_v20 = vld [vmem:[%s19417_s17 + $0x60] sm:$0xff]  ;;  %v11259_v28 = vmul.f32 0.25, %v11251_v26  ;;  %v11261_v37 = vmul.f32 0.25, %v11253_v29  ;;  %vm11257_vm10 = vcmp.ge.f32.partialorder %v11253_v29, 0.0 }
0x333b   :  { %v12008_v39 = vsel %vm12000_vm6, %v11996_v30, %v12004_v38  ;;  %16745 = vmatprep.subr.bf16.mxu1 %v16744_v33  ;;  %v16732_v22 = vpack.c.bf16 %v12153_v21, %v12152_v20  ;;  %v13740_v30 = vld [vmem:[%s19418_s14 + $0x1] ss:$0 sm:$0xff]  ;;  %v11262_v51 = vsel %vm11254_vm9, %v11250_v27, %v11258_v31  ;;  %v13787_v20 = vld [vmem:[%s19414_s16 + $0x30] sm:$0xff]  ;;  %v12374_v21 = vld [vmem:[%s19414_s16 + $0x18] sm:$0xff] }
0x333c   :  { %15853 = vmatprep.mubr.msk.f32.mxu1 %vm917_vm5, %v12008_v39  ;;  %v11263_v38 = vsel %vm11255_vm7, %v11251_v26, %v11259_v28  ;;  %v12474_v27 = vld [vmem:[%s19415_s15 + $0x10] sm:$0xff]  ;;  %v12475_v28 = vld [vmem:[%s19415_s15 + $0x18] sm:$0xff]  ;;  %v12477_v31 = vld [vmem:[%s19415_s15 + $0x28] sm:$0xff] }
0x333d   :  { %15854 = vmatmul.mubr.msk.f32.gmra.mrb[118].mxu1 %vm917_vm5, %v12009_v41 }
0x333e   :  { %16747 = vmatpush3.bf16.msra.mxu1 %v16744_v33  ;;  %15926 = vmatprep.mubr.f32.mxu1 %v16937_v8  ;;  %v12148_v8 = vld [vmem:[%s19417_s17 + $0x40] sm:$0xff]  ;;  %v11252_v33 = vadd.f32 %v13668_v25, %v19043_v52  ;;  %v12473_v25 = vld [vmem:[%s19415_s15 + $0x8] sm:$0xff] }
0x333f   :  { %16749 = vmatprep.subr.bf16.mxu1 %v16748_v40  ;;  %v16724_v14 = vpack.c.bf16 %v12149_v10, %v12148_v8  ;;  %v12372_v8 = vld [vmem:[%s19414_s16 + $0x8] sm:$0xff] }
0x3340   :  { %v11260_v43 = vmul.f32 0.25, %v11252_v33  ;;  %vm11256_vm11 = vcmp.ge.f32.partialorder %v11252_v33, 0.0  ;;  %v13786_v10 = vld [vmem:[%s19414_s16 + $0x28] sm:$0xff] }
0x3341   :  { %16725 = vmatprep.subr.bf16.mxu0 %v16724_v14 }
0x3342   :  { %16751 = vmatpush3.bf16.msra.mxu1 %v16748_v40  ;;  %16727 = vmatpush3.bf16.msra.mxu0 %v16724_v14  ;;  %v11264_v46 = vsel %vm11256_vm11, %v11252_v33, %v11260_v43  ;;  %v12373_v14 = vld [vmem:[%s19414_s16 + $0x10] sm:$0xff] }
0x3343   :  { %16753 = vmatprep.subr.bf16.mxu1 %v16752_v32  ;;  %16729 = vmatprep.subr.bf16.mxu0 %v16728_v19  ;;  %v13795_v43 = vld [vmem:[%s19415_s15 + $0x90] sm:$0xff] }
0x3346   :  { %16755 = vmatpush3.bf16.msra.mxu1 %v16752_v32  ;;  %16731 = vmatpush3.bf16.msra.mxu0 %v16728_v19  ;;  %v11265_v32 = vsel %vm11257_vm10, %v11253_v29, %v11261_v37  ;;  %v13774_v19 = vld [vmem:[%s19415_s15 + $0x68] sm:$0xff]  ;;  %v16800_v29 = vpack.c.bf16 %v12475_v28, %v12474_v27  ;;  %v13793_v37 = vld [vmem:[%s19415_s15 + $0x80] sm:$0xff] }
0x3347   :  { %16757 = vmatprep.subr.bf16.mxu1 %v16756_v44  ;;  %16733 = vmatprep.subr.bf16.mxu0 %v16732_v22  ;;  %v16788_v23 = vpack.c.bf16 %v13774_v19, %v13773_v3 }
0x334a   :  { %16759 = vmatpush3.bf16.msra.mxu1 %v16756_v44  ;;  %16735 = vmatpush3.bf16.msra.mxu0 %v16732_v22  ;;  %v13788_v22 = vld [vmem:[%s19414_s16 + $0x38] sm:$0xff] }
0x334b   :  { %16761 = vmatprep.subr.bf16.mxu1 %v16760_v2  ;;  %16737 = vmatprep.subr.bf16.mxu0 %v16736_v17 }
0x334e   :  { %16763 = vmatpush3.bf16.msra.mxu1 %v16760_v2  ;;  %16739 = vmatpush3.bf16.msra.mxu0 %v16736_v17  ;;  %v13776_v17 = vld [vmem:[%s19415_s15 + $0x78] sm:$0xff] }
0x334f   :  { %16765 = vmatprep.subr.bf16.mxu1 %v16764_v53 }
0x3351   :  { %15889 = vmatmul.mubr.f32.vlgmr.msra.gmra.mrb[142].mxu0 %v16938_v57 }
0x3352   :  { %16767 = vmatpush3.bf16.msra.mxu1 %v16764_v53  ;;  %15891 = vmatprep.mubr.f32.mxu0 %v16939_v58 }
0x3353   :  { %16769 = vmatprep.subr.bf16.mxu1 %v16768_v56 }
0x3355   :  { %15892 = vmatmul.mubr.f32.gmra.mrb[144].mxu0 %v16940_v59 }
0x3356   :  { %16771 = vmatpush3.bf16.msra.mxu1 %v16768_v56  ;;  %15940 = vmatprep.mubr.msk.f32.mxu0 %vm69_vm0, %v12371_v16  ;;  %v16792_v16 = vpack.c.bf16 %v13776_v17, %v13775_v24 }
0x3359   :  { %15927 = vmatmul.mubr.f32.vlgmr.msra.gmra.mrb[120].mxu1 %v16938_v57 }
0x335a   :  { %15929 = vmatprep.mubr.f32.mxu1 %v16939_v58 }
0x335d   :  { %15930 = vmatmul.mubr.f32.gmra.mrb[122].mxu1 %v16940_v59 }
0x335e   :  { %15998 = vmatprep.mubr.msk.f32.mxu1 %vm69_vm0, %v13785_v6  ;;  %v12472_v6 = vld [vmem:[%s19415_s15] sm:$0xff] }
0x335f   :  { %v16796_v26 = vpack.c.bf16 %v12473_v25, %v12472_v6  ;;  %v13746_v25 = vld [vmem:[%s19418_s14 + $0x2] ss:$0 sm:$0xff] }
0x340c   :  { %v15852_v34 = vpop.f32.mrb[116].mxu1 }
0x340d   :  { %v12111_v35 = vadd.f32 %v15852_v34, %v13740_v30  ;;  %v12105_v36 = vpop.f32.mrb[117].mxu1  ;;  %v12478_v34 = vld [vmem:[%s19415_s15 + $0x30] sm:$0xff] }
0x340e   :  { %v12106_v4 = vadd.f32 %v13740_v30, %v12105_v36 }
0x340f   :  { %v19214_v39 = vadd.f32 %v12111_v35, %v11263_v38  ;;  %v12479_v35 = vld [vmem:[%s19415_s15 + $0x38] sm:$0xff]  ;;  %v13794_v38 = vld [vmem:[%s19415_s15 + $0x88] sm:$0xff] }
0x3410   :  { %v19216_v40 = vadd.f32 %v12106_v4, %v11262_v51  ;;  %v15855_v41 = vpop.f32.mrb[118].mxu1  ;;  %v16808_v36 = vpack.c.bf16 %v12479_v35, %v12478_v34  ;;  %v16820_v4 = vpack.c.bf16 %v13794_v38, %v13793_v37  ;;  %v13796_v51 = vld [vmem:[%s19415_s15 + $0x98] sm:$0xff] }
0x3411   :  { %v12121_v42 = vadd.f32 %v15855_v41, %v13740_v30  ;;  %v12115_v0 = vpop.f32.mrb[119].mxu1  ;;  %v12133_v27 = vmul.f32 0.25, %v19214_v39  ;;  %vm12129_vm2 = vcmp.ge.f32.partialorder %v19214_v39, 0.0 }
0x3412   :  { %v12116_v52 = vadd.f32 %v13740_v30, %v12115_v0  ;;  %v12476_v30 = vld [vmem:[%s19415_s15 + $0x20] sm:$0xff]  ;;  %v12132_v28 = vmul.f32 0.25, %v19216_v40  ;;  %vm12128_vm3 = vcmp.ge.f32.partialorder %v19216_v40, 0.0 }
0x3413   :  { %v19218_v45 = vadd.f32 %v12121_v42, %v11265_v32  ;;  %v16804_v33 = vpack.c.bf16 %v12477_v31, %v12476_v30  ;;  %v16824_v32 = vpack.c.bf16 %v13796_v51, %v13795_v43 }
0x3414   :  { %v19220_v44 = vadd.f32 %v12116_v52, %v11264_v46  ;;  %v13797_v46 = vld [vmem:[%s19415_s15 + $0xa0] sm:$0xff]  ;;  %v12136_v37 = vsel %vm12128_vm3, %v19216_v40, %v12132_v28 }
0x3415   :  { %v12135_v43 = vmul.f32 0.25, %v19218_v45 }
0x3416   :  { %vm12130_vm9 = vcmp.ge.f32.partialorder %v19220_v44, 0.0 }
0x342c   :  { %v15928_v1 = vpop.f32.mrb[120].mxu1 }
0x342d   :  { %v12346_v2 = vadd.f32 %v15928_v1, %v13764_v48  ;;  %v12340_v49 = vpop.f32.mrb[121].mxu1 }
0x342e   :  { %v12341_v50 = vadd.f32 %v13764_v48, %v12340_v49 }
0x342f   :  { %vm12360_vm12 = vcmp.ge.f32.partialorder %v12346_v2, 0.0  ;;  %v12364_v53 = vmul.f32 0.25, %v12346_v2 }
0x3430   :  { %vm12359_vm14 = vcmp.ge.f32.partialorder %v12341_v50, 0.0  ;;  %v12363_v54 = vmul.f32 0.25, %v12341_v50  ;;  %v15931_v55 = vpop.f32.mrb[122].mxu1 }
0x3431   :  { %v19225_v56 = vsel %vm12360_vm12, %v12346_v2, %v12364_v53  ;;  %v12356_v57 = vadd.f32 %v15931_v55, %v13764_v48  ;;  %v12350_v58 = vpop.f32.mrb[123].mxu1  ;;  %v13800_v55 = vld [vmem:[%s19415_s15 + $0xb8] sm:$0xff] }
0x3432   :  { %v12367_v59 = vsel %vm12359_vm14, %v12341_v50, %v12363_v54  ;;  %v12351_v62 = vadd.f32 %v13764_v48, %v12350_v58  ;;  %v13798_v48 = vld [vmem:[%s19415_s15 + $0xa8] sm:$0xff]  ;;  %v13799_v54 = vld [vmem:[%s19415_s15 + $0xb0] sm:$0xff] }
0x3433   :  { %v16772_v63 = vpack.c.bf16 %v19225_v56, %v12367_v59  ;;  %vm12362_vm15 = vcmp.ge.f32.partialorder %v12356_v57, 0.0  ;;  %v12366_v5 = vmul.f32 0.25, %v12356_v57  ;;  %v16828_v49 = vpack.c.bf16 %v13798_v48, %v13797_v46  ;;  %v13808_v58 = vld [vmem:[%s19416_s13 + $0x108] sm:$0xff] }
0x3434   :  { %vm12361_vm1 = vcmp.ge.f32.partialorder %v12351_v62, 0.0  ;;  %v12365_v7 = vmul.f32 0.25, %v12351_v62 }
0x3435   :  { %v12370_v61 = vsel %vm12362_vm15, %v12356_v57, %v12366_v5  ;;  %16773 = vmatprep.subr.bf16.mxu0 %v16772_v63  ;;  %16813 = vmatprep.subr.bf16.mxu1 %v16772_v63  ;;  %v13807_v57 = vld [vmem:[%s19416_s13 + $0x100] sm:$0xff] }
0x3436   :  { %v12369_v18 = vsel %vm12361_vm1, %v12351_v62, %v12365_v7  ;;  %16775 = vmatpush3.bf16.msra.mxu0 %v16772_v63  ;;  %16815 = vmatpush3.bf16.msra.mxu1 %v16772_v63  ;;  %v13809_v62 = vld [vmem:[%s19416_s13 + $0x110] sm:$0xff]  ;;  %v13810_v63 = vld [vmem:[%s19416_s13 + $0x118] sm:$0xff]  ;;  %v13811_v7 = vld [vmem:[%s19416_s13 + $0x120] sm:$0xff] }
0x3437   :  { %v16776_v11 = vpack.c.bf16 %v12370_v61, %v12369_v18  ;;  %v16840_v5 = vpack.c.bf16 %v13810_v63, %v13809_v62  ;;  %v16844_v60 = vpack.c.bf16 %v13812_v9, %v13811_v7 }
0x3439   :  { %16777 = vmatprep.subr.bf16.mxu0 %v16776_v11  ;;  %16817 = vmatprep.subr.bf16.mxu1 %v16776_v11 }
0x343a   :  { %16779 = vmatpush3.bf16.msra.mxu0 %v16776_v11  ;;  %16819 = vmatpush3.bf16.msra.mxu1 %v16776_v11 }
0x343b   :  { %16781 = vmatprep.subr.bf16.mxu0 %v16780_v12 }
0x343d   :  { %15941 = vmatmul.mubr.msk.f32.vlgmr.msra.gmra.mrb[146].mxu0 %vm69_vm0, %v12372_v8  ;;  %15999 = vmatmul.mubr.msk.f32.vlgmr.msra.gmra.mrb[124].mxu1 %vm69_vm0, %v13786_v10 }
0x343e   :  { %16783 = vmatpush3.bf16.msra.mxu0 %v16780_v12  ;;  %15943 = vmatprep.mubr.msk.f32.mxu0 %vm69_vm0, %v12373_v14  ;;  %v13806_v12 = vld [vmem:[%s19431_s25 + $0x7] ss:$0 sm:$0xff] }
0x343f   :  { %16785 = vmatprep.subr.bf16.mxu0 %v16784_v15  ;;  %16001 = vmatprep.mubr.msk.f32.mxu1 %vm69_vm0, %v13787_v20 }
0x3441   :  { %15944 = vmatmul.mubr.msk.f32.gmra.mrb[148].mxu0 %vm69_vm0, %v12374_v21  ;;  %16002 = vmatmul.mubr.msk.f32.gmra.mrb[126].mxu1 %vm69_vm0, %v13788_v22 }
0x3442   :  { %16787 = vmatpush3.bf16.msra.mxu0 %v16784_v15  ;;  %15962 = vmatprep.mubr.msk.f32.mxu0 %vm917_vm5, %v12367_v59  ;;  %v16836_v59 = vpack.c.bf16 %v13808_v58, %v13807_v57 }
0x3443   :  { %16789 = vmatprep.subr.bf16.mxu0 %v16788_v23 }
0x3446   :  { %16791 = vmatpush3.bf16.msra.mxu0 %v16788_v23 }
0x3447   :  { %16793 = vmatprep.subr.bf16.mxu0 %v16792_v16 }
0x344a   :  { %16795 = vmatpush3.bf16.msra.mxu0 %v16792_v16 }
0x344b   :  { %16797 = vmatprep.subr.bf16.mxu0 %v16796_v26 }
0x344d   :  { %15963 = vmatmul.mubr.msk.f32.vlgmr.msra.gmra.mrb[150].mxu0 %vm917_vm5, %v19225_v56  ;;  %v16832_v56 = vpack.c.bf16 %v13800_v55, %v13799_v54 }
0x344e   :  { %15965 = vmatprep.mubr.msk.f32.mxu0 %vm917_vm5, %v12369_v18  ;;  %16799 = vmatpush3.bf16.msra.mxu0 %v16796_v26  ;;  %v13814_v18 = vld [vmem:[%s19416_s13 + $0x138] sm:$0xff]  ;;  %v13816_v26 = vld [vmem:[%s19418_s14 + $0x3] ss:$0 sm:$0xff] }
0x344f   :  { %16801 = vmatprep.subr.bf16.mxu0 %v16800_v29 }
0x3451   :  { %15966 = vmatmul.mubr.msk.f32.gmra.mrb[152].mxu0 %vm917_vm5, %v12370_v61  ;;  %v13813_v61 = vld [vmem:[%s19416_s13 + $0x130] sm:$0xff] }
0x3452   :  { %16803 = vmatpush3.bf16.msra.mxu0 %v16800_v29  ;;  %v16848_v11 = vpack.c.bf16 %v13814_v18, %v13813_v61 }
0x3453   :  { %16805 = vmatprep.subr.bf16.mxu0 %v16804_v33 }
0x3456   :  { %16807 = vmatpush3.bf16.msra.mxu0 %v16804_v33  ;;  %v16874_v33 = vadd.f32 %v13816_v26, %v13746_v25 }
0x3457   :  { %16809 = vmatprep.subr.bf16.mxu0 %v16808_v36 }
0x345a   :  { %16811 = vmatpush3.bf16.msra.mxu0 %v16808_v36  ;;  %v12137_v36 = vsel %vm12129_vm2, %v19214_v39, %v12133_v27 }
0x345b   :  { %16821 = vmatprep.subr.bf16.mxu0 %v16820_v4 }
0x3510   :  { %v15942_v41 = vpop.f32.mrb[146].mxu0  ;;  %v16000_v42 = vpop.f32.mrb[124].mxu1 }
0x3511   :  { %v12453_v0 = vpop.f32.mrb[147].mxu0  ;;  %v12766_v52 = vpop.f32.mrb[125].mxu1 }
0x3512   :  { %15984 = vmatprep.mubr.msk.f32.mxu0 %vm917_vm5, %v12453_v0  ;;  %v12134_v0 = vmul.f32 0.25, %v19220_v44 }
0x3513   :  { %15985 = vmatmul.mubr.msk.f32.vlgmr.msra.gmra.mrb[150].mxu0 %vm917_vm5, %v15942_v41 }
0x3514   :  { %16823 = vmatpush3.bf16.msra.mxu0 %v16820_v4  ;;  %v15945_v1 = vpop.f32.mrb[148].mxu0  ;;  %v16003_v2 = vpop.f32.mrb[126].mxu1  ;;  %v12138_v54 = vsel %vm12130_vm9, %v19220_v44, %v12134_v0 }
0x3515   :  { %16825 = vmatprep.subr.bf16.mxu0 %v16824_v32  ;;  %v12463_v50 = vpop.f32.mrb[149].mxu0  ;;  %v12776_v53 = vpop.f32.mrb[127].mxu1 }
0x3516   :  { %15987 = vmatprep.mubr.msk.f32.mxu0 %vm917_vm5, %v12463_v50 }
0x3517   :  { %15988 = vmatmul.mubr.msk.f32.gmra.mrb[152].mxu0 %vm917_vm5, %v15945_v1 }
0x3518   :  { %16827 = vmatpush3.bf16.msra.mxu0 %v16824_v32  ;;  %16020 = vmatprep.mubr.msk.f32.mxu0 %vm917_vm5, %v12766_v52 }
0x3519   :  { %16829 = vmatprep.subr.bf16.mxu0 %v16828_v49 }
0x351c   :  { %16831 = vmatpush3.bf16.msra.mxu0 %v16828_v49 }
0x351d   :  { %16833 = vmatprep.subr.bf16.mxu0 %v16832_v56 }
0x3520   :  { %16835 = vmatpush3.bf16.msra.mxu0 %v16832_v56 }
0x3521   :  { %16837 = vmatprep.subr.bf16.mxu0 %v16836_v59 }
0x3523   :  { %16021 = vmatmul.mubr.msk.f32.vlgmr.msra.gmra.mrb[150].mxu0 %vm917_vm5, %v16000_v42 }
0x3524   :  { %16023 = vmatprep.mubr.msk.f32.mxu0 %vm917_vm5, %v12776_v53  ;;  %16839 = vmatpush3.bf16.msra.mxu0 %v16836_v59 }
0x3525   :  { %16841 = vmatprep.subr.bf16.mxu0 %v16840_v5 }
0x3527   :  { %16024 = vmatmul.mubr.msk.f32.gmra.mrb[152].mxu0 %vm917_vm5, %v16003_v2 }
0x3528   :  { %16843 = vmatpush3.bf16.msra.mxu0 %v16840_v5 }
0x3529   :  { %16845 = vmatprep.subr.bf16.mxu0 %v16844_v60 }
0x352c   :  { %16847 = vmatpush3.bf16.msra.mxu0 %v16844_v60 }
0x352d   :  { %16849 = vmatprep.subr.bf16.mxu0 %v16848_v11 }
0x3530   :  { %16851 = vmatpush3.bf16.msra.mxu0 %v16848_v11 }
0x35f6   :  { %v16022_v13 = vpop.f32.mrb[150].mxu0 }
0x35f7   :  { %v12904_v47 = vadd.f32 %v16022_v13, %v13806_v12  ;;  %v12872_v8 = vpop.f32.mrb[151].mxu0 }
0x35f8   :  { %v12903_v10 = vadd.f32 %v13806_v12, %v12872_v8 }
0x35f9   :  { %v12912_v14 = vmul.f32 0.25, %v12904_v47  ;;  %vm12908_vm0 = vcmp.ge.f32.partialorder %v12904_v47, 0.0 }
0x35fa   :  { %vm12907_vm8 = vcmp.ge.f32.partialorder %v12903_v10, 0.0  ;;  %v12911_v15 = vmul.f32 0.25, %v12903_v10  ;;  %v16025_v3 = vpop.f32.mrb[152].mxu0 }
0x35fb   :  { %v12906_v19 = vadd.f32 %v16025_v3, %v13806_v12  ;;  %v12882_v20 = vpop.f32.mrb[153].mxu0  ;;  %v12916_v23 = vsel %vm12908_vm0, %v12904_v47, %v12912_v14 }
0x35fc   :  { %v12905_v21 = vadd.f32 %v13806_v12, %v12882_v20  ;;  %v12915_v22 = vsel %vm12907_vm8, %v12903_v10, %v12911_v15 }
0x35fd   :  { %v12914_v24 = vmul.f32 0.25, %v12906_v19  ;;  %16042 = vmatprep.mubr.msk.f32.mxu0 %vm917_vm5, %v12915_v22  ;;  %vm12910_vm4 = vcmp.ge.f32.partialorder %v12906_v19, 0.0 }
0x35fe   :  { %vm12909_vm13 = vcmp.ge.f32.partialorder %v12905_v21, 0.0  ;;  %v12913_v17 = vmul.f32 0.25, %v12905_v21  ;;  %16043 = vmatmul.mubr.msk.f32.vlgmr.msra.gmra.mrb[142].mxu0 %vm917_vm5, %v12916_v23 }
0x35ff   :  { %v12918_v6 = vsel %vm12910_vm4, %v12906_v19, %v12914_v24 }
0x3600   :  { %v12917_v16 = vsel %vm12909_vm13, %v12905_v21, %v12913_v17 }
0x3601   :  { %16045 = vmatprep.mubr.msk.f32.mxu0 %vm917_vm5, %v12917_v16 }
0x3602   :  { %16046 = vmatmul.mubr.msk.f32.gmra.mrb[144].mxu0 %vm917_vm5, %v12918_v6  ;;  %vm12131_vm5 = vcmp.ge.f32.partialorder %v19218_v45, 0.0 }
0x3603   :  { %v12139_v49 = vsel %vm12131_vm5, %v19218_v45, %v12135_v43 }
0x36d1   :  { %v16044_v29 = vpop.f32.mrb[142].mxu0 }
0x36d2   :  { %v16868_v30 = vadd.f32 %v16044_v29, %v13746_v25  ;;  %v13014_v31 = vpop.f32.mrb[143].mxu0 }
0x36d3   :  { %v16870_v34 = vadd.f32 %v13746_v25, %v13014_v31 }
0x36d4   :  { %v16869_v35 = vadd.f32 %v16868_v30, %v13816_v26 }
0x36d5   :  { %v16871_v38 = vadd.f32 %v16870_v34, %v13816_v26  ;;  %v16047_v4 = vpop.f32.mrb[144].mxu0 }
0x36d6   :  { %vm13038_vm6 = vcmp.ge.f32.partialorder %v16869_v35, 0.0  ;;  %v13042_v51 = vmul.f32 0.25, %v16869_v35  ;;  %v16873_v41 = vadd.f32 %v16874_v33, %v16047_v4  ;;  %v13024_v42 = vpop.f32.mrb[145].mxu0 }
0x36d7   :  { %vm13037_vm7 = vcmp.ge.f32.partialorder %v16871_v38, 0.0  ;;  %v13041_v32 = vmul.f32 0.25, %v16871_v38  ;;  %v16875_v52 = vadd.f32 %v16874_v33, %v13024_v42 }
0x36d8   :  { %v13046_v39 = vsel %vm13038_vm6, %v16869_v35, %v13042_v51  ;;  %vm13040_vm10 = vcmp.ge.f32.partialorder %v16873_v41, 0.0  ;;  %v13044_v40 = vmul.f32 0.25, %v16873_v41 }
0x36d9   :  { %v13050_v46 = vadd.f32 %v13046_v39, %v12137_v36  ;;  %v13045_v48 = vsel %vm13037_vm7, %v16871_v38, %v13041_v32  ;;  %vm13039_vm11 = vcmp.ge.f32.partialorder %v16875_v52, 0.0  ;;  %v13043_v1 = vmul.f32 0.25, %v16875_v52 }
0x36da   :  { %v13049_v2 = vadd.f32 %v13045_v48, %v12136_v37  ;;  %v13048_v50 = vsel %vm13040_vm10, %v16873_v41, %v13044_v40 }
0x36db   :  { %13054 = vst [vmem:[%s19419_s19 + $0x8] sm:$0xff] %v13050_v46  ;;  %v13052_v53 = vadd.f32 %v13048_v50, %v12139_v49  ;;  %v13047_v55 = vsel %vm13039_vm11, %v16875_v52, %v13043_v1 }
0x36dc   :  { %13053 = vst [vmem:[%s19419_s19] sm:$0xff] %v13049_v2  ;;  %v13051_v56 = vadd.f32 %v13047_v55, %v12138_v54 }
0x36dd   :  { %13056 = vst [vmem:[%s19419_s19 + $0x18] sm:$0xff] %v13052_v53 }
0x36de   :  { %13055 = vst [vmem:[%s19419_s19 + $0x10] sm:$0xff] %v13051_v56 }

</bundles_post_ra>
